<compile_context>
chip_gen: v5e
topology: v5e:2x2
jax: 0.10.0
libtpu: 0.0.40
codegen_flags: <defaults>
</compile_context>

<pallas_src>
import jax
import jax.numpy as jnp
from jax import lax
from jax.experimental import pallas as pl
from jax.experimental.pallas import tpu as pltpu


def _round_up(x, m):
    return ((x + m - 1) // m) * m


# ------------------------------- Pallas kernel ------------------------------ #

def _make_downconv_kernel(pooling: bool):
    """Fused conv3x3+ReLU -> conv3x3+ReLU -> (optional) 2x2 maxpool kernel."""

    def kernel(x_ref, w1_ref, b1_ref, w2_ref, b2_ref, *refs):
        if pooling:
            bp_ref, pool_ref, xpad_ref, ypad_ref = refs
        else:
            bp_ref, xpad_ref, ypad_ref = refs
            pool_ref = None

        H, W, C1p = bp_ref.shape[1], bp_ref.shape[2], bp_ref.shape[3]

        def zero_halo(pad_ref):
            # Zero only the 1-pixel border strips (the interior is fully
            # overwritten every grid step) -> no full-buffer memset.
            Hh, Ww, Cc = pad_ref.shape
            z_row = jnp.zeros((1, Ww, Cc), pad_ref.dtype)
            z_col = jnp.zeros((Hh, 1, Cc), pad_ref.dtype)
            pad_ref[0:1, :, :] = z_row
            pad_ref[Hh - 1:Hh, :, :] = z_row
            pad_ref[:, 0:1, :] = z_col
            pad_ref[:, Ww - 1:Ww, :] = z_col

        def conv3x3_relu(src_ref, w_ref, b_ref):
            # 9 accumulated K=Cin matmuls from shifted views of the padded
            # scratch (no materialized im2col).  bf16 operands, f32 accum.
            cin = src_ref.shape[-1]
            acc = None
            for kh in range(3):
                for kw in range(3):
                    patch = src_ref[kh:kh + H, kw:kw + W, :]        # (H, W, cin) bf16
                    patch = patch.reshape(H * W, cin)
                    part = jnp.dot(patch, w_ref[kh, kw],
                                   preferred_element_type=jnp.float32)
                    acc = part if acc is None else acc + part
            return jnp.maximum(acc + b_ref[...], 0.0)               # (H*W, C1p) f32

        # ---- conv1: zero-halo the scratch, copy the (bf16-cast) input tile ----
        zero_halo(xpad_ref)
        xpad_ref[1:H + 1, 1:W + 1, :] = x_ref[0].astype(xpad_ref.dtype)
        y1 = conv3x3_relu(xpad_ref, w1_ref, b1_ref)                 # (H*W, C1p)

        # ---- conv2: intermediate activation never leaves VMEM ----
        zero_halo(ypad_ref)
        ypad_ref[1:H + 1, 1:W + 1, :] = y1.reshape(H, W, C1p).astype(ypad_ref.dtype)
        y2 = conv3x3_relu(ypad_ref, w2_ref, b2_ref)                 # (H*W, C1p)
        y2hw = y2.reshape(H, W, C1p)

        bp_ref[...] = y2hw.reshape(1, H, W, C1p).astype(bp_ref.dtype)

        # ---- fused 2x2 max-pool epilogue, computed from the y2 VALUE ----
        if pooling:
            Hp, Wp = pool_ref.shape[1], pool_ref.shape[2]
            yc = y2hw[:2 * Hp, :2 * Wp, :]                          # floor odd H/W
            # H-direction: split the outer dim (layout-free) and max the pair.
            yr = yc.reshape(Hp, 2, 2 * Wp, C1p)
            ph = jnp.maximum(yr[:, 0], yr[:, 1])                    # (Hp, 2*Wp, C1p)
            # W-direction: small sublane split + reduce over the pair axis.
            pw = ph.reshape(Hp, Wp, 2, C1p)
            pooled = jnp.max(pw, axis=2)                            # (Hp, Wp, C1p)
            pool_ref[...] = pooled.reshape(1, Hp, Wp, C1p).astype(pool_ref.dtype)

    return kernel


# ------------------------------ Pallas wrapper ------------------------------ #

def _pack_conv_weight(w_oihw, cin_pad, cout_pad):
    """OIHW (Cout, Cin, 3, 3) -> bf16 (3, 3, cin_pad, cout_pad), zero padded.

    Per-tap layout: w[kh, kw] is the (Cin, Cout) matrix used by the kernel."""
    cout, cin = w_oihw.shape[0], w_oihw.shape[1]
    w = jnp.transpose(w_oihw, (2, 3, 1, 0))                          # (3,3,Cin,Cout)
    w = jnp.pad(w, ((0, 0), (0, 0), (0, cin_pad - cin), (0, cout_pad - cout)))
    return w.astype(jnp.bfloat16)


def downconv_fused(x_nhwc, w1_oihw, b1, w2_oihw, b2, pooling=True):
    """Fused conv3x3+ReLU -> conv3x3+ReLU -> (optional) 2x2 maxpool.

    x: (N, H, W, Cin), weights OIHW.  Returns (pooled_or_same, before_pool) NHWC."""
    N, H, W, Cin = x_nhwc.shape
    C1 = w1_oihw.shape[0]
    C1p = _round_up(C1, 128)                    # lane-dense output channels
    Hp, Wp = H // 2, W // 2

    w1p = _pack_conv_weight(w1_oihw, Cin, C1p)                      # (3,3,Cin,C1p) bf16
    w2p = _pack_conv_weight(w2_oihw, C1p, C1p)                      # (3,3,C1p,C1p) bf16
    b1p = jnp.zeros((1, C1p), jnp.float32).at[0, :C1].set(b1.astype(jnp.float32))
    b2p = jnp.zeros((1, C1p), jnp.float32).at[0, :C1].set(b2.astype(jnp.float32))

    out_shape = [jax.ShapeDtypeStruct((N, H, W, C1p), x_nhwc.dtype)]
    out_specs = [pl.BlockSpec((1, H, W, C1p), lambda b: (b, 0, 0, 0))]
    if pooling:
        out_shape.append(jax.ShapeDtypeStruct((N, Hp, Wp, C1p), x_nhwc.dtype))
        out_specs.append(pl.BlockSpec((1, Hp, Wp, C1p), lambda b: (b, 0, 0, 0)))

    # ---- derive vmem limit / cost estimate from the actual footprint ----
    blk = H * W * Cin * 4 + H * W * C1p * 4 + (Hp * Wp * C1p * 4 if pooling else 0)
    wgt = (9 * Cin * C1p + 9 * C1p * C1p) * 2 + 2 * C1p * 4
    scr = ((H + 2) * (W + 2) * Cin + (H + 2) * (W + 2) * C1p) * 2
    acc = 2 * H * W * C1p * 4                                        # accumulators/temps
    vmem_limit = int(min(max(2 * (blk + wgt) + scr + acc + (8 << 20), 32 << 20),
                         112 << 20))

    flops = 2 * N * H * W * 9 * (Cin * C1p + C1p * C1p)
    bytes_accessed = (N * H * W * Cin * 4 + wgt
                      + N * H * W * C1p * 4
                      + (N * Hp * Wp * C1p * 4 if pooling else 0))

    outs = pl.pallas_call(
        _make_downconv_kernel(pooling),
        out_shape=tuple(out_shape),
        grid_spec=pltpu.PrefetchScalarGridSpec(
            num_scalar_prefetch=0,
            grid=(N,),
            in_specs=[
                pl.BlockSpec((1, H, W, Cin), lambda b: (b, 0, 0, 0)),    # x (unpadded)
                pl.BlockSpec((3, 3, Cin, C1p), lambda b: (0, 0, 0, 0)),  # w1 packed
                pl.BlockSpec((1, C1p), lambda b: (0, 0)),                # b1
                pl.BlockSpec((3, 3, C1p, C1p), lambda b: (0, 0, 0, 0)),  # w2 packed
                pl.BlockSpec((1, C1p), lambda b: (0, 0)),                # b2
            ],
            out_specs=out_specs,
            scratch_shapes=[
                pltpu.VMEM((H + 2, W + 2, Cin), jnp.bfloat16),   # padded input (bf16)
                pltpu.VMEM((H + 2, W + 2, C1p), jnp.bfloat16),   # padded conv1 out (bf16)
            ],
        ),
        compiler_params=pltpu.CompilerParams(
            dimension_semantics=("parallel",),
            vmem_limit_bytes=vmem_limit,
        ),
        cost_estimate=pl.CostEstimate(
            flops=flops, transcendentals=0, bytes_accessed=bytes_accessed),
    )(x_nhwc, w1p, b1p, w2p, b2p)

    # slice off the lane padding in the wrapper
    before_pool = outs[0][..., :C1]
    pooled = outs[1][..., :C1] if pooling else before_pool
    return pooled, before_pool


# ------------------------ DHP hypernetwork (param setup) -------------------- #

def dhp_calc_weight(p, z_in, k=3):
    """DHP hypernetwork: W = reshape( w2 . (z_out z_in^T * w1 + b1) + b2 ) -> OIHW."""
    latent_matrix = p["latent_vector"][:, None] * z_in[None, :]            # (n, c)
    embed = latent_matrix[:, :, None] * p["weight1"] + p["bias1"]          # (n, c, m)
    w = jnp.einsum("nckm,ncm->nck", p["weight2"], embed) + p["bias2"]      # (n, c, k*k)
    n, c = w.shape[0], w.shape[1]
    return w.reshape(n, c, k, k)                                           # OIHW


def init_conv_dhp_params(key, in_channels, out_channels, k=3, embedding_dim=8):
    ks = jax.random.split(key, 6)
    s = 0.1
    return dict(
        latent_vector=jax.random.normal(ks[0], (out_channels,), jnp.float32),
        weight1=s * jax.random.normal(ks[1], (out_channels, in_channels, embedding_dim), jnp.float32),
        bias1=s * jax.random.normal(ks[2], (out_channels, in_channels, embedding_dim), jnp.float32),
        weight2=s * jax.random.normal(ks[3], (out_channels, in_channels, k * k, embedding_dim), jnp.float32),
        bias2=s * jax.random.normal(ks[4], (out_channels, in_channels, k * k), jnp.float32),
        bias=s * jax.random.normal(ks[5], (out_channels,), jnp.float32),
    )


def init_downconv_dhp_params(key, in_channels, out_channels):
    k1, k2 = jax.random.split(key)
    return dict(
        conv1=init_conv_dhp_params(k1, in_channels, out_channels),
        conv2=init_conv_dhp_params(k2, out_channels, out_channels),
    )


# ------------------------------ Module forward ------------------------------ #

def downconv_dhp_forward(params, x_nchw, latent_vector_in, pooling=True):
    """Non-finetuning forward: input is the pair (x, latent_vector)."""
    x = jnp.transpose(x_nchw, (0, 2, 3, 1))                                # NCHW -> NHWC

    # DHP-generated weights (tiny; parameter setup stays in plain JAX)
    w1_oihw = dhp_calc_weight(params["conv1"], latent_vector_in)
    w2_oihw = dhp_calc_weight(params["conv2"], params["conv1"]["latent_vector"])

    pooled, before_pool = downconv_fused(
        x, w1_oihw, params["conv1"]["bias"], w2_oihw, params["conv2"]["bias"],
        pooling=pooling)

    # back to PyTorch NCHW convention; (x, before_pool) like the nn.Module
    return (jnp.transpose(pooled, (0, 3, 1, 2)),
            jnp.transpose(before_pool, (0, 3, 1, 2)))


# --------------------------- plain-JAX reference ---------------------------- #

def reference_forward(params, x_nchw, z_in, pooling=True):
    w1 = dhp_calc_weight(params["conv1"], z_in)
    w2 = dhp_calc_weight(params["conv2"], params["conv1"]["latent_vector"])

    def conv(x, w, b):
        # Same numerics as the kernel: bf16 operands, f32 accumulation.
        y = lax.conv_general_dilated(
            x.astype(jnp.bfloat16), w.astype(jnp.bfloat16),
            window_strides=(1, 1), padding="SAME",
            dimension_numbers=("NCHW", "OIHW", "NCHW"),
            preferred_element_type=jnp.float32)
        return jax.nn.relu(y + b[None, :, None, None].astype(jnp.float32))

    y = conv(x_nchw, w1, params["conv1"]["bias"])
    y = conv(y, w2, params["conv2"]["bias"])
    bp = y
    if pooling:
        y = lax.reduce_window(y, -jnp.inf, lax.max,
                              (1, 1, 2, 2), (1, 1, 2, 2), "VALID")
    return y, bp


if __name__ == "__main__":
    key = jax.random.PRNGKey(0)
    k_param, k_x, k_z = jax.random.split(key, 3)

    N, Cin, Cout, H, W = 2, 4, 8, 16, 16
    params = init_downconv_dhp_params(k_param, Cin, Cout)
    x = jax.random.normal(k_x, (N, Cin, H, W), jnp.float32)
    latent_in = jax.random.normal(k_z, (Cin,), jnp.float32)

    pooled, before_pool = downconv_dhp_forward(params, x, latent_in, pooling=True)
    jax.block_until_ready(pooled)
    jax.block_until_ready(before_pool)

    assert pooled.shape == (N, Cout, H // 2, W // 2)
    assert before_pool.shape == (N, Cout, H, W)

    # numerical check against a plain-JAX reference using the same bf16
    # operand / f32 accumulation numerics
    ref_pooled, ref_bp = reference_forward(params, x, latent_in, pooling=True)
    assert jnp.allclose(before_pool, ref_bp, atol=1e-2, rtol=1e-2), "before_pool mismatch"
    assert jnp.allclose(pooled, ref_pooled, atol=1e-2, rtol=1e-2), "pooled mismatch"

    print("KERNEL_OK")
</pallas_src>

<mosaic_0001>
module attributes {stable_mosaic.version = 11 : i64} {
  func.func @kernel(%arg0: i32, %arg1: memref<1x16x16x4xf32, #tpu.memory_space<vmem>>, %arg2: memref<3x3x4x128xbf16, #tpu.memory_space<vmem>>, %arg3: memref<1x128xf32, #tpu.memory_space<vmem>>, %arg4: memref<3x3x128x128xbf16, #tpu.memory_space<vmem>>, %arg5: memref<1x128xf32, #tpu.memory_space<vmem>>, %arg6: memref<1x16x16x128xf32, #tpu.memory_space<vmem>>, %arg7: memref<1x8x8x128xf32, #tpu.memory_space<vmem>>, %arg8: memref<18x18x4xbf16, #tpu.memory_space<vmem>>, %arg9: memref<18x18x128xbf16, #tpu.memory_space<vmem>>) attributes {dimension_semantics = [#tpu.dimension_semantics<parallel>], iteration_bounds = array<i64: 2>, scalar_prefetch = 0 : i64, scratch_operands = 2 : i64, tpu.core_type = #tpu.core_type<tc>, window_params = [{transform_indices = @transform_0, window_bounds = array<i64: 1, 16, 16, 4>}, {pipeline_mode = #tpu.pipeline_mode<synchronous>, transform_indices = @transform_1, window_bounds = array<i64: 3, 3, 4, 128>}, {pipeline_mode = #tpu.pipeline_mode<synchronous>, transform_indices = @transform_2, window_bounds = array<i64: 1, 128>}, {pipeline_mode = #tpu.pipeline_mode<synchronous>, transform_indices = @transform_3, window_bounds = array<i64: 3, 3, 128, 128>}, {pipeline_mode = #tpu.pipeline_mode<synchronous>, transform_indices = @transform_4, window_bounds = array<i64: 1, 128>}, {transform_indices = @transform_5, window_bounds = array<i64: 1, 16, 16, 128>}, {transform_indices = @transform_6, window_bounds = array<i64: 1, 8, 8, 128>}]} {
    %cst = arith.constant 0.000000e+00 : bf16
    %0 = vector.broadcast %cst : bf16 to vector<1x18x4xbf16>
    %cst_0 = arith.constant 0.000000e+00 : bf16
    %1 = vector.broadcast %cst_0 : bf16 to vector<18x1x4xbf16>
    %c0 = arith.constant 0 : index
    %c0_1 = arith.constant 0 : index
    %c0_2 = arith.constant 0 : index
    %2 = vector.load %arg8[%c0, %c0_1, %c0_2] : memref<18x18x4xbf16, #tpu.memory_space<vmem>>, vector<1x18x4xbf16>
    tpu.vector_store %arg8[%c0, %c0_1, %c0_2], %0 {strides = array<i32>} : memref<18x18x4xbf16, #tpu.memory_space<vmem>>, vector<1x18x4xbf16>,
    %c17 = arith.constant 17 : index
    %c0_3 = arith.constant 0 : index
    %c0_4 = arith.constant 0 : index
    %3 = vector.load %arg8[%c17, %c0_3, %c0_4] : memref<18x18x4xbf16, #tpu.memory_space<vmem>>, vector<1x18x4xbf16>
    tpu.vector_store %arg8[%c17, %c0_3, %c0_4], %0 {strides = array<i32>} : memref<18x18x4xbf16, #tpu.memory_space<vmem>>, vector<1x18x4xbf16>,
    %c0_5 = arith.constant 0 : index
    %c0_6 = arith.constant 0 : index
    %c0_7 = arith.constant 0 : index
    %4 = vector.load %arg8[%c0_5, %c0_6, %c0_7] : memref<18x18x4xbf16, #tpu.memory_space<vmem>>, vector<18x1x4xbf16>
    tpu.vector_store %arg8[%c0_5, %c0_6, %c0_7], %1 {strides = array<i32>} : memref<18x18x4xbf16, #tpu.memory_space<vmem>>, vector<18x1x4xbf16>,
    %c0_8 = arith.constant 0 : index
    %c17_9 = arith.constant 17 : index
    %c0_10 = arith.constant 0 : index
    %5 = vector.load %arg8[%c0_8, %c17_9, %c0_10] : memref<18x18x4xbf16, #tpu.memory_space<vmem>>, vector<18x1x4xbf16>
    tpu.vector_store %arg8[%c0_8, %c17_9, %c0_10], %1 {strides = array<i32>} : memref<18x18x4xbf16, #tpu.memory_space<vmem>>, vector<18x1x4xbf16>,
    %c0_11 = arith.constant 0 : index
    %c0_12 = arith.constant 0 : index
    %c0_13 = arith.constant 0 : index
    %c0_14 = arith.constant 0 : index
    %6 = vector.load %arg1[%c0_11, %c0_12, %c0_13, %c0_14] : memref<1x16x16x4xf32, #tpu.memory_space<vmem>>, vector<1x16x16x4xf32>
    %7 = vector.shape_cast %6 : vector<1x16x16x4xf32> to vector<16x16x4xf32>
    %8 = arith.truncf %7 : vector<16x16x4xf32> to vector<16x16x4xbf16>
    %c1 = arith.constant 1 : index
    %c1_15 = arith.constant 1 : index
    %c0_16 = arith.constant 0 : index
    %9 = vector.load %arg8[%c1, %c1_15, %c0_16] : memref<18x18x4xbf16, #tpu.memory_space<vmem>>, vector<16x16x4xbf16>
    tpu.vector_store %arg8[%c1, %c1_15, %c0_16], %8 {strides = array<i32>} : memref<18x18x4xbf16, #tpu.memory_space<vmem>>, vector<16x16x4xbf16>,
    %c0_17 = arith.constant 0 : index
    %c0_18 = arith.constant 0 : index
    %c0_19 = arith.constant 0 : index
    %10 = vector.load %arg8[%c0_17, %c0_18, %c0_19] : memref<18x18x4xbf16, #tpu.memory_space<vmem>>, vector<16x16x4xbf16>
    %11 = vector.shape_cast %10 : vector<16x16x4xbf16> to vector<256x4xbf16>
    %c0_20 = arith.constant 0 : index
    %c0_21 = arith.constant 0 : index
    %c0_22 = arith.constant 0 : index
    %c0_23 = arith.constant 0 : index
    %12 = vector.load %arg2[%c0_20, %c0_21, %c0_22, %c0_23] : memref<3x3x4x128xbf16, #tpu.memory_space<vmem>>, vector<1x1x4x128xbf16>
    %13 = vector.shape_cast %12 : vector<1x1x4x128xbf16> to vector<4x128xbf16>
    %cst_24 = arith.constant dense<0.000000e+00> : vector<256x128xf32>
    %14 = tpu.matmul %11, %13, %cst_24 {dimension_numbers = #tpu.dot_dimension_numbers<[1], [0], [0], [1], [0, 0, 1, 1], [], []>} : vector<256x4xbf16>, vector<4x128xbf16>, vector<256x128xf32> -> vector<256x128xf32>
    %c0_25 = arith.constant 0 : index
    %c1_26 = arith.constant 1 : index
    %c0_27 = arith.constant 0 : index
    %15 = vector.load %arg8[%c0_25, %c1_26, %c0_27] : memref<18x18x4xbf16, #tpu.memory_space<vmem>>, vector<16x16x4xbf16>
    %16 = vector.shape_cast %15 : vector<16x16x4xbf16> to vector<256x4xbf16>
    %c0_28 = arith.constant 0 : index
    %c1_29 = arith.constant 1 : index
    %c0_30 = arith.constant 0 : index
    %c0_31 = arith.constant 0 : index
    %17 = vector.load %arg2[%c0_28, %c1_29, %c0_30, %c0_31] : memref<3x3x4x128xbf16, #tpu.memory_space<vmem>>, vector<1x1x4x128xbf16>
    %18 = vector.shape_cast %17 : vector<1x1x4x128xbf16> to vector<4x128xbf16>
    %cst_32 = arith.constant dense<0.000000e+00> : vector<256x128xf32>
    %19 = tpu.matmul %16, %18, %cst_32 {dimension_numbers = #tpu.dot_dimension_numbers<[1], [0], [0], [1], [0, 0, 1, 1], [], []>} : vector<256x4xbf16>, vector<4x128xbf16>, vector<256x128xf32> -> vector<256x128xf32>
    %20 = arith.addf %14, %19 : vector<256x128xf32>
    %c0_33 = arith.constant 0 : index
    %c2 = arith.constant 2 : index
    %c0_34 = arith.constant 0 : index
    %21 = vector.load %arg8[%c0_33, %c2, %c0_34] : memref<18x18x4xbf16, #tpu.memory_space<vmem>>, vector<16x16x4xbf16>
    %22 = vector.shape_cast %21 : vector<16x16x4xbf16> to vector<256x4xbf16>
    %c0_35 = arith.constant 0 : index
    %c2_36 = arith.constant 2 : index
    %c0_37 = arith.constant 0 : index
    %c0_38 = arith.constant 0 : index
    %23 = vector.load %arg2[%c0_35, %c2_36, %c0_37, %c0_38] : memref<3x3x4x128xbf16, #tpu.memory_space<vmem>>, vector<1x1x4x128xbf16>
    %24 = vector.shape_cast %23 : vector<1x1x4x128xbf16> to vector<4x128xbf16>
    %cst_39 = arith.constant dense<0.000000e+00> : vector<256x128xf32>
    %25 = tpu.matmul %22, %24, %cst_39 {dimension_numbers = #tpu.dot_dimension_numbers<[1], [0], [0], [1], [0, 0, 1, 1], [], []>} : vector<256x4xbf16>, vector<4x128xbf16>, vector<256x128xf32> -> vector<256x128xf32>
    %26 = arith.addf %20, %25 : vector<256x128xf32>
    %c1_40 = arith.constant 1 : index
    %c0_41 = arith.constant 0 : index
    %c0_42 = arith.constant 0 : index
    %27 = vector.load %arg8[%c1_40, %c0_41, %c0_42] : memref<18x18x4xbf16, #tpu.memory_space<vmem>>, vector<16x16x4xbf16>
    %28 = vector.shape_cast %27 : vector<16x16x4xbf16> to vector<256x4xbf16>
    %c1_43 = arith.constant 1 : index
    %c0_44 = arith.constant 0 : index
    %c0_45 = arith.constant 0 : index
    %c0_46 = arith.constant 0 : index
    %29 = vector.load %arg2[%c1_43, %c0_44, %c0_45, %c0_46] : memref<3x3x4x128xbf16, #tpu.memory_space<vmem>>, vector<1x1x4x128xbf16>
    %30 = vector.shape_cast %29 : vector<1x1x4x128xbf16> to vector<4x128xbf16>
    %cst_47 = arith.constant dense<0.000000e+00> : vector<256x128xf32>
    %31 = tpu.matmul %28, %30, %cst_47 {dimension_numbers = #tpu.dot_dimension_numbers<[1], [0], [0], [1], [0, 0, 1, 1], [], []>} : vector<256x4xbf16>, vector<4x128xbf16>, vector<256x128xf32> -> vector<256x128xf32>
    %32 = arith.addf %26, %31 : vector<256x128xf32>
    %c1_48 = arith.constant 1 : index
    %c1_49 = arith.constant 1 : index
    %c0_50 = arith.constant 0 : index
    %33 = vector.load %arg8[%c1_48, %c1_49, %c0_50] : memref<18x18x4xbf16, #tpu.memory_space<vmem>>, vector<16x16x4xbf16>
    %34 = vector.shape_cast %33 : vector<16x16x4xbf16> to vector<256x4xbf16>
    %c1_51 = arith.constant 1 : index
    %c1_52 = arith.constant 1 : index
    %c0_53 = arith.constant 0 : index
    %c0_54 = arith.constant 0 : index
    %35 = vector.load %arg2[%c1_51, %c1_52, %c0_53, %c0_54] : memref<3x3x4x128xbf16, #tpu.memory_space<vmem>>, vector<1x1x4x128xbf16>
    %36 = vector.shape_cast %35 : vector<1x1x4x128xbf16> to vector<4x128xbf16>
    %cst_55 = arith.constant dense<0.000000e+00> : vector<256x128xf32>
    %37 = tpu.matmul %34, %36, %cst_55 {dimension_numbers = #tpu.dot_dimension_numbers<[1], [0], [0], [1], [0, 0, 1, 1], [], []>} : vector<256x4xbf16>, vector<4x128xbf16>, vector<256x128xf32> -> vector<256x128xf32>
    %38 = arith.addf %32, %37 : vector<256x128xf32>
    %c1_56 = arith.constant 1 : index
    %c2_57 = arith.constant 2 : index
    %c0_58 = arith.constant 0 : index
    %39 = vector.load %arg8[%c1_56, %c2_57, %c0_58] : memref<18x18x4xbf16, #tpu.memory_space<vmem>>, vector<16x16x4xbf16>
    %40 = vector.shape_cast %39 : vector<16x16x4xbf16> to vector<256x4xbf16>
    %c1_59 = arith.constant 1 : index
    %c2_60 = arith.constant 2 : index
    %c0_61 = arith.constant 0 : index
    %c0_62 = arith.constant 0 : index
    %41 = vector.load %arg2[%c1_59, %c2_60, %c0_61, %c0_62] : memref<3x3x4x128xbf16, #tpu.memory_space<vmem>>, vector<1x1x4x128xbf16>
    %42 = vector.shape_cast %41 : vector<1x1x4x128xbf16> to vector<4x128xbf16>
    %cst_63 = arith.constant dense<0.000000e+00> : vector<256x128xf32>
    %43 = tpu.matmul %40, %42, %cst_63 {dimension_numbers = #tpu.dot_dimension_numbers<[1], [0], [0], [1], [0, 0, 1, 1], [], []>} : vector<256x4xbf16>, vector<4x128xbf16>, vector<256x128xf32> -> vector<256x128xf32>
    %44 = arith.addf %38, %43 : vector<256x128xf32>
    %c2_64 = arith.constant 2 : index
    %c0_65 = arith.constant 0 : index
    %c0_66 = arith.constant 0 : index
    %45 = vector.load %arg8[%c2_64, %c0_65, %c0_66] : memref<18x18x4xbf16, #tpu.memory_space<vmem>>, vector<16x16x4xbf16>
    %46 = vector.shape_cast %45 : vector<16x16x4xbf16> to vector<256x4xbf16>
    %c2_67 = arith.constant 2 : index
    %c0_68 = arith.constant 0 : index
    %c0_69 = arith.constant 0 : index
    %c0_70 = arith.constant 0 : index
    %47 = vector.load %arg2[%c2_67, %c0_68, %c0_69, %c0_70] : memref<3x3x4x128xbf16, #tpu.memory_space<vmem>>, vector<1x1x4x128xbf16>
    %48 = vector.shape_cast %47 : vector<1x1x4x128xbf16> to vector<4x128xbf16>
    %cst_71 = arith.constant dense<0.000000e+00> : vector<256x128xf32>
    %49 = tpu.matmul %46, %48, %cst_71 {dimension_numbers = #tpu.dot_dimension_numbers<[1], [0], [0], [1], [0, 0, 1, 1], [], []>} : vector<256x4xbf16>, vector<4x128xbf16>, vector<256x128xf32> -> vector<256x128xf32>
    %50 = arith.addf %44, %49 : vector<256x128xf32>
    %c2_72 = arith.constant 2 : index
    %c1_73 = arith.constant 1 : index
    %c0_74 = arith.constant 0 : index
    %51 = vector.load %arg8[%c2_72, %c1_73, %c0_74] : memref<18x18x4xbf16, #tpu.memory_space<vmem>>, vector<16x16x4xbf16>
    %52 = vector.shape_cast %51 : vector<16x16x4xbf16> to vector<256x4xbf16>
    %c2_75 = arith.constant 2 : index
    %c1_76 = arith.constant 1 : index
    %c0_77 = arith.constant 0 : index
    %c0_78 = arith.constant 0 : index
    %53 = vector.load %arg2[%c2_75, %c1_76, %c0_77, %c0_78] : memref<3x3x4x128xbf16, #tpu.memory_space<vmem>>, vector<1x1x4x128xbf16>
    %54 = vector.shape_cast %53 : vector<1x1x4x128xbf16> to vector<4x128xbf16>
    %cst_79 = arith.constant dense<0.000000e+00> : vector<256x128xf32>
    %55 = tpu.matmul %52, %54, %cst_79 {dimension_numbers = #tpu.dot_dimension_numbers<[1], [0], [0], [1], [0, 0, 1, 1], [], []>} : vector<256x4xbf16>, vector<4x128xbf16>, vector<256x128xf32> -> vector<256x128xf32>
    %56 = arith.addf %50, %55 : vector<256x128xf32>
    %c2_80 = arith.constant 2 : index
    %c2_81 = arith.constant 2 : index
    %c0_82 = arith.constant 0 : index
    %57 = vector.load %arg8[%c2_80, %c2_81, %c0_82] : memref<18x18x4xbf16, #tpu.memory_space<vmem>>, vector<16x16x4xbf16>
    %58 = vector.shape_cast %57 : vector<16x16x4xbf16> to vector<256x4xbf16>
    %c2_83 = arith.constant 2 : index
    %c2_84 = arith.constant 2 : index
    %c0_85 = arith.constant 0 : index
    %c0_86 = arith.constant 0 : index
    %59 = vector.load %arg2[%c2_83, %c2_84, %c0_85, %c0_86] : memref<3x3x4x128xbf16, #tpu.memory_space<vmem>>, vector<1x1x4x128xbf16>
    %60 = vector.shape_cast %59 : vector<1x1x4x128xbf16> to vector<4x128xbf16>
    %cst_87 = arith.constant dense<0.000000e+00> : vector<256x128xf32>
    %61 = tpu.matmul %58, %60, %cst_87 {dimension_numbers = #tpu.dot_dimension_numbers<[1], [0], [0], [1], [0, 0, 1, 1], [], []>} : vector<256x4xbf16>, vector<4x128xbf16>, vector<256x128xf32> -> vector<256x128xf32>
    %62 = arith.addf %56, %61 : vector<256x128xf32>
    %c0_88 = arith.constant 0 : index
    %c0_89 = arith.constant 0 : index
    %63 = vector.load %arg3[%c0_88, %c0_89] : memref<1x128xf32, #tpu.memory_space<vmem>>, vector<1x128xf32>
    %64 = vector.broadcast %63 : vector<1x128xf32> to vector<256x128xf32>
    %65 = arith.addf %62, %64 : vector<256x128xf32>
    %cst_90 = arith.constant 0.000000e+00 : f32
    %66 = vector.broadcast %cst_90 : f32 to vector<256x128xf32>
    %67 = arith.maximumf %65, %66 : vector<256x128xf32>
    %cst_91 = arith.constant 0.000000e+00 : bf16
    %68 = vector.broadcast %cst_91 : bf16 to vector<1x18x128xbf16>
    %cst_92 = arith.constant 0.000000e+00 : bf16
    %69 = vector.broadcast %cst_92 : bf16 to vector<18x1x128xbf16>
    %c0_93 = arith.constant 0 : index
    %c0_94 = arith.constant 0 : index
    %c0_95 = arith.constant 0 : index
    %70 = vector.load %arg9[%c0_93, %c0_94, %c0_95] : memref<18x18x128xbf16, #tpu.memory_space<vmem>>, vector<1x18x128xbf16>
    tpu.vector_store %arg9[%c0_93, %c0_94, %c0_95], %68 {strides = array<i32>} : memref<18x18x128xbf16, #tpu.memory_space<vmem>>, vector<1x18x128xbf16>,
    %c17_96 = arith.constant 17 : index
    %c0_97 = arith.constant 0 : index
    %c0_98 = arith.constant 0 : index
    %71 = vector.load %arg9[%c17_96, %c0_97, %c0_98] : memref<18x18x128xbf16, #tpu.memory_space<vmem>>, vector<1x18x128xbf16>
    tpu.vector_store %arg9[%c17_96, %c0_97, %c0_98], %68 {strides = array<i32>} : memref<18x18x128xbf16, #tpu.memory_space<vmem>>, vector<1x18x128xbf16>,
    %c0_99 = arith.constant 0 : index
    %c0_100 = arith.constant 0 : index
    %c0_101 = arith.constant 0 : index
    %72 = vector.load %arg9[%c0_99, %c0_100, %c0_101] : memref<18x18x128xbf16, #tpu.memory_space<vmem>>, vector<18x1x128xbf16>
    tpu.vector_store %arg9[%c0_99, %c0_100, %c0_101], %69 {strides = array<i32>} : memref<18x18x128xbf16, #tpu.memory_space<vmem>>, vector<18x1x128xbf16>,
    %c0_102 = arith.constant 0 : index
    %c17_103 = arith.constant 17 : index
    %c0_104 = arith.constant 0 : index
    %73 = vector.load %arg9[%c0_102, %c17_103, %c0_104] : memref<18x18x128xbf16, #tpu.memory_space<vmem>>, vector<18x1x128xbf16>
    tpu.vector_store %arg9[%c0_102, %c17_103, %c0_104], %69 {strides = array<i32>} : memref<18x18x128xbf16, #tpu.memory_space<vmem>>, vector<18x1x128xbf16>,
    %74 = vector.shape_cast %67 : vector<256x128xf32> to vector<16x16x128xf32>
    %75 = arith.truncf %74 : vector<16x16x128xf32> to vector<16x16x128xbf16>
    %c1_105 = arith.constant 1 : index
    %c1_106 = arith.constant 1 : index
    %c0_107 = arith.constant 0 : index
    %76 = vector.load %arg9[%c1_105, %c1_106, %c0_107] : memref<18x18x128xbf16, #tpu.memory_space<vmem>>, vector<16x16x128xbf16>
    tpu.vector_store %arg9[%c1_105, %c1_106, %c0_107], %75 {strides = array<i32>} : memref<18x18x128xbf16, #tpu.memory_space<vmem>>, vector<16x16x128xbf16>,
    %c0_108 = arith.constant 0 : index
    %c0_109 = arith.constant 0 : index
    %c0_110 = arith.constant 0 : index
    %77 = vector.load %arg9[%c0_108, %c0_109, %c0_110] : memref<18x18x128xbf16, #tpu.memory_space<vmem>>, vector<16x16x128xbf16>
    %78 = vector.shape_cast %77 : vector<16x16x128xbf16> to vector<256x128xbf16>
    %c0_111 = arith.constant 0 : index
    %c0_112 = arith.constant 0 : index
    %c0_113 = arith.constant 0 : index
    %c0_114 = arith.constant 0 : index
    %79 = vector.load %arg4[%c0_111, %c0_112, %c0_113, %c0_114] : memref<3x3x128x128xbf16, #tpu.memory_space<vmem>>, vector<1x1x128x128xbf16>
    %80 = vector.shape_cast %79 : vector<1x1x128x128xbf16> to vector<128x128xbf16>
    %cst_115 = arith.constant dense<0.000000e+00> : vector<256x128xf32>
    %81 = tpu.matmul %78, %80, %cst_115 {dimension_numbers = #tpu.dot_dimension_numbers<[1], [0], [0], [1], [0, 0, 1, 1], [], []>} : vector<256x128xbf16>, vector<128x128xbf16>, vector<256x128xf32> -> vector<256x128xf32>
    %c0_116 = arith.constant 0 : index
    %c1_117 = arith.constant 1 : index
    %c0_118 = arith.constant 0 : index
    %82 = vector.load %arg9[%c0_116, %c1_117, %c0_118] : memref<18x18x128xbf16, #tpu.memory_space<vmem>>, vector<16x16x128xbf16>
    %83 = vector.shape_cast %82 : vector<16x16x128xbf16> to vector<256x128xbf16>
    %c0_119 = arith.constant 0 : index
    %c1_120 = arith.constant 1 : index
    %c0_121 = arith.constant 0 : index
    %c0_122 = arith.constant 0 : index
    %84 = vector.load %arg4[%c0_119, %c1_120, %c0_121, %c0_122] : memref<3x3x128x128xbf16, #tpu.memory_space<vmem>>, vector<1x1x128x128xbf16>
    %85 = vector.shape_cast %84 : vector<1x1x128x128xbf16> to vector<128x128xbf16>
    %cst_123 = arith.constant dense<0.000000e+00> : vector<256x128xf32>
    %86 = tpu.matmul %83, %85, %cst_123 {dimension_numbers = #tpu.dot_dimension_numbers<[1], [0], [0], [1], [0, 0, 1, 1], [], []>} : vector<256x128xbf16>, vector<128x128xbf16>, vector<256x128xf32> -> vector<256x128xf32>
    %87 = arith.addf %81, %86 : vector<256x128xf32>
    %c0_124 = arith.constant 0 : index
    %c2_125 = arith.constant 2 : index
    %c0_126 = arith.constant 0 : index
    %88 = vector.load %arg9[%c0_124, %c2_125, %c0_126] : memref<18x18x128xbf16, #tpu.memory_space<vmem>>, vector<16x16x128xbf16>
    %89 = vector.shape_cast %88 : vector<16x16x128xbf16> to vector<256x128xbf16>
    %c0_127 = arith.constant 0 : index
    %c2_128 = arith.constant 2 : index
    %c0_129 = arith.constant 0 : index
    %c0_130 = arith.constant 0 : index
    %90 = vector.load %arg4[%c0_127, %c2_128, %c0_129, %c0_130] : memref<3x3x128x128xbf16, #tpu.memory_space<vmem>>, vector<1x1x128x128xbf16>
    %91 = vector.shape_cast %90 : vector<1x1x128x128xbf16> to vector<128x128xbf16>
    %cst_131 = arith.constant dense<0.000000e+00> : vector<256x128xf32>
    %92 = tpu.matmul %89, %91, %cst_131 {dimension_numbers = #tpu.dot_dimension_numbers<[1], [0], [0], [1], [0, 0, 1, 1], [], []>} : vector<256x128xbf16>, vector<128x128xbf16>, vector<256x128xf32> -> vector<256x128xf32>
    %93 = arith.addf %87, %92 : vector<256x128xf32>
    %c1_132 = arith.constant 1 : index
    %c0_133 = arith.constant 0 : index
    %c0_134 = arith.constant 0 : index
    %94 = vector.load %arg9[%c1_132, %c0_133, %c0_134] : memref<18x18x128xbf16, #tpu.memory_space<vmem>>, vector<16x16x128xbf16>
    %95 = vector.shape_cast %94 : vector<16x16x128xbf16> to vector<256x128xbf16>
    %c1_135 = arith.constant 1 : index
    %c0_136 = arith.constant 0 : index
    %c0_137 = arith.constant 0 : index
    %c0_138 = arith.constant 0 : index
    %96 = vector.load %arg4[%c1_135, %c0_136, %c0_137, %c0_138] : memref<3x3x128x128xbf16, #tpu.memory_space<vmem>>, vector<1x1x128x128xbf16>
    %97 = vector.shape_cast %96 : vector<1x1x128x128xbf16> to vector<128x128xbf16>
    %cst_139 = arith.constant dense<0.000000e+00> : vector<256x128xf32>
    %98 = tpu.matmul %95, %97, %cst_139 {dimension_numbers = #tpu.dot_dimension_numbers<[1], [0], [0], [1], [0, 0, 1, 1], [], []>} : vector<256x128xbf16>, vector<128x128xbf16>, vector<256x128xf32> -> vector<256x128xf32>
    %99 = arith.addf %93, %98 : vector<256x128xf32>
    %c1_140 = arith.constant 1 : index
    %c1_141 = arith.constant 1 : index
    %c0_142 = arith.constant 0 : index
    %100 = vector.load %arg9[%c1_140, %c1_141, %c0_142] : memref<18x18x128xbf16, #tpu.memory_space<vmem>>, vector<16x16x128xbf16>
    %101 = vector.shape_cast %100 : vector<16x16x128xbf16> to vector<256x128xbf16>
    %c1_143 = arith.constant 1 : index
    %c1_144 = arith.constant 1 : index
    %c0_145 = arith.constant 0 : index
    %c0_146 = arith.constant 0 : index
    %102 = vector.load %arg4[%c1_143, %c1_144, %c0_145, %c0_146] : memref<3x3x128x128xbf16, #tpu.memory_space<vmem>>, vector<1x1x128x128xbf16>
    %103 = vector.shape_cast %102 : vector<1x1x128x128xbf16> to vector<128x128xbf16>
    %cst_147 = arith.constant dense<0.000000e+00> : vector<256x128xf32>
    %104 = tpu.matmul %101, %103, %cst_147 {dimension_numbers = #tpu.dot_dimension_numbers<[1], [0], [0], [1], [0, 0, 1, 1], [], []>} : vector<256x128xbf16>, vector<128x128xbf16>, vector<256x128xf32> -> vector<256x128xf32>
    %105 = arith.addf %99, %104 : vector<256x128xf32>
    %c1_148 = arith.constant 1 : index
    %c2_149 = arith.constant 2 : index
    %c0_150 = arith.constant 0 : index
    %106 = vector.load %arg9[%c1_148, %c2_149, %c0_150] : memref<18x18x128xbf16, #tpu.memory_space<vmem>>, vector<16x16x128xbf16>
    %107 = vector.shape_cast %106 : vector<16x16x128xbf16> to vector<256x128xbf16>
    %c1_151 = arith.constant 1 : index
    %c2_152 = arith.constant 2 : index
    %c0_153 = arith.constant 0 : index
    %c0_154 = arith.constant 0 : index
    %108 = vector.load %arg4[%c1_151, %c2_152, %c0_153, %c0_154] : memref<3x3x128x128xbf16, #tpu.memory_space<vmem>>, vector<1x1x128x128xbf16>
    %109 = vector.shape_cast %108 : vector<1x1x128x128xbf16> to vector<128x128xbf16>
    %cst_155 = arith.constant dense<0.000000e+00> : vector<256x128xf32>
    %110 = tpu.matmul %107, %109, %cst_155 {dimension_numbers = #tpu.dot_dimension_numbers<[1], [0], [0], [1], [0, 0, 1, 1], [], []>} : vector<256x128xbf16>, vector<128x128xbf16>, vector<256x128xf32> -> vector<256x128xf32>
    %111 = arith.addf %105, %110 : vector<256x128xf32>
    %c2_156 = arith.constant 2 : index
    %c0_157 = arith.constant 0 : index
    %c0_158 = arith.constant 0 : index
    %112 = vector.load %arg9[%c2_156, %c0_157, %c0_158] : memref<18x18x128xbf16, #tpu.memory_space<vmem>>, vector<16x16x128xbf16>
    %113 = vector.shape_cast %112 : vector<16x16x128xbf16> to vector<256x128xbf16>
    %c2_159 = arith.constant 2 : index
    %c0_160 = arith.constant 0 : index
    %c0_161 = arith.constant 0 : index
    %c0_162 = arith.constant 0 : index
    %114 = vector.load %arg4[%c2_159, %c0_160, %c0_161, %c0_162] : memref<3x3x128x128xbf16, #tpu.memory_space<vmem>>, vector<1x1x128x128xbf16>
    %115 = vector.shape_cast %114 : vector<1x1x128x128xbf16> to vector<128x128xbf16>
    %cst_163 = arith.constant dense<0.000000e+00> : vector<256x128xf32>
    %116 = tpu.matmul %113, %115, %cst_163 {dimension_numbers = #tpu.dot_dimension_numbers<[1], [0], [0], [1], [0, 0, 1, 1], [], []>} : vector<256x128xbf16>, vector<128x128xbf16>, vector<256x128xf32> -> vector<256x128xf32>
    %117 = arith.addf %111, %116 : vector<256x128xf32>
    %c2_164 = arith.constant 2 : index
    %c1_165 = arith.constant 1 : index
    %c0_166 = arith.constant 0 : index
    %118 = vector.load %arg9[%c2_164, %c1_165, %c0_166] : memref<18x18x128xbf16, #tpu.memory_space<vmem>>, vector<16x16x128xbf16>
    %119 = vector.shape_cast %118 : vector<16x16x128xbf16> to vector<256x128xbf16>
    %c2_167 = arith.constant 2 : index
    %c1_168 = arith.constant 1 : index
    %c0_169 = arith.constant 0 : index
    %c0_170 = arith.constant 0 : index
    %120 = vector.load %arg4[%c2_167, %c1_168, %c0_169, %c0_170] : memref<3x3x128x128xbf16, #tpu.memory_space<vmem>>, vector<1x1x128x128xbf16>
    %121 = vector.shape_cast %120 : vector<1x1x128x128xbf16> to vector<128x128xbf16>
    %cst_171 = arith.constant dense<0.000000e+00> : vector<256x128xf32>
    %122 = tpu.matmul %119, %121, %cst_171 {dimension_numbers = #tpu.dot_dimension_numbers<[1], [0], [0], [1], [0, 0, 1, 1], [], []>} : vector<256x128xbf16>, vector<128x128xbf16>, vector<256x128xf32> -> vector<256x128xf32>
    %123 = arith.addf %117, %122 : vector<256x128xf32>
    %c2_172 = arith.constant 2 : index
    %c2_173 = arith.constant 2 : index
    %c0_174 = arith.constant 0 : index
    %124 = vector.load %arg9[%c2_172, %c2_173, %c0_174] : memref<18x18x128xbf16, #tpu.memory_space<vmem>>, vector<16x16x128xbf16>
    %125 = vector.shape_cast %124 : vector<16x16x128xbf16> to vector<256x128xbf16>
    %c2_175 = arith.constant 2 : index
    %c2_176 = arith.constant 2 : index
    %c0_177 = arith.constant 0 : index
    %c0_178 = arith.constant 0 : index
    %126 = vector.load %arg4[%c2_175, %c2_176, %c0_177, %c0_178] : memref<3x3x128x128xbf16, #tpu.memory_space<vmem>>, vector<1x1x128x128xbf16>
    %127 = vector.shape_cast %126 : vector<1x1x128x128xbf16> to vector<128x128xbf16>
    %cst_179 = arith.constant dense<0.000000e+00> : vector<256x128xf32>
    %128 = tpu.matmul %125, %127, %cst_179 {dimension_numbers = #tpu.dot_dimension_numbers<[1], [0], [0], [1], [0, 0, 1, 1], [], []>} : vector<256x128xbf16>, vector<128x128xbf16>, vector<256x128xf32> -> vector<256x128xf32>
    %129 = arith.addf %123, %128 : vector<256x128xf32>
    %c0_180 = arith.constant 0 : index
    %c0_181 = arith.constant 0 : index
    %130 = vector.load %arg5[%c0_180, %c0_181] : memref<1x128xf32, #tpu.memory_space<vmem>>, vector<1x128xf32>
    %131 = vector.broadcast %130 : vector<1x128xf32> to vector<256x128xf32>
    %132 = arith.addf %129, %131 : vector<256x128xf32>
    %cst_182 = arith.constant 0.000000e+00 : f32
    %133 = vector.broadcast %cst_182 : f32 to vector<256x128xf32>
    %134 = arith.maximumf %132, %133 : vector<256x128xf32>
    %135 = vector.shape_cast %134 : vector<256x128xf32> to vector<16x16x128xf32>
    %136 = vector.shape_cast %135 : vector<16x16x128xf32> to vector<1x16x16x128xf32>
    %c0_183 = arith.constant 0 : index
    %c0_184 = arith.constant 0 : index
    %c0_185 = arith.constant 0 : index
    %c0_186 = arith.constant 0 : index
    %137 = vector.load %arg6[%c0_183, %c0_184, %c0_185, %c0_186] : memref<1x16x16x128xf32, #tpu.memory_space<vmem>>, vector<1x16x16x128xf32>
    tpu.vector_store %arg6[%c0_183, %c0_184, %c0_185, %c0_186], %136 {strides = array<i32>} : memref<1x16x16x128xf32, #tpu.memory_space<vmem>>, vector<1x16x16x128xf32>,
    %138 = vector.shape_cast %135 : vector<16x16x128xf32> to vector<8x2x16x128xf32>
    %139 = vector.extract_strided_slice %138 {offsets = [0, 0, 0, 0], sizes = [8, 1, 16, 128], strides = [1, 1, 1, 1]} : vector<8x2x16x128xf32> to vector<8x1x16x128xf32>
    %140 = vector.shape_cast %139 : vector<8x1x16x128xf32> to vector<8x16x128xf32>
    %141 = vector.extract_strided_slice %138 {offsets = [0, 1, 0, 0], sizes = [8, 1, 16, 128], strides = [1, 1, 1, 1]} : vector<8x2x16x128xf32> to vector<8x1x16x128xf32>
    %142 = vector.shape_cast %141 : vector<8x1x16x128xf32> to vector<8x16x128xf32>
    %143 = arith.maximumf %140, %142 : vector<8x16x128xf32>
    %144 = vector.shape_cast %143 : vector<8x16x128xf32> to vector<8x8x2x128xf32>
    %cst_187 = arith.constant dense<0xFF800000> : vector<8x8x128xf32>
    %145 = vector.multi_reduction <maximumf>, %144, %cst_187 [2] : vector<8x8x2x128xf32> to vector<8x8x128xf32>
    %146 = vector.shape_cast %145 : vector<8x8x128xf32> to vector<1x8x8x128xf32>
    %c0_188 = arith.constant 0 : index
    %c0_189 = arith.constant 0 : index
    %c0_190 = arith.constant 0 : index
    %c0_191 = arith.constant 0 : index
    %147 = vector.load %arg7[%c0_188, %c0_189, %c0_190, %c0_191] : memref<1x8x8x128xf32, #tpu.memory_space<vmem>>, vector<1x8x8x128xf32>
    tpu.vector_store %arg7[%c0_188, %c0_189, %c0_190, %c0_191], %146 {strides = array<i32>} : memref<1x8x8x128xf32, #tpu.memory_space<vmem>>, vector<1x8x8x128xf32>,
    return
  }
  func.func @transform_0(%arg0: i32) -> (i32, i32, i32, i32) {
    %c0_i32 = arith.constant 0 : i32
    %c0_i32_0 = arith.constant 0 : i32
    %c0_i32_1 = arith.constant 0 : i32
    %c0_i32_2 = arith.constant 0 : i32
    return %arg0, %c0_i32, %c0_i32_0, %c0_i32_1 : i32, i32, i32, i32
  }
  func.func @transform_1(%arg0: i32) -> (i32, i32, i32, i32) {
    %c0_i32 = arith.constant 0 : i32
    %c0_i32_0 = arith.constant 0 : i32
    %c0_i32_1 = arith.constant 0 : i32
    %c0_i32_2 = arith.constant 0 : i32
    %c0_i32_3 = arith.constant 0 : i32
    return %c0_i32, %c0_i32_0, %c0_i32_1, %c0_i32_2 : i32, i32, i32, i32
  }
  func.func @transform_2(%arg0: i32) -> (i32, i32) {
    %c0_i32 = arith.constant 0 : i32
    %c0_i32_0 = arith.constant 0 : i32
    %c0_i32_1 = arith.constant 0 : i32
    return %c0_i32, %c0_i32_0 : i32, i32
  }
  func.func @transform_3(%arg0: i32) -> (i32, i32, i32, i32) {
    %c0_i32 = arith.constant 0 : i32
    %c0_i32_0 = arith.constant 0 : i32
    %c0_i32_1 = arith.constant 0 : i32
    %c0_i32_2 = arith.constant 0 : i32
    %c0_i32_3 = arith.constant 0 : i32
    return %c0_i32, %c0_i32_0, %c0_i32_1, %c0_i32_2 : i32, i32, i32, i32
  }
  func.func @transform_4(%arg0: i32) -> (i32, i32) {
    %c0_i32 = arith.constant 0 : i32
    %c0_i32_0 = arith.constant 0 : i32
    %c0_i32_1 = arith.constant 0 : i32
    return %c0_i32, %c0_i32_0 : i32, i32
  }
  func.func @transform_5(%arg0: i32) -> (i32, i32, i32, i32) {
    %c0_i32 = arith.constant 0 : i32
    %c0_i32_0 = arith.constant 0 : i32
    %c0_i32_1 = arith.constant 0 : i32
    %c0_i32_2 = arith.constant 0 : i32
    return %arg0, %c0_i32, %c0_i32_0, %c0_i32_1 : i32, i32, i32, i32
  }
  func.func @transform_6(%arg0: i32) -> (i32, i32, i32, i32) {
    %c0_i32 = arith.constant 0 : i32
    %c0_i32_0 = arith.constant 0 : i32
    %c0_i32_1 = arith.constant 0 : i32
    %c0_i32_2 = arith.constant 0 : i32
    return %arg0, %c0_i32, %c0_i32_0, %c0_i32_1 : i32, i32, i32, i32
  }
}

</mosaic_0001>

<bundles_post_ra>
// kernel: tpu_custom_call.1
= control target key start
LH: loop header
LB: loop body
LE: loop exit
PB: predicated region body
PF: predicated region fallthrough
CT: control target
= control target key end

     0   :  { %12 = vsyncpa [#allocation5], 0  ;;  %s16473_s0 = inlined_call_operand.vmem [shape: f32[2,16,16,4], index: 0, kind: input, shape index: {}]   ;;  %s16474_s1 = inlined_call_operand.vmem [shape: bf16[3,3,4,128], index: 1, kind: input, shape index: {}]   ;;  %s16475_s2 = inlined_call_operand.vmem [shape: f32[1,128], index: 2, kind: input, shape index: {}]   ;;  %s16476_s3 = inlined_call_operand.vmem [shape: bf16[3,3,128,128], index: 3, kind: input, shape index: {}]   ;;  %s16477_s4 = inlined_call_operand.vmem [shape: f32[1,128], index: 4, kind: input, shape index: {}]   ;;  %s16478_s5 = inlined_call_operand.hbm [shape: f32[2,16,16,128], index: 5, kind: output, shape index: {0}]   ;;  %s16479_s6 = inlined_call_operand.hbm [shape: f32[2,8,8,128], index: 6, kind: output, shape index: {1}]  }
   0x1   :  { %14 = vsyncpa [#allocation5 + $0x1], 0 }
   0x2   :  { %15 = vsyncpa [#allocation7], 0 }
   0x3   :  { %17 = vsyncpa [#allocation7 + $0x1], 0  ;;  %s12009_s21 = smov 0   ;;  %s12011_s22 = smov 0  }
   0x4   :  { %s12013_s23 = smov 0   ;;  %s12015_s24 = smov 0  }
   0x5 LB: > { %s12030_s25 = sadd.s32 4294967295, %s11969_s24   ;;  %s10554_s26 = sadd.s32 4294967294, %s11969_s24   ;;  %s11969_s24 = sphi %s12015_s24, %s16770_s24   ;;  %s11965_s23 = sphi %s12013_s23, %s16769_s23   ;;  %s11961_s22 = sphi %s12011_s22, %s16768_s22   ;;  %s11957_s21 = sphi %s12009_s21, %s16767_s21  }
   0x6   : > { %s12034_s27 = sadd.s32 1, %s11969_s24   ;;  %s140_s28 = sadd.s32 1, %s11965_s23 }
   0x7   : > { %s137_s29 = ssub.s32 %s11969_s24, %s12034_s27  ;;  %p150_p0 = scmp.ne.s32.totalorder %s11965_s23, %s11961_s22 }
   0x8   : > { %p138_p1 = scmp.eq.s32.totalorder %s137_s29, 0  ;;  %p151_p2 = scmp.eq.s32.totalorder %s12030_s25, 1 }
   0x9   : > { %p156_p3 = scmp.ne.s32.totalorder %s11961_s22, %s11957_s21  ;;  %p157_p4 = scmp.eq.s32.totalorder %s10554_s26, 1 }
   0xa   : > { %s12045_s30 = scalar_select %p138_p1, %s11965_s23, %s140_s28  }
   0xb   : > { %p12047_p5 = por %p151_p2, %p150_p0  ;;  %p12051_p6 = por %p157_p4, %p156_p3 }
   0xc   : > { %p10557_p7 = scmp.ge.s32.totalorder %s11969_s24, 1  ;;  %p221_p8 = scmp.lt.s32.totalorder %s11969_s24, 3 }
   0xe   : > { %p222_p9 = pnand %p10557_p7, %p221_p8 }
  0x10   : > { %225 = sbr.rel (%p222_p9) target bundleno = 1547 (0x60b), region = 40 }
  0x15   : > { %v917_v0 = vld [vmem:[%s16474_s1] sm:$0x3]  ;;  %vm1420_vm0 = vcmask 1041408   ;;  %p256_p10 = scmp.lt.s32.totalorder %s12030_s25, 1  ;;  %vm262_vm1 = vcmask 27648   ;;  %vm265_vm2 = vcmask 24576  }
  0x16   : > { %v1642_v1 = vsel %vm1420_vm0, %v917_v0, 0  ;;  %vm272_vm3 = vsmask.f32 256  ;;  %v298_v2 = vld [vmem:[#allocation2 + $0x60] sm:$0x1]  ;;  %v11971_v6 = vmov 0  }
  0x17   : > { %11790 = vmatpush.bf16.msra.mxu3 %v1642_v1  ;;  %s257_s11 = scalar_select %p256_p10, %s12030_s25, 1  ;;  %vm12065_vm4 = vmand %vm265_vm2, %vm272_vm3  ;;  %vm328_vm5 = vsmask.f32 7938  ;;  %1651 = vmatpush.bf16.msra.mxu1 %v1642_v1  ;;  %v10562_v5 = vld [vmem:[%s16474_s1 + $0x2] sm:$0x3]  ;;  %vm1371_vm10 = vcmask 31744  }
  0x18   : > { %v299_v4 = vsel %vm12065_vm4, 0, %v298_v2  ;;  %263 = vst.msk [vmem:[#allocation2] sm:$0xf] %vm262_vm1, %v11971_v6  ;;  %v1422_v7 = vsel %vm1420_vm0, %v10562_v5, 0  ;;  %vm12084_vm6 = vmand %vm265_vm2, %vm328_vm5  ;;  %v12090_v9 = vld [vmem:[#allocation2 + $0x68] sm:$0x1] }
  0x19   : > { %s11618_s14 = sshll.u32 %s257_s11, 8  ;;  %300 = vst [vmem:[#allocation2 + $0x60] sm:$0x1] %v299_v4  ;;  %1431 = vmatpush.bf16.msra.mxu0 %v1422_v7  ;;  %11789 = vmatpush.bf16.msra.mxu2 %v1422_v7  ;;  %v12098_v14 = vld [vmem:[#allocation2 + $0x6c] sm:$0x1]  ;;  %v355_v17 = vsel %vm12084_vm6, 0, %v12090_v9  ;;  %vm12132_vm9 = vmand %vm262_vm1, %vm328_vm5 }
  0x1a   : > { %s12080_s17 = scalar_lea.vmem %s16473_s0, %s11618_s14  ;;  %264 = vst.msk [vmem:[#allocation2 + $0x4] sm:$0xf] %vm262_vm1, %v11971_v6  ;;  %vm448_vm7 = vsmask.f32 4368  ;;  %v302_v26 = vsel %vm12065_vm4, 0, %v12098_v14  ;;  %vm1781_vm14 = vcmask 1042432  }
  0x1b   : > { %v398_v10 = vld [vmem:[%s12080_s17 + $0x70] sm:$0xff]  ;;  %v399_v11 = vld [vmem:[%s12080_s17 + $0x78] sm:$0xff]  ;;  %266 = vst.msk [vmem:[#allocation2 + $0x8] sm:$0x1] %vm265_vm2, %v11971_v6  ;;  %v400_v15 = vld [vmem:[%s12080_s17 + $0x80] sm:$0xff]  ;;  %vm1782_vm15 = vcmask 1046532  }
  0x1c   : > { %v430_v12 = vpack.c.bf16 %v398_v10, %v398_v10  ;;  %v431_v13 = vpack.c.bf16 %v399_v11, %v399_v11  ;;  %268 = vst.msk [vmem:[#allocation2 + $0xcc] sm:$0xf] %vm262_vm1, %v11971_v6  ;;  %v401_v16 = vld [vmem:[%s12080_s17 + $0x88] sm:$0xff]  ;;  %v12107_v18 = vpack.c.bf16 %v400_v15, %v400_v15  ;;  %v384_v20 = vld [vmem:[%s12080_s17] sm:$0xff]  ;;  %vm12121_vm8 = vmor %vm272_vm3, %vm448_vm7  ;;  %vm934_vm11 = vsmask.f32 3328 }
  0x1d   : > { %269 = vst.msk [vmem:[#allocation2 + $0xd0] sm:$0xf] %vm262_vm1, %v11971_v6  ;;  %v12109_v19 = vpack.c.bf16 %v401_v16, %v401_v16  ;;  %v12139_v38 = vpack.c.bf16 %v384_v20, %v384_v20  ;;  %vm935_vm12 = vsmask.f32 7440  ;;  %v12144_v44 = vld [vmem:[#allocation2 + $0xc] sm:$0x1] }
  0x1e   : > { %v570_v21 = vshrl.u32 %v430_v12, 16  ;;  %v573_v22 = vshll.u32 %v430_v12, 16  ;;  %v578_v23 = vshrl.u32 %v431_v13, 16  ;;  %v581_v24 = vshll.u32 %v431_v13, 16  ;;  %270 = vst.msk [vmem:[#allocation2 + $0xd4] sm:$0x1] %vm265_vm2, %v11971_v6  ;;  %vm12199_vm13 = vmor %vm934_vm11, %vm935_vm12 }
  0x1f   : > { %v274_v25 = vld [vmem:[#allocation2] sm:$0x1]  ;;  %4863 = vst [vmem:[#allocation3] sm:$0xf] %v11971_v6  ;;  %v587_v27 = vshrl.u32 %v12107_v18, 16  ;;  %v590_v33 = vshll.u32 %v12107_v18, 16  ;;  %vm12655_vm2 = vmor %vm1781_vm14, %vm1782_vm15 }
  0x20   : > { %v572_v29 = vrot.slane %v570_v21, 7  ;;  %v12125_v30 = vrot.slane %v578_v23, 7  ;;  %v822_v31 = vld [vmem:[#allocation2 + $0x60] sm:$0xf]  ;;  %v275_v32 = vsel %vm12065_vm4, 0, %v274_v25  ;;  %v595_v37 = vshrl.u32 %v12109_v19, 16 }
  0x21   : > { %276 = vst [vmem:[#allocation2] sm:$0x1] %v275_v32  ;;  %v886_v35 = vld [vmem:[#allocation2 + $0x4] sm:$0xf]  ;;  %v12136_v36 = vrot.slane %v587_v27, 7  ;;  %v598_v43 = vshll.u32 %v12109_v19, 16 }
  0x22   : > { %v575_v39 = vor.u32 %v573_v22, %v572_v29  ;;  %v576_v40 = vrot.slane %v572_v29, 4  ;;  %v583_v41 = vor.u32 %v581_v24, %v12125_v30  ;;  %v330_v42 = vld [vmem:[#allocation2 + $0x8] sm:$0x1]  ;;  %4864 = vst [vmem:[#allocation3 + $0x4] sm:$0xf] %v11971_v6  ;;  %v947_v46 = vshll.u32 %v886_v35, 16 }
  0x23   : > { %v331_v45 = vsel %vm12084_vm6, 0, %v330_v42  ;;  %v951_v47 = vshrl.u32 %v886_v35, 16  ;;  %4865 = vst [vmem:[#allocation3 + $0x8] sm:$0x1] %v11971_v6  ;;  %v385_v48 = vld [vmem:[%s12080_s17 + $0x8] sm:$0xff]  ;;  %v585_v58 = vrot.slane %v12125_v30, 4 }
  0x24   : > { %v584_v49 = vsel %vm12121_vm8, %v576_v40, %v583_v41  ;;  %v823_v50 = vsel %vm12132_vm9, %v575_v39, %v822_v31  ;;  %332 = vst [vmem:[#allocation2 + $0x8] sm:$0x1] %v331_v45  ;;  %v10675_v51 = vld [vmem:[%s16474_s1 + $0x4] sm:$0x3]  ;;  %v10692_v52 = vld [vmem:[%s16474_s1 + $0x6] sm:$0x3]  ;;  %v417_v53 = vpack.c.bf16 %v385_v48, %v385_v48  ;;  %v592_v39 = vor.u32 %v590_v33, %v12136_v36 }
  0x25   : > { %824 = vst [vmem:[#allocation2 + $0x60] sm:$0xf] %v823_v50  ;;  %v12160_v54 = vrot.slane %v947_v46, 5  ;;  %v953_v55 = vrot.slane %v951_v47, 4  ;;  %v1995_v56 = vsel %vm1420_vm0, %v10675_v51, 0  ;;  %v2281_v57 = vsel %vm1420_vm0, %v10692_v52, 0 }
  0x26   : > { %825 = vst.msk [vmem:[#allocation2 + $0x64] sm:$0xf] %vm262_vm1, %v584_v49  ;;  %2004 = vmatpush.bf16.msrb.mxu2 %v1995_v56  ;;  %2290 = vmatpush.bf16.msrb.mxu3 %v2281_v57  ;;  %v593_v59 = vrot.slane %v12136_v36, 4  ;;  %v12167_v60 = vrot.slane %v595_v37, 7  ;;  %v451_v61 = vshrl.u32 %v12139_v38, 16  ;;  %v278_v63 = vsel %vm12065_vm4, 0, %v12144_v44 }
  0x27   : > { %v954_v62 = vor.u32 %v953_v55, %v12160_v54  ;;  %4867 = vst [vmem:[#allocation3 + $0xcc] sm:$0xf] %v11971_v6  ;;  %v333_v0 = vld [vmem:[#allocation2 + $0x14] sm:$0x1]  ;;  %v459_v1 = vshrl.u32 %v417_v53, 16  ;;  %v454_v7 = vshll.u32 %v12139_v38, 16 }
  0x28   : > { %v885_v2 = vld [vmem:[#allocation2] sm:$0xf]  ;;  %4868 = vst [vmem:[#allocation3 + $0xd0] sm:$0xf] %v11971_v6  ;;  %v600_v5 = vor.u32 %v598_v43, %v12167_v60  ;;  %v334_v13 = vsel %vm12084_vm6, 0, %v333_v0  ;;  %v453_v16 = vrot.slane %v451_v61, 7 }
  0x29   : > { %v11619_v4 = vld [vmem:[#allocation2] sm:$0xff]  ;;  %v938_v10 = vshrl.u32 %v885_v2, 16  ;;  %v941_v11 = vshll.u32 %v885_v2, 16  ;;  %v955_v12 = vrot.slane %v954_v62, 4  ;;  %4869 = vst [vmem:[#allocation3 + $0xd4] sm:$0x1] %v11971_v6 }
  0x2a   : > { %356 = vst [vmem:[#allocation2 + $0x68] sm:$0x1] %v355_v17  ;;  %10643 = vmatmul.msk.bf16.vlgmr.msra.gmra.mxu1 %vm1371_vm10, %v11619_v4  ;;  %v601_v15 = vsel %vm12121_vm8, %v593_v59, %v600_v5  ;;  %v12188_v19 = vrot.slane %v459_v1, 7  ;;  %v462_v20 = vshll.u32 %v417_v53, 16  ;;  %v402_v24 = vld [vmem:[%s12080_s17 + $0x90] sm:$0xff]  ;;  %v457_v14 = vrot.slane %v453_v16, 4 }
  0x2b   : > { %v918_v21 = vld [vmem:[#allocation2 + $0x8] sm:$0x1]  ;;  %v940_v6 = vrot.slane %v938_v10, 4  ;;  %v943_v22 = vrot.slane %v941_v11, 5  ;;  %303 = vst [vmem:[#allocation2 + $0x6c] sm:$0x1] %v302_v26  ;;  %v456_v46 = vor.u32 %v454_v7, %v453_v16  ;;  %v434_v36 = vpack.c.bf16 %v402_v24, %v402_v24 }
  0x2c   : > { %v957_v23 = vshll.u32 %v918_v21, 16  ;;  %v901_v9 = vld [vmem:[#allocation2 + $0x60] sm:$0xf]  ;;  %832 = vst.msk [vmem:[#allocation2 + $0x70] sm:$0xf] %vm262_vm1, %v601_v15  ;;  %v464_v17 = vor.u32 %v462_v20, %v12188_v19  ;;  %v403_v33 = vld [vmem:[%s12080_s17 + $0x98] sm:$0xff] }
  0x2d   : > { %v11627_v25 = vld [vmem:[#allocation2 + $0x60] sm:$0xff]  ;;  %v944_v29 = vor.u32 %v943_v22, %v940_v6  ;;  %v1130_v32 = vshrl.u32 %v901_v9, 16  ;;  %v1133_v35 = vshll.u32 %v901_v9, 16  ;;  %279 = vst [vmem:[#allocation2 + $0xc] sm:$0x1] %v278_v63  ;;  %v466_v62 = vrot.slane %v12188_v19, 4 }
  0x2e   : > { %v902_v31 = vld [vmem:[#allocation2 + $0x64] sm:$0xf]  ;;  %v959_v26 = vrot.slane %v957_v23, 5  ;;  %10651 = vmatmul.msk.bf16.vlgmr.msra.gmra.mxu3 %vm1371_vm10, %v11627_v25  ;;  %335 = vst [vmem:[#allocation2 + $0x14] sm:$0x1] %v334_v13  ;;  %v465_v43 = vsel %vm12121_vm8, %v457_v14, %v464_v17  ;;  %v435_v0 = vpack.c.bf16 %v403_v33, %v403_v33  ;;  %v386_v5 = vld [vmem:[%s12080_s17 + $0x10] sm:$0xff] }
  0x2f   : > { %v1139_v37 = vshll.u32 %v902_v31, 16  ;;  %v1143_v38 = vshrl.u32 %v902_v31, 16  ;;  %v945_v40 = vrot.slane %v944_v29, 4  ;;  %v1132_v41 = vrot.slane %v1130_v32, 4  ;;  %776 = vst.msk [vmem:[#allocation2 + $0x10] sm:$0xf] %vm262_vm1, %v465_v43 }
  0x30   : > { %v1135_v42 = vrot.slane %v1133_v35, 5  ;;  %v960_v44 = vsel %vm12199_vm13, %v955_v12, %v959_v26  ;;  %v10773_v18 = vld [vmem:[%s16474_s1 + $0x8] sm:$0x3]  ;;  %v357_v52 = vld [vmem:[#allocation2 + $0x74] sm:$0x1]  ;;  %v604_v10 = vshrl.u32 %v434_v36, 16  ;;  %v12242_v23 = vpack.c.bf16 %v386_v5, %v386_v5 }
  0x31   : > { %v12211_v45 = vrot.slane %v1139_v37, 5  ;;  %v950_v47 = vsel %vm12199_vm13, %v945_v40, %v12160_v54  ;;  %v1324_v48 = vunpack.c.l.b16 %v960_v44  ;;  %v826_v49 = vld [vmem:[#allocation2 + $0x68] sm:$0x1]  ;;  %v2935_v51 = vsel %vm1420_vm0, %v10773_v18, 0  ;;  %v304_v54 = vld [vmem:[#allocation2 + $0x78] sm:$0x1] }
  0x32   : > { %v1136_v50 = vor.u32 %v1135_v42, %v1132_v41  ;;  %v1323_v53 = vunpack.c.l.b16 %v950_v47  ;;  %v827_v55 = vsel %vm12065_vm4, %v585_v58, %v826_v49  ;;  %v1145_v56 = vrot.slane %v1143_v38, 4  ;;  %v829_v57 = vld [vmem:[#allocation2 + $0x6c] sm:$0xf]  ;;  %2944 = vmatpush.bf16.msrb.mxu0 %v2935_v51  ;;  %v387_v19 = vld [vmem:[%s12080_s17 + $0x18] sm:$0xff]  ;;  %v336_v14 = vld [vmem:[#allocation2 + $0x20] sm:$0x1] }
  0x33   : > { %v358_v59 = vsel %vm12084_vm6, 0, %v357_v52  ;;  %828 = vst [vmem:[#allocation2 + $0x68] sm:$0x1] %v827_v55  ;;  %v830_v61 = vsel %vm12132_vm9, %v592_v39, %v829_v57  ;;  %v904_v63 = vld [vmem:[#allocation2 + $0x70] sm:$0xf]  ;;  %v305_v30 = vsel %vm12065_vm4, 0, %v304_v54 }
  0x34   : > { %v1355_v58 = vpack.c.b16 %v1324_v48, %v1323_v53  ;;  %v1137_v1 = vrot.slane %v1136_v50, 4  ;;  %831 = vst [vmem:[#allocation2 + $0x6c] sm:$0xf] %v830_v61  ;;  %v1163_v2 = vshll.u32 %v904_v63, 16  ;;  %v1167_v4 = vshrl.u32 %v904_v63, 16  ;;  %s15981_s18 = sand.u32 1, %s11961_s22  }
  0x35   : > { %v773_v7 = vld [vmem:[#allocation2 + $0xc] sm:$0xf]  ;;  %359 = vst [vmem:[#allocation2 + $0x74] sm:$0x1] %v358_v59  ;;  %v607_v11 = vshll.u32 %v434_v36, 16  ;;  %v1146_v12 = vor.u32 %v1145_v56, %v12211_v45  ;;  %v602_v13 = vrot.slane %v12167_v60, 4 }
  0x36   : > { %10563 = vmatmul.msk.bf16.vlgmr.msra.gmra.mxu0 %vm1371_vm10, %v1355_v58  ;;  %v774_v15 = vsel %vm12132_vm9, %v456_v46, %v773_v7  ;;  %v777_v16 = vld [vmem:[#allocation2 + $0x14] sm:$0x1]  ;;  %306 = vst [vmem:[#allocation2 + $0x78] sm:$0x1] %v305_v30  ;;  %v888_v21 = vld [vmem:[#allocation2 + $0x10] sm:$0xf]  ;;  %v1142_v25 = vsel %vm12199_vm13, %v1137_v1, %v12211_v45  ;;  %v419_v46 = vpack.c.bf16 %v387_v19, %v387_v19 }
  0x37   : > { %775 = vst [vmem:[#allocation2 + $0xc] sm:$0xf] %v774_v15  ;;  %v778_v20 = vsel %vm12065_vm4, %v466_v62, %v777_v16  ;;  %v606_v6 = vrot.slane %v604_v10, 7  ;;  %v612_v22 = vshrl.u32 %v435_v0, 16  ;;  %v971_v9 = vshll.u32 %v888_v21, 16  ;;  %s10558_s26 = sshll.u32 %s15981_s18, 8 }
  0x38   : > { %779 = vst [vmem:[#allocation2 + $0x14] sm:$0x1] %v778_v20  ;;  %v975_v17 = vshrl.u32 %v888_v21, 16  ;;  %v12244_v24 = vrot.slane %v1163_v2, 5  ;;  %v615_v60 = vshll.u32 %v435_v0, 16  ;;  %v12249_v29 = vrot.slane %v1167_v4, 4 }
  0x39   : > { %v609_v31 = vor.u32 %v607_v11, %v606_v6  ;;  %v12251_v32 = vrot.slane %v612_v22, 7  ;;  %v280_v35 = vld [vmem:[#allocation2 + $0x18] sm:$0x1]  ;;  %v12253_v37 = vrot.slane %v971_v9, 5  ;;  %v610_v39 = vrot.slane %v606_v6, 4  ;;  %v404_v21 = vld [vmem:[%s12080_s17 + $0xa0] sm:$0xff] }
  0x3a   : > { %v926_v26 = vld [vmem:[#allocation2 + $0x68] sm:$0x1]  ;;  %v977_v38 = vrot.slane %v975_v17, 4  ;;  %v281_v40 = vsel %vm12065_vm4, 0, %v280_v35  ;;  %v1147_v41 = vrot.slane %v1146_v12, 4  ;;  %v1339_v18 = vunpack.c.l.b16 %v1142_v25  ;;  %s10559_s28 = sshll.u32 %s15981_s18, 6 }
  0x3b   : > { %v1149_v42 = vshll.u32 %v926_v26, 16  ;;  %v11628_v43 = vld [vmem:[#allocation2 + $0x6c] sm:$0xff]  ;;  %v617_v45 = vor.u32 %v615_v60, %v12251_v32  ;;  %282 = vst [vmem:[#allocation2 + $0x18] sm:$0x1] %v281_v40  ;;  %v1170_v51 = vor.u32 %v12249_v29, %v12244_v24  ;;  %v337_v53 = vsel %vm12084_vm6, 0, %v336_v14  ;;  %s16069_s29 = scalar_lea.vmem [#allocation6], %s10559_s28 }
  0x3c   : > { %v903_v44 = vld [vmem:[#allocation2 + $0x6c] sm:$0xf]  ;;  %v978_v33 = vor.u32 %v977_v38, %v12253_v37  ;;  %v833_v36 = vld [vmem:[#allocation2 + $0x74] sm:$0x1]  ;;  %v360_v61 = vld [vmem:[#allocation2 + $0x80] sm:$0x1]  ;;  %v12282_v38 = vpack.c.bf16 %v404_v21, %v404_v21 }
  0x3d   : > { %v1154_v47 = vshrl.u32 %v903_v44, 16  ;;  %v1157_v48 = vshll.u32 %v903_v44, 16  ;;  %v1151_v49 = vrot.slane %v1149_v42, 5  ;;  %v834_v50 = vsel %vm12065_vm4, %v602_v13, %v833_v36  ;;  %v836_v52 = vld [vmem:[#allocation2 + $0x78] sm:$0xf]  ;;  %s11787_s11 = sshll.u32 %s12030_s25, 8 }
  0x3e   : > { %v887_v55 = vld [vmem:[#allocation2 + $0xc] sm:$0xf]  ;;  %v979_v56 = vrot.slane %v978_v33, 4  ;;  %835 = vst [vmem:[#allocation2 + $0x74] sm:$0x1] %v834_v50  ;;  %v618_v59 = vsel %vm12121_vm8, %v610_v39, %v617_v45  ;;  %v837_v54 = vsel %vm12132_vm9, %v609_v31, %v836_v52  ;;  %10652 = vmatmul.msk.bf16.gmra.mxu3 %vm1371_vm10, %v11628_v43  ;;  %v468_v5 = vshrl.u32 %v12242_v23, 16  ;;  %s10438_s14 = scalar_lea.hbm %s16478_s5, %s11787_s11 }
  0x3f   : > { %v1156_v57 = vrot.slane %v1154_v47, 4  ;;  %v1152_v62 = vsel %vm12199_vm13, %v1147_v41, %v1151_v49  ;;  %v919_v63 = vld [vmem:[#allocation2 + $0x14] sm:$0x1]  ;;  %v962_v30 = vshrl.u32 %v887_v55, 16  ;;  %v965_v0 = vshll.u32 %v887_v55, 16  ;;  %v11620_v1 = vld [vmem:[#allocation2 + $0xc] sm:$0xff] }
  0x40   : > { %v1159_v58 = vrot.slane %v1157_v48, 5  ;;  %v1340_v2 = vunpack.c.l.b16 %v1152_v62  ;;  %v981_v4 = vshll.u32 %v919_v63, 16  ;;  %838 = vst [vmem:[#allocation2 + $0x78] sm:$0xf] %v837_v54  ;;  %v471_v7 = vshll.u32 %v12242_v23, 16  ;;  %10644 = vmatmul.msk.bf16.gmra.mxu1 %vm1371_vm10, %v11620_v1  ;;  %v405_v43 = vld [vmem:[%s12080_s17 + $0xa8] sm:$0xff] }
  0x41   : > { %v964_v10 = vrot.slane %v962_v30, 4  ;;  %v967_v11 = vrot.slane %v965_v0, 5  ;;  %839 = vst.msk [vmem:[#allocation2 + $0x7c] sm:$0xf] %vm262_vm1, %v618_v59  ;;  %v476_v13 = vshrl.u32 %v419_v46, 16  ;;  %v470_v19 = vrot.slane %v468_v5, 7 }
  0x42   : > { %v1160_v12 = vor.u32 %v1159_v58, %v1156_v57  ;;  %v1363_v15 = vpack.c.b16 %v1340_v2, %v1339_v18  ;;  %v983_v16 = vrot.slane %v981_v4, 5  ;;  %338 = vst [vmem:[#allocation2 + $0x20] sm:$0x1] %v337_v53  ;;  %v479_v20 = vshll.u32 %v419_v46, 16  ;;  %v780_v9 = vld [vmem:[#allocation2 + $0x18] sm:$0xf] }
  0x43   : > { %v968_v6 = vor.u32 %v967_v11, %v964_v10  ;;  %v478_v22 = vrot.slane %v476_v13, 7  ;;  %v361_v23 = vsel %vm12084_vm6, 0, %v360_v61  ;;  %v473_v25 = vor.u32 %v471_v7, %v470_v19  ;;  %v307_v31 = vld [vmem:[#allocation2 + $0x84] sm:$0x1]  ;;  %v389_v5 = vld [vmem:[%s12080_s17 + $0x28] sm:$0xff]  ;;  %v407_v21 = vld [vmem:[%s12080_s17 + $0xb8] sm:$0xff] }
  0x44   : > { %10571 = vmatmul.msk.bf16.vlgmr.msra.gmra.mxu2 %vm1371_vm10, %v1363_v15  ;;  %v984_v17 = vsel %vm12199_vm13, %v979_v56, %v983_v16  ;;  %v1161_v60 = vrot.slane %v1160_v12, 4  ;;  %v474_v29 = vrot.slane %v470_v19, 4  ;;  %362 = vst [vmem:[#allocation2 + $0x80] sm:$0x1] %v361_v23  ;;  %v1171_v40 = vrot.slane %v1170_v51, 4  ;;  %v388_v50 = vld [vmem:[%s12080_s17 + $0x20] sm:$0xff] }
  0x45   : > { %v969_v35 = vrot.slane %v968_v6, 4  ;;  %v927_v14 = vld [vmem:[#allocation2 + $0x74] sm:$0x1]  ;;  %v481_v26 = vor.u32 %v479_v20, %v478_v22  ;;  %v1326_v39 = vunpack.c.l.b16 %v984_v17  ;;  %v483_v42 = vrot.slane %v478_v22, 4  ;;  %s10441_s16 = sshll.u32 %s10438_s14, 4  ;;  %s10422_s19 = scalar_lea.sflag [#allocation5], %s15981_s18  ;;  %s10442_s16 = int_to_ptr.hbm [resolvable:$true] %s10441_s16 }
  0x46   : > { %v1173_v41 = vshll.u32 %v927_v14, 16  ;;  %v781_v46 = vsel %vm12132_vm9, %v473_v25, %v780_v9  ;;  %v308_v33 = vsel %vm12065_vm4, 0, %v307_v31  ;;  %v1166_v47 = vsel %vm12199_vm13, %v1161_v60, %v12244_v24  ;;  %v406_v20 = vld [vmem:[%s12080_s17 + $0xb0] sm:$0xff]  ;;  %s11889_s20 = sshra.s32 %s10442_s16, 4  ;;  %s11895_s10 = scalar_lea.hbm %s16478_s5, 512  ;;  %s11890_s20 = int_to_ptr.hbm [resolvable:$true] %s11889_s20 }
  0x47   : > { %v974_v44 = vsel %vm12199_vm13, %v969_v35, %v12253_v37  ;;  %v482_v45 = vsel %vm12121_vm8, %v474_v29, %v481_v26  ;;  %v905_v18 = vld [vmem:[#allocation2 + $0x78] sm:$0xf]  ;;  %v619_v49 = vrot.slane %v12251_v32, 4  ;;  %782 = vst [vmem:[#allocation2 + $0x18] sm:$0xf] %v781_v46  ;;  %v437_v55 = vpack.c.bf16 %v405_v43, %v405_v43  ;;  %p11896_p0 = scmp.lt.s32.totalorder %s11890_s20, %s16478_s5 }
  0x48   : > { %v1325_v36 = vunpack.c.l.b16 %v974_v44  ;;  %v1175_v48 = vrot.slane %v1173_v41, 5  ;;  %v906_v37 = vld [vmem:[#allocation2 + $0x7c] sm:$0xf]  ;;  %783 = vst.msk [vmem:[#allocation2 + $0x1c] sm:$0xf] %vm262_vm1, %v482_v45  ;;  %v1178_v52 = vshrl.u32 %v905_v18, 16  ;;  %v1341_v61 = vunpack.c.l.b16 %v1166_v47 }
  0x49   : > { %v784_v51 = vld [vmem:[#allocation2 + $0x20] sm:$0x1]  ;;  %v1181_v53 = vshll.u32 %v905_v18, 16  ;;  %v11629_v59 = vld [vmem:[#allocation2 + $0x78] sm:$0xff]  ;;  %v1187_v54 = vshll.u32 %v906_v37, 16  ;;  %v1191_v2 = vshrl.u32 %v906_v37, 16  ;;  %v12310_v12 = vpack.c.bf16 %v388_v50, %v388_v50 }
  0x4a   : > { %v1356_v56 = vpack.c.b16 %v1326_v39, %v1325_v36  ;;  %v1176_v57 = vsel %vm12199_vm13, %v1171_v40, %v1175_v48  ;;  %v785_v24 = vsel %vm12065_vm4, %v483_v42, %v784_v51  ;;  %309 = vst [vmem:[#allocation2 + $0x84] sm:$0x1] %v308_v33  ;;  %v283_v32 = vld [vmem:[#allocation2 + $0x24] sm:$0x1]  ;;  %v1180_v30 = vrot.slane %v1178_v52, 4 }
  0x4b   : > { %v1342_v62 = vunpack.c.l.b16 %v1176_v57  ;;  %786 = vst [vmem:[#allocation2 + $0x20] sm:$0x1] %v785_v24  ;;  %v840_v63 = vld [vmem:[#allocation2 + $0x80] sm:$0x1]  ;;  %v1183_v0 = vrot.slane %v1181_v53, 5  ;;  %v1189_v1 = vrot.slane %v1187_v54, 5  ;;  %v12319_v17 = vpack.c.bf16 %v389_v5, %v389_v5 }
  0x4c   : > { %10564 = vmatmul.msk.bf16.gmra.mxu0 %vm1371_vm10, %v1356_v56  ;;  %v841_v58 = vsel %vm12065_vm4, %v619_v49, %v840_v63  ;;  %v621_v4 = vshrl.u32 %v12282_v38, 16  ;;  %v624_v10 = vshll.u32 %v12282_v38, 16  ;;  %v629_v11 = vshrl.u32 %v437_v55, 16  ;;  %v339_v40 = vld [vmem:[#allocation2 + $0x2c] sm:$0x1] }
  0x4d   : > { %842 = vst [vmem:[#allocation2 + $0x80] sm:$0x1] %v841_v58  ;;  %v1184_v7 = vor.u32 %v1183_v0, %v1180_v30  ;;  %v1193_v13 = vrot.slane %v1191_v2, 4  ;;  %v632_v16 = vshll.u32 %v437_v55, 16  ;;  %v284_v19 = vsel %vm12065_vm4, 0, %v283_v32 }
  0x4e   : > { %v623_v15 = vrot.slane %v621_v4, 7  ;;  %v1364_v6 = vpack.c.b16 %v1342_v62, %v1341_v61  ;;  %10653 = vmatmul.msk.bf16.gmra.mxu3 %vm1371_vm10, %v11629_v59  ;;  %v889_v22 = vld [vmem:[#allocation2 + $0x18] sm:$0xf]  ;;  %v12317_v23 = vrot.slane %v629_v11, 7  ;;  %285 = vst [vmem:[#allocation2 + $0x24] sm:$0x1] %v284_v19  ;;  %v12321_v41 = vpack.c.bf16 %v406_v20, %v406_v20 }
  0x4f   : > { %v1185_v9 = vrot.slane %v1184_v7, 4  ;;  %v890_v60 = vld [vmem:[#allocation2 + $0x1c] sm:$0xf]  ;;  %v986_v25 = vshrl.u32 %v889_v22, 16  ;;  %v989_v29 = vshll.u32 %v889_v22, 16  ;;  %v1194_v31 = vor.u32 %v1193_v13, %v1189_v1 }
  0x50   : > { %v11621_v35 = vld [vmem:[#allocation2 + $0x18] sm:$0xff]  ;;  %v626_v14 = vor.u32 %v624_v10, %v623_v15  ;;  %v995_v26 = vshll.u32 %v890_v60, 16  ;;  %v999_v38 = vshrl.u32 %v890_v60, 16  ;;  %v12323_v42 = vpack.c.bf16 %v407_v21, %v407_v21  ;;  %v363_v53 = vld [vmem:[#allocation2 + $0x8c] sm:$0x1]  ;;  %v390_v21 = vld [vmem:[%s12080_s17 + $0x30] sm:$0xff] }
  0x51   : > { %v843_v39 = vld [vmem:[#allocation2 + $0x84] sm:$0xf]  ;;  %v988_v44 = vrot.slane %v986_v25, 4  ;;  %v991_v45 = vrot.slane %v989_v29, 5  ;;  %v1190_v46 = vsel %vm12199_vm13, %v1185_v9, %v1189_v1  ;;  %10645 = vmatmul.msk.bf16.gmra.mxu1 %vm1371_vm10, %v11621_v35  ;;  %v627_v18 = vrot.slane %v623_v15, 4  ;;  %v391_v60 = vld [vmem:[%s12080_s17 + $0x38] sm:$0xff] }
  0x52   : > { %v920_v43 = vld [vmem:[#allocation2 + $0x20] sm:$0x1]  ;;  %v997_v33 = vrot.slane %v995_v26, 5  ;;  %v1001_v36 = vrot.slane %v999_v38, 4  ;;  %v634_v48 = vor.u32 %v632_v16, %v12317_v23  ;;  %v1195_v50 = vrot.slane %v1194_v31, 4 }
  0x53   : > { %v1005_v47 = vshll.u32 %v920_v43, 16  ;;  %v992_v49 = vor.u32 %v991_v45, %v988_v44  ;;  %v844_v51 = vsel %vm12132_vm9, %v626_v14, %v843_v39  ;;  %v340_v52 = vsel %vm12084_vm6, 0, %v339_v40  ;;  %v310_v24 = vld [vmem:[#allocation2 + $0x90] sm:$0x1] }
  0x54   : > { %10572 = vmatmul.msk.bf16.gmra.mxu2 %vm1371_vm10, %v1364_v6  ;;  %v928_v37 = vld [vmem:[#allocation2 + $0x80] sm:$0x1]  ;;  %v1002_v55 = vor.u32 %v1001_v36, %v997_v33  ;;  %v12334_v59 = vunpack.c.l.b16 %v1190_v46  ;;  %845 = vst [vmem:[#allocation2 + $0x84] sm:$0xf] %v844_v51  ;;  %v635_v32 = vsel %vm12121_vm8, %v627_v18, %v634_v48  ;;  %v485_v61 = vshrl.u32 %v12310_v12, 16 }
  0x55   : > { %v1007_v56 = vrot.slane %v1005_v47, 5  ;;  %v1197_v57 = vshll.u32 %v928_v37, 16  ;;  %v993_v54 = vrot.slane %v992_v49, 4  ;;  %341 = vst [vmem:[#allocation2 + $0x2c] sm:$0x1] %v340_v52  ;;  %v488_v62 = vshll.u32 %v12310_v12, 16 }
  0x56   : > { %v1003_v63 = vrot.slane %v1002_v55, 4  ;;  %846 = vst.msk [vmem:[#allocation2 + $0x88] sm:$0xf] %vm262_vm1, %v635_v32  ;;  %v493_v0 = vshrl.u32 %v12319_v17, 16  ;;  %v496_v58 = vshll.u32 %v12319_v17, 16  ;;  %v487_v2 = vrot.slane %v485_v61, 7 }
  0x57   : > { %v1199_v30 = vrot.slane %v1197_v57, 5  ;;  %v998_v1 = vsel %vm12199_vm13, %v993_v54, %v997_v33  ;;  %v364_v4 = vsel %vm12084_vm6, 0, %v363_v53  ;;  %v311_v5 = vsel %vm12065_vm4, 0, %v310_v24  ;;  %v787_v13 = vld [vmem:[#allocation2 + $0x24] sm:$0xf] }
  0x58   : > { %v1008_v7 = vsel %vm12199_vm13, %v1003_v63, %v1007_v56  ;;  %v1327_v10 = vunpack.c.l.b16 %v998_v1  ;;  %v495_v12 = vrot.slane %v493_v0, 7  ;;  %365 = vst [vmem:[#allocation2 + $0x8c] sm:$0x1] %v364_v4  ;;  %v490_v19 = vor.u32 %v488_v62, %v487_v2  ;;  %v286_v40 = vld [vmem:[#allocation2 + $0x30] sm:$0x1]  ;;  %v408_v32 = vld [vmem:[%s12080_s17 + $0xc0] sm:$0xff] }
  0x59   : > { %v1200_v11 = vsel %vm12199_vm13, %v1195_v50, %v1199_v30  ;;  %v1328_v15 = vunpack.c.l.b16 %v1008_v7  ;;  %v491_v20 = vrot.slane %v487_v2, 4  ;;  %312 = vst [vmem:[#allocation2 + $0x90] sm:$0x1] %v311_v5  ;;  %v636_v6 = vrot.slane %v12317_v23, 4  ;;  %v342_v37 = vld [vmem:[#allocation2 + $0x38] sm:$0x1] }
  0x5a   : > { %v1344_v16 = vunpack.c.l.b16 %v1200_v11  ;;  %v498_v22 = vor.u32 %v496_v58, %v495_v12  ;;  %v500_v9 = vrot.slane %v495_v12, 4  ;;  %v638_v17 = vshrl.u32 %v12321_v41, 16  ;;  %v409_v58 = vld [vmem:[%s12080_s17 + $0xc8] sm:$0xff] }
  0x5b   : > { %v1357_v25 = vpack.c.b16 %v1328_v15, %v1327_v10  ;;  %v788_v29 = vsel %vm12132_vm9, %v490_v19, %v787_v13  ;;  %v907_v31 = vld [vmem:[#allocation2 + $0x84] sm:$0xf]  ;;  %v641_v35 = vshll.u32 %v12321_v41, 16  ;;  %v646_v14 = vshrl.u32 %v12323_v42, 16 }
  0x5c   : > { %v499_v26 = vsel %vm12121_vm8, %v491_v20, %v498_v22  ;;  %789 = vst [vmem:[#allocation2 + $0x24] sm:$0xf] %v788_v29  ;;  %v791_v38 = vld [vmem:[#allocation2 + $0x2c] sm:$0x1]  ;;  %v1202_v23 = vshrl.u32 %v907_v31, 16  ;;  %v1205_v39 = vshll.u32 %v907_v31, 16  ;;  %v12363_v43 = vpack.c.bf16 %v390_v21, %v390_v21 }
  0x5d   : > { %10565 = vmatmul.msk.bf16.gmra.mxu0 %vm1371_vm10, %v1357_v25  ;;  %v1365_v44 = vpack.c.b16 %v1344_v16, %v12334_v59  ;;  %v11630_v45 = vld [vmem:[#allocation2 + $0x84] sm:$0xff]  ;;  %790 = vst.msk [vmem:[#allocation2 + $0x28] sm:$0xf] %vm262_vm1, %v499_v26  ;;  %v792_v41 = vsel %vm12065_vm4, %v500_v9, %v791_v38  ;;  %v640_v18 = vrot.slane %v638_v17, 7  ;;  %v12370_v33 = vpack.c.bf16 %v391_v60, %v391_v60  ;;  %v366_v26 = vld [vmem:[#allocation2 + $0x98] sm:$0x1] }
  0x5e   : > { %v908_v46 = vld [vmem:[#allocation2 + $0x88] sm:$0xf]  ;;  %793 = vst [vmem:[#allocation2 + $0x2c] sm:$0x1] %v792_v41  ;;  %v1204_v36 = vrot.slane %v1202_v23, 4  ;;  %v1207_v47 = vrot.slane %v1205_v39, 5  ;;  %10654 = vmatmul.msk.bf16.gmra.mxu3 %vm1371_vm10, %v11630_v45  ;;  %v12395_v7 = vpack.c.bf16 %v408_v32, %v408_v32  ;;  %v12403_v22 = vpack.c.bf16 %v409_v58, %v409_v58 }
  0x5f   : > { %v1211_v48 = vshll.u32 %v908_v46, 16  ;;  %v1215_v49 = vshrl.u32 %v908_v46, 16  ;;  %v847_v50 = vld [vmem:[#allocation2 + $0x8c] sm:$0x1]  ;;  %v643_v51 = vor.u32 %v641_v35, %v640_v18  ;;  %v644_v52 = vrot.slane %v640_v18, 4 }
  0x60   : > { %v12373_v53 = vrot.slane %v646_v14, 7  ;;  %v649_v55 = vshll.u32 %v12323_v42, 16  ;;  %v848_v56 = vsel %vm12065_vm4, %v636_v6, %v847_v50  ;;  %v1208_v57 = vor.u32 %v1207_v47, %v1204_v36  ;;  %v850_v54 = vld [vmem:[#allocation2 + $0x90] sm:$0xf]  ;;  %v392_v36 = vld [vmem:[%s12080_s17 + $0x40] sm:$0xff] }
  0x61   : > { %v12378_v59 = vrot.slane %v1211_v48, 5  ;;  %v1217_v24 = vrot.slane %v1215_v49, 4  ;;  %849 = vst [vmem:[#allocation2 + $0x8c] sm:$0x1] %v848_v56  ;;  %v851_v62 = vsel %vm12132_vm9, %v643_v51, %v850_v54  ;;  %v287_v63 = vsel %vm12065_vm4, 0, %v286_v40 }
  0x62   : > { %v651_v61 = vor.u32 %v649_v55, %v12373_v53  ;;  %v1209_v30 = vrot.slane %v1208_v57, 4  ;;  %v653_v42 = vrot.slane %v12373_v53, 4  ;;  %852 = vst [vmem:[#allocation2 + $0x90] sm:$0xf] %v851_v62  ;;  %v502_v0 = vshrl.u32 %v12363_v43, 16 }
  0x63   : > { %v891_v1 = vld [vmem:[#allocation2 + $0x24] sm:$0xf]  ;;  %288 = vst [vmem:[#allocation2 + $0x30] sm:$0x1] %v287_v63  ;;  %v343_v4 = vsel %vm12084_vm6, 0, %v342_v37  ;;  %v510_v5 = vshrl.u32 %v12370_v33, 16  ;;  %v1218_v13 = vor.u32 %v1217_v24, %v12378_v59 }
  0x64   : > { %10573 = vmatmul.msk.bf16.gmra.mxu2 %vm1371_vm10, %v1365_v44  ;;  %v652_v2 = vsel %vm12121_vm8, %v644_v52, %v651_v61  ;;  %v892_v10 = vld [vmem:[#allocation2 + $0x28] sm:$0xf]  ;;  %v1010_v11 = vshrl.u32 %v891_v1, 16  ;;  %v1013_v12 = vshll.u32 %v891_v1, 16  ;;  %v505_v16 = vshll.u32 %v12363_v43, 16 }
  0x65   : > { %v11622_v15 = vld [vmem:[#allocation2 + $0x24] sm:$0xff]  ;;  %v921_v19 = vld [vmem:[#allocation2 + $0x2c] sm:$0x1]  ;;  %v1019_v20 = vshll.u32 %v892_v10, 16  ;;  %v1023_v21 = vshrl.u32 %v892_v10, 16  ;;  %v1214_v6 = vsel %vm12199_vm13, %v1209_v30, %v12378_v59  ;;  %v504_v25 = vrot.slane %v502_v0, 7 }
  0x66   : > { %853 = vst.msk [vmem:[#allocation2 + $0x94] sm:$0xf] %vm262_vm1, %v652_v2  ;;  %v1012_v9 = vrot.slane %v1010_v11, 4  ;;  %v1015_v17 = vrot.slane %v1013_v12, 5  ;;  %v1029_v60 = vshll.u32 %v921_v19, 16  ;;  %10646 = vmatmul.msk.bf16.gmra.mxu1 %vm1371_vm10, %v11622_v15  ;;  %v512_v35 = vrot.slane %v510_v5, 7 }
  0x67   : > { %344 = vst [vmem:[#allocation2 + $0x38] sm:$0x1] %v343_v4  ;;  %v1021_v29 = vrot.slane %v1019_v20, 5  ;;  %v1025_v31 = vrot.slane %v1023_v21, 4  ;;  %v513_v14 = vshll.u32 %v12370_v33, 16  ;;  %v1219_v39 = vrot.slane %v1218_v13, 4 }
  0x68   : > { %v1016_v38 = vor.u32 %v1015_v17, %v1012_v9  ;;  %v929_v23 = vld [vmem:[#allocation2 + $0x8c] sm:$0x1]  ;;  %v507_v40 = vor.u32 %v505_v16, %v504_v25  ;;  %v508_v43 = vrot.slane %v504_v25, 4  ;;  %v1031_v45 = vrot.slane %v1029_v60, 5  ;;  %v313_v56 = vld [vmem:[#allocation2 + $0x9c] sm:$0x1] }
  0x69   : > { %v1026_v44 = vor.u32 %v1025_v31, %v1021_v29  ;;  %v1221_v41 = vshll.u32 %v929_v23, 16  ;;  %v515_v46 = vor.u32 %v513_v14, %v512_v35  ;;  %v909_v18 = vld [vmem:[#allocation2 + $0x90] sm:$0xf]  ;;  %v517_v48 = vrot.slane %v512_v35, 4  ;;  %v289_v10 = vld [vmem:[#allocation2 + $0x3c] sm:$0x1] }
  0x6a   : > { %v1017_v47 = vrot.slane %v1016_v38, 4  ;;  %v794_v49 = vld [vmem:[#allocation2 + $0x30] sm:$0xf]  ;;  %v367_v37 = vsel %vm12084_vm6, 0, %v366_v26  ;;  %v1226_v50 = vshrl.u32 %v909_v18, 16  ;;  %v1345_v59 = vunpack.c.l.b16 %v1214_v6  ;;  %v393_v6 = vld [vmem:[%s12080_s17 + $0x48] sm:$0xff] }
  0x6b   : > { %v1027_v33 = vrot.slane %v1026_v44, 4  ;;  %v1223_v51 = vrot.slane %v1221_v41, 5  ;;  %v516_v52 = vsel %vm12121_vm8, %v508_v43, %v515_v46  ;;  %v795_v55 = vsel %vm12132_vm9, %v507_v40, %v794_v49  ;;  %368 = vst [vmem:[#allocation2 + $0x98] sm:$0x1] %v367_v37  ;;  %v345_v11 = vld [vmem:[#allocation2 + $0x44] sm:$0x1] }
  0x6c   : > { %v1022_v57 = vsel %vm12199_vm13, %v1017_v47, %v1021_v29  ;;  %796 = vst [vmem:[#allocation2 + $0x30] sm:$0xf] %v795_v55  ;;  %v1228_v32 = vrot.slane %v1226_v50, 4  ;;  %v12416_v61 = vpack.c.bf16 %v392_v36, %v392_v36  ;;  %v1229_v58 = vshll.u32 %v909_v18, 16  ;;  %v410_v29 = vld [vmem:[%s12080_s17 + $0xd0] sm:$0xff]  ;;  %v411_v38 = vld [vmem:[%s12080_s17 + $0xd8] sm:$0xff] }
  0x6d   : > { %v11631_v24 = vld [vmem:[#allocation2 + $0x90] sm:$0xff]  ;;  %v1032_v62 = vsel %vm12199_vm13, %v1027_v33, %v1031_v45  ;;  %v1329_v63 = vunpack.c.l.b16 %v1022_v57  ;;  %v1224_v30 = vsel %vm12199_vm13, %v1219_v39, %v1223_v51  ;;  %797 = vst.msk [vmem:[#allocation2 + $0x34] sm:$0xf] %vm262_vm1, %v516_v52  ;;  %v314_v15 = vsel %vm12065_vm4, 0, %v313_v56 }
  0x6e   : > { %v910_v54 = vld [vmem:[#allocation2 + $0x94] sm:$0xf]  ;;  %v798_v0 = vld [vmem:[#allocation2 + $0x38] sm:$0x1]  ;;  %v1330_v1 = vunpack.c.l.b16 %v1032_v62  ;;  %v1346_v2 = vunpack.c.l.b16 %v1224_v30  ;;  %10655 = vmatmul.msk.bf16.gmra.mxu3 %vm1371_vm10, %v11631_v24  ;;  %v1231_v12 = vrot.slane %v1229_v58, 5  ;;  %v655_v16 = vshrl.u32 %v12395_v7, 16 }
  0x6f   : > { %v799_v4 = vsel %vm12065_vm4, %v517_v48, %v798_v0  ;;  %v1235_v5 = vshll.u32 %v910_v54, 16  ;;  %v1239_v13 = vshrl.u32 %v910_v54, 16  ;;  %315 = vst [vmem:[#allocation2 + $0x9c] sm:$0x1] %v314_v15  ;;  %v658_v21 = vshll.u32 %v12395_v7, 16  ;;  %v394_v31 = vld [vmem:[%s12080_s17 + $0x50] sm:$0xff] }
  0x70   : > { %800 = vst [vmem:[#allocation2 + $0x38] sm:$0x1] %v799_v4  ;;  %v1358_v19 = vpack.c.b16 %v1330_v1, %v1329_v63  ;;  %v1366_v20 = vpack.c.b16 %v1346_v2, %v1345_v59  ;;  %v1232_v9 = vor.u32 %v1231_v12, %v1228_v32  ;;  %v12433_v25 = vrot.slane %v655_v16, 7 }
  0x71   : > { %v12431_v17 = vrot.slane %v1235_v5, 5  ;;  %v1241_v60 = vrot.slane %v1239_v13, 4  ;;  %v663_v14 = vshrl.u32 %v12403_v22, 16  ;;  %v290_v26 = vsel %vm12065_vm4, 0, %v289_v10 }
  0x72   : > { %10566 = vmatmul.msk.bf16.gmra.mxu0 %vm1371_vm10, %v1358_v19  ;;  %v854_v35 = vld [vmem:[#allocation2 + $0x98] sm:$0x1]  ;;  %v346_v7 = vsel %vm12084_vm6, 0, %v345_v11  ;;  %v666_v40 = vshll.u32 %v12403_v22, 16  ;;  %291 = vst [vmem:[#allocation2 + $0x3c] sm:$0x1] %v290_v26  ;;  %v425_v43 = vpack.c.bf16 %v393_v6, %v393_v6  ;;  %v660_v18 = vor.u32 %v658_v21, %v12433_v25 }
  0x73   : > { %v893_v23 = vld [vmem:[#allocation2 + $0x30] sm:$0xf]  ;;  %v855_v39 = vsel %vm12065_vm4, %v653_v42, %v854_v35  ;;  %v519_v44 = vshrl.u32 %v12416_v61, 16  ;;  %v12452_v36 = vpack.c.bf16 %v394_v31, %v394_v31  ;;  %v1233_v53 = vrot.slane %v1232_v9, 4  ;;  %347 = vst [vmem:[#allocation2 + $0x44] sm:$0x1] %v346_v7 }
  0x74   : > { %10574 = vmatmul.msk.bf16.gmra.mxu2 %vm1371_vm10, %v1366_v20  ;;  %v894_v45 = vld [vmem:[#allocation2 + $0x34] sm:$0xf]  ;;  %v1034_v41 = vshrl.u32 %v893_v23, 16  ;;  %v1037_v46 = vshll.u32 %v893_v23, 16  ;;  %856 = vst [vmem:[#allocation2 + $0x98] sm:$0x1] %v855_v39  ;;  %v1242_v49 = vor.u32 %v1241_v60, %v12431_v17  ;;  %v12455_v33 = vpack.c.bf16 %v410_v29, %v410_v29 }
  0x75   : > { %v1043_v47 = vshll.u32 %v894_v45, 16  ;;  %v1047_v48 = vshrl.u32 %v894_v45, 16  ;;  %v11623_v42 = vld [vmem:[#allocation2 + $0x30] sm:$0xff]  ;;  %v12457_v51 = vpack.c.bf16 %v411_v38, %v411_v38  ;;  %v661_v57 = vrot.slane %v12433_v25, 4  ;;  %v369_v9 = vld [vmem:[#allocation2 + $0xa4] sm:$0x1] }
  0x76   : > { %v1036_v37 = vrot.slane %v1034_v41, 4  ;;  %v1039_v50 = vrot.slane %v1037_v46, 5  ;;  %10647 = vmatmul.msk.bf16.gmra.mxu1 %vm1371_vm10, %v11623_v42  ;;  %v857_v59 = vld [vmem:[#allocation2 + $0x9c] sm:$0xf]  ;;  %v12461_v54 = vrot.slane %v663_v14, 7  ;;  %v521_v62 = vrot.slane %v519_v44, 7 }
  0x77   : > { %v922_v22 = vld [vmem:[#allocation2 + $0x38] sm:$0x1]  ;;  %v1045_v52 = vrot.slane %v1043_v47, 5  ;;  %v1049_v55 = vrot.slane %v1047_v48, 4  ;;  %v858_v32 = vsel %vm12132_vm9, %v660_v18, %v857_v59  ;;  %v522_v0 = vshll.u32 %v12416_v61, 16 }
  0x78   : > { %v1053_v56 = vshll.u32 %v922_v22, 16  ;;  %v1040_v24 = vor.u32 %v1039_v50, %v1036_v37  ;;  %859 = vst [vmem:[#allocation2 + $0x9c] sm:$0xf] %v858_v32  ;;  %v527_v58 = vshrl.u32 %v425_v43, 16  ;;  %v1238_v2 = vsel %vm12199_vm13, %v1233_v53, %v12431_v17  ;;  %v316_v31 = vld [vmem:[#allocation2 + $0xa8] sm:$0x1] }
  0x79   : > { %v1050_v63 = vor.u32 %v1049_v55, %v1045_v52  ;;  %v668_v4 = vor.u32 %v666_v40, %v12461_v54  ;;  %v525_v5 = vrot.slane %v521_v62, 4  ;;  %v801_v10 = vld [vmem:[#allocation2 + $0x3c] sm:$0xf]  ;;  %v524_v13 = vor.u32 %v522_v0, %v521_v62  ;;  %v292_v38 = vld [vmem:[#allocation2 + $0x48] sm:$0x1] }
  0x7a   : > { %v1055_v30 = vrot.slane %v1053_v56, 5  ;;  %v1041_v1 = vrot.slane %v1040_v24, 4  ;;  %v529_v15 = vrot.slane %v527_v58, 7  ;;  %v530_v16 = vshll.u32 %v425_v43, 16  ;;  %v805_v6 = vld [vmem:[#allocation2 + $0x44] sm:$0x1] }
  0x7b   : > { %v1051_v11 = vrot.slane %v1050_v63, 4  ;;  %v930_v12 = vld [vmem:[#allocation2 + $0x98] sm:$0x1]  ;;  %v1243_v20 = vrot.slane %v1242_v49, 4  ;;  %v669_v21 = vsel %vm12121_vm8, %v661_v57, %v668_v4  ;;  %v1347_v26 = vunpack.c.l.b16 %v1238_v2  ;;  %v348_v45 = vld [vmem:[#allocation2 + $0x50] sm:$0x1] }
  0x7c   : > { %v1046_v19 = vsel %vm12199_vm13, %v1041_v1, %v1045_v52  ;;  %v1245_v61 = vshll.u32 %v930_v12, 16  ;;  %860 = vst.msk [vmem:[#allocation2 + $0xa0] sm:$0xf] %vm262_vm1, %v669_v21  ;;  %v532_v25 = vor.u32 %v530_v16, %v529_v15  ;;  %v534_v29 = vrot.slane %v529_v15, 4  ;;  %v395_v23 = vld [vmem:[%s12080_s17 + $0x58] sm:$0xff]  ;;  %v412_v12 = vld [vmem:[%s12080_s17 + $0xe0] sm:$0xff] }
  0x7d   : > { %v1056_v17 = vsel %vm12199_vm13, %v1051_v11, %v1055_v30  ;;  %v1331_v60 = vunpack.c.l.b16 %v1046_v19  ;;  %v802_v7 = vsel %vm12132_vm9, %v524_v13, %v801_v10  ;;  %v370_v43 = vsel %vm12084_vm6, 0, %v369_v9 }
  0x7e   : > { %v1332_v35 = vunpack.c.l.b16 %v1056_v17  ;;  %v1247_v14 = vrot.slane %v1245_v61, 5  ;;  %v533_v39 = vsel %vm12121_vm8, %v525_v5, %v532_v25  ;;  %803 = vst [vmem:[#allocation2 + $0x3c] sm:$0xf] %v802_v7  ;;  %v806_v40 = vsel %vm12065_vm4, %v534_v29, %v805_v6 }
  0x7f   : > { %v672_v44 = vshrl.u32 %v12455_v33, 16  ;;  %804 = vst.msk [vmem:[#allocation2 + $0x40] sm:$0xf] %vm262_vm1, %v533_v39  ;;  %v911_v18 = vld [vmem:[#allocation2 + $0x9c] sm:$0xf]  ;;  %v317_v47 = vsel %vm12065_vm4, 0, %v316_v31  ;;  %v12499_v55 = vpack.c.bf16 %v395_v23, %v395_v23 }
  0x80   : > { %v1359_v41 = vpack.c.b16 %v1332_v35, %v1331_v60  ;;  %v1248_v46 = vsel %vm12199_vm13, %v1243_v20, %v1247_v14  ;;  %v680_v48 = vshrl.u32 %v12457_v51, 16  ;;  %807 = vst [vmem:[#allocation2 + $0x44] sm:$0x1] %v806_v40  ;;  %v1250_v49 = vshrl.u32 %v911_v18, 16 }
  0x81   : > { %v1348_v53 = vunpack.c.l.b16 %v1248_v46  ;;  %v1253_v42 = vshll.u32 %v911_v18, 16  ;;  %v674_v22 = vrot.slane %v672_v44, 7  ;;  %371 = vst [vmem:[#allocation2 + $0xa4] sm:$0x1] %v370_v43  ;;  %v683_v50 = vshll.u32 %v12457_v51, 16  ;;  %v413_v43 = vld [vmem:[%s12080_s17 + $0xe8] sm:$0xff] }
  0x82   : > { %10567 = vmatmul.msk.bf16.gmra.mxu0 %vm1371_vm10, %v1359_v41  ;;  %v12494_v37 = vrot.slane %v680_v48, 7  ;;  %v293_v52 = vsel %vm12065_vm4, 0, %v292_v38  ;;  %v1252_v57 = vrot.slane %v1250_v49, 4  ;;  %318 = vst [vmem:[#allocation2 + $0xa8] sm:$0x1] %v317_v47  ;;  %v349_v24 = vsel %vm12084_vm6, 0, %v348_v45 }
  0x83   : > { %v1367_v56 = vpack.c.b16 %v1348_v53, %v1347_v26  ;;  %v1255_v59 = vrot.slane %v1253_v42, 5  ;;  %v11632_v32 = vld [vmem:[#allocation2 + $0x9c] sm:$0xff]  ;;  %v675_v63 = vshll.u32 %v12455_v33, 16  ;;  %v678_v30 = vrot.slane %v674_v22, 4  ;;  %294 = vst [vmem:[#allocation2 + $0x48] sm:$0x1] %v293_v52 }
  0x84   : > { %v912_v62 = vld [vmem:[#allocation2 + $0xa0] sm:$0xf]  ;;  %v685_v51 = vor.u32 %v683_v50, %v12494_v37  ;;  %v536_v0 = vshrl.u32 %v12452_v36, 16  ;;  %v670_v58 = vrot.slane %v12461_v54, 4  ;;  %v539_v4 = vshll.u32 %v12452_v36, 16  ;;  %10656 = vmatmul.msk.bf16.gmra.mxu3 %vm1371_vm10, %v11632_v32 }
  0x85   : > { %10575 = vmatmul.msk.bf16.gmra.mxu2 %vm1371_vm10, %v1367_v56  ;;  %v1259_v1 = vshll.u32 %v912_v62, 16  ;;  %v1263_v2 = vshrl.u32 %v912_v62, 16  ;;  %v895_v5 = vld [vmem:[#allocation2 + $0x3c] sm:$0xf]  ;;  %v1256_v10 = vor.u32 %v1255_v59, %v1252_v57  ;;  %350 = vst [vmem:[#allocation2 + $0x50] sm:$0x1] %v349_v24  ;;  %v677_v9 = vor.u32 %v675_v63, %v674_v22 }
  0x86   : > { %v686_v33 = vsel %vm12121_vm8, %v678_v30, %v685_v51  ;;  %v538_v11 = vrot.slane %v536_v0, 7  ;;  %v896_v13 = vld [vmem:[#allocation2 + $0x40] sm:$0xf]  ;;  %v1058_v15 = vshrl.u32 %v895_v5, 16  ;;  %v1061_v16 = vshll.u32 %v895_v5, 16 }
  0x87   : > { %v12513_v19 = vrot.slane %v1259_v1, 5  ;;  %v544_v54 = vshrl.u32 %v12499_v55, 16  ;;  %v923_v20 = vld [vmem:[#allocation2 + $0x44] sm:$0x1]  ;;  %v1067_v61 = vshll.u32 %v896_v13, 16  ;;  %v1071_v36 = vshrl.u32 %v896_v13, 16 }
  0x88   : > { %v1265_v21 = vrot.slane %v1263_v2, 4  ;;  %v11624_v6 = vld [vmem:[#allocation2 + $0x3c] sm:$0xff]  ;;  %v1060_v17 = vrot.slane %v1058_v15, 4  ;;  %v1063_v60 = vrot.slane %v1061_v16, 5  ;;  %v1077_v25 = vshll.u32 %v923_v20, 16 }
  0x89   : > { %v861_v29 = vld [vmem:[#allocation2 + $0xa4] sm:$0x1]  ;;  %v541_v31 = vor.u32 %v539_v4, %v538_v11  ;;  %v1069_v35 = vrot.slane %v1067_v61, 5  ;;  %v1073_v14 = vrot.slane %v1071_v36, 4  ;;  %10648 = vmatmul.msk.bf16.gmra.mxu1 %vm1371_vm10, %v11624_v6  ;;  %v864_v7 = vld [vmem:[#allocation2 + $0xa8] sm:$0xf]  ;;  %v12522_v44 = vpack.c.bf16 %v412_v12, %v412_v12 }
  0x8a   : > { %v862_v26 = vsel %vm12065_vm4, %v670_v58, %v861_v29  ;;  %867 = vst.msk [vmem:[#allocation2 + $0xac] sm:$0xf] %vm262_vm1, %v686_v33  ;;  %v372_v38 = vld [vmem:[#allocation2 + $0xb0] sm:$0x1]  ;;  %v1064_v23 = vor.u32 %v1063_v60, %v1060_v17  ;;  %v1257_v39 = vrot.slane %v1256_v10, 4  ;;  %v687_v40 = vrot.slane %v12494_v37, 4 }
  0x8b   : > { %863 = vst [vmem:[#allocation2 + $0xa4] sm:$0x1] %v862_v26  ;;  %v1074_v45 = vor.u32 %v1073_v14, %v1069_v35  ;;  %v1079_v41 = vrot.slane %v1077_v25, 5  ;;  %v865_v46 = vsel %vm12132_vm9, %v677_v9, %v864_v7  ;;  %v546_v18 = vrot.slane %v544_v54, 7  ;;  %v808_v47 = vld [vmem:[#allocation2 + $0x48] sm:$0xf] }
  0x8c   : > { %v319_v48 = vld [vmem:[#allocation2 + $0xb4] sm:$0x1]  ;;  %v1065_v53 = vrot.slane %v1064_v23, 4  ;;  %866 = vst [vmem:[#allocation2 + $0xa8] sm:$0xf] %v865_v46  ;;  %v542_v49 = vrot.slane %v538_v11, 4  ;;  %v809_v22 = vsel %vm12132_vm9, %v541_v31, %v808_v47  ;;  %v1266_v52 = vor.u32 %v1265_v21, %v12513_v19 }
  0x8d   : > { %v547_v42 = vshll.u32 %v12499_v55, 16  ;;  %v1075_v50 = vrot.slane %v1074_v45, 4  ;;  %v551_v56 = vrot.slane %v546_v18, 4  ;;  %810 = vst [vmem:[#allocation2 + $0x48] sm:$0xf] %v809_v22  ;;  %v445_v59 = vpack.c.bf16 %v413_v43, %v413_v43  ;;  %v396_v10 = vld [vmem:[%s12080_s17 + $0x60] sm:$0xff] }
  0x8e   : > { %v812_v57 = vld [vmem:[#allocation2 + $0x50] sm:$0x1]  ;;  %v1070_v24 = vsel %vm12199_vm13, %v1065_v53, %v1069_v35  ;;  %v373_v62 = vsel %vm12084_vm6, 0, %v372_v38  ;;  %v320_v55 = vsel %vm12065_vm4, 0, %v319_v48  ;;  %v689_v0 = vshrl.u32 %v12522_v44, 16 }
  0x8f   : > { %v549_v32 = vor.u32 %v547_v42, %v546_v18  ;;  %v1080_v63 = vsel %vm12199_vm13, %v1075_v50, %v1079_v41  ;;  %v1333_v30 = vunpack.c.l.b16 %v1070_v24  ;;  %v813_v51 = vsel %vm12065_vm4, %v551_v56, %v812_v57  ;;  %374 = vst [vmem:[#allocation2 + $0xb0] sm:$0x1] %v373_v62  ;;  %v295_v48 = vld [vmem:[#allocation2 + $0x54] sm:$0x1]  ;;  %v351_v53 = vld [vmem:[#allocation2 + $0x5c] sm:$0x1] }
  0x90   : > { %v1334_v58 = vunpack.c.l.b16 %v1080_v63  ;;  %v1262_v1 = vsel %vm12199_vm13, %v1257_v39, %v12513_v19  ;;  %814 = vst [vmem:[#allocation2 + $0x50] sm:$0x1] %v813_v51  ;;  %v697_v5 = vshrl.u32 %v445_v59, 16  ;;  %v1267_v15 = vrot.slane %v1266_v52, 4 }
  0x91   : > { %v550_v2 = vsel %vm12121_vm8, %v542_v49, %v549_v32  ;;  %v914_v4 = vld [vmem:[#allocation2 + $0xac] sm:$0xf]  ;;  %321 = vst [vmem:[#allocation2 + $0xb4] sm:$0x1] %v320_v55  ;;  %v691_v54 = vrot.slane %v689_v0, 7  ;;  %v1349_v20 = vunpack.c.l.b16 %v1262_v1  ;;  %v692_v21 = vshll.u32 %v12522_v44, 16 }
  0x92   : > { %v931_v33 = vld [vmem:[#allocation2 + $0xa4] sm:$0x1]  ;;  %811 = vst.msk [vmem:[#allocation2 + $0x4c] sm:$0xf] %vm262_vm1, %v550_v2  ;;  %v1283_v11 = vshll.u32 %v914_v4, 16  ;;  %v1287_v12 = vshrl.u32 %v914_v4, 16  ;;  %v1360_v13 = vpack.c.b16 %v1334_v58, %v1333_v30  ;;  %v12551_v6 = vpack.c.bf16 %v396_v10, %v396_v10 }
  0x93   : > { %v1269_v16 = vshll.u32 %v931_v33, 16  ;;  %v11633_v61 = vld [vmem:[#allocation2 + $0xa8] sm:$0xff]  ;;  %v12554_v29 = vrot.slane %v697_v5, 7  ;;  %v695_v26 = vrot.slane %v691_v54, 4  ;;  %v700_v43 = vshll.u32 %v445_v59, 16 }
  0x94   : > { %v913_v19 = vld [vmem:[#allocation2 + $0xa8] sm:$0xf]  ;;  %v12548_v36 = vrot.slane %v1283_v11, 5  ;;  %10568 = vmatmul.msk.bf16.gmra.mxu0 %vm1371_vm10, %v1360_v13  ;;  %10657 = vmatmul.msk.bf16.gmra.mxu3 %vm1371_vm10, %v11633_v61  ;;  %v1289_v14 = vrot.slane %v1287_v12, 4  ;;  %v694_v50 = vor.u32 %v692_v21, %v691_v54  ;;  %v296_v1 = vsel %vm12065_vm4, 0, %v295_v48 }
  0x95   : > { %v1271_v9 = vrot.slane %v1269_v16, 5  ;;  %v897_v17 = vld [vmem:[#allocation2 + $0x48] sm:$0xf]  ;;  %v1274_v60 = vshrl.u32 %v913_v19, 16  ;;  %v1277_v25 = vshll.u32 %v913_v19, 16  ;;  %v702_v52 = vor.u32 %v700_v43, %v12554_v29 }
  0x96   : > { %v1082_v31 = vshrl.u32 %v897_v17, 16  ;;  %v1085_v35 = vshll.u32 %v897_v17, 16  ;;  %v868_v38 = vld [vmem:[#allocation2 + $0xb0] sm:$0x1]  ;;  %v397_v44 = vld [vmem:[%s12080_s17 + $0x68] sm:$0xff]  ;;  %v352_v2 = vsel %vm12084_vm6, 0, %v351_v53 }
  0x97   : > { %v1272_v7 = vsel %vm12199_vm13, %v1267_v15, %v1271_v9  ;;  %v1276_v23 = vrot.slane %v1274_v60, 4  ;;  %v1279_v39 = vrot.slane %v1277_v25, 5  ;;  %v924_v41 = vld [vmem:[#allocation2 + $0x50] sm:$0x1]  ;;  %v869_v47 = vsel %vm12065_vm4, %v687_v40, %v868_v38  ;;  %v375_v11 = vld [vmem:[#allocation2 + $0xbc] sm:$0x1] }
  0x98   : > { %v1350_v45 = vunpack.c.l.b16 %v1272_v7  ;;  %v1084_v46 = vrot.slane %v1082_v31, 4  ;;  %v1087_v18 = vrot.slane %v1085_v35, 5  ;;  %v1101_v42 = vshll.u32 %v924_v41, 16  ;;  %870 = vst [vmem:[#allocation2 + $0xb0] sm:$0x1] %v869_v47 }
  0x99   : > { %v12564_v49 = vld [vmem:[#allocation2 + $0x4c] sm:$0xf]  ;;  %v1280_v22 = vor.u32 %v1279_v39, %v1276_v23  ;;  %v871_v32 = vld [vmem:[#allocation2 + $0xb4] sm:$0xf]  ;;  %v1290_v40 = vor.u32 %v1289_v14, %v12548_v36  ;;  %v703_v62 = vsel %vm12121_vm8, %v695_v26, %v702_v52  ;;  %v429_v55 = vpack.c.bf16 %v397_v44, %v397_v44  ;;  %297 = vst [vmem:[#allocation2 + $0x54] sm:$0x1] %v296_v1 }
  0x9a   : > { %v1368_v56 = vpack.c.b16 %v1350_v45, %v1349_v20  ;;  %v1088_v57 = vor.u32 %v1087_v18, %v1084_v46  ;;  %v1091_v59 = vshll.u32 %v12564_v49, 16  ;;  %v1095_v24 = vshrl.u32 %v12564_v49, 16  ;;  %v11625_v37 = vld [vmem:[#allocation2 + $0x48] sm:$0xff]  ;;  %874 = vst.msk [vmem:[#allocation2 + $0xb8] sm:$0xf] %vm262_vm1, %v703_v62 }
  0x9b   : > { %v1281_v0 = vrot.slane %v1280_v22, 4  ;;  %10649 = vmatmul.msk.bf16.gmra.mxu1 %vm1371_vm10, %v11625_v37  ;;  %v872_v58 = vsel %vm12132_vm9, %v694_v50, %v871_v32  ;;  %v1103_v10 = vrot.slane %v1101_v42, 5  ;;  %v553_v33 = vshrl.u32 %v12551_v6, 16  ;;  %353 = vst [vmem:[#allocation2 + $0x5c] sm:$0x1] %v352_v2 }
  0x9c   : > { %10576 = vmatmul.msk.bf16.gmra.mxu2 %vm1371_vm10, %v1368_v56  ;;  %v1089_v63 = vrot.slane %v1088_v57, 4  ;;  %v1093_v30 = vrot.slane %v1091_v59, 5  ;;  %v1097_v51 = vrot.slane %v1095_v24, 4  ;;  %873 = vst [vmem:[#allocation2 + $0xb4] sm:$0xf] %v872_v58  ;;  %v1291_v12 = vrot.slane %v1290_v40, 4 }
  0x9d   : > { %v556_v13 = vshll.u32 %v12551_v6, 16  ;;  %v561_v15 = vshrl.u32 %v429_v55, 16  ;;  %v564_v16 = vshll.u32 %v429_v55, 16  ;;  %v1286_v61 = vsel %vm12199_vm13, %v1281_v0, %v12548_v36  ;;  %v2404_v50 = vld [vmem:[#allocation2 + $0xc] sm:$0xf] }
  0x9e   : > { %v1094_v4 = vsel %vm12199_vm13, %v1089_v63, %v1093_v30  ;;  %v1098_v5 = vor.u32 %v1097_v51, %v1093_v30  ;;  %v555_v19 = vrot.slane %v553_v33, 7  ;;  %v376_v60 = vsel %vm12084_vm6, 0, %v375_v11  ;;  %v12606_v63 = vld [vmem:[#allocation2 + $0x10] sm:$0xf] }
  0x9f   : > { %v932_v20 = vld [vmem:[#allocation2 + $0xb0] sm:$0x1]  ;;  %v1335_v21 = vunpack.c.l.b16 %v1094_v4  ;;  %v563_v17 = vrot.slane %v561_v15, 7  ;;  %377 = vst [vmem:[#allocation2 + $0xbc] sm:$0x1] %v376_v60  ;;  %v1351_v38 = vunpack.c.l.b16 %v1286_v61  ;;  %v704_v36 = vrot.slane %v12554_v29, 4 }
  0xa0   : > { %v1099_v54 = vrot.slane %v1098_v5, 4  ;;  %v1293_v9 = vshll.u32 %v932_v20, 16  ;;  %v559_v6 = vrot.slane %v555_v19, 4  ;;  %v558_v14 = vor.u32 %v556_v13, %v555_v19  ;;  %v815_v48 = vld [vmem:[#allocation2 + $0x54] sm:$0xf] }
  0xa1   : > { %v566_v26 = vor.u32 %v564_v16, %v563_v17  ;;  %v916_v7 = vld [vmem:[#allocation2 + $0xb8] sm:$0xf]  ;;  %v568_v23 = vrot.slane %v563_v17, 4  ;;  %v2453_v62 = vshrl.u32 %v2404_v50, 16  ;;  %v2456_v30 = vshll.u32 %v2404_v50, 16 }
  0xa2   : > { %v1104_v25 = vsel %vm12199_vm13, %v1099_v54, %v1103_v10  ;;  %v1295_v35 = vrot.slane %v1293_v9, 5  ;;  %v1307_v39 = vshll.u32 %v916_v7, 16  ;;  %v1311_v18 = vshrl.u32 %v916_v7, 16  ;;  %v819_v22 = vld [vmem:[#allocation2 + $0x5c] sm:$0x1] }
  0xa3   : > { %v1336_v31 = vunpack.c.l.b16 %v1104_v25  ;;  %v11634_v45 = vld [vmem:[#allocation2 + $0xb4] sm:$0xff]  ;;  %v567_v41 = vsel %vm12121_vm8, %v559_v6, %v566_v26  ;;  %v816_v29 = vsel %vm12132_vm9, %v558_v14, %v815_v48  ;;  %v820_v56 = vsel %vm12065_vm4, %v568_v23, %v819_v22  ;;  %v10823_v17 = vld [vmem:[%s16474_s1 + $0xc] sm:$0x3]  ;;  %v10904_v60 = vld [vmem:[%s16474_s1 + $0xe] sm:$0x3] }
  0xa4   : > { %v1296_v44 = vsel %vm12199_vm13, %v1291_v12, %v1295_v35  ;;  %v915_v46 = vld [vmem:[#allocation2 + $0xb4] sm:$0xf]  ;;  %818 = vst.msk [vmem:[#allocation2 + $0x58] sm:$0xf] %vm262_vm1, %v567_v41  ;;  %10658 = vmatmul.msk.bf16.gmra.mxu3 %vm1371_vm10, %v11634_v45  ;;  %v1309_v37 = vrot.slane %v1307_v39, 5  ;;  %v1313_v32 = vrot.slane %v1311_v18, 4 }
  0xa5   : > { %v1361_v43 = vpack.c.b16 %v1336_v31, %v1335_v21  ;;  %v1352_v47 = vunpack.c.l.b16 %v1296_v44  ;;  %v1298_v53 = vshrl.u32 %v915_v46, 16  ;;  %v1301_v42 = vshll.u32 %v915_v46, 16  ;;  %817 = vst [vmem:[#allocation2 + $0x54] sm:$0xf] %v816_v29  ;;  %v10806_v26 = vld [vmem:[%s16474_s1 + $0xa] sm:$0x3] }
  0xa6   : > { %821 = vst [vmem:[#allocation2 + $0x5c] sm:$0x1] %v820_v56  ;;  %v875_v24 = vld [vmem:[#allocation2 + $0xbc] sm:$0x1]  ;;  %v1314_v0 = vor.u32 %v1313_v32, %v1309_v37  ;;  %v12613_v4 = vrot.slane %v2453_v62, 4  ;;  %v2462_v5 = vshll.u32 %v12606_v63, 16 }
  0xa7   : > { %10569 = vmatmul.msk.bf16.gmra.mxu0 %vm1371_vm10, %v1361_v43  ;;  %v1369_v52 = vpack.c.b16 %v1352_v47, %v1351_v38  ;;  %v1300_v57 = vrot.slane %v1298_v53, 4  ;;  %v1303_v59 = vrot.slane %v1301_v42, 5  ;;  %v876_v40 = vsel %vm12065_vm4, %v704_v36, %v875_v24  ;;  %v1653_v58 = vpop.f32.mrf.mxu1  ;;  %v11635_v23 = vld [vmem:[#allocation2 + $0xc] sm:$0xff]  ;;  %v2406_v22 = vld [vmem:[#allocation2 + $0x14] sm:$0x1] }
  0xa8   : > { %877 = vst [vmem:[#allocation2 + $0xbc] sm:$0x1] %v876_v40  ;;  %v2458_v12 = vrot.slane %v2456_v30, 5  ;;  %v2466_v13 = vshrl.u32 %v12606_v63, 16  ;;  %v1315_v21 = vrot.slane %v1314_v0, 4  ;;  %v12636_v45 = vrot.slane %v2462_v5, 5 }
  0xa9   : > { %v1304_v55 = vor.u32 %v1303_v59, %v1300_v57  ;;  %v3620_v46 = vsel %vm1420_vm0, %v10823_v17, 0  ;;  %v4274_v18 = vsel %vm1420_vm0, %v10904_v60, 0  ;;  %v3333_v48 = vsel %vm1420_vm0, %v10806_v26, 0  ;;  %v3058_v59 = vld [vmem:[#allocation2 + $0xc] sm:$0xe] }
  0xaa   : > { %v2468_v50 = vrot.slane %v2466_v13, 4  ;;  %3629 = vmatpush.bf16.msra.mxu2 %v3620_v46  ;;  %4283 = vmatpush.bf16.msra.mxu3 %v4274_v18  ;;  %v2459_v57 = vor.u32 %v2458_v12, %v12613_v4  ;;  %v2472_v40 = vshll.u32 %v2406_v22, 16  ;;  %v3124_v4 = vrot.slane %v12606_v63, 5  ;;  %v10937_v63 = vld [vmem:[%s16474_s1 + $0x10] sm:$0x3] }
  0xab   : > { %v12609_v51 = vld [vmem:[#allocation2 + $0x58] sm:$0xf]  ;;  %v1305_v33 = vrot.slane %v1304_v55, 4  ;;  %3342 = vmatpush.bf16.msrb.mxu1 %v3333_v48  ;;  %v11840_v55 = vld [vmem:[#allocation2 + $0x4] sm:$0xf]  ;;  %v3127_v13 = vrot.slane %v2406_v22, 5 }
  0xac   : > { %10577 = vmatmul.msk.bf16.gmra.mxu2 %vm1371_vm10, %v1369_v52  ;;  %v1115_v1 = vshll.u32 %v12609_v51, 16  ;;  %v1119_v2 = vshrl.u32 %v12609_v51, 16  ;;  %v899_v10 = vld [vmem:[#allocation2 + $0x54] sm:$0xf]  ;;  %v1786_v30 = vrot.slane %v11840_v55, 5  ;;  %v3126_v12 = vrot.slane %v3124_v4, 4 }
  0xad   : > { %v11626_v11 = vld [vmem:[#allocation2 + $0x54] sm:$0xff]  ;;  %v12617_v15 = vld [vmem:[#allocation2 + $0x5c] sm:$0x1]  ;;  %v1106_v16 = vshrl.u32 %v899_v10, 16  ;;  %v1109_v54 = vshll.u32 %v899_v10, 16  ;;  %v1310_v38 = vsel %vm12199_vm13, %v1305_v33, %v1309_v37  ;;  %v16497_v10 = vmov 0 }
  0xae   : > { %v1117_v20 = vrot.slane %v1115_v1, 5  ;;  %v1121_v61 = vrot.slane %v1119_v2, 4  ;;  %v1125_v19 = vshll.u32 %v12617_v15, 16  ;;  %10650 = vmatmul.msk.bf16.gmra.mxu1 %vm1371_vm10, %v11626_v11  ;;  %v1353_v29 = vunpack.c.l.b16 %v1310_v38  ;;  %v1733_v1 = vld [vmem:[#allocation2] sm:$0xe] }
  0xaf   : > { %v1108_v25 = vrot.slane %v1106_v16, 4  ;;  %v1111_v6 = vrot.slane %v1109_v54, 5  ;;  %v933_v35 = vld [vmem:[#allocation2 + $0xbc] sm:$0x1]  ;;  %v12640_v47 = vpop.f32.mrf.mxu1  ;;  %v10790_v2 = vrot.slane %v3058_v59, 9  ;;  %v16498_v10 = vsel %vm12655_vm2, 4294967295, %v16497_v10 }
  0xb0   : > { %v1122_v31 = vor.u32 %v1121_v61, %v1117_v20  ;;  %v1127_v7 = vrot.slane %v1125_v19, 5  ;;  %v1317_v36 = vshll.u32 %v933_v35, 16  ;;  %16499 = vst [vmem:[#allocation10_spill] sm:$0xff] %v16498_v10  ;;  %v2460_v33 = vrot.slane %v2459_v57, 4  ;;  %v11841_v16 = vld [vmem:[#allocation2 + $0x8] sm:$0x1] }
  0xb1   : > { %v12621_v9 = vpop.f32.mrf.mxu3  ;;  %v1112_v43 = vor.u32 %v1111_v6, %v1108_v25  ;;  %v3125_v11 = vsel %vm12655_vm2, %v10790_v2, %v3124_v4  ;;  %v1789_v54 = vrot.slane %v11841_v16, 5  ;;  %v1788_v61 = vrot.slane %v1786_v30, 4  ;;  %v2407_v6 = vld [vmem:[#allocation2 + $0x18] sm:$0xf]  ;;  %v2409_v57 = vld [vmem:[#allocation2 + $0x20] sm:$0x1] }
  0xb2   : > { %v1123_v44 = vrot.slane %v1122_v31, 4  ;;  %v1319_v41 = vrot.slane %v1317_v36, 5  ;;  %v3236_v19 = vunpack.c.l.b16 %v3125_v11  ;;  %v2474_v60 = vrot.slane %v2472_v40, 5  ;;  %v3059_v55 = vld [vmem:[#allocation2 + $0x18] sm:$0xe] }
  0xb3   : > { %v1433_v14 = vpop.f32.mrf.mxu0  ;;  %v1113_v53 = vrot.slane %v1112_v43, 4  ;;  %v4672_v31 = vsel %vm1420_vm0, %v10937_v63, 0  ;;  %v3128_v35 = vsel %vm12655_vm2, %v3126_v12, %v3127_v13  ;;  %v1790_v36 = vsel %vm12655_vm2, %v1788_v61, %v1789_v54  ;;  %v11842_v12 = vld [vmem:[#allocation2 + $0x10] sm:$0xf] }
  0xb4   : > { %v12634_v39 = vadd.f32 %v1653_v58, %v1433_v14  ;;  %v1128_v42 = vsel %vm12199_vm13, %v1123_v44, %v1127_v7  ;;  %v1320_v56 = vsel %vm12199_vm13, %v1315_v21, %v1319_v41  ;;  %10757 = vmatmul.msk.bf16.vlgmr.msrb.gmra.mxu3 %vm1371_vm10, %v11635_v23  ;;  %v2469_v58 = vor.u32 %v2468_v50, %v12636_v45  ;;  %v2408_v14 = vld [vmem:[#allocation2 + $0x1c] sm:$0xf] }
  0xb5   : > { %v1338_v52 = vunpack.c.l.b16 %v1128_v42  ;;  %v1118_v24 = vsel %vm12199_vm13, %v1113_v53, %v1117_v20  ;;  %v1354_v37 = vunpack.c.l.b16 %v1320_v56  ;;  %v10659_v20 = vrot.slane %v1733_v1, 9  ;;  %4681 = vmatpush.bf16.msra.mxu0 %v4672_v31  ;;  %v11636_v53 = vld [vmem:[#allocation2 + $0x18] sm:$0xff] }
  0xb6   : > { %v1337_v32 = vunpack.c.l.b16 %v1118_v24  ;;  %v2470_v17 = vrot.slane %v2469_v58, 4  ;;  %v3237_v26 = vunpack.c.l.b16 %v3128_v35  ;;  %v2465_v7 = vsel %vm12199_vm13, %v2460_v33, %v12636_v45 }
  0xb7   : > { %v1370_v0 = vpack.c.b16 %v1354_v37, %v1353_v29  ;;  %v1787_v38 = vsel %vm12655_vm2, %v10659_v20, %v1786_v30  ;;  %v2477_v43 = vshrl.u32 %v2407_v6, 16  ;;  %v2480_v46 = vshll.u32 %v2407_v6, 16 }
  0xb8   : > { %v1362_v5 = vpack.c.b16 %v1338_v52, %v1337_v32  ;;  %v3268_v44 = vpack.c.b16 %v3237_v26, %v3236_v19  ;;  %v2475_v41 = vsel %vm12199_vm13, %v2470_v17, %v2474_v60  ;;  %v2486_v18 = vshll.u32 %v2408_v14, 16  ;;  %v11843_v60 = vld [vmem:[#allocation2 + $0x14] sm:$0x1] }
  0xb9   : > { %v12651_v62 = vpop.f32.mrf.mxu3  ;;  %v2490_v48 = vshrl.u32 %v2408_v14, 16  ;;  %v1898_v45 = vunpack.c.l.b16 %v1787_v38  ;;  %v1899_v42 = vunpack.c.l.b16 %v1790_v36  ;;  %v2838_v29 = vunpack.c.l.b16 %v2465_v7  ;;  %v2410_v7 = vld [vmem:[#allocation2 + $0x24] sm:$0xf]  ;;  %v2411_v36 = vld [vmem:[#allocation2 + $0x28] sm:$0xf] }
  0xba   : > { %10570 = vmatmul.msk.bf16.gmra.mxu0 %vm1371_vm10, %v1362_v5  ;;  %v2839_v22 = vunpack.c.l.b16 %v2475_v41  ;;  %v2479_v50 = vrot.slane %v2477_v43, 4  ;;  %v2482_v59 = vrot.slane %v2480_v46, 5  ;;  %v2488_v24 = vrot.slane %v2486_v18, 5 }
  0xbb   : > { %v12666_v25 = vpop.f32.mrf.mxu0  ;;  %v2492_v37 = vrot.slane %v2490_v48, 4  ;;  %v3131_v32 = vrot.slane %v2408_v14, 5  ;;  %v1930_v30 = vpack.c.b16 %v1899_v42, %v1898_v45  ;;  %v10791_v58 = vrot.slane %v3059_v55, 9 }
  0xbc   : > { %10578 = vmatmul.msk.bf16.gmra.mxu2 %vm1371_vm10, %v1370_v0  ;;  %v3134_v2 = vrot.slane %v2409_v57, 5  ;;  %v2870_v4 = vpack.c.b16 %v2839_v22, %v2838_v29  ;;  %v2496_v5 = vshll.u32 %v2409_v57, 16  ;;  %v1793_v13 = vrot.slane %v11842_v12, 5 }
  0xbd   : > { %v1658_v21 = vpop.f32.mrf.mxu1  ;;  %v3133_v1 = vrot.slane %v3131_v32, 4  ;;  %v2483_v16 = vor.u32 %v2482_v59, %v2479_v50  ;;  %v2493_v54 = vor.u32 %v2492_v37, %v2488_v24  ;;  %v3132_v20 = vsel %vm12655_vm2, %v10791_v58, %v3131_v32  ;;  %v11637_v50 = vld [vmem:[#allocation2 + $0x24] sm:$0xff] }
  0xbe   : > { %10807 = vmatmul.msk.bf16.vlgmr.msrb.gmra.mxu1 %vm1371_vm10, %v3268_v44  ;;  %v3238_v63 = vunpack.c.l.b16 %v3132_v20  ;;  %v1795_v17 = vrot.slane %v1793_v13, 4  ;;  %v1796_v6 = vrot.slane %v11843_v60, 5  ;;  %v2498_v14 = vrot.slane %v2496_v5, 5  ;;  %v1735_v60 = vld [vmem:[#allocation2 + $0x18] sm:$0xe] }
  0xbf   : > { %v3135_v61 = vsel %vm12655_vm2, %v3133_v1, %v3134_v2  ;;  %v2484_v31 = vrot.slane %v2483_v16, 4  ;;  %v2494_v35 = vrot.slane %v2493_v54, 4  ;;  %v2504_v45 = vshll.u32 %v2410_v7, 16  ;;  %v2412_v2 = vld [vmem:[#allocation2 + $0x2c] sm:$0x1] }
  0xc0   : > { %v3239_v19 = vunpack.c.l.b16 %v3135_v61  ;;  %v1797_v18 = vsel %vm12655_vm2, %v1795_v17, %v1796_v6  ;;  %v2510_v29 = vshll.u32 %v2411_v36, 16  ;;  %v2514_v22 = vshrl.u32 %v2411_v36, 16  ;;  %v11844_v61 = vld [vmem:[#allocation2 + $0x1c] sm:$0xf] }
  0xc1   : > { %v12678_v23 = vpop.f32.mrf.mxu3  ;;  %v2489_v42 = vsel %vm12199_vm13, %v2484_v31, %v2488_v24  ;;  %v1901_v57 = vunpack.c.l.b16 %v1797_v18  ;;  %v2506_v55 = vrot.slane %v2504_v45, 5  ;;  %v3138_v1 = vrot.slane %v2411_v36, 5 }
  0xc2   : > { %v3269_v43 = vpack.c.b16 %v3239_v19, %v3238_v63  ;;  %v2840_v59 = vunpack.c.l.b16 %v2489_v42  ;;  %v2516_v58 = vrot.slane %v2514_v22, 4  ;;  %v3141_v16 = vrot.slane %v2412_v2, 5 }
  0xc3   : > { %v1800_v63 = vrot.slane %v11844_v61, 5  ;;  %v10661_v36 = vrot.slane %v1735_v60, 9  ;;  %vm10352_vm12 = vcmask 1046534  }
  0xc4   : > { %10758 = vmatmul.msk.bf16.gmra.mxu3 %vm1371_vm10, %v11636_v53  ;;  %v2501_v53 = vshrl.u32 %v2410_v7, 16 }
  0xc5   : > { %v12683_v52 = vpop.f32.mrf.mxu1 }
  0xc6   : > { %v2503_v32 = vrot.slane %v2501_v53, 4 }
  0xc7   : > { %v1473_v56 = vpop.f32.mrf.mxu2 }
  0xc8   : > { %v12686_v40 = vadd.f32 %v12621_v9, %v1473_v56  ;;  %v1734_v9 = vld [vmem:[#allocation2 + $0xc] sm:$0xe] }
  0xc9   : > { %v1438_v0 = vpop.f32.mrf.mxu0  ;;  %v12691_v11 = vpop.f32.mrf.mxu3 }
  0xca   : > { %v12689_v33 = vadd.f32 %v1658_v21, %v1438_v0  ;;  %10774 = vmatmul.msk.bf16.vlgmr.msrb.gmra.mxu0 %vm1371_vm10, %v2870_v4  ;;  %v10660_v21 = vrot.slane %v1734_v9, 9  ;;  %v2512_v0 = vrot.slane %v2510_v29, 5  ;;  %v3060_v4 = vld [vmem:[#allocation2 + $0x24] sm:$0xe]  ;;  %v2507_v9 = vor.u32 %v2506_v55, %v2503_v32 }
  0xcb   : > { %v10792_v12 = vrot.slane %v3060_v4, 9 }
  0xcc   : > { %10676 = vmatmul.msk.bf16.vlgmr.msrb.gmra.mxu2 %vm1371_vm10, %v1930_v30  ;;  %v1794_v46 = vsel %vm12655_vm2, %v10660_v21, %v1793_v13  ;;  %v3140_v13 = vrot.slane %v3138_v1, 4  ;;  %v2517_v17 = vor.u32 %v2516_v58, %v2512_v0  ;;  %v2508_v7 = vrot.slane %v2507_v9, 4  ;;  %v11638_v58 = vld [vmem:[#allocation2 + $0x30] sm:$0xff] }
  0xcd   : > { %v1900_v56 = vunpack.c.l.b16 %v1794_v46  ;;  %v3139_v6 = vsel %vm12655_vm2, %v10792_v12, %v3138_v1  ;;  %v11845_v46 = vld [vmem:[#allocation2 + $0x20] sm:$0x1] }
  0xce   : > { %v1663_v44 = vpop.f32.mrf.mxu1  ;;  %10808 = vmatmul.msk.bf16.gmra.mxu1 %vm1371_vm10, %v3269_v43  ;;  %v3142_v31 = vsel %vm12655_vm2, %v3140_v13, %v3141_v16  ;;  %v1802_v43 = vrot.slane %v1800_v63, 4  ;;  %v1803_v18 = vrot.slane %v11845_v46, 5  ;;  %v2518_v53 = vrot.slane %v2517_v17, 4  ;;  %v2415_v17 = vld [vmem:[#allocation2 + $0x38] sm:$0x1] }
  0xcf   : > { %v1475_v26 = vpop.f32.mrf.mxu2  ;;  %v1931_v5 = vpack.c.b16 %v1901_v57, %v1900_v56  ;;  %v1801_v56 = vsel %vm12655_vm2, %v10661_v36, %v1800_v63  ;;  %v3148_v36 = vrot.slane %v2415_v17, 5 }
  0xd0   : > { %v12700_v38 = vadd.f32 %v12651_v62, %v1475_v26  ;;  %v2499_v62 = vsel %vm12199_vm13, %v2494_v35, %v2498_v14  ;;  %v3240_v14 = vunpack.c.l.b16 %v3139_v6  ;;  %v3241_v26 = vunpack.c.l.b16 %v3142_v31 }
  0xd1   : > { %v12702_v41 = vpop.f32.mrf.mxu0  ;;  %v12708_v48 = vpop.f32.mrf.mxu3  ;;  %v2841_v37 = vunpack.c.l.b16 %v2499_v62  ;;  %v2413_v62 = vld [vmem:[#allocation2 + $0x30] sm:$0xf]  ;;  %v1804_v57 = vsel %vm12655_vm2, %v1802_v43, %v1803_v18  ;;  %v2544_v18 = vshll.u32 %v2415_v17, 16 }
  0xd2   : > { %v3270_v22 = vpack.c.b16 %v3241_v26, %v3240_v14  ;;  %v2528_v55 = vshll.u32 %v2413_v62, 16  ;;  %v11846_v26 = vld [vmem:[#allocation2 + $0x28] sm:$0xf] }
  0xd3   : > { %v2871_v54 = vpack.c.b16 %v2841_v37, %v2840_v59  ;;  %v2525_v59 = vshrl.u32 %v2413_v62, 16 }
  0xd4   : > { %10759 = vmatmul.msk.bf16.gmra.mxu3 %vm1371_vm10, %v11637_v50  ;;  %v2513_v50 = vsel %vm12199_vm13, %v2508_v7, %v2512_v0  ;;  %v1902_v0 = vunpack.c.l.b16 %v1801_v56  ;;  %v1807_v7 = vrot.slane %v11846_v26, 5 }
  0xd5   : > { %v2842_v4 = vunpack.c.l.b16 %v2513_v50  ;;  %v2527_v13 = vrot.slane %v2525_v59, 4 }
  0xd6   : > { %v12721_v19 = vpop.f32.mrf.mxu1  ;;  %v1809_v56 = vrot.slane %v1807_v7, 4 }
  0xd7   : > { %v1478_v30 = vpop.f32.mrf.mxu2 }
  0xd8   : > { %v12716_v24 = vadd.f32 %v12678_v23, %v1478_v30  ;;  %v2520_v23 = vshll.u32 %v2412_v2, 16  ;;  %v1903_v2 = vunpack.c.l.b16 %v1804_v57  ;;  %v11847_v57 = vld [vmem:[#allocation2 + $0x2c] sm:$0x1] }
  0xd9   : > { %v12719_v20 = vpop.f32.mrf.mxu3  ;;  %v1810_v59 = vrot.slane %v11847_v57, 5 }
  0xda   : > { %16500 = vst [vmem:[#allocation11_spill] sm:$0xff] %v12716_v24  ;;  %v1443_v21 = vpop.f32.mrf.mxu0  ;;  %10775 = vmatmul.msk.bf16.gmra.mxu0 %vm1371_vm10, %v2871_v54  ;;  %v2522_v45 = vrot.slane %v2520_v23, 5  ;;  %v2530_v54 = vrot.slane %v2528_v55, 5  ;;  %v3061_v23 = vld [vmem:[#allocation2 + $0x30] sm:$0xe]  ;;  %v1932_v60 = vpack.c.b16 %v1903_v2, %v1902_v0 }
  0xdb   : > { %v12727_v35 = vadd.f32 %v1663_v44, %v1443_v21  ;;  %v2414_v44 = vld [vmem:[#allocation2 + $0x34] sm:$0xf]  ;;  %v10793_v6 = vrot.slane %v3061_v23, 9 }
  0xdc   : > { %10677 = vmatmul.msk.bf16.gmra.mxu2 %vm1371_vm10, %v1931_v5  ;;  %v2523_v37 = vsel %vm12199_vm13, %v2518_v53, %v2522_v45  ;;  %v2538_v30 = vshrl.u32 %v2414_v44, 16  ;;  %v3145_v63 = vrot.slane %v2414_v44, 5  ;;  %v2531_v43 = vor.u32 %v2530_v54, %v2527_v13  ;;  %v1736_v53 = vld [vmem:[#allocation2 + $0x24] sm:$0xe] }
  0xdd   : > { %v2843_v5 = vunpack.c.l.b16 %v2523_v37  ;;  %v10662_v50 = vrot.slane %v1736_v53, 9  ;;  %v1811_v54 = vsel %vm12655_vm2, %v1809_v56, %v1810_v59 }
  0xde   : > { %10809 = vmatmul.msk.bf16.gmra.mxu1 %vm1371_vm10, %v3270_v22  ;;  %v2540_v61 = vrot.slane %v2538_v30, 4  ;;  %v3147_v31 = vrot.slane %v3145_v63, 4  ;;  %v3146_v45 = vsel %vm12655_vm2, %v10793_v6, %v3145_v63  ;;  %v2532_v37 = vrot.slane %v2531_v43, 4  ;;  %v11639_v6 = vld [vmem:[#allocation2 + $0x3c] sm:$0xff] }
  0xdf   : > { %v1480_v42 = vpop.f32.mrf.mxu2  ;;  %v2872_v14 = vpack.c.b16 %v2843_v5, %v2842_v4  ;;  %v2417_v4 = vld [vmem:[#allocation2 + $0x40] sm:$0xf] }
  0xe0   : > { %v12732_v29 = vadd.f32 %v12691_v11, %v1480_v42  ;;  %v2534_v11 = vshll.u32 %v2414_v44, 16  ;;  %v3149_v62 = vsel %vm12655_vm2, %v3147_v31, %v3148_v36  ;;  %v3242_v44 = vunpack.c.l.b16 %v3146_v45 }
  0xe1   : > { %v12742_v32 = vpop.f32.mrf.mxu3  ;;  %v3243_v22 = vunpack.c.l.b16 %v3149_v62  ;;  %v1905_v31 = vunpack.c.l.b16 %v1811_v54  ;;  %v3152_v45 = vrot.slane %v2417_v4, 5 }
  0xe2   : > { %16501 = vst [vmem:[#allocation12_spill] sm:$0xff] %v12732_v29  ;;  %v12745_v12 = vpop.f32.mrf.mxu0  ;;  %v2536_v9 = vrot.slane %v2534_v11, 5  ;;  %v2546_v11 = vrot.slane %v2544_v18, 5  ;;  %v3068_v29 = vld [vmem:[#allocation2 + $0x84] sm:$0xe] }
  0xe3   : > { %v1668_v1 = vpop.f32.mrf.mxu1  ;;  %v3271_v5 = vpack.c.b16 %v3243_v22, %v3242_v44  ;;  %v2418_v22 = vld [vmem:[#allocation2 + $0x44] sm:$0x1]  ;;  %v3154_v59 = vrot.slane %v3152_v45, 4 }
  0xe4   : > { %10760 = vmatmul.msk.bf16.gmra.mxu3 %vm1371_vm10, %v11638_v58  ;;  %v2541_v46 = vor.u32 %v2540_v61, %v2536_v9  ;;  %v2416_v58 = vld [vmem:[#allocation2 + $0x3c] sm:$0xf]  ;;  %v2537_v17 = vsel %vm12199_vm13, %v2532_v37, %v2536_v9 }
  0xe5   : > { %v2549_v61 = vshrl.u32 %v2416_v58, 16  ;;  %v2552_v63 = vshll.u32 %v2416_v58, 16  ;;  %v2844_v26 = vunpack.c.l.b16 %v2537_v17  ;;  %v3155_v58 = vrot.slane %v2418_v22, 5 }
  0xe6   : > { %v2542_v55 = vrot.slane %v2541_v46, 4 }
  0xe7   : > { %v1483_v16 = vpop.f32.mrf.mxu2  ;;  %v2551_v43 = vrot.slane %v2549_v61, 4  ;;  %v2554_v46 = vrot.slane %v2552_v63, 5  ;;  %v11849_v63 = vld [vmem:[#allocation2 + $0x38] sm:$0x1] }
  0xe8   : > { %v12748_v21 = vadd.f32 %v12708_v48, %v1483_v16  ;;  %v1808_v16 = vsel %vm12655_vm2, %v10662_v50, %v1807_v7  ;;  %v2547_v23 = vsel %vm12199_vm13, %v2542_v55, %v2546_v11  ;;  %v3062_v50 = vld [vmem:[#allocation2 + $0x3c] sm:$0xe]  ;;  %v11848_v11 = vld [vmem:[#allocation2 + $0x34] sm:$0xf]  ;;  %v1817_v17 = vrot.slane %v11849_v63, 5 }
  0xe9   : > { %v12753_v48 = vpop.f32.mrf.mxu3  ;;  %v2845_v7 = vunpack.c.l.b16 %v2547_v23  ;;  %v10794_v57 = vrot.slane %v3062_v50, 9  ;;  %v2555_v55 = vor.u32 %v2554_v46, %v2551_v43 }
  0xea   : > { %16502 = vst [vmem:[#allocation13_spill] sm:$0xff] %v12748_v21  ;;  %10776 = vmatmul.msk.bf16.gmra.mxu0 %vm1371_vm10, %v2872_v14  ;;  %v2435_v21 = vld [vmem:[#allocation2 + $0x88] sm:$0xf] }
  0xeb   : > { %v12755_v42 = vpop.f32.mrf.mxu1  ;;  %v2873_v37 = vpack.c.b16 %v2845_v7, %v2844_v26  ;;  %v2556_v23 = vrot.slane %v2555_v55, 4  ;;  %v2419_v7 = vld [vmem:[#allocation2 + $0x48] sm:$0xf] }
  0xec   : > { %10678 = vmatmul.msk.bf16.gmra.mxu2 %vm1371_vm10, %v1932_v60  ;;  %v2562_v60 = vshrl.u32 %v2417_v4, 16 }
  0xee   : > { %10810 = vmatmul.msk.bf16.gmra.mxu1 %vm1371_vm10, %v3271_v5  ;;  %v2564_v9 = vrot.slane %v2562_v60, 4  ;;  %v2568_v5 = vshll.u32 %v2418_v22, 16 }
  0xef   : > { %v1485_v30 = vpop.f32.mrf.mxu2  ;;  %v1448_v0 = vpop.f32.mrf.mxu0 }
  0xf0   : > { %v12762_v2 = vadd.f32 %v12719_v20, %v1485_v30  ;;  %v12764_v13 = vadd.f32 %v1668_v1, %v1448_v0  ;;  %v2558_v20 = vshll.u32 %v2417_v4, 16  ;;  %v1904_v1 = vunpack.c.l.b16 %v1808_v16  ;;  %v1737_v4 = vld [vmem:[#allocation2 + $0x30] sm:$0xe] }
  0xf1   : > { %v12775_v36 = vpop.f32.mrf.mxu3  ;;  %v1814_v30 = vrot.slane %v11848_v11, 5  ;;  %v3153_v16 = vsel %vm12655_vm2, %v10794_v57, %v3152_v45 }
  0xf2   : > { %16503 = vst [vmem:[#allocation14_spill] sm:$0xff] %v12762_v2  ;;  %v2560_v53 = vrot.slane %v2558_v20, 5  ;;  %v1933_v56 = vpack.c.b16 %v1905_v31, %v1904_v1  ;;  %v3244_v54 = vunpack.c.l.b16 %v3153_v16  ;;  %v10663_v20 = vrot.slane %v1737_v4, 9 }
  0xf3   : > { %v1673_v14 = vpop.f32.mrf.mxu1  ;;  %v1816_v60 = vrot.slane %v1814_v30, 4  ;;  %v2570_v31 = vrot.slane %v2568_v5, 5 }
  0xf4   : > { %10761 = vmatmul.msk.bf16.gmra.mxu3 %vm1371_vm10, %v11639_v6  ;;  %v2565_v0 = vor.u32 %v2564_v9, %v2560_v53  ;;  %v2420_v9 = vld [vmem:[#allocation2 + $0x4c] sm:$0xf]  ;;  %v2561_v50 = vsel %vm12199_vm13, %v2556_v23, %v2560_v53 }
  0xf5   : > { %v1818_v57 = vsel %vm12655_vm2, %v1816_v60, %v1817_v17  ;;  %v2582_v55 = vshll.u32 %v2420_v9, 16  ;;  %v2586_v11 = vshrl.u32 %v2420_v9, 16  ;;  %v2846_v5 = vunpack.c.l.b16 %v2561_v50  ;;  %v3063_v17 = vld [vmem:[#allocation2 + $0x48] sm:$0xe]  ;;  %v11850_v50 = vld [vmem:[#allocation2 + $0x40] sm:$0xf] }
  0xf6   : > { %v2566_v1 = vrot.slane %v2565_v0, 4  ;;  %v1907_v0 = vunpack.c.l.b16 %v1818_v57 }
  0xf7   : > { %v1488_v18 = vpop.f32.mrf.mxu2  ;;  %v12777_v62 = vpop.f32.mrf.mxu0 }
  0xf8   : > { %v12780_v44 = vadd.f32 %v12742_v32, %v1488_v18  ;;  %v3156_v32 = vsel %vm12655_vm2, %v3154_v59, %v3155_v58  ;;  %v2573_v59 = vshrl.u32 %v2419_v7, 16  ;;  %v11640_v58 = vld [vmem:[#allocation2 + $0x48] sm:$0xff] }
  0xf9   : > { %v3245_v61 = vunpack.c.l.b16 %v3156_v32  ;;  %v1715_v18 = vpop.f32.mrf.mxu3  ;;  %v2588_v32 = vrot.slane %v2586_v11, 4 }
  0xfa   : > { %16504 = vst [vmem:[#allocation15_spill] sm:$0xff] %v12780_v44  ;;  %10777 = vmatmul.msk.bf16.gmra.mxu0 %vm1371_vm10, %v2873_v37  ;;  %v2571_v37 = vsel %vm12199_vm13, %v2566_v1, %v2570_v31  ;;  %v2575_v4 = vrot.slane %v2573_v59, 4  ;;  %v10795_v1 = vrot.slane %v3063_v17, 9  ;;  %v3067_v44 = vld [vmem:[#allocation2 + $0x78] sm:$0xe] }
  0xfb   : > { %v12789_v6 = vpop.f32.mrf.mxu1  ;;  %v3272_v45 = vpack.c.b16 %v3245_v61, %v3244_v54  ;;  %v2847_v53 = vunpack.c.l.b16 %v2571_v37  ;;  %v3159_v54 = vrot.slane %v2420_v9, 5  ;;  %v2421_v61 = vld [vmem:[#allocation2 + $0x50] sm:$0x1]  ;;  %v1821_v9 = vrot.slane %v11850_v50, 5 }
  0xfc   : > { %10679 = vmatmul.msk.bf16.gmra.mxu2 %vm1371_vm10, %v1933_v56  ;;  %v1815_v56 = vsel %vm12655_vm2, %v10663_v20, %v1814_v30  ;;  %v2584_v30 = vrot.slane %v2582_v55, 5  ;;  %v2592_v37 = vshll.u32 %v2421_v61, 16 }
  0xfd   : > { %v3161_v31 = vrot.slane %v3159_v54, 4 }
  0xfe   : > { %10811 = vmatmul.msk.bf16.gmra.mxu1 %vm1371_vm10, %v3272_v45  ;;  %v1738_v45 = vld [vmem:[#allocation2 + $0x3c] sm:$0xe]  ;;  %v2589_v59 = vor.u32 %v2588_v32, %v2584_v30  ;;  %v2422_v32 = vld [vmem:[#allocation2 + $0x54] sm:$0xf] }
  0xff   : > { %v1490_v26 = vpop.f32.mrf.mxu2  ;;  %v1453_v43 = vpop.f32.mrf.mxu0  ;;  %v2600_v50 = vshll.u32 %v2422_v32, 16 }
 0x100   : > { %v12792_v46 = vadd.f32 %v12753_v48, %v1490_v26  ;;  %v12794_v22 = vadd.f32 %v1673_v14, %v1453_v43  ;;  %v2576_v48 = vshll.u32 %v2419_v7, 16  ;;  %v1906_v14 = vunpack.c.l.b16 %v1815_v56 }
 0x101   : > { %v2874_v26 = vpack.c.b16 %v2847_v53, %v2846_v5  ;;  %v3162_v56 = vrot.slane %v2421_v61, 5  ;;  %v1823_v5 = vrot.slane %v1821_v9, 4  ;;  %v2423_v61 = vld [vmem:[#allocation2 + $0x58] sm:$0xf] }
 0x102   : > { %16505 = vst [vmem:[#allocation16_spill] sm:$0xff] %v12792_v46  ;;  %v2578_v16 = vrot.slane %v2576_v48, 5  ;;  %v1934_v20 = vpack.c.b16 %v1907_v0, %v1906_v14  ;;  %v3160_v48 = vsel %vm12655_vm2, %v10795_v1, %v3159_v54  ;;  %v11851_v14 = vld [vmem:[#allocation2 + $0x44] sm:$0x1] }
 0x103   : > { %v3163_v55 = vsel %vm12655_vm2, %v3161_v31, %v3162_v56  ;;  %v3246_v11 = vunpack.c.l.b16 %v3160_v48  ;;  %v1824_v0 = vrot.slane %v11851_v14, 5 }
 0x104   : > { %10762 = vmatmul.msk.bf16.gmra.mxu3 %vm1371_vm10, %v11640_v58  ;;  %v2579_v57 = vor.u32 %v2578_v16, %v2575_v4  ;;  %v3247_v58 = vunpack.c.l.b16 %v3163_v55  ;;  %v2590_v4 = vrot.slane %v2589_v59, 4  ;;  %v2594_v16 = vrot.slane %v2592_v37, 5 }
 0x105   : > { %v2606_v37 = vshll.u32 %v2423_v61, 16 }
 0x106   : > { %v1678_v63 = vpop.f32.mrf.mxu1  ;;  %v2580_v53 = vrot.slane %v2579_v57, 4  ;;  %v3273_v17 = vpack.c.b16 %v3247_v58, %v3246_v11  ;;  %v2595_v59 = vsel %vm12199_vm13, %v2590_v4, %v2594_v16 }
 0x107   : > { %v12806_v23 = vpop.f32.mrf.mxu0  ;;  %v12811_v43 = vpop.f32.mrf.mxu3  ;;  %v2849_v58 = vunpack.c.l.b16 %v2595_v59 }
 0x108   : > { %v1493_v60 = vpop.f32.mrf.mxu2  ;;  %v2585_v57 = vsel %vm12199_vm13, %v2580_v53, %v2584_v30  ;;  %v2424_v30 = vld [vmem:[#allocation2 + $0x5c] sm:$0x1]  ;;  %v3064_v53 = vld [vmem:[#allocation2 + $0x54] sm:$0xe] }
 0x109   : > { %v12809_v7 = vadd.f32 %v12775_v36, %v1493_v60  ;;  %v10664_v36 = vrot.slane %v1738_v45, 9  ;;  %v2597_v45 = vshrl.u32 %v2422_v32, 16  ;;  %v10796_v16 = vrot.slane %v3064_v53, 9 }
 0x10a   : > { %10778 = vmatmul.msk.bf16.gmra.mxu0 %vm1371_vm10, %v2874_v26  ;;  %v1825_v26 = vsel %vm12655_vm2, %v1823_v5, %v1824_v0  ;;  %v2602_v0 = vrot.slane %v2600_v50, 5  ;;  %v2608_v5 = vrot.slane %v2606_v37, 5  ;;  %v2616_v59 = vshll.u32 %v2424_v30, 16 }
 0x10b   : > { %16506 = vst [vmem:[#allocation17_spill] sm:$0xff] %v12809_v7  ;;  %v1822_v60 = vsel %vm12655_vm2, %v10664_v36, %v1821_v9  ;;  %v2610_v9 = vshrl.u32 %v2423_v61, 16  ;;  %v1909_v11 = vunpack.c.l.b16 %v1825_v26  ;;  %v2848_v36 = vunpack.c.l.b16 %v2585_v57  ;;  %v1739_v26 = vld [vmem:[#allocation2 + $0x48] sm:$0xe]  ;;  %v2426_v7 = vld [vmem:[#allocation2 + $0x64] sm:$0xf] }
 0x10c   : > { %10680 = vmatmul.msk.bf16.gmra.mxu2 %vm1371_vm10, %v1934_v20  ;;  %v1908_v55 = vunpack.c.l.b16 %v1822_v60  ;;  %v2599_v14 = vrot.slane %v2597_v45, 4  ;;  %v3169_v57 = vrot.slane %v2424_v30, 5  ;;  %v2425_v30 = vld [vmem:[#allocation2 + $0x60] sm:$0xf] }
 0x10d   : > { %v2612_v32 = vrot.slane %v2610_v9, 4 }
 0x10e   : > { %v12821_v1 = vpop.f32.mrf.mxu1  ;;  %10812 = vmatmul.msk.bf16.gmra.mxu1 %vm1371_vm10, %v3273_v17  ;;  %v1935_v4 = vpack.c.b16 %v1909_v11, %v1908_v55  ;;  %v2603_v60 = vor.u32 %v2602_v0, %v2599_v14  ;;  %v10665_v11 = vrot.slane %v1739_v26, 9 }
 0x10f   : > { %v12825_v31 = vpop.f32.mrf.mxu3  ;;  %v2613_v50 = vor.u32 %v2612_v32, %v2608_v5  ;;  %v2618_v32 = vrot.slane %v2616_v59, 5  ;;  %v2630_v59 = vshll.u32 %v2426_v7, 16 }
 0x110   : > { %v1495_v54 = vpop.f32.mrf.mxu2  ;;  %v2604_v14 = vrot.slane %v2603_v60, 4  ;;  %v2621_v60 = vshrl.u32 %v2425_v30, 16 }
 0x111   : > { %v12823_v20 = vadd.f32 %v1715_v18, %v1495_v54  ;;  %v1458_v56 = vpop.f32.mrf.mxu0  ;;  %v11641_v18 = vld [vmem:[#allocation2 + $0x54] sm:$0xff]  ;;  %v3166_v54 = vrot.slane %v2423_v61, 5  ;;  %v2614_v0 = vrot.slane %v2613_v50, 4 }
 0x112   : > { %v12833_v48 = vadd.f32 %v1678_v63, %v1458_v56  ;;  %v1828_v63 = vrot.slane %v12564_v49, 5  ;;  %v2609_v26 = vsel %vm12199_vm13, %v2604_v14, %v2608_v5  ;;  %v2623_v5 = vrot.slane %v2621_v60, 4  ;;  %v1740_v60 = vld [vmem:[#allocation2 + $0x54] sm:$0xe] }
 0x113   : > { %16507 = vst [vmem:[#allocation18_spill] sm:$0xff] %v12823_v20  ;;  %v3168_v56 = vrot.slane %v3166_v54, 4  ;;  %v2875_v20 = vpack.c.b16 %v2849_v58, %v2848_v36  ;;  %v3167_v37 = vsel %vm12655_vm2, %v10796_v16, %v3166_v54  ;;  %v2619_v50 = vsel %vm12199_vm13, %v2614_v0, %v2618_v32  ;;  %v2427_v32 = vld [vmem:[#allocation2 + $0x68] sm:$0x1] }
 0x114   : > { %10763 = vmatmul.msk.bf16.gmra.mxu3 %vm1371_vm10, %v11641_v18  ;;  %v3248_v49 = vunpack.c.l.b16 %v3167_v37  ;;  %v11852_v18 = vld [vmem:[#allocation2 + $0x50] sm:$0x1]  ;;  %v1830_v36 = vrot.slane %v1828_v63, 4  ;;  %v2634_v37 = vshrl.u32 %v2426_v7, 16  ;;  %v2632_v14 = vrot.slane %v2630_v59, 5 }
 0x115   : > { %v3170_v9 = vsel %vm12655_vm2, %v3168_v56, %v3169_v57  ;;  %v1831_v55 = vrot.slane %v11852_v18, 5  ;;  %v1829_v56 = vsel %vm12655_vm2, %v10665_v11, %v1828_v63  ;;  %v2624_v57 = vshll.u32 %v2425_v30, 16 }
 0x116   : > { %v3249_v58 = vunpack.c.l.b16 %v3170_v9  ;;  %v2850_v18 = vunpack.c.l.b16 %v2609_v26  ;;  %v2851_v11 = vunpack.c.l.b16 %v2619_v50  ;;  %v2636_v30 = vrot.slane %v2634_v37, 4 }
 0x117   : > { %v12838_v17 = vpop.f32.mrf.mxu3  ;;  %v2640_v37 = vshll.u32 %v2427_v32, 16 }
 0x118   : > { %v1683_v61 = vpop.f32.mrf.mxu1  ;;  %v3274_v54 = vpack.c.b16 %v3249_v58, %v3248_v49  ;;  %v11642_v49 = vld [vmem:[#allocation2 + $0x60] sm:$0xff]  ;;  %v2626_v58 = vrot.slane %v2624_v57, 5  ;;  %v3176_v57 = vrot.slane %v2427_v32, 5 }
 0x119   : > { %v12840_v45 = vpop.f32.mrf.mxu0  ;;  %v2642_v32 = vrot.slane %v2640_v37, 5 }
 0x11a   : > { %10779 = vmatmul.msk.bf16.gmra.mxu0 %vm1371_vm10, %v2875_v20 }
 0x11c   : > { %10681 = vmatmul.msk.bf16.gmra.mxu2 %vm1371_vm10, %v1935_v4  ;;  %v1832_v4 = vsel %vm12655_vm2, %v1830_v36, %v1831_v55 }
 0x11d   : > { %v1911_v9 = vunpack.c.l.b16 %v1832_v4 }
 0x11e   : > { %10813 = vmatmul.msk.bf16.gmra.mxu1 %vm1371_vm10, %v3274_v54  ;;  %v1835_v54 = vrot.slane %v12609_v51, 5 }
 0x11f   : > { %v1498_v53 = vpop.f32.mrf.mxu2  ;;  %v12857_v20 = vpop.f32.mrf.mxu3 }
 0x120   : > { %v12849_v16 = vadd.f32 %v12811_v43, %v1498_v53  ;;  %v1910_v43 = vunpack.c.l.b16 %v1829_v56  ;;  %v1685_v55 = vpop.f32.mrf.mxu1  ;;  %v3173_v53 = vrot.slane %v2426_v7, 5  ;;  %v3065_v56 = vld [vmem:[#allocation2 + $0x60] sm:$0xe]  ;;  %v2637_v7 = vor.u32 %v2636_v30, %v2632_v14 }
 0x121   : > { %v10797_v26 = vrot.slane %v3065_v56, 9  ;;  %v2428_v56 = vld [vmem:[#allocation2 + $0x6c] sm:$0xf] }
 0x122   : > { %16508 = vst [vmem:[#allocation19_spill] sm:$0xff] %v12849_v16  ;;  %v1936_v0 = vpack.c.b16 %v1911_v9, %v1910_v43  ;;  %v3175_v50 = vrot.slane %v3173_v53, 4  ;;  %v2638_v30 = vrot.slane %v2637_v7, 4  ;;  %v2648_v37 = vshll.u32 %v2428_v56, 16 }
 0x123   : > { %v3174_v43 = vsel %vm12655_vm2, %v10797_v26, %v3173_v53 }
 0x124   : > { %v1463_v63 = vpop.f32.mrf.mxu0  ;;  %10764 = vmatmul.msk.bf16.gmra.mxu3 %vm1371_vm10, %v11642_v49  ;;  %v3177_v9 = vsel %vm12655_vm2, %v3175_v50, %v3176_v57  ;;  %v10666_v49 = vrot.slane %v1740_v60, 9  ;;  %v2429_v50 = vld [vmem:[#allocation2 + $0x70] sm:$0xf] }
 0x125   : > { %v12862_v36 = vadd.f32 %v1683_v61, %v1463_v63  ;;  %v2876_v61 = vpack.c.b16 %v2851_v11, %v2850_v18  ;;  %v2627_v63 = vor.u32 %v2626_v58, %v2623_v5  ;;  %v1837_v18 = vrot.slane %v1835_v54, 4 }
 0x126   : > { %v3251_v11 = vunpack.c.l.b16 %v3177_v9  ;;  %v2658_v9 = vshrl.u32 %v2429_v50, 16 }
 0x127   : > { %v1500_v16 = vpop.f32.mrf.mxu2  ;;  %v12869_v59 = vpop.f32.mrf.mxu3  ;;  %v2628_v58 = vrot.slane %v2627_v63, 4  ;;  %v2643_v63 = vsel %vm12199_vm13, %v2638_v30, %v2642_v32  ;;  %v2430_v30 = vld [vmem:[#allocation2 + $0x74] sm:$0x1]  ;;  %v3066_v32 = vld [vmem:[#allocation2 + $0x6c] sm:$0xe] }
 0x128   : > { %v12866_v4 = vadd.f32 %v12825_v31, %v1500_v16  ;;  %v3250_v31 = vunpack.c.l.b16 %v3174_v43  ;;  %v1838_v16 = vrot.slane %v12617_v15, 5  ;;  %v2654_v43 = vshll.u32 %v2429_v50, 16 }
 0x12a   : > { %16509 = vst [vmem:[#allocation20_spill] sm:$0xff] %v12866_v4  ;;  %10780 = vmatmul.msk.bf16.gmra.mxu0 %vm1371_vm10, %v2876_v61  ;;  %v3275_v57 = vpack.c.b16 %v3251_v11, %v3250_v31  ;;  %v1839_v60 = vsel %vm12655_vm2, %v1837_v18, %v1838_v16  ;;  %v2645_v61 = vshrl.u32 %v2428_v56, 16  ;;  %v2650_v18 = vrot.slane %v2648_v37, 5 }
 0x12b   : > { %v1688_v53 = vpop.f32.mrf.mxu1  ;;  %v1913_v31 = vunpack.c.l.b16 %v1839_v60  ;;  %v2656_v11 = vrot.slane %v2654_v43, 5  ;;  %v11853_v60 = vld [vmem:[#allocation2 + $0x64] sm:$0xf]  ;;  %v3183_v37 = vrot.slane %v2430_v30, 5 }
 0x12c   : > { %v1465_v51 = vpop.f32.mrf.mxu0  ;;  %10682 = vmatmul.msk.bf16.gmra.mxu2 %vm1371_vm10, %v1936_v0  ;;  %v1836_v0 = vsel %vm12655_vm2, %v10666_v49, %v1835_v54  ;;  %v2853_v49 = vunpack.c.l.b16 %v2643_v63  ;;  %v2647_v16 = vrot.slane %v2645_v61, 4  ;;  %v1842_v4 = vrot.slane %v11853_v60, 5  ;;  %v1741_v61 = vld [vmem:[#allocation2 + $0x60] sm:$0xe] }
 0x12d   : > { %v12878_v5 = vadd.f32 %v1685_v55, %v1465_v51  ;;  %v2633_v55 = vsel %vm12199_vm13, %v2628_v58, %v2632_v14  ;;  %v11643_v51 = vld [vmem:[#allocation2 + $0x6c] sm:$0xff]  ;;  %v2660_v14 = vrot.slane %v2658_v9, 4  ;;  %v3180_v58 = vrot.slane %v2429_v50, 5 }
 0x12e   : > { %10814 = vmatmul.msk.bf16.gmra.mxu1 %vm1371_vm10, %v3275_v57  ;;  %v2852_v54 = vunpack.c.l.b16 %v2633_v55  ;;  %v10798_v57 = vrot.slane %v3066_v32, 9  ;;  %v2651_v50 = vor.u32 %v2650_v18, %v2647_v16  ;;  %v11854_v32 = vld [vmem:[#allocation2 + $0x68] sm:$0x1] }
 0x12f   : > { %v1503_v26 = vpop.f32.mrf.mxu2  ;;  %v12891_v7 = vpop.f32.mrf.mxu3  ;;  %v3182_v55 = vrot.slane %v3180_v58, 4  ;;  %v1845_v60 = vrot.slane %v11854_v32, 5  ;;  %v11644_v32 = vld [vmem:[#allocation2 + $0x78] sm:$0xff] }
 0x130   : > { %v12881_v15 = vadd.f32 %v12838_v17, %v1503_v26  ;;  %v1912_v17 = vunpack.c.l.b16 %v1836_v0  ;;  %v2877_v63 = vpack.c.b16 %v2853_v49, %v2852_v54  ;;  %v10667_v54 = vrot.slane %v1741_v61, 9 }
 0x131   : > { %v1844_v49 = vrot.slane %v1842_v4, 4  ;;  %v2652_v16 = vrot.slane %v2651_v50, 4 }
 0x132   : > { %16510 = vst [vmem:[#allocation21_spill] sm:$0xff] %v12881_v15  ;;  %v1937_v15 = vpack.c.b16 %v1913_v31, %v1912_v17  ;;  %v2661_v17 = vor.u32 %v2660_v14, %v2656_v11  ;;  %v2664_v31 = vshll.u32 %v2430_v30, 16  ;;  %v2431_v30 = vld [vmem:[#allocation2 + $0x78] sm:$0xf] }
 0x133   : > { %v1690_v0 = vpop.f32.mrf.mxu1 }
 0x134   : > { %10765 = vmatmul.msk.bf16.gmra.mxu3 %vm1371_vm10, %v11643_v51  ;;  %v3181_v51 = vsel %vm12655_vm2, %v10798_v57, %v3180_v58  ;;  %v2662_v18 = vrot.slane %v2661_v17, 4  ;;  %v2666_v14 = vrot.slane %v2664_v31, 5  ;;  %v2657_v17 = vsel %vm12199_vm13, %v2652_v16, %v2656_v11 }
 0x137   : > { %v1505_v26 = vpop.f32.mrf.mxu2  ;;  %v1468_v43 = vpop.f32.mrf.mxu0 }
 0x138   : > { %v12896_v56 = vadd.f32 %v12857_v20, %v1505_v26  ;;  %v12898_v9 = vpop.f32.mrf.mxu3  ;;  %v12902_v46 = vadd.f32 %v1688_v53, %v1468_v43  ;;  %v3184_v20 = vsel %vm12655_vm2, %v3182_v55, %v3183_v37  ;;  %v3252_v26 = vunpack.c.l.b16 %v3181_v51  ;;  %v2432_v53 = vld [vmem:[#allocation2 + $0x7c] sm:$0xf] }
 0x139   : > { %v1843_v55 = vsel %vm12655_vm2, %v10667_v54, %v1842_v4  ;;  %v2669_v37 = vshrl.u32 %v2431_v30, 16  ;;  %v2682_v51 = vshrl.u32 %v2432_v53, 16  ;;  %v3187_v16 = vrot.slane %v2432_v53, 5 }
 0x13a   : > { %16511 = vst [vmem:[#allocation22_spill] sm:$0xff] %v12896_v56  ;;  %v3253_v56 = vunpack.c.l.b16 %v3184_v20  ;;  %10781 = vmatmul.msk.bf16.gmra.mxu0 %vm1371_vm10, %v2877_v63  ;;  %v2672_v63 = vshll.u32 %v2431_v30, 16  ;;  %v1914_v4 = vunpack.c.l.b16 %v1843_v55  ;;  %v11855_v55 = vld [vmem:[#allocation2 + $0x70] sm:$0xf] }
 0x13b   : > { %v12915_v61 = vpop.f32.mrf.mxu1  ;;  %v2684_v11 = vrot.slane %v2682_v51, 4 }
 0x13c   : > { %10683 = vmatmul.msk.bf16.gmra.mxu2 %vm1371_vm10, %v1937_v15  ;;  %v3276_v57 = vpack.c.b16 %v3253_v56, %v3252_v26  ;;  %v1846_v15 = vsel %vm12655_vm2, %v1844_v49, %v1845_v60  ;;  %v2667_v56 = vsel %vm12199_vm13, %v2662_v18, %v2666_v14  ;;  %v2854_v60 = vunpack.c.l.b16 %v2657_v17  ;;  %v2433_v14 = vld [vmem:[#allocation2 + $0x80] sm:$0x1] }
 0x13d   : > { %v1915_v26 = vunpack.c.l.b16 %v1846_v15  ;;  %v2855_v54 = vunpack.c.l.b16 %v2667_v56  ;;  %v2671_v49 = vrot.slane %v2669_v37, 4  ;;  %v2674_v30 = vrot.slane %v2672_v63, 5  ;;  %v1742_v56 = vld [vmem:[#allocation2 + $0x6c] sm:$0xe] }
 0x13e   : > { %10815 = vmatmul.msk.bf16.gmra.mxu1 %vm1371_vm10, %v3276_v57  ;;  %v1849_v15 = vrot.slane %v11855_v55, 5  ;;  %v10799_v57 = vrot.slane %v3067_v44, 9  ;;  %v3189_v17 = vrot.slane %v3187_v16, 4  ;;  %v11856_v55 = vld [vmem:[#allocation2 + $0x74] sm:$0x1]  ;;  %v10668_v44 = vrot.slane %v1742_v56, 9 }
 0x13f   : > { %v1508_v58 = vpop.f32.mrf.mxu2  ;;  %v1470_v50 = vpop.f32.mrf.mxu0  ;;  %v1938_v18 = vpack.c.b16 %v1915_v26, %v1914_v4  ;;  %v2878_v37 = vpack.c.b16 %v2855_v54, %v2854_v60  ;;  %v2675_v63 = vor.u32 %v2674_v30, %v2671_v49  ;;  %v2688_v26 = vshll.u32 %v2433_v14, 16 }
 0x140   : > { %v12909_v43 = vadd.f32 %v12869_v59, %v1508_v58  ;;  %v12921_v31 = vpop.f32.mrf.mxu3  ;;  %v2678_v59 = vshll.u32 %v2432_v53, 16  ;;  %v12923_v20 = vadd.f32 %v1690_v0, %v1470_v50  ;;  %v1851_v60 = vrot.slane %v1849_v15, 4 }
 0x141   : > { %v2676_v49 = vrot.slane %v2675_v63, 4 }
 0x142   : > { %16512 = vst [vmem:[#allocation23_spill] sm:$0xff] %v12909_v43  ;;  %v2680_v58 = vrot.slane %v2678_v59, 5  ;;  %v3190_v59 = vrot.slane %v2433_v14, 5  ;;  %v2434_v14 = vld [vmem:[#allocation2 + $0x84] sm:$0xf] }
 0x143   : > { %v12930_v50 = vpop.f32.mrf.mxu1  ;;  %v2693_v63 = vshrl.u32 %v2434_v14, 16 }
 0x144   : > { %10766 = vmatmul.msk.bf16.gmra.mxu3 %vm1371_vm10, %v11644_v32  ;;  %v2685_v4 = vor.u32 %v2684_v11, %v2680_v58  ;;  %v3188_v32 = vsel %vm12655_vm2, %v10799_v57, %v3187_v16  ;;  %v2690_v11 = vrot.slane %v2688_v26, 5 }
 0x146   : > { %v2686_v30 = vrot.slane %v2685_v4, 4 }
 0x147   : > { %v1510_v43 = vpop.f32.mrf.mxu2  ;;  %v2946_v53 = vpop.f32.mrf.mxu0 }
 0x148   : > { %v12928_v0 = vadd.f32 %v12891_v7, %v1510_v43  ;;  %v12932_v51 = vpop.f32.mrf.mxu3  ;;  %v3191_v7 = vsel %vm12655_vm2, %v3189_v17, %v3190_v59  ;;  %v3254_v43 = vunpack.c.l.b16 %v3188_v32  ;;  %v1850_v17 = vsel %vm12655_vm2, %v10668_v44, %v1849_v15 }
 0x149   : > { %v3255_v54 = vunpack.c.l.b16 %v3191_v7  ;;  %v2696_v59 = vshll.u32 %v2434_v14, 16  ;;  %v2691_v32 = vsel %vm12199_vm13, %v2686_v30, %v2690_v11  ;;  %v2706_v15 = vshrl.u32 %v2435_v21, 16 }
 0x14a   : > { %16513 = vst [vmem:[#allocation24_spill] sm:$0xff] %v12928_v0  ;;  %v1852_v0 = vrot.slane %v11856_v55, 5  ;;  %10782 = vmatmul.msk.bf16.gmra.mxu0 %vm1371_vm10, %v2878_v37  ;;  %v2681_v37 = vsel %vm12199_vm13, %v2676_v49, %v2680_v58  ;;  %v1916_v7 = vunpack.c.l.b16 %v1850_v17  ;;  %v11645_v55 = vld [vmem:[#allocation2 + $0x84] sm:$0xff]  ;;  %v1656_v58 = vadd.f32 %v12640_v47, %v12666_v25  ;;  %v11857_v47 = vld [vmem:[#allocation2 + $0x7c] sm:$0xf] }
 0x14b   : > { %v3277_v16 = vpack.c.b16 %v3255_v54, %v3254_v43  ;;  %v12945_v56 = vpop.f32.mrf.mxu1  ;;  %v2856_v44 = vunpack.c.l.b16 %v2681_v37  ;;  %v2695_v54 = vrot.slane %v2693_v63, 4  ;;  %v2698_v49 = vrot.slane %v2696_v59, 5 }
 0x14c   : > { %10684 = vmatmul.msk.bf16.gmra.mxu2 %vm1371_vm10, %v1938_v18  ;;  %v1853_v18 = vsel %vm12655_vm2, %v1851_v60, %v1852_v0  ;;  %v11698_v0 = vld [vmem:[%s16476_s3 + $0x78] sm:$0xff]  ;;  %v2857_v60 = vunpack.c.l.b16 %v2691_v32  ;;  %v2708_v14 = vrot.slane %v2706_v15, 4  ;;  %v1856_v25 = vrot.slane %v11857_v47, 5  ;;  %v2438_v47 = vld [vmem:[#allocation2 + $0x94] sm:$0xf] }
 0x14d   : > { %v1917_v43 = vunpack.c.l.b16 %v1853_v18  ;;  %6025 = vmatpush.bf16.msra.mxu1 %v11698_v0  ;;  %v10800_v37 = vrot.slane %v3068_v29, 9 }
 0x14e   : > { %10816 = vmatmul.msk.bf16.gmra.mxu1 %vm1371_vm10, %v3277_v16  ;;  %v2436_v16 = vld [vmem:[#allocation2 + $0x8c] sm:$0x1]  ;;  %v2879_v59 = vpack.c.b16 %v2857_v60, %v2856_v44 }
 0x14f   : > { %v2006_v2 = vpop.f32.mrf.mxu2  ;;  %v2948_v4 = vpop.f32.mrf.mxu0  ;;  %v1939_v18 = vpack.c.b16 %v1917_v43, %v1916_v7  ;;  %v3197_v32 = vrot.slane %v2436_v16, 5  ;;  %v2712_v7 = vshll.u32 %v2436_v16, 16 }
 0x150   : > { %v2086_v57 = vadd.f32 %v2006_v2, %v12634_v39  ;;  %v12952_v39 = vpop.f32.mrf.mxu3  ;;  %v2702_v2 = vshll.u32 %v2435_v21, 16 }
 0x152   : > { %v2372_v26 = vadd.f32 %v12898_v9, %v2086_v57  ;;  %v2704_v11 = vrot.slane %v2702_v2, 5  ;;  %v3194_v57 = vrot.slane %v2435_v21, 5 }
 0x154   : > { %v3026_v9 = vadd.f32 %v2946_v53, %v2372_v26  ;;  %10767 = vmatmul.msk.bf16.gmra.mxu3 %vm1371_vm10, %v11645_v55  ;;  %v12964_v53 = vpop.f32.mrf.mxu1  ;;  %v3196_v63 = vrot.slane %v3194_v57, 4  ;;  %v2699_v26 = vor.u32 %v2698_v49, %v2695_v54  ;;  %v2709_v0 = vor.u32 %v2708_v14, %v2704_v11  ;;  %v11858_v55 = vld [vmem:[#allocation2 + $0x80] sm:$0x1] }
 0x155   : > { %v3195_v43 = vsel %vm12655_vm2, %v10800_v37, %v3194_v57  ;;  %v1858_v54 = vrot.slane %v1856_v25, 4  ;;  %v2714_v57 = vrot.slane %v2712_v7, 5  ;;  %v2726_v7 = vshll.u32 %v2438_v47, 16 }
 0x156   : > { %v12961_v30 = vadd.f32 %v12915_v61, %v3026_v9  ;;  %v1743_v61 = vld [vmem:[#allocation2 + $0x78] sm:$0xe]  ;;  %v3198_v29 = vsel %vm12655_vm2, %v3196_v63, %v3197_v32  ;;  %v3256_v9 = vunpack.c.l.b16 %v3195_v43  ;;  %v2710_v14 = vrot.slane %v2709_v0, 4 }
 0x157   : > { %v2008_v17 = vpop.f32.mrf.mxu2  ;;  %v2951_v2 = vpop.f32.mrf.mxu0  ;;  %v10669_v60 = vrot.slane %v1743_v61, 9  ;;  %v3257_v49 = vunpack.c.l.b16 %v3198_v29 }
 0x158   : > { %v2087_v24 = vadd.f32 %v2008_v17, %v1656_v58  ;;  %v12967_v15 = vpop.f32.mrf.mxu3  ;;  %v1859_v58 = vrot.slane %v11858_v55, 5  ;;  %v2437_v17 = vld [vmem:[#allocation2 + $0x90] sm:$0xf]  ;;  %v2715_v0 = vsel %vm12199_vm13, %v2710_v14, %v2714_v57  ;;  %v3201_v14 = vrot.slane %v2438_v47, 5 }
 0x159   : > { %v3278_v37 = vpack.c.b16 %v3257_v49, %v3256_v9  ;;  %v12998_v49 = vrot.slane %v2726_v7, 5 }
 0x15a   : > { %v2373_v21 = vadd.f32 %v12921_v31, %v2087_v24  ;;  %10783 = vmatmul.msk.bf16.gmra.mxu0 %vm1371_vm10, %v2879_v59  ;;  %v2700_v24 = vrot.slane %v2699_v26, 4  ;;  %v2717_v59 = vshrl.u32 %v2437_v17, 16  ;;  %v2720_v26 = vshll.u32 %v2437_v17, 16 }
 0x15c   : > { %10685 = vmatmul.msk.bf16.gmra.mxu2 %vm1371_vm10, %v1939_v18  ;;  %v3027_v44 = vadd.f32 %v2948_v4, %v2373_v21  ;;  %v1857_v4 = vsel %vm12655_vm2, %v10669_v60, %v1856_v25  ;;  %v1860_v18 = vsel %vm12655_vm2, %v1858_v54, %v1859_v58  ;;  %v12983_v61 = vpop.f32.mrf.mxu1  ;;  %v2730_v25 = vshrl.u32 %v2438_v47, 16  ;;  %v11646_v58 = vld [vmem:[#allocation2 + $0x90] sm:$0xff] }
 0x15d   : > { %v1918_v43 = vunpack.c.l.b16 %v1857_v4  ;;  %v1919_v55 = vunpack.c.l.b16 %v1860_v18  ;;  %v2719_v60 = vrot.slane %v2717_v59, 4 }
 0x15e   : > { %v12976_v31 = vadd.f32 %v12930_v50, %v3027_v44  ;;  %v2705_v50 = vsel %vm12199_vm13, %v2700_v24, %v2704_v11  ;;  %10817 = vmatmul.msk.bf16.gmra.mxu1 %vm1371_vm10, %v3278_v37  ;;  %v1661_v11 = vadd.f32 %v12683_v52, %v12702_v41  ;;  %v2859_v44 = vunpack.c.l.b16 %v2715_v0  ;;  %v3069_v37 = vld [vmem:[#allocation2 + $0x90] sm:$0xe]  ;;  %v1744_v52 = vld [vmem:[#allocation2 + $0x84] sm:$0xe]  ;;  %v11859_v41 = vld [vmem:[#allocation2 + $0x88] sm:$0xf] }
 0x15f   : > { %v2011_v16 = vpop.f32.mrf.mxu2  ;;  %v2953_v32 = vpop.f32.mrf.mxu0  ;;  %v2858_v9 = vunpack.c.l.b16 %v2705_v50  ;;  %v2732_v24 = vrot.slane %v2730_v25, 4  ;;  %v1940_v17 = vpack.c.b16 %v1919_v55, %v1918_v43  ;;  %v10801_v18 = vrot.slane %v3069_v37, 9 }
 0x160   : > { %v2088_v63 = vadd.f32 %v2011_v16, %v12689_v33  ;;  %v12990_v33 = vpop.f32.mrf.mxu3  ;;  %v2439_v16 = vld [vmem:[#allocation2 + $0x98] sm:$0x1]  ;;  %v3203_v50 = vrot.slane %v3201_v14, 4  ;;  %v10670_v55 = vrot.slane %v1744_v52, 9 }
 0x161   : > { %v2733_v7 = vor.u32 %v2732_v24, %v12998_v49  ;;  %v2736_v25 = vshll.u32 %v2439_v16, 16  ;;  %v3202_v43 = vsel %vm12655_vm2, %v10801_v18, %v3201_v14  ;;  %v2441_v24 = vld [vmem:[#allocation2 + $0xa0] sm:$0xf] }
 0x162   : > { %v2374_v21 = vadd.f32 %v12932_v51, %v2088_v63  ;;  %v2722_v51 = vrot.slane %v2720_v26, 5  ;;  %v3204_v26 = vrot.slane %v2439_v16, 5 }
 0x163   : > { %v2734_v16 = vrot.slane %v2733_v7, 4  ;;  %v2738_v37 = vrot.slane %v2736_v25, 5 }
 0x164   : > { %v3028_v29 = vadd.f32 %v2951_v2, %v2374_v21  ;;  %10768 = vmatmul.msk.bf16.gmra.mxu3 %vm1371_vm10, %v11646_v58  ;;  %v1863_v2 = vrot.slane %v11859_v41, 5  ;;  %v13001_v4 = vpop.f32.mrf.mxu1  ;;  %v2723_v59 = vor.u32 %v2722_v51, %v2719_v60  ;;  %v3205_v58 = vsel %vm12655_vm2, %v3203_v50, %v3204_v26 }
 0x165   : > { %v3259_v51 = vunpack.c.l.b16 %v3205_v58  ;;  %v2750_v26 = vshll.u32 %v2441_v24, 16  ;;  %v11647_v58 = vld [vmem:[#allocation2 + $0x9c] sm:$0xff] }
 0x166   : > { %v12996_v54 = vadd.f32 %v12945_v56, %v3028_v29  ;;  %v2880_v56 = vpack.c.b16 %v2859_v44, %v2858_v9  ;;  %v11860_v29 = vld [vmem:[#allocation2 + $0x8c] sm:$0x1]  ;;  %v1865_v60 = vrot.slane %v1863_v2, 4  ;;  %v2724_v14 = vrot.slane %v2723_v59, 4 }
 0x167   : > { %v2013_v57 = vpop.f32.mrf.mxu2  ;;  %v2956_v21 = vpop.f32.mrf.mxu0  ;;  %v1866_v9 = vrot.slane %v11860_v29, 5  ;;  %v1864_v52 = vsel %vm12655_vm2, %v10670_v55, %v1863_v2  ;;  %v2739_v2 = vsel %vm12199_vm13, %v2734_v16, %v2738_v37  ;;  %v1745_v16 = vld [vmem:[#allocation2 + $0x90] sm:$0xe]  ;;  %v11861_v37 = vld [vmem:[#allocation2 + $0x94] sm:$0xf] }
 0x168   : > { %v2089_v63 = vadd.f32 %v2013_v57, %v1661_v11  ;;  %v13004_v0 = vpop.f32.mrf.mxu3  ;;  %v3258_v11 = vunpack.c.l.b16 %v3202_v43  ;;  %v2729_v7 = vsel %vm12199_vm13, %v2724_v14, %v12998_v49  ;;  %v1920_v43 = vunpack.c.l.b16 %v1864_v52 }
 0x169   : > { %v1867_v50 = vsel %vm12655_vm2, %v1865_v60, %v1866_v9  ;;  %v2442_v9 = vld [vmem:[#allocation2 + $0xa4] sm:$0x1]  ;;  %v2860_v60 = vunpack.c.l.b16 %v2729_v7  ;;  %v3208_v52 = vrot.slane %v2441_v24, 5 }
 0x16a   : > { %v2375_v47 = vadd.f32 %v12952_v39, %v2089_v63  ;;  %v2440_v39 = vld [vmem:[#allocation2 + $0x9c] sm:$0xf]  ;;  %10784 = vmatmul.msk.bf16.gmra.mxu0 %vm1371_vm10, %v2880_v56  ;;  %v1921_v55 = vunpack.c.l.b16 %v1867_v50  ;;  %v3211_v7 = vrot.slane %v2442_v9, 5 }
 0x16b   : > { %v2741_v41 = vshrl.u32 %v2440_v39, 16  ;;  %v2744_v18 = vshll.u32 %v2440_v39, 16  ;;  %v2861_v39 = vunpack.c.l.b16 %v2739_v2  ;;  %v11862_v2 = vld [vmem:[#allocation2 + $0x98] sm:$0x1] }
 0x16c   : > { %10686 = vmatmul.msk.bf16.gmra.mxu2 %vm1371_vm10, %v1940_v17  ;;  %v3029_v44 = vadd.f32 %v2953_v32, %v2375_v47  ;;  %v3279_v17 = vpack.c.b16 %v3259_v51, %v3258_v11  ;;  %v13021_v56 = vpop.f32.mrf.mxu1  ;;  %v1666_v51 = vadd.f32 %v12721_v19, %v12745_v12  ;;  %v3210_v12 = vrot.slane %v3208_v52, 4 }
 0x16d   : > { %v2743_v11 = vrot.slane %v2741_v41, 4  ;;  %v2746_v29 = vrot.slane %v2744_v18, 5  ;;  %v1941_v18 = vpack.c.b16 %v1921_v55, %v1920_v43 }
 0x16e   : > { %v13014_v57 = vadd.f32 %v12964_v53, %v3029_v44  ;;  %v2754_v53 = vshrl.u32 %v2441_v24, 16  ;;  %10818 = vmatmul.msk.bf16.gmra.mxu1 %vm1371_vm10, %v3279_v17  ;;  %v13035_v44 = vrot.slane %v2750_v26, 5  ;;  %v2760_v17 = vshll.u32 %v2442_v9, 16 }
 0x16f   : > { %v2016_v63 = vpop.f32.mrf.mxu2  ;;  %v2958_v47 = vpop.f32.mrf.mxu0 }
 0x170   : > { %v2090_v32 = vadd.f32 %v2016_v63, %v12727_v35  ;;  %v13029_v25 = vpop.f32.mrf.mxu3  ;;  %v11697_v35 = vld [vmem:[%s16476_s3 + $0x70] sm:$0xff]  ;;  %v2756_v49 = vrot.slane %v2754_v53, 4  ;;  %v1870_v63 = vrot.slane %v11861_v37, 5  ;;  %v322_v37 = vld [vmem:[#allocation2 + $0xc0] sm:$0x1] }
 0x171   : > { %6026 = vmatpush.bf16.msra.mxu1 %v11697_v35  ;;  %v1873_v35 = vrot.slane %v11862_v2, 5 }
 0x172   : > { %v2376_v59 = vadd.f32 %v12967_v15, %v2090_v32  ;;  %v3070_v32 = vld [vmem:[#allocation2 + $0x9c] sm:$0xe]  ;;  %v2757_v26 = vor.u32 %v2756_v49, %v13035_v44  ;;  %v3212_v49 = vsel %vm12655_vm2, %v3210_v12, %v3211_v7 }
 0x173   : > { %v10802_v19 = vrot.slane %v3070_v32, 9  ;;  %v415_v32 = vld [vmem:[%s12080_s17 + $0xf8] sm:$0xff] }
 0x174   : > { %v3030_v15 = vadd.f32 %v2956_v21, %v2376_v59  ;;  %10769 = vmatmul.msk.bf16.gmra.mxu3 %vm1371_vm10, %v11647_v58  ;;  %v2747_v21 = vor.u32 %v2746_v29, %v2743_v11  ;;  %v13044_v53 = vpop.f32.mrf.mxu1  ;;  %v10671_v59 = vrot.slane %v1745_v16, 9  ;;  %v1872_v58 = vrot.slane %v1870_v63, 4 }
 0x175   : > { %v3209_v11 = vsel %vm12655_vm2, %v10802_v19, %v3208_v52  ;;  %v447_v12 = vpack.c.bf16 %v415_v32, %v415_v32 }
 0x176   : > { %v13040_v14 = vadd.f32 %v12983_v61, %v3030_v15  ;;  %v2881_v61 = vpack.c.b16 %v2861_v39, %v2860_v60  ;;  %v2748_v29 = vrot.slane %v2747_v21, 4  ;;  %v2443_v15 = vld [vmem:[#allocation2 + $0xa8] sm:$0xf]  ;;  %v3260_v60 = vunpack.c.l.b16 %v3209_v11 }
 0x177   : > { %v2018_v41 = vpop.f32.mrf.mxu2  ;;  %v2961_v24 = vpop.f32.mrf.mxu0  ;;  %v2758_v39 = vrot.slane %v2757_v26, 4  ;;  %v1871_v16 = vsel %vm12655_vm2, %v10671_v59, %v1870_v63  ;;  %v2765_v21 = vshrl.u32 %v2443_v15, 16  ;;  %v2768_v26 = vshll.u32 %v2443_v15, 16 }
 0x178   : > { %v2091_v50 = vadd.f32 %v2018_v41, %v1666_v51  ;;  %v13047_v55 = vpop.f32.mrf.mxu3  ;;  %v2762_v51 = vrot.slane %v2760_v17, 5  ;;  %v1874_v41 = vsel %vm12655_vm2, %v1872_v58, %v1873_v35  ;;  %v1922_v2 = vunpack.c.l.b16 %v1871_v16 }
 0x179   : > { %v1923_v35 = vunpack.c.l.b16 %v1874_v41  ;;  %v714_v58 = vshrl.u32 %v447_v12, 16  ;;  %v1671_v11 = vadd.f32 %v12755_v42, %v12777_v62  ;;  %v378_v62 = vld [vmem:[#allocation2 + $0xc8] sm:$0x1] }
 0x17a   : > { %v2377_v43 = vadd.f32 %v12990_v33, %v2091_v50  ;;  %v3261_v33 = vunpack.c.l.b16 %v3212_v49  ;;  %10785 = vmatmul.msk.bf16.gmra.mxu0 %vm1371_vm10, %v2881_v61  ;;  %v13066_v50 = vld [vmem:[#allocation2 + $0xac] sm:$0xf]  ;;  %v2753_v61 = vsel %vm12199_vm13, %v2748_v29, %v13035_v44  ;;  %v2763_v59 = vsel %vm12199_vm13, %v2758_v39, %v2762_v51 }
 0x17b   : > { %v2778_v44 = vshrl.u32 %v13066_v50, 16  ;;  %v11648_v29 = vld [vmem:[#allocation2 + $0xa8] sm:$0xff]  ;;  %v2770_v39 = vrot.slane %v2768_v26, 5  ;;  %v2863_v41 = vunpack.c.l.b16 %v2763_v59  ;;  %v13084_v42 = vrot.slane %v714_v58, 7 }
 0x17c   : > { %10687 = vmatmul.msk.bf16.gmra.mxu2 %vm1371_vm10, %v1941_v18  ;;  %v3031_v9 = vadd.f32 %v2958_v47, %v2377_v43  ;;  %v323_v18 = vsel %vm12065_vm4, 0, %v322_v37  ;;  %v414_v47 = vld [vmem:[%s12080_s17 + $0xf0] sm:$0xff]  ;;  %v3280_v19 = vpack.c.b16 %v3261_v33, %v3260_v60  ;;  %v13074_v7 = vpop.f32.mrf.mxu1  ;;  %v2774_v60 = vshll.u32 %v13066_v50, 16  ;;  %v3071_v59 = vld [vmem:[#allocation2 + $0xa8] sm:$0xe]  ;;  %s15995_s17 = scalar_lea.vmem [#allocation4], %s10558_s26 }
 0x17d   : > { %324 = vst [vmem:[#allocation2 + $0xc0] sm:$0x1] %v323_v18  ;;  %v446_v63 = vpack.c.bf16 %v414_v47, %v414_v47  ;;  %v2862_v37 = vunpack.c.l.b16 %v2753_v61  ;;  %v2445_v18 = vld [vmem:[#allocation2 + $0xb0] sm:$0x1]  ;;  %v2780_v26 = vrot.slane %v2778_v44, 4  ;;  %s10439_s15 = sshll.u32 %s15995_s17, 4  ;;  %s16407_s15 = int_to_ptr.vmem [resolvable:$true] %s10439_s15 }
 0x17e   : > { %v13058_v52 = vadd.f32 %v13001_v4, %v3031_v9  ;;  %v2767_v9 = vrot.slane %v2765_v21, 4  ;;  %10819 = vmatmul.msk.bf16.gmra.mxu1 %vm1371_vm10, %v3280_v19  ;;  %v13089_v21 = vrot.slane %v2774_v60, 5  ;;  %v3215_v19 = vrot.slane %v13066_v50, 5  ;;  %s11891_s26 = scalar_lea.hbm %s11890_s20, 256 }
 0x17f   : > { %v2021_v17 = vpop.f32.mrf.mxu2  ;;  %v706_v43 = vshrl.u32 %v446_v63, 16  ;;  %v2963_v15 = vpop.f32.mrf.mxu0  ;;  %v709_v33 = vshll.u32 %v446_v63, 16  ;;  %v10803_v50 = vrot.slane %v3071_v59, 9  ;;  %v2882_v44 = vpack.c.b16 %v2863_v41, %v2862_v37  ;;  %v11864_v37 = vld [vmem:[#allocation2 + $0xa4] sm:$0x1]  ;;  %p11892_p11 = scmp.ne.s32.totalorder %s11890_s20, %s11891_s26  ;;  %p11897_p1 = scmp.lt.s32.totalorder %s11895_s10, %s11891_s26 }
 0x180   : > { %v2092_v4 = vadd.f32 %v2021_v17, %v12764_v13  ;;  %v13079_v13 = vpop.f32.mrf.mxu3  ;;  %v717_v17 = vshll.u32 %v447_v12, 16  ;;  %v2771_v61 = vor.u32 %v2770_v39, %v2767_v9  ;;  %v3217_v60 = vrot.slane %v3215_v19, 4  ;;  %v1746_v9 = vld [vmem:[#allocation2 + $0x9c] sm:$0xe] }
 0x181   : > { %v708_v51 = vrot.slane %v706_v43, 7  ;;  %v11863_v43 = vld [vmem:[#allocation2 + $0xa0] sm:$0xf]  ;;  %v3218_v39 = vrot.slane %v2445_v18, 5  ;;  %v1880_v41 = vrot.slane %v11864_v37, 5  ;;  %p11893_p12 = pnand %p11892_p11, %p12047_p5  ;;  %p11898_p2 = por %p11897_p1, %p11896_p0 }
 0x182   : > { %v2378_v49 = vadd.f32 %v13004_v0, %v2092_v4  ;;  %v1942_v0 = vpack.c.b16 %v1923_v35, %v1922_v2  ;;  %v719_v2 = vor.u32 %v717_v17, %v13084_v42  ;;  %v1877_v58 = vrot.slane %v11863_v43, 5  ;;  %v13109_v17 = vld [vmem:[#allocation2 + $0xb8] sm:$0xf] }
 0x183   : > { %v711_v47 = vor.u32 %v709_v33, %v708_v51  ;;  %v712_v32 = vrot.slane %v708_v51, 4  ;;  %v2798_v43 = vshll.u32 %v13109_v17, 16  ;;  %p11894_p13 = pneg %p11893_p12 }
 0x184   : > { %v3032_v16 = vadd.f32 %v2961_v24, %v2378_v49  ;;  %v878_v63 = vld [vmem:[#allocation2 + $0xc0] sm:$0xf]  ;;  %10770 = vmatmul.msk.bf16.gmra.mxu3 %vm1371_vm10, %v11648_v29  ;;  %v13098_v49 = vpop.f32.mrf.mxu1  ;;  %v2784_v29 = vshll.u32 %v2445_v18, 16  ;;  %v2772_v18 = vrot.slane %v2771_v61, 4 }
 0x185   : > { %v879_v35 = vsel %vm12132_vm9, %v711_v47, %v878_v63  ;;  %v720_v51 = vsel %vm12121_vm8, %v712_v32, %v719_v2  ;;  %v3216_v47 = vsel %vm12655_vm2, %v10803_v50, %v3215_v19  ;;  %v3219_v32 = vsel %vm12655_vm2, %v3217_v60, %v3218_v39  ;;  %v2448_v39 = vld [vmem:[#allocation2 + $0xbc] sm:$0x1]  ;;  %p11899_p3 = pnand %p11898_p2, %p11894_p13 }
 0x186   : > { %v13087_v4 = vadd.f32 %v13021_v56, %v3032_v16  ;;  %v379_v56 = vsel %vm12084_vm6, 0, %v378_v62  ;;  %880 = vst [vmem:[#allocation2 + $0xc0] sm:$0xf] %v879_v35  ;;  %v2446_v62 = vld [vmem:[#allocation2 + $0xb4] sm:$0xf]  ;;  %v3262_v63 = vunpack.c.l.b16 %v3216_v47  ;;  %v3263_v59 = vunpack.c.l.b16 %v3219_v32 }
 0x187   : > { %v2023_v24 = vpop.f32.mrf.mxu2  ;;  %380 = vst [vmem:[#allocation2 + $0xc8] sm:$0x1] %v379_v56  ;;  %v2966_v34 = vpop.f32.mrf.mxu0  ;;  %v2786_v19 = vrot.slane %v2784_v29, 5  ;;  %v2789_v2 = vshrl.u32 %v2446_v62, 16  ;;  %v2792_v35 = vshll.u32 %v2446_v62, 16  ;;  %v721_v56 = vrot.slane %v13084_v42, 4 }
 0x188   : > { %v2093_v12 = vadd.f32 %v2023_v24, %v1671_v11  ;;  %v13103_v16 = vpop.f32.mrf.mxu3  ;;  %v2781_v11 = vor.u32 %v2780_v26, %v13089_v21  ;;  %881 = vst.msk [vmem:[#allocation2 + $0xc4] sm:$0xf] %vm262_vm1, %v720_v51  ;;  %v10672_v24 = vrot.slane %v1746_v9, 9  ;;  %v1879_v26 = vrot.slane %v1877_v58, 4 }
 0x189   : > { %v2802_v50 = vshrl.u32 %v13109_v17, 16  ;;  %v2791_v51 = vrot.slane %v2789_v2, 4  ;;  %v13138_v37 = vrot.slane %v2798_v43, 5  ;;  %vm4870_vm1 = vcmask 1040384  }
 0x18a   : > { %v2379_v33 = vadd.f32 %v13029_v25, %v2093_v12  ;;  %10786 = vmatmul.msk.bf16.gmra.mxu0 %vm1371_vm10, %v2882_v44  ;;  %v2782_v12 = vrot.slane %v2781_v11, 4  ;;  %v1878_v44 = vsel %vm12655_vm2, %v10672_v24, %v1877_v58  ;;  %v1881_v29 = vsel %vm12655_vm2, %v1879_v26, %v1880_v41  ;;  %vm13546_vm7 = vmand %vm4870_vm1, %vm272_vm3 }
 0x18b   : > { %v2804_v41 = vrot.slane %v2802_v50, 4  ;;  %v1925_v32 = vunpack.c.l.b16 %v1881_v29  ;;  %v3072_v50 = vld [vmem:[#allocation2 + $0xb4] sm:$0xe]  ;;  %vm13572_vm3 = vmand %vm4870_vm1, %vm328_vm5  ;;  %vm5334_vm9 = vcmask 1043456  }
 0x18c   : > { %10688 = vmatmul.msk.bf16.gmra.mxu2 %vm1371_vm10, %v1942_v0  ;;  %v3033_v25 = vadd.f32 %v2963_v15, %v2379_v33  ;;  %v3281_v15 = vpack.c.b16 %v3263_v59, %v3262_v63  ;;  %v13126_v9 = vpop.f32.mrf.mxu1  ;;  %v2794_v33 = vrot.slane %v2792_v35, 5  ;;  %v2787_v58 = vsel %vm12199_vm13, %v2782_v12, %v2786_v19  ;;  %v11649_v63 = vld [vmem:[#allocation2 + $0xb4] sm:$0xff]  ;;  %vm13698_vm11 = vmand %vm5334_vm9, %vm328_vm5 }
 0x18d   : > { %v2865_v24 = vunpack.c.l.b16 %v2787_v58  ;;  %v2808_v59 = vshll.u32 %v2448_v39, 16  ;;  %v1676_v19 = vadd.f32 %v12789_v6, %v12806_v23  ;;  %v2805_v35 = vor.u32 %v2804_v41, %v13138_v37 }
 0x18e   : > { %v13117_v61 = vadd.f32 %v13044_v53, %v3033_v25  ;;  %v882_v42 = vld [vmem:[#allocation2 + $0xc8] sm:$0x1]  ;;  %v2777_v53 = vsel %vm12199_vm13, %v2772_v18, %v13089_v21  ;;  %v1924_v18 = vunpack.c.l.b16 %v1878_v44  ;;  %10820 = vmatmul.msk.bf16.gmra.mxu1 %vm1371_vm10, %v3281_v15  ;;  %v2795_v26 = vor.u32 %v2794_v33, %v2791_v51  ;;  %v11865_v15 = vld [vmem:[#allocation2 + $0xac] sm:$0xf]  ;;  %v3743_v51 = vld [vmem:[#allocation2 + $0x18] sm:$0xf] }
 0x18f   : > { %v2026_v0 = vpop.f32.mrf.mxu2  ;;  %v883_v11 = vsel %vm12065_vm4, %v721_v56, %v882_v42  ;;  %v11696_v21 = vld [vmem:[%s16476_s3 + $0x68] sm:$0xff]  ;;  %v3222_v56 = vrot.slane %v13109_v17, 5  ;;  %v10804_v29 = vrot.slane %v3072_v50, 9  ;;  %v2810_v42 = vrot.slane %v2808_v59, 5 }
 0x190   : > { %v2094_v60 = vadd.f32 %v2026_v0, %v12794_v22  ;;  %v2968_v22 = vpop.f32.mrf.mxu0  ;;  %v13136_v47 = vpop.f32.mrf.mxu3  ;;  %884 = vst [vmem:[#allocation2 + $0xc8] sm:$0x1] %v883_v11  ;;  %6027 = vmatpush.bf16.msra.mxu1 %v11696_v21  ;;  %v1943_v43 = vpack.c.b16 %v1925_v32, %v1924_v18  ;;  %v13159_v21 = vld [vmem:[#allocation2 + $0x1c] sm:$0xf]  ;;  %vm10344_vm5 = vcmask 1042434  }
 0x191   : > { %v3224_v6 = vrot.slane %v3222_v56, 4  ;;  %v3223_v41 = vsel %vm12655_vm2, %v10804_v29, %v3222_v56  ;;  %v3801_v59 = vshll.u32 %v13159_v21, 16  ;;  %v2449_v56 = vld [vmem:[#allocation2 + $0xc0] sm:$0xf] }
 0x192   : > { %v2380_v62 = vadd.f32 %v13047_v55, %v2094_v60  ;;  %v2864_v55 = vunpack.c.l.b16 %v2777_v53  ;;  %v1884_v60 = vrot.slane %v11865_v15, 5  ;;  %v3225_v53 = vrot.slane %v2448_v39, 5  ;;  %v11866_v39 = vld [vmem:[#allocation2 + $0xb0] sm:$0x1] }
 0x193   : > { %v3264_v32 = vunpack.c.l.b16 %v3223_v41 }
 0x194   : > { %v3034_v25 = vadd.f32 %v2966_v34, %v2380_v62  ;;  %10771 = vmatmul.msk.bf16.gmra.mxu3 %vm1371_vm10, %v11649_v63  ;;  %v1747_v34 = vld [vmem:[#allocation2 + $0xa8] sm:$0xe]  ;;  %v13152_v44 = vpop.f32.mrf.mxu1  ;;  %v2883_v23 = vpack.c.b16 %v2865_v24, %v2864_v55  ;;  %v2806_v62 = vrot.slane %v2805_v35, 4  ;;  %v3226_v18 = vsel %vm12655_vm2, %v3224_v6, %v3225_v53 }
 0x195   : > { %v10673_v58 = vrot.slane %v1747_v34, 9  ;;  %v3792_v63 = vshrl.u32 %v3743_v51, 16  ;;  %v1887_v55 = vrot.slane %v11866_v39, 5  ;;  %v1886_v24 = vrot.slane %v1884_v60, 4 }
 0x196   : > { %v13147_v2 = vadd.f32 %v13074_v7, %v3034_v25  ;;  %v2796_v7 = vrot.slane %v2795_v26, 4  ;;  %v3795_v25 = vshll.u32 %v3743_v51, 16  ;;  %v3265_v26 = vunpack.c.l.b16 %v3226_v18  ;;  %v13187_v51 = vld [vmem:[#allocation2 + $0x20] sm:$0x1] }
 0x197   : > { %v2028_v12 = vpop.f32.mrf.mxu2  ;;  %v2811_v35 = vsel %vm12199_vm13, %v2806_v62, %v2810_v42  ;;  %v3794_v50 = vrot.slane %v3792_v63, 4  ;;  %v1888_v29 = vsel %vm12655_vm2, %v1886_v24, %v1887_v55  ;;  %v2816_v42 = vshll.u32 %v2449_v56, 16  ;;  %v2451_v39 = vld [vmem:[#allocation2 + $0xc8] sm:$0x1] }
 0x198   : > { %v2095_v0 = vadd.f32 %v2028_v12, %v1676_v19  ;;  %v2971_v33 = vpop.f32.mrf.mxu0  ;;  %v13155_v11 = vpop.f32.mrf.mxu3  ;;  %v2801_v19 = vsel %vm12199_vm13, %v2796_v7, %v13138_v37  ;;  %v13173_v12 = vld [vmem:[#allocation2 + $0xc4] sm:$0xf]  ;;  %v13182_v37 = vrot.slane %v3801_v59, 5  ;;  %v2813_v7 = vshrl.u32 %v2449_v56, 16 }
 0x199   : > { %v2822_v53 = vshll.u32 %v13173_v12, 16  ;;  %v2866_v62 = vunpack.c.l.b16 %v2801_v19  ;;  %v2867_v18 = vunpack.c.l.b16 %v2811_v35  ;;  %v1927_v63 = vunpack.c.l.b16 %v1888_v29 }
 0x19a   : > { %v2381_v17 = vadd.f32 %v13079_v13, %v2095_v0  ;;  %10787 = vmatmul.msk.bf16.gmra.mxu0 %vm1371_vm10, %v2883_v23  ;;  %v3797_v0 = vrot.slane %v3795_v25, 5  ;;  %v3805_v23 = vshrl.u32 %v13159_v21, 16  ;;  %v11650_v25 = vld [vmem:[#allocation2 + $0xc0] sm:$0xff]  ;;  %v3811_v59 = vshll.u32 %v13187_v51, 16 }
 0x19b   : > { %v2815_v56 = vrot.slane %v2813_v7, 4  ;;  %v1681_v35 = vadd.f32 %v12821_v1, %v12840_v45  ;;  %v2884_v29 = vpack.c.b16 %v2867_v18, %v2866_v62  ;;  %v3229_v7 = vrot.slane %v13173_v12, 5 }
 0x19c   : > { %10689 = vmatmul.msk.bf16.gmra.mxu2 %vm1371_vm10, %v1943_v43  ;;  %v13164_v13 = vadd.f32 %v2968_v22, %v2381_v17  ;;  %v1885_v22 = vsel %vm12655_vm2, %v10673_v58, %v1884_v60  ;;  %v3282_v43 = vpack.c.b16 %v3265_v26, %v3264_v32  ;;  %v13180_v6 = vpop.f32.mrf.mxu1  ;;  %v2826_v60 = vshrl.u32 %v13173_v12, 16 }
 0x19d   : > { %v3807_v41 = vrot.slane %v3805_v23, 4  ;;  %v1926_v32 = vunpack.c.l.b16 %v1885_v22  ;;  %v3798_v55 = vor.u32 %v3797_v0, %v3794_v50  ;;  %v3073_v23 = vld [vmem:[#allocation2 + $0xc0] sm:$0xe]  ;;  %v3231_v18 = vrot.slane %v3229_v7, 4 }
 0x19e   : > { %10821 = vmatmul.msk.bf16.gmra.mxu1 %vm1371_vm10, %v3282_v43  ;;  %v2828_v19 = vrot.slane %v2826_v60, 4  ;;  %v10805_v1 = vrot.slane %v3073_v23, 9 }
 0x19f   : > { %v2031_v34 = vpop.f32.mrf.mxu2  ;;  %v3808_v26 = vor.u32 %v3807_v41, %v13182_v37  ;;  %v1944_v50 = vpack.c.b16 %v1927_v63, %v1926_v32  ;;  %v3799_v0 = vrot.slane %v3798_v55, 4  ;;  %v11867_v41 = vld [vmem:[#allocation2 + $0xb8] sm:$0xf]  ;;  %v3746_v32 = vld [vmem:[#allocation2 + $0x24] sm:$0xf] }
 0x1a0   : > { %v2096_v15 = vadd.f32 %v2031_v34, %v12833_v48  ;;  %v2973_v17 = vpop.f32.mrf.mxu0  ;;  %v13190_v58 = vpop.f32.mrf.mxu3  ;;  %v2818_v34 = vrot.slane %v2816_v42, 5  ;;  %v1891_v62 = vrot.slane %v11867_v41, 5  ;;  %v13207_v63 = vld [vmem:[#allocation2 + $0x28] sm:$0xf] }
 0x1a1   : > { %v3809_v60 = vrot.slane %v3808_v26, 4  ;;  %v3230_v26 = vsel %vm12655_vm2, %v10805_v1, %v3229_v7  ;;  %v3825_v23 = vshll.u32 %v13207_v63, 16 }
 0x1a2   : > { %v2382_v48 = vadd.f32 %v13103_v16, %v2096_v15  ;;  %v13195_v16 = vrot.slane %v2822_v53, 5  ;;  %v2832_v15 = vshll.u32 %v2451_v39, 16  ;;  %v2819_v45 = vor.u32 %v2818_v34, %v2815_v56 }
 0x1a3   : > { %v3804_v56 = vsel %vm12199_vm13, %v3799_v0, %v13182_v37  ;;  %v3266_v34 = vunpack.c.l.b16 %v3230_v26  ;;  %v1893_v37 = vrot.slane %v1891_v62, 4 }
 0x1a4   : > { %v3036_v24 = vadd.f32 %v2971_v33, %v2382_v48  ;;  %10772 = vmatmul.msk.bf16.gmra.mxu3 %vm1371_vm10, %v11650_v25  ;;  %v1748_v33 = vld [vmem:[#allocation2 + $0xb4] sm:$0xe]  ;;  %v13204_v53 = vpop.f32.mrf.mxu1  ;;  %v3813_v48 = vrot.slane %v3811_v59, 5  ;;  %v3232_v59 = vrot.slane %v2451_v39, 5  ;;  %v11868_v39 = vld [vmem:[#allocation2 + $0xbc] sm:$0x1]  ;;  %v4177_v41 = vunpack.c.l.b16 %v3804_v56 }
 0x1a5   : > { %v10674_v12 = vrot.slane %v1748_v33, 9  ;;  %v1894_v7 = vrot.slane %v11868_v39, 5  ;;  %v2820_v1 = vrot.slane %v2819_v45, 4 }
 0x1a6   : > { %v13200_v22 = vadd.f32 %v13126_v9, %v3036_v24  ;;  %v2829_v9 = vor.u32 %v2828_v19, %v13195_v16  ;;  %v3816_v19 = vshrl.u32 %v3746_v32, 16  ;;  %v3233_v33 = vsel %vm12655_vm2, %v3231_v18, %v3232_v59 }
 0x1a7   : > { %v2033_v43 = vpop.f32.mrf.mxu2  ;;  %v3267_v0 = vunpack.c.l.b16 %v3233_v33  ;;  %v1892_v59 = vsel %vm12655_vm2, %v10674_v12, %v1891_v62  ;;  %v1895_v45 = vsel %vm12655_vm2, %v1893_v37, %v1894_v7  ;;  %v11695_v12 = vld [vmem:[%s16476_s3 + $0x60] sm:$0xff] }
 0x1a8   : > { %v2097_v42 = vadd.f32 %v2033_v43, %v1681_v35  ;;  %v2976_v25 = vpop.f32.mrf.mxu0  ;;  %v13210_v24 = vpop.f32.mrf.mxu3  ;;  %v3819_v35 = vshll.u32 %v3746_v32, 16  ;;  %6028 = vmatpush.bf16.msra.mxu1 %v11695_v12 }
 0x1aa   : > { %v2383_v55 = vadd.f32 %v13136_v47, %v2097_v42  ;;  %v3814_v47 = vsel %vm12199_vm13, %v3809_v60, %v3813_v48  ;;  %10788 = vmatmul.msk.bf16.gmra.mxu0 %vm1371_vm10, %v2884_v29  ;;  %v3829_v42 = vshrl.u32 %v13207_v63, 16  ;;  %v3283_v60 = vpack.c.b16 %v3267_v0, %v3266_v34 }
 0x1ab   : > { %v3818_v48 = vrot.slane %v3816_v19, 4  ;;  %v3821_v26 = vrot.slane %v3819_v35, 5  ;;  %v3827_v29 = vrot.slane %v3825_v23, 5  ;;  %v2825_v34 = vsel %vm12199_vm13, %v2820_v1, %v13195_v16 }
 0x1ac   : > { %10690 = vmatmul.msk.bf16.gmra.mxu2 %vm1371_vm10, %v1944_v50  ;;  %v13218_v43 = vadd.f32 %v2973_v17, %v2383_v55  ;;  %v2830_v50 = vrot.slane %v2829_v9, 4  ;;  %v2834_v17 = vrot.slane %v2832_v15, 5  ;;  %v4178_v55 = vunpack.c.l.b16 %v3814_v47  ;;  %v13230_v39 = vpop.f32.mrf.mxu1  ;;  %v13234_v9 = vld [vmem:[#allocation2 + $0x2c] sm:$0x1] }
 0x1ad   : > { %v3831_v33 = vrot.slane %v3829_v42, 4  ;;  %v1928_v19 = vunpack.c.l.b16 %v1892_v59  ;;  %v3822_v47 = vor.u32 %v3821_v26, %v3818_v48  ;;  %v3835_v16 = vshll.u32 %v13234_v9, 16  ;;  %v3749_v48 = vld [vmem:[#allocation2 + $0x30] sm:$0xf]  ;;  %v13256_v26 = vld [vmem:[#allocation2 + $0x34] sm:$0xf] }
 0x1ae   : > { %v4209_v35 = vpack.c.b16 %v4178_v55, %v4177_v41  ;;  %10822 = vmatmul.msk.bf16.gmra.mxu1 %vm1371_vm10, %v3283_v60  ;;  %v2868_v37 = vunpack.c.l.b16 %v2825_v34  ;;  %v3843_v34 = vshll.u32 %v3749_v48, 16 }
 0x1af   : > { %v2036_v32 = vpop.f32.mrf.mxu2  ;;  %v3832_v7 = vor.u32 %v3831_v33, %v3827_v29  ;;  %v3837_v55 = vrot.slane %v3835_v16, 5  ;;  %v4463_v33 = vrot.slane %v13159_v21, 5 }
 0x1b0   : > { %v2098_v18 = vadd.f32 %v2036_v32, %v12862_v36  ;;  %v2978_v15 = vpop.f32.mrf.mxu0  ;;  %v2835_v36 = vsel %vm12199_vm13, %v2830_v50, %v2834_v17  ;;  %v13242_v62 = vpop.f32.mrf.mxu3  ;;  %v3823_v50 = vrot.slane %v3822_v47, 4  ;;  %v4466_v47 = vrot.slane %v13187_v51, 5 }
 0x1b1   : > { %v2869_v0 = vunpack.c.l.b16 %v2835_v36  ;;  %v3845_v16 = vrot.slane %v3843_v34, 5 }
 0x1b2   : > { %v2384_v56 = vadd.f32 %v13155_v11, %v2098_v18  ;;  %v1929_v11 = vunpack.c.l.b16 %v1895_v45  ;;  %v4397_v45 = vld [vmem:[#allocation2 + $0x18] sm:$0xe] }
 0x1b3   : > { %v2885_v60 = vpack.c.b16 %v2869_v0, %v2868_v37  ;;  %v10921_v21 = vrot.slane %v4397_v45, 9 }
 0x1b4   : > { %v3038_v23 = vadd.f32 %v2976_v25, %v2384_v56  ;;  %10905 = vmatmul.msk.bf16.vlgmr.msra.gmra.mxu3 %vm1371_vm10, %v4209_v35  ;;  %v1945_v41 = vpack.c.b16 %v1929_v11, %v1928_v19  ;;  %v13254_v32 = vpop.f32.mrf.mxu1  ;;  %v3833_v25 = vrot.slane %v3832_v7, 4  ;;  %v3840_v56 = vshrl.u32 %v3749_v48, 16 }
 0x1b5   : > { %16514 = vst [vmem:[#allocation25_spill] sm:$0xff] %v13254_v32  ;;  %v3849_v19 = vshll.u32 %v13256_v26, 16  ;;  %v4465_v35 = vrot.slane %v4463_v33, 4 }
 0x1b6   : > { %v13250_v42 = vadd.f32 %v13180_v6, %v3038_v23  ;;  %v3838_v12 = vsel %vm12199_vm13, %v3833_v25, %v3837_v55  ;;  %v3842_v7 = vrot.slane %v3840_v56, 4  ;;  %v4464_v25 = vsel %vm12655_vm2, %v10921_v21, %v4463_v33 }
 0x1b7   : > { %v2038_v1 = vpop.f32.mrf.mxu2  ;;  %v4180_v11 = vunpack.c.l.b16 %v3838_v12  ;;  %v3851_v0 = vrot.slane %v3849_v19, 5  ;;  %v4467_v51 = vsel %vm12655_vm2, %v4465_v35, %v4466_v47  ;;  %v11651_v19 = vld [vmem:[#allocation2 + $0x18] sm:$0xff] }
 0x1b8   : > { %v2099_v17 = vadd.f32 %v2038_v1, %v12878_v5  ;;  %v2981_v18 = vpop.f32.mrf.mxu0  ;;  %v13259_v6 = vpop.f32.mrf.mxu3  ;;  %v3828_v5 = vsel %vm12199_vm13, %v3823_v50, %v3827_v29  ;;  %v13276_v50 = vld [vmem:[#allocation2 + $0x38] sm:$0x1]  ;;  %v3846_v48 = vor.u32 %v3845_v16, %v3842_v7  ;;  %v4576_v56 = vunpack.c.l.b16 %v4467_v51  ;;  %v3752_v47 = vld [vmem:[#allocation2 + $0x3c] sm:$0xf]  ;;  %v4398_v16 = vld [vmem:[#allocation2 + $0x24] sm:$0xe] }
 0x1b9   : > { %v4179_v23 = vunpack.c.l.b16 %v3828_v5  ;;  %v3859_v45 = vshll.u32 %v13276_v50, 16  ;;  %v4575_v5 = vunpack.c.l.b16 %v4464_v25  ;;  %v4470_v7 = vrot.slane %v13207_v63, 5 }
 0x1ba   : > { %v2385_v59 = vadd.f32 %v13190_v58, %v2099_v17  ;;  %v3853_v58 = vshrl.u32 %v13256_v26, 16  ;;  %10789 = vmatmul.msk.bf16.gmra.mxu0 %vm1371_vm10, %v2885_v60  ;;  %v3847_v33 = vrot.slane %v3846_v48, 4  ;;  %v10922_v63 = vrot.slane %v4398_v16, 9 }
 0x1bb   : > { %v4210_v60 = vpack.c.b16 %v4180_v11, %v4179_v23  ;;  %v3861_v35 = vrot.slane %v3859_v45, 5  ;;  %v4473_v48 = vrot.slane %v13234_v9, 5 }
 0x1bc   : > { %10691 = vmatmul.msk.bf16.gmra.mxu2 %vm1371_vm10, %v1945_v41  ;;  %v13265_v36 = vadd.f32 %v2978_v15, %v2385_v59  ;;  %v13274_v37 = vpop.f32.mrf.mxu1  ;;  %v3855_v1 = vrot.slane %v3853_v58, 4 }
 0x1be   : > { %v3856_v59 = vor.u32 %v3855_v1, %v3851_v0  ;;  %v3867_v1 = vshll.u32 %v3752_v47, 16 }
 0x1bf   : > { %v2041_v29 = vpop.f32.mrf.mxu2 }
 0x1c0   : > { %v2100_v15 = vadd.f32 %v2041_v29, %v12902_v46  ;;  %v2983_v17 = vpop.f32.mrf.mxu0  ;;  %v13283_v55 = vpop.f32.mrf.mxu3  ;;  %v3857_v21 = vrot.slane %v3856_v59, 4  ;;  %v13293_v29 = vld [vmem:[#allocation2 + $0x40] sm:$0xf] }
 0x1c1   : > { %v3873_v51 = vshll.u32 %v13293_v29, 16 }
 0x1c2   : > { %v2386_v41 = vadd.f32 %v13210_v24, %v2100_v15  ;;  %v3864_v15 = vshrl.u32 %v3752_v47, 16  ;;  %v3862_v25 = vsel %vm12199_vm13, %v3857_v21, %v3861_v35  ;;  %v4471_v35 = vsel %vm12655_vm2, %v10922_v63, %v4470_v7  ;;  %v11652_v63 = vld [vmem:[#allocation2 + $0x24] sm:$0xff] }
 0x1c3   : > { %v4182_v59 = vunpack.c.l.b16 %v3862_v25 }
 0x1c4   : > { %v3040_v46 = vadd.f32 %v2981_v18, %v2386_v41  ;;  %10906 = vmatmul.msk.bf16.gmra.mxu3 %vm1371_vm10, %v4210_v60  ;;  %v13291_v58 = vpop.f32.mrf.mxu1  ;;  %v4607_v18 = vpack.c.b16 %v4576_v56, %v4575_v5  ;;  %v4472_v60 = vrot.slane %v4470_v7, 4  ;;  %v3866_v45 = vrot.slane %v3864_v15, 4 }
 0x1c5   : > { %16515 = vst [vmem:[#allocation26_spill] sm:$0xff] %v13291_v58  ;;  %v3869_v5 = vrot.slane %v3867_v1, 5 }
 0x1c6   : > { %v13287_v34 = vadd.f32 %v13230_v39, %v3040_v46  ;;  %v4474_v9 = vsel %vm12655_vm2, %v4472_v60, %v4473_v48 }
 0x1c7   : > { %v2043_v24 = vpop.f32.mrf.mxu2  ;;  %v4578_v1 = vunpack.c.l.b16 %v4474_v9 }
 0x1c8   : > { %v2101_v12 = vadd.f32 %v2043_v24, %v12923_v20  ;;  %v2986_v23 = vpop.f32.mrf.mxu0  ;;  %v13296_v39 = vpop.f32.mrf.mxu3  ;;  %v3852_v20 = vsel %vm12199_vm13, %v3847_v33, %v3851_v0  ;;  %v3875_v24 = vrot.slane %v3873_v51, 5 }
 0x1c9   : > { %v4181_v46 = vunpack.c.l.b16 %v3852_v20 }
 0x1ca   : > { %v2387_v11 = vadd.f32 %v13242_v62, %v2101_v12  ;;  %v3877_v62 = vshrl.u32 %v13293_v29, 16  ;;  %10938 = vmatmul.msk.bf16.vlgmr.msra.gmra.mxu0 %vm1371_vm10, %v4607_v18  ;;  %v13313_v12 = vld [vmem:[#allocation2 + $0x44] sm:$0x1] }
 0x1cb   : > { %v4211_v47 = vpack.c.b16 %v4182_v59, %v4181_v46  ;;  %v3883_v15 = vshll.u32 %v13313_v12, 16  ;;  %v3755_v46 = vld [vmem:[#allocation2 + $0x48] sm:$0xf]  ;;  %v13333_v59 = vld [vmem:[#allocation2 + $0x4c] sm:$0xf] }
 0x1cc   : > { %10888 = vmatmul.msk.bf16.vlgmr.msra.gmra.mxu2 %vm1371_vm10, %v11651_v19  ;;  %v13302_v41 = vadd.f32 %v2983_v17, %v2387_v11  ;;  %v13311_v56 = vpop.f32.mrf.mxu1  ;;  %v3879_v33 = vrot.slane %v3877_v62, 4  ;;  %v3870_v11 = vor.u32 %v3869_v5, %v3866_v45 }
 0x1ce   : > { %v3880_v20 = vor.u32 %v3879_v33, %v3875_v24  ;;  %v3871_v51 = vrot.slane %v3870_v11, 4  ;;  %v4399_v33 = vld [vmem:[#allocation2 + $0x30] sm:$0xe] }
 0x1cf   : > { %v2046_v0 = vpop.f32.mrf.mxu2 }
 0x1d0   : > { %v2102_v17 = vadd.f32 %v2046_v0, %v12686_v40  ;;  %v2988_v19 = vpop.f32.mrf.mxu0  ;;  %v13320_v18 = vpop.f32.mrf.mxu3  ;;  %v11694_v40 = vld [vmem:[%s16476_s3 + $0x58] sm:$0xff]  ;;  %v3881_v48 = vrot.slane %v3880_v20, 4 }
 0x1d1   : > { %6029 = vmatpush.bf16.msra.mxu1 %v11694_v40 }
 0x1d2   : > { %v2388_v21 = vadd.f32 %v13259_v6, %v2102_v17  ;;  %v4577_v6 = vunpack.c.l.b16 %v4471_v35  ;;  %v4477_v17 = vrot.slane %v13256_v26, 5  ;;  %v3891_v35 = vshll.u32 %v3755_v46, 16 }
 0x1d3   : > { %v10923_v26 = vrot.slane %v4399_v33, 9 }
 0x1d4   : > { %v3042_v16 = vadd.f32 %v2986_v23, %v2388_v21  ;;  %10907 = vmatmul.msk.bf16.gmra.mxu3 %vm1371_vm10, %v4211_v47  ;;  %v13331_v60 = vpop.f32.mrf.mxu1  ;;  %v3885_v23 = vrot.slane %v3883_v15, 5  ;;  %v4608_v0 = vpack.c.b16 %v4578_v1, %v4577_v6  ;;  %v3888_v21 = vshrl.u32 %v3755_v46, 16 }
 0x1d5   : > { %16517 = vst [vmem:[#allocation28_spill] sm:$0xff] %v13331_v60  ;;  %v3897_v47 = vshll.u32 %v13333_v59, 16  ;;  %v4479_v11 = vrot.slane %v4477_v17, 4  ;;  %v3893_v1 = vrot.slane %v3891_v35, 5  ;;  %v4478_v46 = vsel %vm12655_vm2, %v10923_v26, %v4477_v17  ;;  %v16521_v26 = vld [vmem:[#allocation12_spill] sm:$0xff] }
 0x1d6   : > { %v13327_v7 = vadd.f32 %v13274_v37, %v3042_v16  ;;  %v3886_v40 = vsel %vm12199_vm13, %v3881_v48, %v3885_v23  ;;  %v4480_v16 = vrot.slane %v13276_v50, 5  ;;  %v3890_v6 = vrot.slane %v3888_v21, 4  ;;  %v13353_v48 = vld [vmem:[#allocation2 + $0x50] sm:$0x1]  ;;  %v11654_v60 = vld [vmem:[#allocation2 + $0x3c] sm:$0xff] }
 0x1d7   : > { %v2048_v25 = vpop.f32.mrf.mxu2  ;;  %v4184_v15 = vunpack.c.l.b16 %v3886_v40  ;;  %v3907_v40 = vshll.u32 %v13353_v48, 16 }
 0x1d8   : > { %16516 = vst [vmem:[#allocation27_spill] sm:$0xff] %v13327_v7  ;;  %v2103_v62 = vadd.f32 %v2048_v25, %v12700_v38  ;;  %v2991_v45 = vpop.f32.mrf.mxu0  ;;  %v13336_v37 = vpop.f32.mrf.mxu3  ;;  %v3876_v38 = vsel %vm12199_vm13, %v3871_v51, %v3875_v24  ;;  %v4481_v50 = vsel %vm12655_vm2, %v4479_v11, %v4480_v16  ;;  %v11653_v11 = vld [vmem:[#allocation2 + $0x30] sm:$0xff] }
 0x1d9   : > { %v4183_v20 = vunpack.c.l.b16 %v3876_v38  ;;  %v3894_v38 = vor.u32 %v3893_v1, %v3890_v6  ;;  %v13370_v6 = vld [vmem:[#allocation2 + $0x58] sm:$0xf] }
 0x1da   : > { %v2389_v5 = vadd.f32 %v13283_v55, %v2103_v62  ;;  %v3901_v55 = vshrl.u32 %v13333_v59, 16  ;;  %10939 = vmatmul.msk.bf16.gmra.mxu0 %vm1371_vm10, %v4608_v0  ;;  %v3899_v62 = vrot.slane %v3897_v47, 5  ;;  %v4579_v47 = vunpack.c.l.b16 %v4478_v46  ;;  %v4400_v46 = vld [vmem:[#allocation2 + $0x3c] sm:$0xe] }
 0x1db   : > { %v4212_v33 = vpack.c.b16 %v4184_v15, %v4183_v20  ;;  %v3895_v17 = vrot.slane %v3894_v38, 4 }
 0x1dc   : > { %10889 = vmatmul.msk.bf16.gmra.mxu2 %vm1371_vm10, %v11652_v63  ;;  %v13342_v9 = vadd.f32 %v2988_v19, %v2389_v5  ;;  %v16519_v19 = vld [vmem:[#allocation11_spill] sm:$0xff]  ;;  %v13351_v51 = vpop.f32.mrf.mxu1  ;;  %v3903_v63 = vrot.slane %v3901_v55, 4  ;;  %v4580_v55 = vunpack.c.l.b16 %v4481_v50 }
 0x1dd   : > { %v3900_v50 = vsel %vm12199_vm13, %v3895_v17, %v3899_v62 }
 0x1de   : > { %16518 = vst [vmem:[#allocation29_spill] sm:$0xff] %v13342_v9  ;;  %v3904_v35 = vor.u32 %v3903_v63, %v3899_v62  ;;  %v4609_v20 = vpack.c.b16 %v4580_v55, %v4579_v47  ;;  %v4487_v55 = vrot.slane %v13313_v12, 5 }
 0x1df   : > { %v2051_v24 = vpop.f32.mrf.mxu2 }
 0x1e0   : > { %v2104_v25 = vadd.f32 %v2051_v24, %v16519_v19  ;;  %v2993_v23 = vpop.f32.mrf.mxu0  ;;  %v13360_v5 = vpop.f32.mrf.mxu3  ;;  %v3905_v16 = vrot.slane %v3904_v35, 4 }
 0x1e2   : > { %v2390_v0 = vadd.f32 %v13296_v39, %v2104_v25  ;;  %v3909_v25 = vrot.slane %v3907_v40, 5  ;;  %v3921_v40 = vshll.u32 %v13370_v6, 16 }
 0x1e4   : > { %v3044_v21 = vadd.f32 %v2991_v45, %v2390_v0  ;;  %10908 = vmatmul.msk.bf16.gmra.mxu3 %vm1371_vm10, %v4212_v33  ;;  %v13368_v15 = vpop.f32.mrf.mxu1  ;;  %v3758_v45 = vld [vmem:[#allocation2 + $0x54] sm:$0xf]  ;;  %v4484_v0 = vrot.slane %v13293_v29, 5  ;;  %v3910_v35 = vsel %vm12199_vm13, %v3905_v16, %v3909_v25  ;;  %v10924_v29 = vrot.slane %v4400_v46, 9  ;;  %v13388_v16 = vld [vmem:[#allocation2 + $0x5c] sm:$0x1] }
 0x1e5   : > { %16522 = vst [vmem:[#allocation12_spill] sm:$0xff] %v13368_v15  ;;  %v3912_v33 = vshrl.u32 %v3758_v45, 16  ;;  %v3915_v38 = vshll.u32 %v3758_v45, 16  ;;  %v4186_v17 = vunpack.c.l.b16 %v3910_v35  ;;  %v3923_v45 = vrot.slane %v3921_v40, 5 }
 0x1e6   : > { %v13364_v24 = vadd.f32 %v13311_v56, %v3044_v21  ;;  %v4486_v47 = vrot.slane %v4484_v0, 4 }
 0x1e7   : > { %v2053_v39 = vpop.f32.mrf.mxu2 }
 0x1e8   : > { %16520 = vst [vmem:[#allocation11_spill] sm:$0xff] %v13364_v24  ;;  %v2105_v19 = vadd.f32 %v2053_v39, %v16521_v26  ;;  %v2996_v1 = vpop.f32.mrf.mxu0  ;;  %v13373_v56 = vpop.f32.mrf.mxu3  ;;  %v4185_v39 = vunpack.c.l.b16 %v3900_v50  ;;  %v3914_v26 = vrot.slane %v3912_v33, 4  ;;  %v4488_v12 = vsel %vm12655_vm2, %v4486_v47, %v4487_v55  ;;  %v11693_v50 = vld [vmem:[%s16476_s3 + $0x50] sm:$0xff] }
 0x1e9   : > { %6030 = vmatpush.bf16.msra.mxu1 %v11693_v50  ;;  %v16526_v55 = vld [vmem:[#allocation14_spill] sm:$0xff] }
 0x1ea   : > { %v2391_v63 = vadd.f32 %v13320_v18, %v2105_v19  ;;  %v3925_v18 = vshrl.u32 %v13370_v6, 16  ;;  %10940 = vmatmul.msk.bf16.gmra.mxu0 %vm1371_vm10, %v4609_v20  ;;  %v3917_v19 = vrot.slane %v3915_v38, 5  ;;  %v4485_v20 = vsel %vm12655_vm2, %v10924_v29, %v4484_v0 }
 0x1eb   : > { %v4213_v33 = vpack.c.b16 %v4186_v17, %v4185_v39 }
 0x1ec   : > { %10890 = vmatmul.msk.bf16.gmra.mxu2 %vm1371_vm10, %v11653_v11  ;;  %v13379_v21 = vadd.f32 %v2993_v23, %v2391_v63  ;;  %v16524_v23 = vld [vmem:[#allocation13_spill] sm:$0xff]  ;;  %v3927_v63 = vrot.slane %v3925_v18, 4  ;;  %v3399_v38 = vpop.f32.mrf.mxu1  ;;  %v3918_v35 = vor.u32 %v3917_v19, %v3914_v26 }
 0x1ee   : > { %16523 = vst [vmem:[#allocation30_spill] sm:$0xff] %v13379_v21  ;;  %v3928_v18 = vor.u32 %v3927_v63, %v3923_v45  ;;  %v3919_v47 = vrot.slane %v3918_v35, 4 }
 0x1ef   : > { %v2056_v62 = vpop.f32.mrf.mxu2 }
 0x1f0   : > { %v2106_v11 = vadd.f32 %v2056_v62, %v16524_v23  ;;  %v2998_v25 = vpop.f32.mrf.mxu0  ;;  %v13395_v46 = vpop.f32.mrf.mxu3  ;;  %v4581_v62 = vunpack.c.l.b16 %v4485_v20  ;;  %v4582_v23 = vunpack.c.l.b16 %v4488_v12  ;;  %v3929_v39 = vrot.slane %v3928_v18, 4  ;;  %v4401_v12 = vld [vmem:[#allocation2 + $0x48] sm:$0xe] }
 0x1f1   : > { %v3924_v50 = vsel %vm12199_vm13, %v3919_v47, %v3923_v45  ;;  %v4494_v45 = vrot.slane %v13353_v48, 5 }
 0x1f2   : > { %v2392_v15 = vadd.f32 %v13336_v37, %v2106_v11  ;;  %v3931_v37 = vshll.u32 %v13388_v16, 16  ;;  %v4610_v26 = vpack.c.b16 %v4582_v23, %v4581_v62  ;;  %v10925_v62 = vrot.slane %v4401_v12, 9 }
 0x1f3   : > { %v4187_v47 = vunpack.c.l.b16 %v3924_v50 }
 0x1f4   : > { %v3046_v40 = vadd.f32 %v2996_v1, %v2392_v15  ;;  %10909 = vmatmul.msk.bf16.gmra.mxu3 %vm1371_vm10, %v4213_v33  ;;  %v3933_v17 = vrot.slane %v3931_v37, 5  ;;  %v3761_v15 = vld [vmem:[#allocation2 + $0x60] sm:$0xf]  ;;  %v13406_v1 = vld [vmem:[#allocation2 + $0x64] sm:$0xf] }
 0x1f5   : > { %v3936_v33 = vshrl.u32 %v3761_v15, 16  ;;  %v3939_v35 = vshll.u32 %v3761_v15, 16  ;;  %v3945_v37 = vshll.u32 %v13406_v1, 16 }
 0x1f6   : > { %v13402_v0 = vadd.f32 %v13351_v51, %v3046_v40  ;;  %v4491_v51 = vrot.slane %v13333_v59, 5  ;;  %v3934_v18 = vsel %vm12199_vm13, %v3929_v39, %v3933_v17  ;;  %v13422_v59 = vpop.f32.mrf.mxu1 }
 0x1f7   : > { %v2058_v29 = vpop.f32.mrf.mxu2  ;;  %16528 = vst [vmem:[#allocation31_spill] sm:$0xff] %v13422_v59  ;;  %v3947_v39 = vrot.slane %v3945_v37, 5 }
 0x1f8   : > { %16525 = vst [vmem:[#allocation13_spill] sm:$0xff] %v13402_v0  ;;  %v2107_v11 = vadd.f32 %v2058_v29, %v16526_v55  ;;  %v3001_v19 = vpop.f32.mrf.mxu0  ;;  %v13409_v20 = vpop.f32.mrf.mxu3  ;;  %v4493_v23 = vrot.slane %v4491_v51, 4  ;;  %v3941_v55 = vrot.slane %v3939_v35, 5  ;;  %v4492_v12 = vsel %vm12655_vm2, %v10925_v62, %v4491_v51  ;;  %v16531_v62 = vld [vmem:[#allocation16_spill] sm:$0xff] }
 0x1fa   : > { %v2393_v63 = vadd.f32 %v13360_v5, %v2107_v11  ;;  %v3949_v5 = vshrl.u32 %v13406_v1, 16  ;;  %10941 = vmatmul.msk.bf16.gmra.mxu0 %vm1371_vm10, %v4610_v26  ;;  %v16529_v11 = vld [vmem:[#allocation15_spill] sm:$0xff]  ;;  %v4495_v48 = vsel %vm12655_vm2, %v4493_v23, %v4494_v45  ;;  %v11655_v23 = vld [vmem:[#allocation2 + $0x48] sm:$0xff] }
 0x1fc   : > { %10891 = vmatmul.msk.bf16.gmra.mxu2 %vm1371_vm10, %v11654_v60  ;;  %v13415_v40 = vadd.f32 %v2998_v25, %v2393_v63  ;;  %v4188_v60 = vunpack.c.l.b16 %v3934_v18  ;;  %v3938_v25 = vrot.slane %v3936_v33, 4  ;;  %v3951_v17 = vrot.slane %v3949_v5, 4  ;;  %v13426_v63 = vld [vmem:[#allocation2 + $0x68] sm:$0x1] }
 0x1fd   : > { %v3955_v37 = vshll.u32 %v13426_v63, 16  ;;  %v4583_v5 = vunpack.c.l.b16 %v4492_v12 }
 0x1fe   : > { %16527 = vst [vmem:[#allocation14_spill] sm:$0xff] %v13415_v40  ;;  %v4214_v50 = vpack.c.b16 %v4188_v60, %v4187_v47  ;;  %v3942_v33 = vor.u32 %v3941_v55, %v3938_v25  ;;  %v3952_v18 = vor.u32 %v3951_v17, %v3947_v39  ;;  %v3764_v60 = vld [vmem:[#allocation2 + $0x6c] sm:$0xf] }
 0x1ff   : > { %v2061_v29 = vpop.f32.mrf.mxu2  ;;  %v3957_v21 = vrot.slane %v3955_v37, 5  ;;  %v4501_v37 = vrot.slane %v13388_v16, 5 }
 0x200   : > { %v2108_v15 = vadd.f32 %v2061_v29, %v16529_v11  ;;  %v3003_v40 = vpop.f32.mrf.mxu0  ;;  %v13433_v59 = vpop.f32.mrf.mxu3  ;;  %v4584_v29 = vunpack.c.l.b16 %v4495_v48  ;;  %v3943_v51 = vrot.slane %v3942_v33, 4  ;;  %v3953_v45 = vrot.slane %v3952_v18, 4 }
 0x201   : > { %v3960_v48 = vshrl.u32 %v3764_v60, 16 }
 0x202   : > { %v2394_v26 = vadd.f32 %v13373_v56, %v2108_v15  ;;  %v3404_v56 = vpop.f32.mrf.mxu1  ;;  %v4611_v47 = vpack.c.b16 %v4584_v29, %v4583_v5  ;;  %v3948_v12 = vsel %vm12199_vm13, %v3943_v51, %v3947_v39  ;;  %v3958_v33 = vsel %vm12199_vm13, %v3953_v45, %v3957_v21  ;;  %v13460_v45 = vld [vmem:[#allocation2 + $0x74] sm:$0x1] }
 0x203   : > { %v4189_v5 = vunpack.c.l.b16 %v3948_v12  ;;  %v4190_v29 = vunpack.c.l.b16 %v3958_v33  ;;  %v3962_v51 = vrot.slane %v3960_v48, 4  ;;  %v11692_v48 = vld [vmem:[%s16476_s3 + $0x48] sm:$0xff] }
 0x204   : > { %v3048_v35 = vadd.f32 %v3001_v19, %v2394_v26  ;;  %10910 = vmatmul.msk.bf16.gmra.mxu3 %vm1371_vm10, %v4214_v50  ;;  %v13440_v19 = vld [vmem:[#allocation2 + $0x70] sm:$0xf]  ;;  %v4402_v26 = vld [vmem:[#allocation2 + $0x54] sm:$0xe]  ;;  %6031 = vmatpush.bf16.msra.mxu1 %v11692_v48 }
 0x206   : > { %v13436_v11 = vadd.f32 %v3399_v38, %v3048_v35  ;;  %v4498_v38 = vrot.slane %v13370_v6, 5  ;;  %v3969_v35 = vshll.u32 %v13440_v19, 16  ;;  %v10926_v6 = vrot.slane %v4402_v26, 9 }
 0x207   : > { %v2063_v0 = vpop.f32.mrf.mxu2 }
 0x208   : > { %16530 = vst [vmem:[#allocation15_spill] sm:$0xff] %v13436_v11  ;;  %v2109_v15 = vadd.f32 %v2063_v0, %v16531_v62  ;;  %v3006_v25 = vpop.f32.mrf.mxu0  ;;  %v13443_v17 = vpop.f32.mrf.mxu3  ;;  %v3963_v0 = vshll.u32 %v3764_v60, 16  ;;  %v4500_v18 = vrot.slane %v4498_v38, 4  ;;  %v4499_v26 = vsel %vm12655_vm2, %v10926_v6, %v4498_v38 }
 0x20a   : > { %v2395_v55 = vadd.f32 %v13395_v46, %v2109_v15  ;;  %v3973_v46 = vshrl.u32 %v13440_v19, 16  ;;  %10942 = vmatmul.msk.bf16.gmra.mxu0 %vm1371_vm10, %v4611_v47  ;;  %v3965_v62 = vrot.slane %v3963_v0, 5  ;;  %v13458_v21 = vpop.f32.mrf.mxu1  ;;  %v4502_v16 = vsel %vm12655_vm2, %v4500_v18, %v4501_v37  ;;  %v16536_v18 = vld [vmem:[#allocation18_spill] sm:$0xff] }
 0x20b   : > { %v4215_v0 = vpack.c.b16 %v4190_v29, %v4189_v5  ;;  %v3767_v29 = vld [vmem:[#allocation2 + $0x78] sm:$0xf] }
 0x20c   : > { %10892 = vmatmul.msk.bf16.gmra.mxu2 %vm1371_vm10, %v11655_v23  ;;  %v13449_v50 = vadd.f32 %v3003_v40, %v2395_v55  ;;  %v16533_v40 = vld [vmem:[#allocation17_spill] sm:$0xff]  ;;  %v3971_v23 = vrot.slane %v3969_v35, 5  ;;  %v3975_v60 = vrot.slane %v3973_v46, 4  ;;  %v3966_v33 = vor.u32 %v3965_v62, %v3962_v51 }
 0x20d   : > { %16534 = vst [vmem:[#allocation17_spill] sm:$0xff] %v13458_v21  ;;  %v11656_v21 = vld [vmem:[#allocation2 + $0x54] sm:$0xff]  ;;  %v3984_v48 = vshrl.u32 %v3767_v29, 16 }
 0x20e   : > { %16532 = vst [vmem:[#allocation16_spill] sm:$0xff] %v13449_v50  ;;  %v3976_v46 = vor.u32 %v3975_v60, %v3971_v23  ;;  %v3967_v6 = vrot.slane %v3966_v33, 4 }
 0x20f   : > { %v2066_v39 = vpop.f32.mrf.mxu2 }
 0x210   : > { %v2110_v15 = vadd.f32 %v2066_v39, %v16533_v40  ;;  %v3008_v55 = vpop.f32.mrf.mxu0  ;;  %v13467_v12 = vpop.f32.mrf.mxu3  ;;  %v3979_v39 = vshll.u32 %v13460_v45, 16  ;;  %v4586_v40 = vunpack.c.l.b16 %v4502_v16  ;;  %v3977_v50 = vrot.slane %v3976_v46, 4 }
 0x211   : > { %v3972_v16 = vsel %vm12199_vm13, %v3967_v6, %v3971_v23  ;;  %v3986_v6 = vrot.slane %v3984_v48, 4 }
 0x212   : > { %v2396_v47 = vadd.f32 %v13409_v20, %v2110_v15  ;;  %v4585_v20 = vunpack.c.l.b16 %v4499_v26  ;;  %v3981_v11 = vrot.slane %v3979_v39, 5  ;;  %v4403_v26 = vld [vmem:[#allocation2 + $0x60] sm:$0xe] }
 0x214   : > { %v3050_v35 = vadd.f32 %v3006_v25, %v2396_v47  ;;  %10911 = vmatmul.msk.bf16.gmra.mxu3 %vm1371_vm10, %v4215_v0  ;;  %v4612_v5 = vpack.c.b16 %v4586_v40, %v4585_v20  ;;  %v13477_v25 = vld [vmem:[#allocation2 + $0x7c] sm:$0xf]  ;;  %v3409_v47 = vpop.f32.mrf.mxu1  ;;  %v3987_v0 = vshll.u32 %v3767_v29, 16  ;;  %v4508_v20 = vrot.slane %v13426_v63, 5 }
 0x215   : > { %v3997_v46 = vshrl.u32 %v13477_v25, 16  ;;  %v4191_v40 = vunpack.c.l.b16 %v3972_v16 }
 0x216   : > { %v13473_v15 = vadd.f32 %v3404_v56, %v3050_v35  ;;  %v4505_v56 = vrot.slane %v13406_v1, 5  ;;  %v3982_v35 = vsel %vm12199_vm13, %v3977_v50, %v3981_v11  ;;  %v10927_v1 = vrot.slane %v4403_v26, 9  ;;  %v13495_v11 = vld [vmem:[#allocation2 + $0x80] sm:$0x1] }
 0x217   : > { %v2068_v38 = vpop.f32.mrf.mxu2  ;;  %v3999_v29 = vrot.slane %v3997_v46, 4 }
 0x218   : > { %16535 = vst [vmem:[#allocation32_spill] sm:$0xff] %v13473_v15  ;;  %v2111_v37 = vadd.f32 %v2068_v38, %v16536_v18  ;;  %v3011_v51 = vpop.f32.mrf.mxu0  ;;  %v13480_v60 = vpop.f32.mrf.mxu3  ;;  %v4507_v39 = vrot.slane %v4505_v56, 4  ;;  %v4192_v38 = vunpack.c.l.b16 %v3982_v35 }
 0x21a   : > { %v2397_v62 = vadd.f32 %v13433_v59, %v2111_v37  ;;  %v3993_v59 = vshll.u32 %v13477_v25, 16  ;;  %10943 = vmatmul.msk.bf16.gmra.mxu0 %vm1371_vm10, %v4612_v5  ;;  %v4506_v5 = vsel %vm12655_vm2, %v10927_v1, %v4505_v56  ;;  %v4509_v63 = vsel %vm12655_vm2, %v4507_v39, %v4508_v20  ;;  %v16541_v1 = vld [vmem:[#allocation20_spill] sm:$0xff] }
 0x21b   : > { %v4216_v16 = vpack.c.b16 %v4192_v38, %v4191_v40  ;;  %v4587_v46 = vunpack.c.l.b16 %v4506_v5  ;;  %v11657_v20 = vld [vmem:[#allocation2 + $0x60] sm:$0xff]  ;;  %v4404_v5 = vld [vmem:[#allocation2 + $0x6c] sm:$0xe] }
 0x21c   : > { %10893 = vmatmul.msk.bf16.gmra.mxu2 %vm1371_vm10, %v11656_v21  ;;  %v13486_v33 = vadd.f32 %v3008_v55, %v2397_v62  ;;  %v3989_v21 = vrot.slane %v3987_v0, 5  ;;  %v16538_v55 = vld [vmem:[#allocation19_spill] sm:$0xff]  ;;  %v3995_v37 = vrot.slane %v3993_v59, 5  ;;  %v4003_v59 = vshll.u32 %v13495_v11, 16 }
 0x21e   : > { %16537 = vst [vmem:[#allocation18_spill] sm:$0xff] %v13486_v33  ;;  %v3990_v48 = vor.u32 %v3989_v21, %v3986_v6  ;;  %v4000_v35 = vor.u32 %v3999_v29, %v3995_v37  ;;  %v4005_v40 = vrot.slane %v4003_v59, 5  ;;  %v13511_v6 = vld [vmem:[#allocation2 + $0x88] sm:$0xf] }
 0x21f   : > { %v2071_v23 = vpop.f32.mrf.mxu2  ;;  %v4017_v59 = vshll.u32 %v13511_v6, 16 }
 0x220   : > { %v2112_v18 = vadd.f32 %v2071_v23, %v16538_v55  ;;  %v3013_v50 = vpop.f32.mrf.mxu0  ;;  %v13502_v26 = vpop.f32.mrf.mxu3  ;;  %v4588_v23 = vunpack.c.l.b16 %v4509_v63  ;;  %v3991_v56 = vrot.slane %v3990_v48, 4 }
 0x221   : > { %v13505_v55 = vpop.f32.mrf.mxu1 }
 0x222   : > { %v2398_v62 = vadd.f32 %v13443_v17, %v2112_v18  ;;  %16539 = vst [vmem:[#allocation19_spill] sm:$0xff] %v13505_v55  ;;  %v4001_v18 = vrot.slane %v4000_v35, 4  ;;  %v4613_v38 = vpack.c.b16 %v4588_v23, %v4587_v46  ;;  %v3996_v63 = vsel %vm12199_vm13, %v3991_v56, %v3995_v37 }
 0x223   : > { %v4515_v23 = vrot.slane %v13460_v45, 5  ;;  %v4193_v56 = vunpack.c.l.b16 %v3996_v63 }
 0x224   : > { %v3052_v0 = vadd.f32 %v3011_v51, %v2398_v62  ;;  %10912 = vmatmul.msk.bf16.gmra.mxu3 %vm1371_vm10, %v4216_v16  ;;  %v3770_v51 = vld [vmem:[#allocation2 + $0x84] sm:$0xf]  ;;  %v4006_v35 = vsel %vm12199_vm13, %v4001_v18, %v4005_v40  ;;  %v13529_v40 = vld [vmem:[#allocation2 + $0x8c] sm:$0x1] }
 0x225   : > { %v4008_v16 = vshrl.u32 %v3770_v51, 16  ;;  %v4011_v48 = vshll.u32 %v3770_v51, 16 }
 0x226   : > { %v13507_v33 = vadd.f32 %v3409_v47, %v3052_v0  ;;  %v4512_v47 = vrot.slane %v13440_v19, 5  ;;  %v10928_v19 = vrot.slane %v4404_v5, 9 }
 0x227   : > { %v2073_v17 = vpop.f32.mrf.mxu2 }
 0x228   : > { %16540 = vst [vmem:[#allocation33_spill] sm:$0xff] %v13507_v33  ;;  %v2113_v39 = vadd.f32 %v2073_v17, %v16541_v1  ;;  %v3016_v21 = vpop.f32.mrf.mxu0  ;;  %v13514_v62 = vpop.f32.mrf.mxu3  ;;  %v4514_v46 = vrot.slane %v4512_v47, 4  ;;  %v4194_v1 = vunpack.c.l.b16 %v4006_v35 }
 0x229   : > { %v3414_v17 = vpop.f32.mrf.mxu1 }
 0x22a   : > { %v2399_v29 = vadd.f32 %v13467_v12, %v2113_v39  ;;  %v4021_v12 = vshrl.u32 %v13511_v6, 16  ;;  %10944 = vmatmul.msk.bf16.gmra.mxu0 %vm1371_vm10, %v4613_v38  ;;  %v4010_v39 = vrot.slane %v4008_v16, 4  ;;  %v4513_v38 = vsel %vm12655_vm2, %v10928_v19, %v4512_v47 }
 0x22b   : > { %v4516_v45 = vsel %vm12655_vm2, %v4514_v46, %v4515_v23  ;;  %v4217_v63 = vpack.c.b16 %v4194_v1, %v4193_v56  ;;  %v4519_v47 = vrot.slane %v13477_v25, 5  ;;  %v16545_v46 = vld [vmem:[#allocation22_spill] sm:$0xff]  ;;  %v4872_v1 = vld [vmem:[#allocation3] sm:$0x1] }
 0x22c   : > { %10894 = vmatmul.msk.bf16.gmra.mxu2 %vm1371_vm10, %v11657_v20  ;;  %v13520_v0 = vadd.f32 %v3013_v50, %v2399_v29  ;;  %v4013_v50 = vrot.slane %v4011_v48, 5  ;;  %v16543_v20 = vld [vmem:[#allocation21_spill] sm:$0xff]  ;;  %v4019_v29 = vrot.slane %v4017_v59, 5  ;;  %v4023_v18 = vrot.slane %v4021_v12, 4 }
 0x22d   : > { %v4027_v59 = vshll.u32 %v13529_v40, 16  ;;  %v4589_v12 = vunpack.c.l.b16 %v4513_v38 }
 0x22e   : > { %16542 = vst [vmem:[#allocation20_spill] sm:$0xff] %v13520_v0  ;;  %v4014_v16 = vor.u32 %v4013_v50, %v4010_v39  ;;  %v4024_v35 = vor.u32 %v4023_v18, %v4019_v29  ;;  %v13554_v18 = vld [vmem:[#allocation2 + $0x94] sm:$0xf] }
 0x22f   : > { %v2076_v37 = vpop.f32.mrf.mxu2 }
 0x230   : > { %v2114_v51 = vadd.f32 %v2076_v37, %v16543_v20  ;;  %v3018_v55 = vpop.f32.mrf.mxu0  ;;  %v13536_v5 = vpop.f32.mrf.mxu3  ;;  %v4590_v37 = vunpack.c.l.b16 %v4516_v45  ;;  %v4015_v19 = vrot.slane %v4014_v16, 4  ;;  %v4025_v56 = vrot.slane %v4024_v35, 4  ;;  %v4405_v16 = vld [vmem:[#allocation2 + $0x78] sm:$0xe] }
 0x231   : > { %v13550_v50 = vpop.f32.mrf.mxu1 }
 0x232   : > { %v2400_v0 = vadd.f32 %v13480_v60, %v2114_v51  ;;  %v11658_v60 = vld [vmem:[#allocation2 + $0x6c] sm:$0xff]  ;;  %v4614_v39 = vpack.c.b16 %v4590_v37, %v4589_v12  ;;  %16549 = vst [vmem:[#allocation34_spill] sm:$0xff] %v13550_v50  ;;  %v4045_v12 = vshrl.u32 %v13554_v18, 16  ;;  %v13582_v50 = vld [vmem:[#allocation2 + $0x98] sm:$0x1] }
 0x233   : > { %v3773_v51 = vld [vmem:[#allocation2 + $0x90] sm:$0xf] }
 0x234   : > { %v3054_v48 = vadd.f32 %v3016_v21, %v2400_v0  ;;  %10913 = vmatmul.msk.bf16.gmra.mxu3 %vm1371_vm10, %v4217_v63  ;;  %v16546_v21 = vmov 0  ;;  %v4875_v0 = vld [vmem:[#allocation3 + $0xc] sm:$0x1]  ;;  %v4035_v35 = vshll.u32 %v3773_v51, 16 }
 0x235   : > { %v16547_v21 = vsel %vm13546_vm7, 4294967295, %v16546_v21  ;;  %v4876_v25 = vsel %vm13546_vm7, 0, %v4875_v0  ;;  %v4927_v0 = vld [vmem:[#allocation3 + $0x8] sm:$0x1] }
 0x236   : > { %v13539_v20 = vadd.f32 %v3414_v17, %v3054_v48  ;;  %16548 = vst [vmem:[#allocation22_spill] sm:$0xff] %v16547_v21  ;;  %v4029_v17 = vrot.slane %v4027_v59, 5  ;;  %v4032_v48 = vshrl.u32 %v3773_v51, 16  ;;  %v4041_v59 = vshll.u32 %v13554_v18, 16 }
 0x237   : > { %v2078_v33 = vpop.f32.mrf.mxu2  ;;  %4877 = vst [vmem:[#allocation3 + $0xc] sm:$0x1] %v4876_v25  ;;  %v4521_v25 = vrot.slane %v4519_v47, 4 }
 0x238   : > { %16544 = vst [vmem:[#allocation21_spill] sm:$0xff] %v13539_v20  ;;  %v2115_v23 = vadd.f32 %v2078_v33, %v16545_v46  ;;  %v4873_v33 = vsel %vm13546_vm7, 0, %v4872_v1  ;;  %v3021_v38 = vpop.f32.mrf.mxu0  ;;  %v13559_v63 = vpop.f32.mrf.mxu3  ;;  %v4020_v46 = vsel %vm12199_vm13, %v4015_v19, %v4019_v29  ;;  %v10929_v1 = vrot.slane %v4405_v16, 9  ;;  %v13597_v20 = vld [vmem:[#allocation2 + $0x84] sm:$0xe] }
 0x239   : > { %4874 = vst [vmem:[#allocation3] sm:$0x1] %v4873_v33  ;;  %v4034_v29 = vrot.slane %v4032_v48, 4  ;;  %v4037_v19 = vrot.slane %v4035_v35, 5  ;;  %v13580_v51 = vrot.slane %v4041_v59, 5  ;;  %v4195_v33 = vunpack.c.l.b16 %v4020_v46 }
 0x23a   : > { %v2401_v45 = vadd.f32 %v13502_v26, %v2115_v23  ;;  %v4030_v26 = vsel %vm12199_vm13, %v4025_v56, %v4029_v17  ;;  %v16551_v23 = vmov 0  ;;  %10945 = vmatmul.msk.bf16.gmra.mxu0 %vm1371_vm10, %v4614_v39  ;;  %v4047_v56 = vrot.slane %v4045_v12, 4 }
 0x23b   : > { %v16552_v23 = vsel %vm13572_vm3, 4294967295, %v16551_v23  ;;  %v4520_v16 = vsel %vm12655_vm2, %v10929_v1, %v4519_v47  ;;  %v4038_v59 = vor.u32 %v4037_v19, %v4034_v29  ;;  %v4051_v46 = vshll.u32 %v13582_v50, 16  ;;  %v4930_v1 = vld [vmem:[#allocation3 + $0x14] sm:$0x1]  ;;  %v5449_v19 = vld [vmem:[#allocation3 + $0x4] sm:$0xf] }
 0x23c   : > { %10895 = vmatmul.msk.bf16.gmra.mxu2 %vm1371_vm10, %v11658_v60  ;;  %v13564_v37 = vadd.f32 %v3018_v55, %v2401_v45  ;;  %16553 = vst [vmem:[#allocation36_spill] sm:$0xff] %v16552_v23  ;;  %v4522_v55 = vrot.slane %v13495_v11, 5  ;;  %v4928_v60 = vsel %vm13572_vm3, 0, %v4927_v0  ;;  %v4196_v45 = vunpack.c.l.b16 %v4030_v26 }
 0x23d   : > { %4929 = vst [vmem:[#allocation3 + $0x8] sm:$0x1] %v4928_v60  ;;  %v4048_v12 = vor.u32 %v4047_v56, %v13580_v51  ;;  %v3419_v60 = vpop.f32.mrf.mxu1  ;;  %v4931_v29 = vsel %vm13572_vm3, 0, %v4930_v1  ;;  %v4591_v56 = vunpack.c.l.b16 %v4520_v16  ;;  %v4053_v58 = vrot.slane %v4051_v46, 5  ;;  %v16555_v1 = vld [vmem:[#allocation24_spill] sm:$0xff]  ;;  %v11659_v16 = vld [vmem:[#allocation2 + $0x78] sm:$0xff] }
 0x23e   : > { %16550 = vst [vmem:[#allocation35_spill] sm:$0xff] %v13564_v37  ;;  %v16554_v37 = vld [vmem:[#allocation23_spill] sm:$0xff]  ;;  %v4523_v11 = vsel %vm12655_vm2, %v4521_v25, %v4522_v55  ;;  %v4218_v47 = vpack.c.b16 %v4196_v45, %v4195_v33  ;;  %v4039_v33 = vrot.slane %v4038_v59, 4  ;;  %v5522_v9 = vshll.u32 %v5449_v19, 16 }
 0x23f   : > { %v2081_v17 = vpop.f32.mrf.mxu2  ;;  %4932 = vst [vmem:[#allocation3 + $0x14] sm:$0x1] %v4931_v29  ;;  %v4049_v45 = vrot.slane %v4048_v12, 4  ;;  %v3776_v46 = vld [vmem:[#allocation2 + $0x9c] sm:$0xf] }
 0x240   : > { %v2116_v39 = vadd.f32 %v2081_v17, %v16554_v37  ;;  %v3023_v0 = vpop.f32.mrf.mxu0  ;;  %v13590_v35 = vpop.f32.mrf.mxu3  ;;  %v5448_v26 = vld [vmem:[#allocation3] sm:$0xf]  ;;  %v11691_v37 = vld [vmem:[%s16476_s3 + $0x40] sm:$0xff]  ;;  %v5524_v12 = vrot.slane %v5522_v9, 5 }
 0x241   : > { %v5513_v17 = vshrl.u32 %v5448_v26, 16  ;;  %v5516_v25 = vshll.u32 %v5448_v26, 16  ;;  %6032 = vmatpush.bf16.msra.mxu1 %v11691_v37  ;;  %v5526_v37 = vshrl.u32 %v5449_v19, 16 }
 0x242   : > { %v2402_v48 = vadd.f32 %v13514_v62, %v2116_v39  ;;  %v4526_v62 = vrot.slane %v13511_v6, 5  ;;  %v4592_v39 = vunpack.c.l.b16 %v4523_v11 }
 0x243   : > { %v5515_v6 = vrot.slane %v5513_v17, 4  ;;  %v5528_v19 = vrot.slane %v5526_v37, 4 }
 0x244   : > { %v3056_v55 = vadd.f32 %v3021_v38, %v2402_v48  ;;  %v5496_v15 = vld [vmem:[#allocation3 + $0x8] sm:$0x1]  ;;  %10914 = vmatmul.msk.bf16.gmra.mxu3 %vm1371_vm10, %v4218_v47  ;;  %v10930_v38 = vrot.slane %v13597_v20, 9  ;;  %v5518_v48 = vrot.slane %v5516_v25, 5  ;;  %v4528_v11 = vrot.slane %v4526_v62, 4 }
 0x245   : > { %v5532_v29 = vshll.u32 %v5496_v15, 16  ;;  %v4615_v32 = vpack.c.b16 %v4592_v39, %v4591_v56  ;;  %v4044_v25 = vsel %vm12199_vm13, %v4039_v33, %v13580_v51  ;;  %v4054_v15 = vsel %vm12199_vm13, %v4049_v45, %v4053_v58 }
 0x246   : > { %v13602_v24 = vadd.f32 %v3419_v60, %v3056_v55  ;;  %v4529_v60 = vrot.slane %v13529_v40, 5  ;;  %v5519_v59 = vor.u32 %v5518_v48, %v5515_v6  ;;  %v13608_v55 = vld [vmem:[#allocation2 + $0xa0] sm:$0xf]  ;;  %v4056_v40 = vshrl.u32 %v3776_v46, 16 }
 0x247   : > { %v2083_v26 = vpop.f32.mrf.mxu2  ;;  %v4059_v39 = vshll.u32 %v3776_v46, 16  ;;  %v4065_v9 = vshll.u32 %v13608_v55, 16  ;;  %v5534_v6 = vrot.slane %v5532_v29, 5  ;;  %v4069_v48 = vshrl.u32 %v13608_v55, 16 }
 0x248   : > { %v2117_v7 = vadd.f32 %v2083_v26, %v16555_v1  ;;  %v4683_v47 = vpop.f32.mrf.mxu0  ;;  %v13611_v17 = vpop.f32.mrf.mxu3  ;;  %v5520_v56 = vrot.slane %v5519_v59, 4  ;;  %v4058_v33 = vrot.slane %v4056_v40, 4  ;;  %v4197_v29 = vunpack.c.l.b16 %v4044_v25 }
 0x249   : > { %v4061_v45 = vrot.slane %v4059_v39, 5  ;;  %v4198_v59 = vunpack.c.l.b16 %v4054_v15 }
 0x24a   : > { %v2403_v20 = vadd.f32 %v13536_v5, %v2117_v7  ;;  %v4878_v7 = vld [vmem:[#allocation3 + $0x18] sm:$0x1]  ;;  %v5529_v5 = vor.u32 %v5528_v19, %v5524_v12  ;;  %10946 = vmatmul.msk.bf16.gmra.mxu0 %vm1371_vm10, %v4615_v32  ;;  %v5525_v51 = vsel %vm12199_vm13, %v5520_v56, %v5524_v12  ;;  %v4527_v19 = vsel %vm12655_vm2, %v10930_v38, %v4526_v62  ;;  %v4407_v38 = vld [vmem:[#allocation2 + $0x90] sm:$0xe] }
 0x24b   : > { %v4879_v58 = vsel %vm13546_vm7, 0, %v4878_v7  ;;  %v5913_v46 = vunpack.c.l.b16 %v5525_v51  ;;  %v4530_v12 = vsel %vm12655_vm2, %v4528_v11, %v4529_v60  ;;  %v4062_v39 = vor.u32 %v4061_v45, %v4058_v33 }
 0x24c   : > { %10896 = vmatmul.msk.bf16.gmra.mxu2 %vm1371_vm10, %v11659_v16  ;;  %v13620_v26 = vadd.f32 %v3023_v0, %v2403_v20  ;;  %4880 = vst [vmem:[#allocation3 + $0x18] sm:$0x1] %v4879_v58  ;;  %v5530_v1 = vrot.slane %v5529_v5, 4  ;;  %v13628_v16 = vld [vmem:[#allocation2 + $0xa4] sm:$0x1]  ;;  %v13630_v0 = vrot.slane %v4065_v9, 5  ;;  %v4593_v11 = vunpack.c.l.b16 %v4527_v19 }
 0x24d   : > { %v4071_v20 = vrot.slane %v4069_v48, 4  ;;  %v4075_v25 = vshll.u32 %v13628_v16, 16  ;;  %v4594_v60 = vunpack.c.l.b16 %v4530_v12  ;;  %v4219_v5 = vpack.c.b16 %v4198_v59, %v4197_v29  ;;  %v11706_v48 = vld [vmem:[%s16476_s3 + $0xb8] sm:$0xff] }
 0x24e   : > { %v5535_v56 = vsel %vm12199_vm13, %v5530_v1, %v5534_v6  ;;  %v11690_v6 = vld [vmem:[%s16476_s3 + $0x38] sm:$0xff]  ;;  %v4533_v33 = vrot.slane %v13554_v18, 5  ;;  %v10931_v1 = vrot.slane %v4407_v38, 9  ;;  %6636 = vmatpush.bf16.msrb.mxu3 %v11706_v48  ;;  %v4540_v18 = vrot.slane %v13608_v55, 5  ;;  %v3779_v55 = vld [vmem:[#allocation2 + $0xa8] sm:$0xf] }
 0x24f   : > { %v3631_v37 = vpop.f32.mrf.mxu2  ;;  %v5914_v40 = vunpack.c.l.b16 %v5535_v56  ;;  %v4072_v9 = vor.u32 %v4071_v20, %v13630_v0  ;;  %6258 = vmatpush.bf16.msrb.mxu2 %v11690_v6  ;;  %v4077_v59 = vrot.slane %v4075_v25, 5  ;;  %v11660_v56 = vld [vmem:[#allocation2 + $0x84] sm:$0xff]  ;;  %v13672_v38 = vld [vmem:[#allocation2 + $0xac] sm:$0xf]  ;;  %v4080_v48 = vshrl.u32 %v3779_v55, 16 }
 0x250   : > { %v3711_v32 = vadd.f32 %v3631_v37, %v12961_v30  ;;  %v4685_v15 = vpop.f32.mrf.mxu0  ;;  %v13645_v30 = vld [vmem:[%s16475_s2] ss:$0 sm:$0xff]  ;;  %v13647_v62 = vpop.f32.mrf.mxu3  ;;  %v4063_v37 = vrot.slane %v4062_v39, 4  ;;  %v13664_v39 = vsel %vm12655_vm2, %v10931_v1, %v4533_v33  ;;  %v11730_v1 = vld [vmem:[%s16476_s3 + $0xf8] sm:$0xff] }
 0x251   : > { %v5945_v58 = vpack.c.b16 %v5914_v40, %v5913_v46  ;;  %v4073_v29 = vrot.slane %v4072_v9, 4  ;;  %v4535_v40 = vrot.slane %v4533_v33, 4  ;;  %v4536_v9 = vrot.slane %v13582_v50, 5  ;;  %6950 = vmatpush.bf16.msrb.mxu0 %v11730_v1 }
 0x252   : > { %v4365_v7 = vadd.f32 %v13559_v63, %v3711_v32  ;;  %v4933_v63 = vld [vmem:[#allocation3 + $0x20] sm:$0x1]  ;;  %v4616_v32 = vpack.c.b16 %v4594_v60, %v4593_v11  ;;  %v4068_v25 = vsel %vm12199_vm13, %v4063_v37, %v13630_v0  ;;  %v4083_v50 = vshll.u32 %v3779_v55, 16 }
 0x253   : > { %v4934_v45 = vsel %vm13572_vm3, 0, %v4933_v63  ;;  %6033 = vmatmul.bf16.vlgmr.msra.gmra.mxu1 %v5945_v58  ;;  %v4542_v63 = vrot.slane %v4540_v18, 4  ;;  %v4089_v58 = vshll.u32 %v13672_v38, 16  ;;  %v4093_v0 = vshrl.u32 %v13672_v38, 16 }
 0x254   : > { %v4763_v51 = vadd.f32 %v4683_v47, %v4365_v7  ;;  %4935 = vst [vmem:[#allocation3 + $0x20] sm:$0x1] %v4934_v45  ;;  %10915 = vmatmul.msk.bf16.gmra.mxu3 %vm1371_vm10, %v4219_v5  ;;  %v4408_v47 = vld [vmem:[#allocation2 + $0x9c] sm:$0xe]  ;;  %v4078_v7 = vsel %vm12199_vm13, %v4073_v29, %v4077_v59  ;;  %v13687_v37 = vsel %vm12655_vm2, %v4535_v40, %v4536_v9  ;;  %v4881_v29 = vld [vmem:[#allocation3 + $0x24] sm:$0x1]  ;;  %v4199_v59 = vunpack.c.l.b16 %v4068_v25 }
 0x255   : > { %v10932_v6 = vrot.slane %v4408_v47, 9  ;;  %v4200_v9 = vunpack.c.l.b16 %v4078_v7  ;;  %v4095_v55 = vrot.slane %v4093_v0, 4 }
 0x256   : > { %v4799_v20 = vadd.f32 %v13645_v30, %v4763_v51 }
 0x257   : > { %v3633_v19 = vpop.f32.mrf.mxu2 }
 0x258   : > { %v4831_v46 = vmax.f32 %v4799_v20, 0.0  ;;  %v3712_v12 = vadd.f32 %v3633_v19, %v12976_v31  ;;  %v4688_v31 = vpop.f32.mrf.mxu0  ;;  %v13675_v5 = vpop.f32.mrf.mxu3  ;;  %v13689_v20 = vld [vmem:[#allocation2 + $0xb0] sm:$0x1]  ;;  %v4082_v19 = vrot.slane %v4080_v48, 4 }
 0x25a   : > { %v4981_v11 = vpack.c.bf16 %v4831_v46, %v4831_v46  ;;  %v4366_v60 = vadd.f32 %v13590_v35, %v3712_v12  ;;  %v4543_v35 = vrot.slane %v13628_v16, 5  ;;  %10947 = vmatmul.msk.bf16.gmra.mxu0 %vm1371_vm10, %v4616_v32  ;;  %v4882_v16 = vsel %vm13546_vm7, 0, %v4881_v29 }
 0x25b   : > { %v4091_v12 = vrot.slane %v4089_v58, 5  ;;  %4883 = vst [vmem:[#allocation3 + $0x24] sm:$0x1] %v4882_v16  ;;  %v4541_v58 = vsel %vm12655_vm2, %v10932_v6, %v4540_v18  ;;  %v4596_v18 = vunpack.c.l.b16 %v13687_v37  ;;  %v4220_v6 = vpack.c.b16 %v4200_v9, %v4199_v59  ;;  %v4409_v59 = vld [vmem:[#allocation2 + $0xa8] sm:$0xe] }
 0x25c   : > { %v5014_v51 = vshrl.u32 %v4981_v11, 16  ;;  %v5017_v33 = vshll.u32 %v4981_v11, 16  ;;  %v4764_v45 = vadd.f32 %v4685_v15, %v4366_v60  ;;  %10897 = vmatmul.msk.bf16.gmra.mxu2 %vm1371_vm10, %v11660_v56  ;;  %v4085_v15 = vrot.slane %v4083_v50, 5  ;;  %v5336_v56 = vld [vmem:[#allocation3 + $0xc] sm:$0xf] }
 0x25d   : > { %v4099_v11 = vshll.u32 %v13689_v20, 16  ;;  %v4096_v1 = vor.u32 %v4095_v55, %v4091_v12  ;;  %v4547_v9 = vrot.slane %v13672_v38, 5 }
 0x25e   : > { %v13691_v47 = vrot.slane %v5014_v51, 7  ;;  %v4800_v46 = vadd.f32 %v13645_v30, %v4764_v45  ;;  %v4086_v25 = vor.u32 %v4085_v15, %v4082_v19  ;;  %v4595_v51 = vunpack.c.l.b16 %v13664_v39  ;;  %v11738_v39 = vld [vmem:[%s16476_s3 + $0x138] sm:$0xff] }
 0x25f   : > { %v3636_v40 = vpop.f32.mrf.mxu2  ;;  %v4101_v29 = vrot.slane %v4099_v11, 5  ;;  %7632 = vmatpush.bf16.msrb.mxu1 %v11738_v39 }
 0x260   : > { %v5019_v60 = vor.u32 %v5017_v33, %v13691_v47  ;;  %v4832_v48 = vmax.f32 %v4800_v46, 0.0  ;;  %v3713_v50 = vadd.f32 %v3636_v40, %v12996_v54  ;;  %v4087_v45 = vrot.slane %v4086_v25, 4  ;;  %v4690_v0 = vpop.f32.mrf.mxu0  ;;  %v13711_v16 = vpop.f32.mrf.mxu3  ;;  %v4936_v46 = vld [vmem:[#allocation3 + $0x2c] sm:$0x1] }
 0x261   : > { %v4544_v54 = vsel %vm12655_vm2, %v4542_v63, %v4543_v35  ;;  %v4597_v33 = vunpack.c.l.b16 %v4541_v58  ;;  %v5020_v63 = vrot.slane %v13691_v47, 4  ;;  %v4617_v39 = vpack.c.b16 %v4596_v18, %v4595_v51 }
 0x262   : > { %v5337_v7 = vsel %vm13698_vm11, %v5019_v60, %v5336_v56  ;;  %v4982_v19 = vpack.c.bf16 %v4832_v48, %v4832_v48  ;;  %v4367_v15 = vadd.f32 %v13611_v17, %v3713_v50  ;;  %v4097_v56 = vrot.slane %v4096_v1, 4  ;;  %v5340_v50 = vld [vmem:[#allocation3 + $0x14] sm:$0x1] }
 0x263   : > { %5338 = vst [vmem:[#allocation3 + $0xc] sm:$0xf] %v5337_v7  ;;  %v4937_v17 = vsel %vm13572_vm3, 0, %v4936_v46  ;;  %v4092_v55 = vsel %vm12199_vm13, %v4087_v45, %v4091_v12  ;;  %v4598_v35 = vunpack.c.l.b16 %v4544_v54  ;;  %v10933_v48 = vrot.slane %v4409_v59, 9 }
 0x264   : > { %v5022_v40 = vshrl.u32 %v4982_v19, 16  ;;  %v4765_v25 = vadd.f32 %v4688_v31, %v4367_v15  ;;  %4938 = vst [vmem:[#allocation3 + $0x2c] sm:$0x1] %v4937_v17  ;;  %v4102_v37 = vsel %vm12199_vm13, %v4097_v56, %v4101_v29  ;;  %v5025_v60 = vshll.u32 %v4982_v19, 16  ;;  %10916 = vmatmul.msk.bf16.gmra.mxu3 %vm1371_vm10, %v4220_v6  ;;  %v11661_v19 = vld [vmem:[#allocation2 + $0x90] sm:$0xff] }
 0x265   : > { %v13729_v12 = vunpack.c.l.b16 %v4092_v55  ;;  %v13731_v47 = vunpack.c.l.b16 %v4102_v37  ;;  %v4549_v45 = vrot.slane %v4547_v9, 4  ;;  %v4550_v1 = vrot.slane %v13689_v20, 5  ;;  %v3782_v55 = vld [vmem:[#allocation2 + $0xb4] sm:$0xf] }
 0x266   : > { %v5024_v11 = vrot.slane %v5022_v40, 7  ;;  %v4801_v31 = vadd.f32 %v13645_v30, %v4765_v25  ;;  %v13737_v54 = vadd.f32 %v13098_v49, %v13164_v13  ;;  %v13741_v6 = vsel %vm12655_vm2, %v10933_v48, %v4547_v9 }
 0x267   : > { %v3638_v58 = vpop.f32.mrf.mxu2  ;;  %v13752_v49 = vadd.f32 %v13152_v44, %v13218_v43  ;;  %v13754_v13 = vpack.c.b16 %v4598_v35, %v4597_v33  ;;  %v13761_v59 = vsel %vm12655_vm2, %v4549_v45, %v4550_v1  ;;  %v13763_v44 = vld [vmem:[#allocation2 + $0xb8] sm:$0xf]  ;;  %v4884_v33 = vld [vmem:[#allocation3 + $0x30] sm:$0x1]  ;;  %v4107_v1 = vshll.u32 %v3782_v55, 16 }
 0x268   : > { %v5027_v29 = vor.u32 %v5025_v60, %v5024_v11  ;;  %v5029_v7 = vrot.slane %v5024_v11, 4  ;;  %v4833_v15 = vmax.f32 %v4801_v31, 0.0  ;;  %v3714_v38 = vadd.f32 %v3638_v58, %v13014_v57  ;;  %v4693_v40 = vpop.f32.mrf.mxu0  ;;  %v13748_v25 = vpop.f32.mrf.mxu3  ;;  %v5343_v60 = vld [vmem:[#allocation3 + $0x18] sm:$0xf] }
 0x269   : > { %v4599_v11 = vunpack.c.l.b16 %v13741_v6  ;;  %v4885_v48 = vsel %vm13546_vm7, 0, %v4884_v33 }
 0x26a   : > { %v5028_v46 = vsel %vm12121_vm8, %v5020_v63, %v5027_v29  ;;  %v5341_v20 = vsel %vm13546_vm7, %v5029_v7, %v5340_v50  ;;  %v4983_v56 = vpack.c.bf16 %v4833_v15, %v4833_v15  ;;  %v4368_v57 = vadd.f32 %v13647_v62, %v3714_v38  ;;  %v5450_v17 = vld [vmem:[#allocation3 + $0xc] sm:$0xf]  ;;  %10948 = vmatmul.msk.bf16.gmra.mxu0 %vm1371_vm10, %v4617_v39 }
 0x26b   : > { %5339 = vst [vmem:[#allocation3 + $0x10] sm:$0xf] %v5028_v46  ;;  %v5537_v51 = vshrl.u32 %v5450_v17, 16  ;;  %v5540_v18 = vshll.u32 %v5450_v17, 16  ;;  %v4221_v62 = vpack.c.b16 %v13731_v47, %v13729_v12  ;;  %v4104_v50 = vshrl.u32 %v3782_v55, 16 }
 0x26c   : > { %5342 = vst [vmem:[#allocation3 + $0x14] sm:$0x1] %v5341_v20  ;;  %v5031_v63 = vshrl.u32 %v4983_v56, 16  ;;  %v4766_v37 = vadd.f32 %v4690_v0, %v4368_v57  ;;  %10898 = vmatmul.msk.bf16.gmra.mxu2 %vm1371_vm10, %v11661_v19  ;;  %v5034_v43 = vshll.u32 %v4983_v56, 16  ;;  %v4113_v29 = vshll.u32 %v13763_v44, 16 }
 0x26d   : > { %v5539_v35 = vrot.slane %v5537_v51, 4  ;;  %v5542_v9 = vrot.slane %v5540_v18, 5  ;;  %4886 = vst [vmem:[#allocation3 + $0x30] sm:$0x1] %v4885_v48  ;;  %v4117_v7 = vshrl.u32 %v13763_v44, 16  ;;  %v4106_v20 = vrot.slane %v4104_v50, 4 }
 0x26e   : > { %v13767_v0 = vrot.slane %v5031_v63, 7  ;;  %v4802_v31 = vadd.f32 %v13645_v30, %v4766_v37  ;;  %v4109_v56 = vrot.slane %v4107_v1, 5  ;;  %v4115_v57 = vrot.slane %v4113_v29, 5  ;;  %v4939_v29 = vld [vmem:[#allocation3 + $0x38] sm:$0x1] }
 0x26f   : > { %v3641_v58 = vpop.f32.mrf.mxu2  ;;  %v5543_v45 = vor.u32 %v5542_v9, %v5539_v35  ;;  %v4600_v9 = vunpack.c.l.b16 %v13761_v59  ;;  %v3785_v59 = vld [vmem:[#allocation2 + $0xc0] sm:$0xf] }
 0x270   : > { %v5036_v15 = vor.u32 %v5034_v43, %v13767_v0  ;;  %v5037_v38 = vrot.slane %v13767_v0, 4  ;;  %v4834_v19 = vmax.f32 %v4802_v31, 0.0  ;;  %v3715_v39 = vadd.f32 %v3641_v58, %v13040_v14  ;;  %v4695_v18 = vpop.f32.mrf.mxu0  ;;  %v13780_v63 = vpop.f32.mrf.mxu3  ;;  %v11705_v58 = vld [vmem:[%s16476_s3 + $0xb0] sm:$0xff] }
 0x271   : > { %v5544_v46 = vrot.slane %v5543_v45, 4  ;;  %v4119_v43 = vrot.slane %v4117_v7, 4  ;;  %v4110_v0 = vor.u32 %v4109_v56, %v4106_v20  ;;  %6637 = vmatpush.bf16.msrb.mxu3 %v11705_v58  ;;  %v13796_v56 = vld [vmem:[#allocation2 + $0xbc] sm:$0x1] }
 0x272   : > { %v5344_v17 = vsel %vm13698_vm11, %v5036_v15, %v5343_v60  ;;  %v4984_v51 = vpack.c.bf16 %v4834_v19, %v4834_v19  ;;  %v4369_v55 = vadd.f32 %v13675_v5, %v3715_v39  ;;  %v13782_v37 = vld [vmem:[#allocation3 + $0x10] sm:$0xf]  ;;  %v11689_v5 = vld [vmem:[%s16476_s3 + $0x30] sm:$0xff] }
 0x273   : > { %5345 = vst [vmem:[#allocation3 + $0x18] sm:$0xf] %v5344_v17  ;;  %v5497_v33 = vld [vmem:[#allocation3 + $0x14] sm:$0x1]  ;;  %v5546_v14 = vshll.u32 %v13782_v37, 16  ;;  %v5550_v35 = vshrl.u32 %v13782_v37, 16  ;;  %v4120_v15 = vor.u32 %v4119_v43, %v4115_v57  ;;  %6259 = vmatpush.bf16.msrb.mxu2 %v11689_v5 }
 0x274   : > { %v5039_v31 = vshrl.u32 %v4984_v51, 16  ;;  %v5042_v60 = vshll.u32 %v4984_v51, 16  ;;  %v4767_v48 = vadd.f32 %v4693_v40, %v4369_v55  ;;  %v5556_v50 = vshll.u32 %v5497_v33, 16  ;;  %v5347_v17 = vld [vmem:[#allocation3 + $0x20] sm:$0x1]  ;;  %10917 = vmatmul.msk.bf16.gmra.mxu3 %vm1371_vm10, %v4221_v62 }
 0x275   : > { %v5548_v45 = vrot.slane %v5546_v14, 5  ;;  %v5552_v1 = vrot.slane %v5550_v35, 4  ;;  %v4111_v7 = vrot.slane %v4110_v0, 4  ;;  %v4940_v40 = vsel %vm13572_vm3, 0, %v4939_v29  ;;  %v4410_v29 = vld [vmem:[#allocation2 + $0xb4] sm:$0xe] }
 0x276   : > { %v5041_v19 = vrot.slane %v5039_v31, 7  ;;  %v4803_v39 = vadd.f32 %v13645_v30, %v4767_v48  ;;  %v5558_v20 = vrot.slane %v5556_v50, 5  ;;  %4941 = vst [vmem:[#allocation3 + $0x38] sm:$0x1] %v4940_v40  ;;  %v4121_v14 = vrot.slane %v4120_v15, 4  ;;  %v11662_v50 = vld [vmem:[#allocation2 + $0x9c] sm:$0xff] }
 0x277   : > { %v3643_v51 = vpop.f32.mrf.mxu2  ;;  %v5549_v55 = vsel %vm12199_vm13, %v5544_v46, %v5548_v45  ;;  %v5553_v33 = vor.u32 %v5552_v1, %v5548_v45  ;;  %v4116_v43 = vsel %vm12199_vm13, %v4111_v7, %v4115_v57  ;;  %v4123_v46 = vshll.u32 %v13796_v56, 16 }
 0x278   : > { %v5044_v35 = vor.u32 %v5042_v60, %v5041_v19  ;;  %v5046_v0 = vrot.slane %v5041_v19, 4  ;;  %v4835_v31 = vmax.f32 %v4803_v39, 0.0  ;;  %v3716_v48 = vadd.f32 %v3643_v51, %v13058_v52  ;;  %v4698_v57 = vpop.f32.mrf.mxu0  ;;  %v13815_v1 = vpop.f32.mrf.mxu3 }
 0x279   : > { %v5554_v5 = vrot.slane %v5553_v33, 4  ;;  %v5915_v58 = vunpack.c.l.b16 %v5549_v55  ;;  %v13808_v45 = vunpack.c.l.b16 %v4116_v43  ;;  %v4125_v39 = vrot.slane %v4123_v46, 5  ;;  %v4887_v55 = vld [vmem:[#allocation3 + $0x3c] sm:$0x1] }
 0x27a   : > { %v5045_v12 = vsel %vm12121_vm8, %v5037_v38, %v5044_v35  ;;  %v5348_v47 = vsel %vm13546_vm7, %v5046_v0, %v5347_v17  ;;  %v4985_v62 = vpack.c.bf16 %v4835_v31, %v4835_v31  ;;  %v4370_v60 = vadd.f32 %v13711_v16, %v3716_v48  ;;  %v5452_v52 = vld [vmem:[#allocation3 + $0x18] sm:$0xf]  ;;  %10949 = vmatmul.msk.bf16.gmra.mxu0 %vm1371_vm10, %v13754_v13  ;;  %v5350_v13 = vld [vmem:[#allocation3 + $0x24] sm:$0xf] }
 0x27b   : > { %5346 = vst [vmem:[#allocation3 + $0x1c] sm:$0xf] %v5045_v12  ;;  %v5559_v7 = vsel %vm12199_vm13, %v5554_v5, %v5558_v20  ;;  %v5561_v15 = vshrl.u32 %v5452_v52, 16  ;;  %v5564_v19 = vshll.u32 %v5452_v52, 16  ;;  %v11729_v16 = vld [vmem:[%s16476_s3 + $0xf0] sm:$0xff]  ;;  %v4126_v43 = vsel %vm12199_vm13, %v4121_v14, %v4125_v39 }
 0x27c   : > { %5349 = vst [vmem:[#allocation3 + $0x20] sm:$0x1] %v5348_v47  ;;  %v5048_v38 = vshrl.u32 %v4985_v62, 16  ;;  %v5051_v40 = vshll.u32 %v4985_v62, 16  ;;  %v4768_v51 = vadd.f32 %v4695_v18, %v4370_v60  ;;  %10899 = vmatmul.msk.bf16.gmra.mxu2 %vm1371_vm10, %v11662_v50  ;;  %v5916_v17 = vunpack.c.l.b16 %v5559_v7  ;;  %6951 = vmatpush.bf16.msrb.mxu0 %v11729_v16 }
 0x27d   : > { %v5563_v33 = vrot.slane %v5561_v15, 4  ;;  %v5566_v20 = vrot.slane %v5564_v19, 5  ;;  %v10934_v35 = vrot.slane %v4410_v29, 9  ;;  %v4888_v48 = vsel %vm13546_vm7, 0, %v4887_v55  ;;  %v4942_v55 = vld [vmem:[#allocation3 + $0x44] sm:$0x1] }
 0x27e   : > { %v13827_v0 = vrot.slane %v5048_v38, 7  ;;  %v4804_v18 = vadd.f32 %v13645_v30, %v4768_v51  ;;  %v5946_v31 = vpack.c.b16 %v5916_v17, %v5915_v58  ;;  %v13834_v50 = vadd.f32 %v13204_v53, %v13265_v36  ;;  %4889 = vst [vmem:[#allocation3 + $0x3c] sm:$0x1] %v4888_v48 }
 0x27f   : > { %v3646_v5 = vpop.f32.mrf.mxu2  ;;  %v4204_v46 = vunpack.c.l.b16 %v4126_v43  ;;  %v4554_v14 = vrot.slane %v13763_v44, 5  ;;  %v4557_v12 = vrot.slane %v13796_v56, 5  ;;  %v5567_v60 = vor.u32 %v5566_v20, %v5563_v33 }
 0x280   : > { %v5053_v47 = vor.u32 %v5051_v40, %v13827_v0  ;;  %v4836_v62 = vmax.f32 %v4804_v18, 0.0  ;;  %v3717_v58 = vadd.f32 %v3646_v5, %v13087_v4  ;;  %6038 = vmatmul.bf16.gmra.mxu1 %v5946_v31  ;;  %v5054_v52 = vrot.slane %v13827_v0, 4  ;;  %v4700_v7 = vpop.f32.mrf.mxu0  ;;  %v13852_v15 = vpop.f32.mrf.mxu3 }
 0x281   : > { %v13845_v53 = vpack.c.b16 %v4600_v9, %v4599_v11  ;;  %v4555_v36 = vsel %vm12655_vm2, %v10934_v35, %v4554_v14  ;;  %v4556_v44 = vrot.slane %v4554_v14, 4  ;;  %v4222_v6 = vpack.c.b16 %v4204_v46, %v13808_v45  ;;  %v11737_v45 = vld [vmem:[%s16476_s3 + $0x130] sm:$0xff] }
 0x282   : > { %v5351_v56 = vsel %vm13698_vm11, %v5053_v47, %v5350_v13  ;;  %v4986_v29 = vpack.c.bf16 %v4836_v62, %v4836_v62  ;;  %v4371_v4 = vadd.f32 %v13748_v25, %v3717_v58  ;;  %v13854_v19 = vld [vmem:[#allocation3 + $0x1c] sm:$0xf]  ;;  %v4601_v40 = vunpack.c.l.b16 %v4555_v36  ;;  %7633 = vmatpush.bf16.msrb.mxu1 %v11737_v45  ;;  %v11663_v36 = vld [vmem:[#allocation2 + $0xa8] sm:$0xff] }
 0x283   : > { %5352 = vst [vmem:[#allocation3 + $0x24] sm:$0xf] %v5351_v56  ;;  %v13857_v11 = vld [vmem:[#allocation3 + $0x20] sm:$0x1]  ;;  %v5570_v9 = vshll.u32 %v13854_v19, 16  ;;  %v5574_v39 = vshrl.u32 %v13854_v19, 16  ;;  %v4558_v38 = vsel %vm12655_vm2, %v4556_v44, %v4557_v12 }
 0x284   : > { %v5056_v51 = vshrl.u32 %v4986_v29, 16  ;;  %v4769_v25 = vadd.f32 %v4698_v57, %v4371_v4  ;;  %v5568_v17 = vrot.slane %v5567_v60, 4  ;;  %v5580_v16 = vshll.u32 %v13857_v11, 16  ;;  %v5354_v57 = vld [vmem:[#allocation3 + $0x2c] sm:$0x1]  ;;  %10918 = vmatmul.msk.bf16.gmra.mxu3 %vm1371_vm10, %v4222_v6 }
 0x285   : > { %v5572_v33 = vrot.slane %v5570_v9, 5  ;;  %v5576_v20 = vrot.slane %v5574_v39, 4  ;;  %v4602_v43 = vunpack.c.l.b16 %v4558_v38  ;;  %v4943_v35 = vsel %vm13572_vm3, 0, %v4942_v55 }
 0x286   : > { %v5058_v0 = vrot.slane %v5056_v51, 7  ;;  %v5059_v18 = vshll.u32 %v4986_v29, 16  ;;  %v4805_v31 = vadd.f32 %v13645_v30, %v4769_v25  ;;  %v5582_v48 = vrot.slane %v5580_v16, 5  ;;  %4944 = vst [vmem:[#allocation3 + $0x44] sm:$0x1] %v4943_v35 }
 0x287   : > { %v3648_v13 = vpop.f32.mrf.mxu2  ;;  %v5573_v5 = vsel %vm12199_vm13, %v5568_v17, %v5572_v33  ;;  %v5577_v46 = vor.u32 %v5576_v20, %v5572_v33  ;;  %v13873_v14 = vpack.c.b16 %v4602_v43, %v4601_v40  ;;  %v4128_v12 = vshrl.u32 %v3785_v59, 16  ;;  %v13883_v17 = vld [vmem:[#allocation2 + $0xc4] sm:$0xf]  ;;  %v4890_v43 = vld [vmem:[#allocation3 + $0x48] sm:$0x1] }
 0x288   : > { %v5061_v47 = vor.u32 %v5059_v18, %v5058_v0  ;;  %v5063_v62 = vrot.slane %v5058_v0, 4  ;;  %v4837_v58 = vmax.f32 %v4805_v31, 0.0  ;;  %v3718_v60 = vadd.f32 %v3648_v13, %v13117_v61  ;;  %v4703_v38 = vpop.f32.mrf.mxu0  ;;  %v13881_v51 = vpop.f32.mrf.mxu3  ;;  %v13885_v61 = vld [vmem:[#allocation2 + $0xc8] sm:$0x1] }
 0x289   : > { %v5578_v44 = vrot.slane %v5577_v46, 4  ;;  %v5917_v56 = vunpack.c.l.b16 %v5573_v5  ;;  %v4130_v29 = vrot.slane %v4128_v12, 4  ;;  %v4131_v4 = vshll.u32 %v3785_v59, 16  ;;  %v5357_v35 = vld [vmem:[#allocation3 + $0x30] sm:$0xf] }
 0x28a   : > { %v5062_v9 = vsel %vm12121_vm8, %v5054_v52, %v5061_v47  ;;  %v5355_v39 = vsel %vm13546_vm7, %v5063_v62, %v5354_v57  ;;  %v4987_v6 = vpack.c.bf16 %v4837_v58, %v4837_v58  ;;  %v4372_v40 = vadd.f32 %v13780_v63, %v3718_v60  ;;  %v5454_v25 = vld [vmem:[#allocation3 + $0x24] sm:$0xf]  ;;  %10950 = vmatmul.msk.bf16.gmra.mxu0 %vm1371_vm10, %v13845_v53  ;;  %v11704_v46 = vld [vmem:[%s16476_s3 + $0xa8] sm:$0xff]  ;;  %v4411_v60 = vld [vmem:[#allocation2 + $0xc0] sm:$0xe] }
 0x28b   : > { %5353 = vst [vmem:[#allocation3 + $0x28] sm:$0xf] %v5062_v9  ;;  %v5583_v59 = vsel %vm12199_vm13, %v5578_v44, %v5582_v48  ;;  %v5585_v16 = vshrl.u32 %v5454_v25, 16  ;;  %v5588_v52 = vshll.u32 %v5454_v25, 16  ;;  %v4133_v45 = vrot.slane %v4131_v4, 5  ;;  %6638 = vmatpush.bf16.msrb.mxu3 %v11704_v46  ;;  %v11728_v46 = vld [vmem:[%s16476_s3 + $0xe8] sm:$0xff] }
 0x28c   : > { %5356 = vst [vmem:[#allocation3 + $0x2c] sm:$0x1] %v5355_v39  ;;  %v5065_v55 = vshrl.u32 %v4987_v6, 16  ;;  %v5068_v33 = vshll.u32 %v4987_v6, 16  ;;  %v4770_v20 = vadd.f32 %v4700_v7, %v4372_v40  ;;  %10900 = vmatmul.msk.bf16.gmra.mxu2 %vm1371_vm10, %v11663_v36  ;;  %v5918_v63 = vunpack.c.l.b16 %v5583_v59  ;;  %6952 = vmatpush.bf16.msrb.mxu0 %v11728_v46  ;;  %v381_v46 = vld [vmem:[#allocation2 + $0xd4] sm:$0x1] }
 0x28d   : > { %v4891_v0 = vsel %vm13546_vm7, 0, %v4890_v43  ;;  %v5587_v18 = vrot.slane %v5585_v16, 4  ;;  %v5590_v31 = vrot.slane %v5588_v52, 5  ;;  %v4134_v48 = vor.u32 %v4133_v45, %v4130_v29 }
 0x28e   : > { %v13894_v57 = vrot.slane %v5065_v55, 7  ;;  %v4806_v13 = vadd.f32 %v13645_v30, %v4770_v20  ;;  %v5947_v5 = vpack.c.b16 %v5918_v63, %v5917_v56  ;;  %4892 = vst [vmem:[#allocation3 + $0x48] sm:$0x1] %v4891_v0  ;;  %v4137_v7 = vshll.u32 %v13883_v17, 16 }
 0x28f   : > { %v3651_v12 = vpop.f32.mrf.mxu2  ;;  %v5591_v53 = vor.u32 %v5590_v31, %v5587_v18  ;;  %v4135_v47 = vrot.slane %v4134_v48, 4  ;;  %v4141_v62 = vshrl.u32 %v13883_v17, 16  ;;  %v4147_v58 = vshll.u32 %v13885_v61, 16  ;;  %v11688_v48 = vld [vmem:[%s16476_s3 + $0x28] sm:$0xff] }
 0x290   : > { %v5070_v36 = vor.u32 %v5068_v33, %v13894_v57  ;;  %v5071_v44 = vrot.slane %v13894_v57, 4  ;;  %v4838_v56 = vmax.f32 %v4806_v13, 0.0  ;;  %v3719_v29 = vadd.f32 %v3651_v12, %v13147_v2  ;;  %6043 = vmatmul.bf16.gmra.mxu1 %v5947_v5  ;;  %v13908_v59 = vpop.f32.mrf.mxu0  ;;  %v13911_v52 = vpop.f32.mrf.mxu3  ;;  %v11703_v2 = vld [vmem:[%s16476_s3 + $0xa0] sm:$0xff]  ;;  %6260 = vmatpush.bf16.msrb.mxu2 %v11688_v48  ;;  %v325_v48 = vld [vmem:[#allocation2 + $0xcc] sm:$0x1] }
 0x291   : > { %v5592_v4 = vrot.slane %v5591_v53, 4  ;;  %v4139_v9 = vrot.slane %v4137_v7, 5  ;;  %v4143_v39 = vrot.slane %v4141_v62, 4  ;;  %v4149_v6 = vrot.slane %v4147_v58, 5  ;;  %6639 = vmatpush.bf16.msrb.mxu3 %v11703_v2  ;;  %v11702_v62 = vld [vmem:[%s16476_s3 + $0x98] sm:$0xff]  ;;  %v11727_v2 = vld [vmem:[%s16476_s3 + $0xe0] sm:$0xff] }
 0x292   : > { %v5358_v40 = vsel %vm13698_vm11, %v5070_v36, %v5357_v35  ;;  %v4988_v25 = vpack.c.bf16 %v4838_v56, %v4838_v56  ;;  %v4373_v16 = vadd.f32 %v13815_v1, %v3719_v29  ;;  %v13913_v45 = vld [vmem:[#allocation3 + $0x28] sm:$0xf]  ;;  %v10935_v55 = vrot.slane %v4411_v60, 9  ;;  %v5361_v58 = vld [vmem:[#allocation3 + $0x38] sm:$0x1]  ;;  %6953 = vmatpush.bf16.msrb.mxu0 %v11727_v2 }
 0x293   : > { %5359 = vst [vmem:[#allocation3 + $0x30] sm:$0xf] %v5358_v40  ;;  %v13918_v33 = vld [vmem:[#allocation3 + $0x2c] sm:$0x1]  ;;  %v5594_v20 = vshll.u32 %v13913_v45, 16  ;;  %v5598_v63 = vshrl.u32 %v13913_v45, 16  ;;  %v4140_v43 = vsel %vm12199_vm13, %v4135_v47, %v4139_v9  ;;  %v4144_v1 = vor.u32 %v4143_v39, %v4139_v9 }
 0x294   : > { %v5073_v35 = vshrl.u32 %v4988_v25, 16  ;;  %v5076_v0 = vshll.u32 %v4988_v25, 16  ;;  %v4771_v18 = vadd.f32 %v4703_v38, %v4373_v16  ;;  %v5604_v31 = vshll.u32 %v13918_v33, 16  ;;  %v11664_v16 = vld [vmem:[#allocation2 + $0xb4] sm:$0xff] }
 0x295   : > { %v5596_v57 = vrot.slane %v5594_v20, 5  ;;  %v5600_v13 = vrot.slane %v5598_v63, 4  ;;  %v4145_v5 = vrot.slane %v4144_v1, 4  ;;  %v4205_v7 = vunpack.c.l.b16 %v4140_v43  ;;  %6640 = vmatpush.bf16.msrb.mxu3 %v11702_v62 }
 0x296   : > { %v5075_v12 = vrot.slane %v5073_v35, 7  ;;  %v4807_v53 = vadd.f32 %v13645_v30, %v4771_v18  ;;  %v5606_v47 = vrot.slane %v5604_v31, 5  ;;  %v4561_v38 = vrot.slane %v13883_v17, 5  ;;  %v4945_v18 = vld [vmem:[#allocation3 + $0x50] sm:$0x1] }
 0x297   : > { %v3653_v60 = vpop.f32.mrf.mxu2  ;;  %v5597_v36 = vsel %vm12199_vm13, %v5592_v4, %v5596_v57  ;;  %v5601_v56 = vor.u32 %v5600_v13, %v5596_v57  ;;  %v4150_v29 = vsel %vm12199_vm13, %v4145_v5, %v4149_v6  ;;  %v4564_v9 = vrot.slane %v13885_v61, 5 }
 0x298   : > { %v5078_v39 = vor.u32 %v5076_v0, %v5075_v12  ;;  %v5080_v40 = vrot.slane %v5075_v12, 4  ;;  %v4839_v25 = vmax.f32 %v4807_v53, 0.0  ;;  %v3720_v17 = vadd.f32 %v3653_v60, %v13737_v54  ;;  %v13953_v1 = vpop.f32.mrf.mxu0  ;;  %v13956_v0 = vpop.f32.mrf.mxu3  ;;  %v13966_v60 = vld [vmem:[#allocation2 + $0xd0] sm:$0xf] }
 0x299   : > { %v5602_v20 = vrot.slane %v5601_v56, 4  ;;  %v5919_v4 = vunpack.c.l.b16 %v5597_v36  ;;  %v4206_v63 = vunpack.c.l.b16 %v4150_v29  ;;  %v13947_v6 = vsel %vm12655_vm2, %v10935_v55, %v4561_v38  ;;  %v11701_v55 = vld [vmem:[%s16476_s3 + $0x90] sm:$0xff]  ;;  %v13977_v56 = vld [vmem:[#allocation2 + $0xcc] sm:$0xe]  ;;  %v11726_v29 = vld [vmem:[%s16476_s3 + $0xd8] sm:$0xff] }
 0x29a   : > { %v5079_v61 = vsel %vm12121_vm8, %v5071_v44, %v5078_v39  ;;  %v5362_v43 = vsel %vm13546_vm7, %v5080_v40, %v5361_v58  ;;  %v4989_v54 = vpack.c.bf16 %v4839_v25, %v4839_v25  ;;  %v4374_v35 = vadd.f32 %v13852_v15, %v3720_v17  ;;  %v5456_v31 = vld [vmem:[#allocation3 + $0x30] sm:$0xf]  ;;  %v4893_v58 = vld [vmem:[#allocation3 + $0x54] sm:$0x1]  ;;  %6641 = vmatpush.bf16.msrb.mxu3 %v11701_v55  ;;  %v5364_v36 = vld [vmem:[#allocation3 + $0x3c] sm:$0xf] }
 0x29b   : > { %5360 = vst [vmem:[#allocation3 + $0x34] sm:$0xf] %v5079_v61  ;;  %v5607_v44 = vsel %vm12199_vm13, %v5602_v20, %v5606_v47  ;;  %v4223_v57 = vpack.c.b16 %v4206_v63, %v4205_v7  ;;  %v4563_v13 = vrot.slane %v4561_v38, 4  ;;  %v4603_v5 = vunpack.c.l.b16 %v13947_v6  ;;  %10951 = vmatmul.msk.bf16.gmra.mxu0 %vm1371_vm10, %v13873_v14  ;;  %v11700_v17 = vld [vmem:[%s16476_s3 + $0x88] sm:$0xff] }
 0x29c   : > { %5363 = vst [vmem:[#allocation3 + $0x38] sm:$0x1] %v5362_v43  ;;  %v5082_v15 = vshrl.u32 %v4989_v54, 16  ;;  %v5085_v12 = vshll.u32 %v4989_v54, 16  ;;  %v4772_v53 = vadd.f32 %v13908_v59, %v4374_v35  ;;  %10901 = vmatmul.msk.bf16.gmra.mxu2 %vm1371_vm10, %v11664_v16  ;;  %v5920_v62 = vunpack.c.l.b16 %v5607_v44  ;;  %6954 = vmatpush.bf16.msrb.mxu0 %v11726_v29  ;;  %v11725_v54 = vld [vmem:[%s16476_s3 + $0xd0] sm:$0xff] }
 0x29d   : > { %10919 = vmatmul.msk.bf16.gmra.mxu3 %vm1371_vm10, %v4223_v57  ;;  %v4565_v7 = vsel %vm12655_vm2, %v4563_v13, %v4564_v9  ;;  %v4946_v47 = vsel %vm13572_vm3, 0, %v4945_v18  ;;  %v4894_v59 = vsel %vm13546_vm7, 0, %v4893_v58  ;;  %v5609_v38 = vshrl.u32 %v5456_v31, 16  ;;  %v11687_v9 = vld [vmem:[%s16476_s3 + $0x20] sm:$0xff] }
 0x29e   : > { %v13982_v39 = vrot.slane %v5082_v15, 7  ;;  %v4808_v14 = vadd.f32 %v13645_v30, %v4772_v53  ;;  %v5948_v40 = vpack.c.b16 %v5920_v62, %v5919_v4  ;;  %v4604_v25 = vunpack.c.l.b16 %v4565_v7  ;;  %4947 = vst [vmem:[#allocation3 + $0x50] sm:$0x1] %v4946_v47  ;;  %6261 = vmatpush.bf16.msrb.mxu2 %v11687_v9  ;;  %6642 = vmatpush.bf16.msrb.mxu3 %v11700_v17  ;;  %v11699_v15 = vld [vmem:[%s16476_s3 + $0x80] sm:$0xff]  ;;  %v5368_v9 = vld [vmem:[#allocation3 + $0x44] sm:$0x1] }
 0x29f   : > { %v3656_v16 = vpop.f32.mrf.mxu2  ;;  %4895 = vst [vmem:[#allocation3 + $0x54] sm:$0x1] %v4894_v59  ;;  %v5611_v2 = vrot.slane %v5609_v38, 4  ;;  %v5612_v20 = vshll.u32 %v5456_v31, 16  ;;  %v326_v63 = vsel %vm12065_vm4, 0, %v325_v48  ;;  %v382_v4 = vsel %vm12084_vm6, 0, %v381_v46 }
 0x2a0   : > { %v5087_v6 = vor.u32 %v5085_v12, %v13982_v39  ;;  %v4840_v61 = vmax.f32 %v4808_v14, 0.0  ;;  %v3721_v43 = vadd.f32 %v3656_v16, %v13200_v22  ;;  %6048 = vmatmul.bf16.gmra.mxu1 %v5948_v40  ;;  %327 = vst [vmem:[#allocation2 + $0xcc] sm:$0x1] %v326_v63  ;;  %v5088_v35 = vrot.slane %v13982_v39, 4  ;;  %v14005_v48 = vpop.f32.mrf.mxu0  ;;  %v14008_v44 = vpop.f32.mrf.mxu3  ;;  %v11686_v46 = vld [vmem:[%s16476_s3 + $0x18] sm:$0xff]  ;;  %6955 = vmatpush.bf16.msrb.mxu0 %v11725_v54  ;;  %v11736_v38 = vld [vmem:[%s16476_s3 + $0x128] sm:$0xff] }
 0x2a1   : > { %v5614_v3 = vrot.slane %v5612_v20, 5  ;;  %383 = vst [vmem:[#allocation2 + $0xd4] sm:$0x1] %v382_v4  ;;  %v4161_v8 = vshll.u32 %v13966_v60, 16  ;;  %v4165_v18 = vshrl.u32 %v13966_v60, 16  ;;  %v10936_v13 = vrot.slane %v13977_v56, 9  ;;  %7634 = vmatpush.bf16.msrb.mxu1 %v11736_v38 }
 0x2a2   : > { %v5365_v31 = vsel %vm13698_vm11, %v5087_v6, %v5364_v36  ;;  %v4990_v22 = vpack.c.bf16 %v4840_v61, %v4840_v61  ;;  %v4375_v55 = vadd.f32 %v13881_v51, %v3721_v43  ;;  %v14010_v57 = vld [vmem:[#allocation3 + $0x34] sm:$0xf]  ;;  %v14019_v12 = vpack.c.b16 %v4604_v25, %v4603_v5  ;;  %v4948_v5 = vld [vmem:[#allocation3 + $0x5c] sm:$0x1]  ;;  %6262 = vmatpush.bf16.msrb.mxu2 %v11686_v46 }
 0x2a3   : > { %5366 = vst [vmem:[#allocation3 + $0x3c] sm:$0xf] %v5365_v31  ;;  %v14021_v53 = vld [vmem:[#allocation3 + $0x38] sm:$0x1]  ;;  %v5615_v51 = vor.u32 %v5614_v3, %v5611_v2  ;;  %v5618_v62 = vshll.u32 %v14010_v57, 16  ;;  %v5622_v58 = vshrl.u32 %v14010_v57, 16  ;;  %6643 = vmatpush.bf16.msrb.mxu3 %v11699_v15 }
 0x2a4   : > { %v5090_v36 = vshrl.u32 %v4990_v22, 16  ;;  %v5093_v7 = vshll.u32 %v4990_v22, 16  ;;  %v4773_v47 = vadd.f32 %v13953_v1, %v4375_v55  ;;  %v5628_v59 = vshll.u32 %v14021_v53, 16  ;;  %v11724_v2 = vld [vmem:[%s16476_s3 + $0xc8] sm:$0xff]  ;;  %v11665_v31 = vld [vmem:[#allocation2 + $0xc0] sm:$0xff] }
 0x2a5   : > { %v5616_v29 = vrot.slane %v5615_v51, 4  ;;  %v5620_v39 = vrot.slane %v5618_v62, 5  ;;  %v5624_v14 = vrot.slane %v5622_v58, 4  ;;  %v14030_v40 = vrot.slane %v4161_v8, 5  ;;  %6956 = vmatpush.bf16.msrb.mxu0 %v11724_v2 }
 0x2a6   : > { %v5092_v25 = vrot.slane %v5090_v36, 7  ;;  %v4809_v17 = vadd.f32 %v13645_v30, %v4773_v47  ;;  %v5630_v16 = vrot.slane %v5628_v59, 5  ;;  %v4167_v1 = vrot.slane %v4165_v18, 4  ;;  %v11685_v30 = vld [vmem:[%s16476_s3 + $0x10] sm:$0xff] }
 0x2a7   : > { %v3658_v20 = vpop.f32.mrf.mxu2  ;;  %v5621_v63 = vsel %vm12199_vm13, %v5616_v29, %v5620_v39  ;;  %v5625_v4 = vor.u32 %v5624_v14, %v5620_v39  ;;  %v3788_v6 = vld [vmem:[#allocation2 + $0xcc] sm:$0xf]  ;;  %v4568_v61 = vrot.slane %v13966_v60, 5  ;;  %v4949_v43 = vsel %vm13572_vm3, 0, %v4948_v5  ;;  %6263 = vmatpush.bf16.msrb.mxu2 %v11685_v30  ;;  %v11723_v60 = vld [vmem:[%s16476_s3 + $0xc0] sm:$0xff] }
 0x2a8   : > { %v5095_v54 = vor.u32 %v5093_v7, %v5092_v25  ;;  %v5097_v3 = vrot.slane %v5092_v25, 4  ;;  %v4841_v8 = vmax.f32 %v4809_v17, 0.0  ;;  %v3722_v18 = vadd.f32 %v3658_v20, %v13752_v49  ;;  %4950 = vst [vmem:[#allocation3 + $0x5c] sm:$0x1] %v4949_v43  ;;  %v14052_v49 = vpop.f32.mrf.mxu0  ;;  %v3790_v7 = vld [vmem:[#allocation2 + $0xd4] sm:$0x1]  ;;  %v14055_v47 = vpop.f32.mrf.mxu3 }
 0x2a9   : > { %v5626_v22 = vrot.slane %v5625_v4, 4  ;;  %v5921_v55 = vunpack.c.l.b16 %v5621_v63  ;;  %v4152_v46 = vshrl.u32 %v3788_v6, 16  ;;  %v4155_v15 = vshll.u32 %v3788_v6, 16  ;;  %6957 = vmatpush.bf16.msrb.mxu0 %v11723_v60  ;;  %v4896_v4 = vld [vmem:[#allocation3 + $0x60] sm:$0x1] }
 0x2aa   : > { %v5096_v51 = vsel %vm12121_vm8, %v5088_v35, %v5095_v54  ;;  %v5369_v62 = vsel %vm13546_vm7, %v5097_v3, %v5368_v9  ;;  %v4991_v58 = vpack.c.bf16 %v4841_v8, %v4841_v8  ;;  %v4376_v36 = vadd.f32 %v13911_v52, %v3722_v18  ;;  %v11684_v35 = vld [vmem:[%s16476_s3 + $0x8] sm:$0xff]  ;;  %v5371_v6 = vld [vmem:[#allocation3 + $0x48] sm:$0xf] }
 0x2ab   : > { %5367 = vst [vmem:[#allocation3 + $0x40] sm:$0xf] %v5096_v51  ;;  %v5631_v59 = vsel %vm12199_vm13, %v5626_v22, %v5630_v16  ;;  %v4154_v38 = vrot.slane %v4152_v46, 4  ;;  %v4157_v5 = vrot.slane %v4155_v15, 5  ;;  %v4168_v29 = vor.u32 %v4167_v1, %v14030_v40  ;;  %10952 = vmatmul.msk.bf16.gmra.mxu0 %vm1371_vm10, %v14019_v12  ;;  %6264 = vmatpush.bf16.msrb.mxu2 %v11684_v35  ;;  %v6347_v35 = vld [vmem:[#allocation3] sm:$0xe] }
 0x2ac   : > { %5370 = vst [vmem:[#allocation3 + $0x44] sm:$0x1] %v5369_v62  ;;  %v5099_v39 = vshrl.u32 %v4991_v58, 16  ;;  %v5102_v14 = vshll.u32 %v4991_v58, 16  ;;  %v4774_v52 = vadd.f32 %v14005_v48, %v4376_v36  ;;  %10902 = vmatmul.msk.bf16.gmra.mxu2 %vm1371_vm10, %v11665_v31  ;;  %v5922_v25 = vunpack.c.l.b16 %v5631_v59  ;;  %v14076_v48 = vld [vmem:[%s16475_s2] ss:$0 sm:$0xff] }
 0x2ad   : > { %v4158_v9 = vor.u32 %v4157_v5, %v4154_v38  ;;  %v4169_v17 = vrot.slane %v4168_v29, 4  ;;  %v4171_v16 = vshll.u32 %v3790_v7, 16  ;;  %v4569_v1 = vsel %vm12655_vm2, %v10936_v13, %v4568_v61  ;;  %v11683_v13 = vld [vmem:[%s16476_s3] sm:$0xff] }
 0x2ae   : > { %v14071_v2 = vrot.slane %v5099_v39, 7  ;;  %v4810_v20 = vadd.f32 %v14076_v48, %v4774_v52  ;;  %v5949_v63 = vpack.c.b16 %v5922_v25, %v5921_v55  ;;  %v4570_v12 = vrot.slane %v4568_v61, 4  ;;  %v5458_v61 = vld [vmem:[#allocation3 + $0x3c] sm:$0xf] }
 0x2af   : > { %v3661_v43 = vpop.f32.mrf.mxu2  ;;  %v4159_v30 = vrot.slane %v4158_v9, 4  ;;  %v4173_v56 = vrot.slane %v4171_v16, 5  ;;  %v4571_v54 = vrot.slane %v3790_v7, 5  ;;  %v4605_v3 = vunpack.c.l.b16 %v4569_v1  ;;  %6265 = vmatpush.bf16.msrb.mxu2 %v11683_v13 }
 0x2b0   : > { %v5104_v8 = vor.u32 %v5102_v14, %v14071_v2  ;;  %v5105_v18 = vrot.slane %v14071_v2, 4  ;;  %v4842_v31 = vmax.f32 %v4810_v20, 0.0  ;;  %v3723_v22 = vadd.f32 %v3661_v43, %v13250_v42  ;;  %6053 = vmatmul.bf16.gmra.mxu1 %v5949_v63  ;;  %v4715_v62 = vpop.f32.mrf.mxu0  ;;  %v14097_v7 = vpop.f32.mrf.mxu3 }
 0x2b1   : > { %v4164_v55 = vsel %vm12199_vm13, %v4159_v30, %v14030_v40  ;;  %v4174_v46 = vsel %vm12199_vm13, %v4169_v17, %v4173_v56  ;;  %v4572_v15 = vsel %vm12655_vm2, %v4570_v12, %v4571_v54  ;;  %v4897_v60 = vsel %vm13546_vm7, 0, %v4896_v4  ;;  %v5375_v4 = vld [vmem:[#allocation3 + $0x50] sm:$0x1]  ;;  %v11870_v56 = vld [vmem:[#allocation3 + $0x4] sm:$0xf] }
 0x2b2   : > { %v5372_v51 = vsel %vm13698_vm11, %v5104_v8, %v5371_v6  ;;  %v4992_v42 = vpack.c.bf16 %v4842_v31, %v4842_v31  ;;  %v4377_v58 = vadd.f32 %v13956_v0, %v3723_v22  ;;  %v4207_v36 = vunpack.c.l.b16 %v4164_v55  ;;  %4898 = vst [vmem:[#allocation3 + $0x60] sm:$0x1] %v4897_v60  ;;  %v14099_v40 = vld [vmem:[#allocation3 + $0x40] sm:$0xf]  ;;  %v11666_v22 = vld [vmem:[#allocation2 + $0xcc] sm:$0xff] }
 0x2b3   : > { %5373 = vst [vmem:[#allocation3 + $0x48] sm:$0xf] %v5372_v51  ;;  %v4208_v59 = vunpack.c.l.b16 %v4174_v46  ;;  %v4606_v38 = vunpack.c.l.b16 %v4572_v15  ;;  %v5633_v5 = vshrl.u32 %v5458_v61, 16  ;;  %v5636_v29 = vshll.u32 %v5458_v61, 16  ;;  %v14102_v25 = vld [vmem:[#allocation3 + $0x44] sm:$0x1] }
 0x2b4   : > { %v5107_v39 = vshrl.u32 %v4992_v42, 16  ;;  %v5110_v14 = vshll.u32 %v4992_v42, 16  ;;  %v4775_v52 = vadd.f32 %v14052_v49, %v4377_v58  ;;  %v5642_v0 = vshll.u32 %v14099_v40, 16 }
 0x2b5   : > { %v4224_v9 = vpack.c.b16 %v4208_v59, %v4207_v36  ;;  %v4622_v17 = vpack.c.b16 %v4606_v38, %v4605_v3  ;;  %v5635_v16 = vrot.slane %v5633_v5, 4  ;;  %v5638_v1 = vrot.slane %v5636_v29, 5  ;;  %v11871_v29 = vld [vmem:[#allocation3 + $0x8] sm:$0x1] }
 0x2b6   : > { %v5109_v2 = vrot.slane %v5107_v39, 7  ;;  %v4811_v20 = vadd.f32 %v14076_v48, %v4775_v52  ;;  %v5644_v63 = vrot.slane %v5642_v0, 5  ;;  %v5646_v12 = vshrl.u32 %v14099_v40, 16 }
 0x2b7   : > { %10920 = vmatmul.msk.bf16.gmra.mxu3 %vm1371_vm10, %v4224_v9  ;;  %v3663_v6 = vpop.f32.mrf.mxu2  ;;  %v5639_v43 = vor.u32 %v5638_v1, %v5635_v16  ;;  %v5652_v49 = vshll.u32 %v14102_v25, 16  ;;  %v11098_v30 = vrot.slane %v6347_v35, 9  ;;  %v6397_v54 = vrot.slane %v11870_v56, 5  ;;  %v4899_v9 = vld [vmem:[#allocation3 + $0x6c] sm:$0x1] }
 0x2b8   : > { %v5112_v13 = vor.u32 %v5110_v14, %v5109_v2  ;;  %v5114_v3 = vrot.slane %v5109_v2, 4  ;;  %v4843_v8 = vmax.f32 %v4811_v20, 0.0  ;;  %v3724_v31 = vadd.f32 %v3663_v6, %v13834_v50  ;;  %v4718_v58 = vpop.f32.mrf.mxu0  ;;  %v14117_v59 = vpop.f32.mrf.mxu3  ;;  %v4951_v50 = vld [vmem:[#allocation3 + $0x68] sm:$0x1] }
 0x2b9   : > { %v5640_v61 = vrot.slane %v5639_v43, 4  ;;  %v5648_v55 = vrot.slane %v5646_v12, 4  ;;  %v5654_v46 = vrot.slane %v5652_v49, 5  ;;  %v6398_v15 = vsel %vm12655_vm2, %v11098_v30, %v6397_v54 }
 0x2ba   : > { %v5113_v60 = vsel %vm12121_vm8, %v5105_v18, %v5112_v13  ;;  %v5376_v51 = vsel %vm13546_vm7, %v5114_v3, %v5375_v4  ;;  %v4993_v42 = vpack.c.bf16 %v4843_v8, %v4843_v8  ;;  %v4378_v36 = vadd.f32 %v14008_v44, %v3724_v31  ;;  %v5460_v39 = vld [vmem:[#allocation3 + $0x48] sm:$0xf]  ;;  %v5378_v4 = vld [vmem:[#allocation3 + $0x54] sm:$0xf] }
 0x2bb   : > { %5374 = vst [vmem:[#allocation3 + $0x4c] sm:$0xf] %v5113_v60  ;;  %v5649_v38 = vor.u32 %v5648_v55, %v5644_v63  ;;  %v6399_v5 = vrot.slane %v6397_v54, 4  ;;  %v6400_v35 = vrot.slane %v11871_v29, 5  ;;  %v5645_v0 = vsel %vm12199_vm13, %v5640_v61, %v5644_v63  ;;  %10953 = vmatmul.msk.bf16.gmra.mxu0 %vm1371_vm10, %v4622_v17 }
 0x2bc   : > { %5377 = vst [vmem:[#allocation3 + $0x50] sm:$0x1] %v5376_v51  ;;  %v5116_v14 = vshrl.u32 %v4993_v42, 16  ;;  %v5119_v52 = vshll.u32 %v4993_v42, 16  ;;  %v4776_v18 = vadd.f32 %v4715_v62, %v4378_v36  ;;  %10903 = vmatmul.msk.bf16.gmra.mxu2 %vm1371_vm10, %v11666_v22  ;;  %v6524_v1 = vunpack.c.l.b16 %v6398_v15  ;;  %v6348_v42 = vld [vmem:[#allocation3 + $0xc] sm:$0xe] }
 0x2bd   : > { %v5650_v44 = vrot.slane %v5649_v38, 4  ;;  %v6401_v16 = vsel %vm12655_vm2, %v6399_v5, %v6400_v35  ;;  %v4952_v2 = vsel %vm13572_vm3, 0, %v4951_v50  ;;  %v4900_v63 = vsel %vm13546_vm7, 0, %v4899_v9  ;;  %v16558_v35 = vld [vmem:[#allocation25_spill] sm:$0xff] }
 0x2be   : > { %v14127_v20 = vrot.slane %v5116_v14, 7  ;;  %v4812_v62 = vadd.f32 %v14076_v48, %v4776_v18  ;;  %v6525_v12 = vunpack.c.l.b16 %v6401_v16  ;;  %4953 = vst [vmem:[#allocation3 + $0x68] sm:$0x1] %v4952_v2  ;;  %v5657_v43 = vshrl.u32 %v5460_v39, 16 }
 0x2bf   : > { %v3666_v6 = vpop.f32.mrf.mxu2  ;;  %v5655_v17 = vsel %vm12199_vm13, %v5650_v44, %v5654_v46  ;;  %4901 = vst [vmem:[#allocation3 + $0x6c] sm:$0x1] %v4900_v63  ;;  %v5660_v49 = vshll.u32 %v5460_v39, 16  ;;  %v5923_v13 = vunpack.c.l.b16 %v5645_v0  ;;  %v6404_v36 = vrot.slane %v13782_v37, 5  ;;  %v11735_v37 = vld [vmem:[%s16476_s3 + $0x120] sm:$0xff] }
 0x2c0   : > { %v5121_v30 = vor.u32 %v5119_v52, %v14127_v20  ;;  %v4844_v56 = vmax.f32 %v4812_v62, 0.0  ;;  %v3725_v54 = vadd.f32 %v3666_v6, %v13287_v34  ;;  %v5924_v3 = vunpack.c.l.b16 %v5655_v17  ;;  %v4720_v15 = vpop.f32.mrf.mxu0  ;;  %v14139_v60 = vpop.f32.mrf.mxu3  ;;  %7635 = vmatpush.bf16.msrb.mxu1 %v11735_v37 }
 0x2c1   : > { %v6556_v8 = vpack.c.b16 %v6525_v12, %v6524_v1  ;;  %v5659_v31 = vrot.slane %v5657_v43, 4  ;;  %v5662_v22 = vrot.slane %v5660_v49, 5  ;;  %v3439_v39 = vadd.f32 %v16558_v35, %v13302_v41  ;;  %v4954_v41 = vld [vmem:[#allocation3 + $0x74] sm:$0x1] }
 0x2c2   : > { %v5379_v61 = vsel %vm13698_vm11, %v5121_v30, %v5378_v4  ;;  %v4994_v55 = vpack.c.bf16 %v4844_v56, %v4844_v56  ;;  %v4379_v46 = vadd.f32 %v14055_v47, %v3725_v54  ;;  %v14141_v51 = vld [vmem:[#allocation3 + $0x4c] sm:$0xf]  ;;  %v5950_v34 = vpack.c.b16 %v5924_v3, %v5923_v13  ;;  %v11667_v56 = vld [vmem:[#allocation3] sm:$0xff]  ;;  %v11872_v3 = vld [vmem:[#allocation3 + $0x14] sm:$0x1] }
 0x2c3   : > { %5380 = vst [vmem:[#allocation3 + $0x54] sm:$0xf] %v5379_v61  ;;  %v14144_v50 = vld [vmem:[#allocation3 + $0x50] sm:$0x1]  ;;  %v5663_v38 = vor.u32 %v5662_v22, %v5659_v31  ;;  %v5666_v5 = vshll.u32 %v14141_v51, 16  ;;  %v5670_v29 = vshrl.u32 %v14141_v51, 16 }
 0x2c4   : > { %v5124_v47 = vshrl.u32 %v4994_v55, 16  ;;  %v4777_v14 = vadd.f32 %v4718_v58, %v4379_v46  ;;  %v5676_v52 = vshll.u32 %v14144_v50, 16  ;;  %v5122_v18 = vrot.slane %v14127_v20, 4  ;;  %6058 = vmatmul.bf16.gmra.mxu1 %v5950_v34  ;;  %v5382_v58 = vld [vmem:[#allocation3 + $0x5c] sm:$0x1] }
 0x2c5   : > { %v5668_v0 = vrot.slane %v5666_v5, 5  ;;  %v5672_v9 = vrot.slane %v5670_v29, 4  ;;  %v11099_v44 = vrot.slane %v6348_v42, 9  ;;  %v5127_v1 = vshll.u32 %v4994_v55, 16  ;;  %v14171_v34 = vld [vmem:[#allocation3 + $0x18] sm:$0xe] }
 0x2c6   : > { %v5126_v16 = vrot.slane %v5124_v47, 7  ;;  %v4813_v2 = vadd.f32 %v14076_v48, %v4777_v14  ;;  %v5664_v62 = vrot.slane %v5663_v38, 4  ;;  %v5678_v4 = vrot.slane %v5676_v52, 5  ;;  %v11707_v38 = vld [vmem:[#allocation3 + $0xc] sm:$0xff]  ;;  %v4902_v52 = vld [vmem:[#allocation3 + $0x78] sm:$0x1] }
 0x2c7   : > { %6644 = vmatmul.bf16.vlgmr.msrb.gmra.mxu3 %v6556_v8  ;;  %v3668_v12 = vpop.f32.mrf.mxu2  ;;  %v5673_v63 = vor.u32 %v5672_v9, %v5668_v0  ;;  %v14158_v6 = vsel %vm12655_vm2, %v11099_v44, %v6404_v36  ;;  %v6406_v20 = vrot.slane %v6404_v36, 4  ;;  %v6407_v31 = vrot.slane %v11872_v3, 5 }
 0x2c8   : > { %v5129_v17 = vor.u32 %v5127_v1, %v5126_v16  ;;  %v5131_v43 = vrot.slane %v5126_v16, 4  ;;  %v4845_v49 = vmax.f32 %v4813_v2, 0.0  ;;  %v3726_v30 = vadd.f32 %v3668_v12, %v3439_v39  ;;  %v4723_v46 = vpop.f32.mrf.mxu0  ;;  %v14169_v36 = vpop.f32.mrf.mxu3  ;;  %v6350_v39 = vld [vmem:[#allocation3 + $0x24] sm:$0xe]  ;;  %v5385_v2 = vld [vmem:[#allocation3 + $0x60] sm:$0xf] }
 0x2c9   : > { %v5669_v54 = vsel %vm12199_vm13, %v5664_v62, %v5668_v0  ;;  %v5674_v13 = vrot.slane %v5673_v63, 4  ;;  %v4955_v8 = vsel %vm13572_vm3, 0, %v4954_v41  ;;  %v6408_v29 = vsel %vm12655_vm2, %v6406_v20, %v6407_v31 }
 0x2ca   : > { %v5130_v22 = vsel %vm12121_vm8, %v5122_v18, %v5129_v17  ;;  %v5383_v61 = vsel %vm13546_vm7, %v5131_v43, %v5382_v58  ;;  %v4995_v55 = vpack.c.bf16 %v4845_v49, %v4845_v49  ;;  %v4380_v42 = vadd.f32 %v14097_v7, %v3726_v30  ;;  %4956 = vst [vmem:[#allocation3 + $0x74] sm:$0x1] %v4955_v8 }
 0x2cb   : > { %5381 = vst [vmem:[#allocation3 + $0x58] sm:$0xf] %v5130_v22  ;;  %v5679_v5 = vsel %vm12199_vm13, %v5674_v13, %v5678_v4  ;;  %v6411_v35 = vrot.slane %v13854_v19, 5  ;;  %6958 = vmatmul.bf16.vlgmr.msrb.gmra.mxu0 %v11707_v38  ;;  %v5925_v37 = vunpack.c.l.b16 %v5669_v54  ;;  %v6526_v18 = vunpack.c.l.b16 %v14158_v6  ;;  %v16559_v6 = vld [vmem:[#allocation27_spill] sm:$0xff]  ;;  %v16560_v22 = vld [vmem:[#allocation29_spill] sm:$0xff] }
 0x2cc   : > { %5384 = vst [vmem:[#allocation3 + $0x5c] sm:$0x1] %v5383_v61  ;;  %v5133_v47 = vshrl.u32 %v4995_v55, 16  ;;  %v4778_v14 = vadd.f32 %v4720_v15, %v4380_v42  ;;  %6266 = vmatmul.bf16.vlgmr.msrb.gmra.mxu2 %v11667_v56  ;;  %v5926_v7 = vunpack.c.l.b16 %v5679_v5  ;;  %v4903_v0 = vsel %vm13546_vm7, 0, %v4902_v52  ;;  %v16561_v61 = vld [vmem:[#allocation26_spill] sm:$0xff] }
 0x2cd   : > { %v5136_v44 = vshll.u32 %v4995_v55, 16  ;;  %v6527_v1 = vunpack.c.l.b16 %v6408_v29  ;;  %4904 = vst [vmem:[#allocation3 + $0x78] sm:$0x1] %v4903_v0  ;;  %v11100_v15 = vrot.slane %v14171_v34, 9  ;;  %v14187_v41 = vrot.slane %v6411_v35, 4 }
 0x2ce   : > { %v14181_v9 = vrot.slane %v5133_v47, 7  ;;  %v4814_v16 = vadd.f32 %v14076_v48, %v4778_v14  ;;  %v11101_v58 = vrot.slane %v6350_v39, 9  ;;  %v6418_v12 = vrot.slane %v13913_v45, 5  ;;  %v5462_v38 = vld [vmem:[#allocation3 + $0x54] sm:$0xf] }
 0x2cf   : > { %v3671_v62 = vpop.f32.mrf.mxu2  ;;  %v5951_v17 = vpack.c.b16 %v5926_v7, %v5925_v37  ;;  %v6414_v43 = vrot.slane %v13857_v11, 5  ;;  %v6421_v56 = vrot.slane %v13918_v33, 5  ;;  %v3441_v55 = vadd.f32 %v16561_v61, %v16560_v22 }
 0x2d0   : > { %v5138_v63 = vor.u32 %v5136_v44, %v14181_v9  ;;  %v4846_v4 = vmax.f32 %v4814_v16, 0.0  ;;  %v3727_v20 = vadd.f32 %v3671_v62, %v16559_v6  ;;  %v6419_v49 = vsel %vm12655_vm2, %v11101_v58, %v6418_v12  ;;  %v4725_v3 = vpop.f32.mrf.mxu0  ;;  %v14200_v8 = vpop.f32.mrf.mxu3 }
 0x2d1   : > { %v6420_v30 = vrot.slane %v6418_v12, 4  ;;  %v5139_v54 = vrot.slane %v14181_v9, 4  ;;  %v6557_v42 = vpack.c.b16 %v6527_v1, %v6526_v18  ;;  %v5681_v14 = vshrl.u32 %v5462_v38, 16  ;;  %v4957_v1 = vld [vmem:[#allocation3 + $0x80] sm:$0x1] }
 0x2d2   : > { %v5386_v13 = vsel %vm13698_vm11, %v5138_v63, %v5385_v2  ;;  %v4996_v45 = vpack.c.bf16 %v4846_v4, %v4846_v4  ;;  %v4381_v31 = vadd.f32 %v14117_v59, %v3727_v20  ;;  %v14204_v5 = vld [vmem:[#allocation3 + $0x58] sm:$0xf]  ;;  %v6530_v7 = vunpack.c.l.b16 %v6419_v49  ;;  %v5389_v2 = vld [vmem:[#allocation3 + $0x68] sm:$0x1] }
 0x2d3   : > { %5387 = vst [vmem:[#allocation3 + $0x60] sm:$0xf] %v5386_v13  ;;  %v6422_v33 = vsel %vm12655_vm2, %v6420_v30, %v6421_v56  ;;  %v14208_v47 = vld [vmem:[#allocation3 + $0x5c] sm:$0x1]  ;;  %v5684_v59 = vshll.u32 %v5462_v38, 16  ;;  %v5690_v52 = vshll.u32 %v14204_v5, 16 }
 0x2d4   : > { %v5141_v29 = vshrl.u32 %v4996_v45, 16  ;;  %v4779_v39 = vadd.f32 %v4723_v46, %v4381_v31  ;;  %6063 = vmatmul.bf16.gmra.mxu1 %v5951_v17  ;;  %v5694_v37 = vshrl.u32 %v14204_v5, 16  ;;  %v5700_v18 = vshll.u32 %v14208_v47, 16  ;;  %v11668_v38 = vld [vmem:[#allocation3 + $0xc] sm:$0xff] }
 0x2d5   : > { %v5144_v9 = vshll.u32 %v4996_v45, 16  ;;  %v5683_v16 = vrot.slane %v5681_v14, 4  ;;  %v5686_v62 = vrot.slane %v5684_v59, 5  ;;  %v5692_v58 = vrot.slane %v5690_v52, 5 }
 0x2d6   : > { %v5143_v0 = vrot.slane %v5141_v29, 7  ;;  %v4815_v44 = vadd.f32 %v14076_v48, %v4779_v39  ;;  %v5696_v12 = vrot.slane %v5694_v37, 4  ;;  %v5702_v63 = vrot.slane %v5700_v18, 5  ;;  %v11708_v39 = vld [vmem:[#allocation3 + $0x18] sm:$0xff]  ;;  %v4905_v18 = vld [vmem:[#allocation3 + $0x84] sm:$0x1] }
 0x2d7   : > { %6649 = vmatmul.bf16.gmra.mxu3 %v6557_v42  ;;  %v3673_v46 = vpop.f32.mrf.mxu2  ;;  %v5687_v49 = vor.u32 %v5686_v62, %v5683_v16  ;;  %v4958_v56 = vsel %vm13572_vm3, 0, %v4957_v1  ;;  %v6531_v13 = vunpack.c.l.b16 %v6422_v33  ;;  %v4906_v19 = vsel %vm13546_vm7, 0, %v4905_v18 }
 0x2d8   : > { %v5146_v4 = vor.u32 %v5144_v9, %v5143_v0  ;;  %v5148_v6 = vrot.slane %v5143_v0, 4  ;;  %v4847_v20 = vmax.f32 %v4815_v44, 0.0  ;;  %v3728_v17 = vadd.f32 %v3673_v46, %v3441_v55  ;;  %v4728_v61 = vpop.f32.mrf.mxu0  ;;  %v14221_v29 = vpop.f32.mrf.mxu3  ;;  %4959 = vst [vmem:[#allocation3 + $0x80] sm:$0x1] %v4958_v56  ;;  %v6351_v55 = vld [vmem:[#allocation3 + $0x30] sm:$0xe] }
 0x2d9   : > { %v5697_v30 = vor.u32 %v5696_v12, %v5692_v58  ;;  %v5688_v14 = vrot.slane %v5687_v49, 4  ;;  %v14223_v33 = vpack.c.b16 %v6531_v13, %v6530_v7  ;;  %v6415_v7 = vsel %vm12655_vm2, %v14187_v41, %v6414_v43  ;;  %4907 = vst [vmem:[#allocation3 + $0x84] sm:$0x1] %v4906_v19  ;;  %v14246_v41 = vld [vmem:[#allocation3 + $0x3c] sm:$0xe] }
 0x2da   : > { %v5147_v45 = vsel %vm12121_vm8, %v5139_v54, %v5146_v4  ;;  %v5390_v31 = vsel %vm13546_vm7, %v5148_v6, %v5389_v2  ;;  %v4997_v22 = vpack.c.bf16 %v4847_v20, %v4847_v20  ;;  %v4382_v42 = vadd.f32 %v14139_v60, %v3728_v17  ;;  %v5392_v43 = vld [vmem:[#allocation3 + $0x6c] sm:$0xf] }
 0x2db   : > { %5388 = vst [vmem:[#allocation3 + $0x64] sm:$0xf] %v5147_v45  ;;  %v5698_v59 = vrot.slane %v5697_v30, 4  ;;  %v6425_v54 = vrot.slane %v14010_v57, 5  ;;  %v6412_v60 = vsel %vm12655_vm2, %v11100_v15, %v6411_v35  ;;  %6963 = vmatmul.bf16.gmra.mxu0 %v11708_v39  ;;  %v5693_v57 = vsel %vm12199_vm13, %v5688_v14, %v5692_v58  ;;  %v16562_v58 = vld [vmem:[#allocation11_spill] sm:$0xff] }
 0x2dc   : > { %5391 = vst [vmem:[#allocation3 + $0x68] sm:$0x1] %v5390_v31  ;;  %v5150_v52 = vshrl.u32 %v4997_v22, 16  ;;  %v4780_v37 = vadd.f32 %v4725_v3, %v4382_v42  ;;  %6271 = vmatmul.bf16.gmra.mxu2 %v11668_v38  ;;  %v11102_v34 = vrot.slane %v6351_v55, 9  ;;  %v5153_v35 = vshll.u32 %v4997_v22, 16  ;;  %v16563_v31 = vld [vmem:[#allocation30_spill] sm:$0xff]  ;;  %v14263_v38 = vpop.f32.mrf.mxu1 }
 0x2dd   : > { %v5703_v3 = vsel %vm12199_vm13, %v5698_v59, %v5702_v63  ;;  %v5927_v44 = vunpack.c.l.b16 %v5693_v57  ;;  %v6529_v16 = vunpack.c.l.b16 %v6415_v7  ;;  %v6427_v1 = vrot.slane %v6425_v54, 4  ;;  %v16564_v22 = vld [vmem:[#allocation28_spill] sm:$0xff]  ;;  %v5464_v39 = vld [vmem:[#allocation3 + $0x60] sm:$0xf] }
 0x2de   : > { %v14243_v0 = vrot.slane %v5150_v52, 7  ;;  %v4816_v11 = vadd.f32 %v14076_v48, %v4780_v37  ;;  %v5928_v15 = vunpack.c.l.b16 %v5703_v3  ;;  %v6428_v2 = vrot.slane %v14021_v53, 5  ;;  %v11734_v7 = vld [vmem:[%s16476_s3 + $0x118] sm:$0xff] }
 0x2df   : > { %v3676_v9 = vpop.f32.mrf.mxu2  ;;  %v6426_v63 = vsel %vm12655_vm2, %v11102_v34, %v6425_v54  ;;  %v6528_v6 = vunpack.c.l.b16 %v6412_v60  ;;  %v11103_v17 = vrot.slane %v14246_v41, 9  ;;  %v3443_v42 = vadd.f32 %v16564_v22, %v16563_v31  ;;  %7636 = vmatpush.bf16.msrb.mxu1 %v11734_v7  ;;  %v11669_v22 = vld [vmem:[#allocation3 + $0x18] sm:$0xff] }
 0x2e0   : > { %v5155_v46 = vor.u32 %v5153_v35, %v14243_v0  ;;  %v4848_v62 = vmax.f32 %v4816_v11, 0.0  ;;  %v3729_v12 = vadd.f32 %v3676_v9, %v16562_v58  ;;  %v5952_v4 = vpack.c.b16 %v5928_v15, %v5927_v44  ;;  %v4730_v53 = vpop.f32.mrf.mxu0  ;;  %v14259_v13 = vpop.f32.mrf.mxu3  ;;  %v5396_v15 = vld [vmem:[#allocation3 + $0x74] sm:$0x1] }
 0x2e1   : > { %v6429_v20 = vsel %vm12655_vm2, %v6427_v1, %v6428_v2  ;;  %v6558_v55 = vpack.c.b16 %v6529_v16, %v6528_v6  ;;  %v6532_v59 = vunpack.c.l.b16 %v6426_v63  ;;  %v5156_v54 = vrot.slane %v14243_v0, 4 }
 0x2e2   : > { %v5393_v49 = vsel %vm13698_vm11, %v5155_v46, %v5392_v43  ;;  %v4998_v30 = vpack.c.bf16 %v4848_v62, %v4848_v62  ;;  %v4383_v56 = vadd.f32 %v14169_v36, %v3729_v12  ;;  %v6533_v45 = vunpack.c.l.b16 %v6429_v20  ;;  %v14265_v14 = vld [vmem:[#allocation3 + $0x64] sm:$0xf] }
 0x2e3   : > { %5394 = vst [vmem:[#allocation3 + $0x6c] sm:$0xf] %v5393_v49  ;;  %v14268_v60 = vld [vmem:[#allocation3 + $0x68] sm:$0x1]  ;;  %v5705_v36 = vshrl.u32 %v5464_v39, 16  ;;  %v5708_v57 = vshll.u32 %v5464_v39, 16 }
 0x2e4   : > { %v5158_v52 = vshrl.u32 %v4998_v30, 16  ;;  %v4781_v37 = vadd.f32 %v4728_v61, %v4383_v56  ;;  %v5161_v18 = vshll.u32 %v4998_v30, 16  ;;  %6068 = vmatmul.bf16.gmra.mxu1 %v5952_v4  ;;  %v5714_v3 = vshll.u32 %v14265_v14, 16  ;;  %v4960_v61 = vld [vmem:[#allocation3 + $0x8c] sm:$0x1] }
 0x2e5   : > { %v5718_v19 = vshrl.u32 %v14265_v14, 16  ;;  %v5707_v0 = vrot.slane %v5705_v36, 4  ;;  %v14276_v11 = vpack.c.b16 %v6533_v45, %v6532_v59  ;;  %v5710_v9 = vrot.slane %v5708_v57, 5  ;;  %v11709_v45 = vld [vmem:[#allocation3 + $0x24] sm:$0xff]  ;;  %v4908_v36 = vld [vmem:[#allocation3 + $0x90] sm:$0x1] }
 0x2e6   : > { %v5160_v34 = vrot.slane %v5158_v52, 7  ;;  %v4817_v35 = vadd.f32 %v14076_v48, %v4781_v37  ;;  %v5716_v44 = vrot.slane %v5714_v3, 5  ;;  %v5724_v1 = vshll.u32 %v14268_v60, 16 }
 0x2e7   : > { %6654 = vmatmul.bf16.gmra.mxu3 %v6558_v55  ;;  %v3678_v43 = vpop.f32.mrf.mxu2  ;;  %v5720_v16 = vrot.slane %v5718_v19, 4  ;;  %v5711_v12 = vor.u32 %v5710_v9, %v5707_v0  ;;  %v4961_v4 = vsel %vm13572_vm3, 0, %v4960_v61  ;;  %v6432_v6 = vrot.slane %v14099_v40, 5  ;;  %v14289_v55 = vpop.f32.mrf.mxu1  ;;  %v16565_v9 = vld [vmem:[#allocation13_spill] sm:$0xff] }
 0x2e8   : > { %v5163_v2 = vor.u32 %v5161_v18, %v5160_v34  ;;  %v5165_v46 = vrot.slane %v5160_v34, 4  ;;  %v4849_v62 = vmax.f32 %v4817_v35, 0.0  ;;  %v3730_v58 = vadd.f32 %v3678_v43, %v3443_v42  ;;  %v4733_v56 = vpop.f32.mrf.mxu0  ;;  %v14287_v42 = vpop.f32.mrf.mxu3  ;;  %4962 = vst [vmem:[#allocation3 + $0x8c] sm:$0x1] %v4961_v4  ;;  %v5399_v35 = vld [vmem:[#allocation3 + $0x78] sm:$0xf] }
 0x2e9   : > { %v5721_v63 = vor.u32 %v5720_v16, %v5716_v44  ;;  %v5712_v39 = vrot.slane %v5711_v12, 4  ;;  %v5726_v59 = vrot.slane %v5724_v1, 5  ;;  %v6434_v52 = vrot.slane %v6432_v6, 4  ;;  %v16567_v4 = vld [vmem:[#allocation12_spill] sm:$0xff] }
 0x2ea   : > { %v5164_v20 = vsel %vm12121_vm8, %v5156_v54, %v5163_v2  ;;  %v5397_v49 = vsel %vm13546_vm7, %v5165_v46, %v5396_v15  ;;  %v4999_v30 = vpack.c.bf16 %v4849_v62, %v4849_v62  ;;  %v4384_v31 = vadd.f32 %v14200_v8, %v3730_v58 }
 0x2eb   : > { %5395 = vst [vmem:[#allocation3 + $0x70] sm:$0xf] %v5164_v20  ;;  %v5722_v40 = vrot.slane %v5721_v63, 4  ;;  %v6433_v8 = vsel %vm12655_vm2, %v11103_v17, %v6432_v6  ;;  %6968 = vmatmul.bf16.gmra.mxu0 %v11709_v45  ;;  %v5717_v7 = vsel %vm12199_vm13, %v5712_v39, %v5716_v44  ;;  %v4909_v57 = vsel %vm13546_vm7, 0, %v4908_v36  ;;  %v16566_v63 = vld [vmem:[#allocation14_spill] sm:$0xff] }
 0x2ec   : > { %5398 = vst [vmem:[#allocation3 + $0x74] sm:$0x1] %v5397_v49  ;;  %v5167_v54 = vshrl.u32 %v4999_v30, 16  ;;  %v4782_v37 = vadd.f32 %v4730_v53, %v4384_v31  ;;  %6276 = vmatmul.bf16.gmra.mxu2 %v11669_v22  ;;  %v6435_v3 = vrot.slane %v14102_v25, 5  ;;  %v5170_v19 = vshll.u32 %v4999_v30, 16 }
 0x2ed   : > { %v5727_v18 = vsel %vm12199_vm13, %v5722_v40, %v5726_v59  ;;  %4910 = vst [vmem:[#allocation3 + $0x90] sm:$0x1] %v4909_v57  ;;  %v5929_v0 = vunpack.c.l.b16 %v5717_v7  ;;  %v6534_v1 = vunpack.c.l.b16 %v6433_v8  ;;  %v6353_v25 = vld [vmem:[#allocation3 + $0x48] sm:$0xe]  ;;  %v3445_v6 = vadd.f32 %v16567_v4, %v16566_v63  ;;  %v5466_v20 = vld [vmem:[#allocation3 + $0x6c] sm:$0xf] }
 0x2ee   : > { %v5169_v53 = vrot.slane %v5167_v54, 7  ;;  %v4818_v34 = vadd.f32 %v14076_v48, %v4782_v37  ;;  %v5930_v41 = vunpack.c.l.b16 %v5727_v18  ;;  %v6436_v61 = vsel %vm12655_vm2, %v6434_v52, %v6435_v3  ;;  %v4963_v57 = vld [vmem:[#allocation3 + $0x98] sm:$0x1]  ;;  %v5403_v3 = vld [vmem:[#allocation3 + $0x80] sm:$0x1] }
 0x2ef   : > { %v3681_v17 = vpop.f32.mrf.mxu2  ;;  %v6535_v2 = vunpack.c.l.b16 %v6436_v61  ;;  %v5729_v40 = vshrl.u32 %v5466_v20, 16  ;;  %v11104_v59 = vrot.slane %v6353_v25, 9  ;;  %v14319_v54 = vpop.f32.mrf.mxu1  ;;  %vm10342_vm4 = vcmask 1041409  }
 0x2f0   : > { %v5172_v15 = vor.u32 %v5170_v19, %v5169_v53  ;;  %v4850_v43 = vmax.f32 %v4818_v34, 0.0  ;;  %v3731_v44 = vadd.f32 %v3681_v17, %v16565_v9  ;;  %v5953_v16 = vpack.c.b16 %v5930_v41, %v5929_v0  ;;  %v4735_v58 = vpop.f32.mrf.mxu0  ;;  %v14315_v22 = vpop.f32.mrf.mxu3 }
 0x2f1   : > { %v14313_v30 = vpack.c.b16 %v6535_v2, %v6534_v1  ;;  %v5173_v52 = vrot.slane %v5169_v53, 4  ;;  %vm10346_vm6 = vcmask 1043459   ;;  %vm10350_vm10 = vcmask 1045509  }
 0x2f2   : > { %v5400_v46 = vsel %vm13698_vm11, %v5172_v15, %v5399_v35  ;;  %v5000_v62 = vpack.c.bf16 %v4850_v43, %v4850_v43  ;;  %v4385_v12 = vadd.f32 %v14221_v29, %v3731_v44  ;;  %v14311_v49 = vld [vmem:[#allocation3 + $0x70] sm:$0xf]  ;;  %v5732_v29 = vshll.u32 %v5466_v20, 16 }
 0x2f3   : > { %5401 = vst [vmem:[#allocation3 + $0x78] sm:$0xf] %v5400_v46  ;;  %v14317_v39 = vld [vmem:[#allocation3 + $0x74] sm:$0x1]  ;;  %v5738_v37 = vshll.u32 %v14311_v49, 16  ;;  %v5742_v36 = vshrl.u32 %v14311_v49, 16 }
 0x2f4   : > { %v5175_v45 = vshrl.u32 %v5000_v62, 16  ;;  %v4783_v31 = vadd.f32 %v4733_v56, %v4385_v12  ;;  %6073 = vmatmul.bf16.gmra.mxu1 %v5953_v16  ;;  %v5178_v7 = vshll.u32 %v5000_v62, 16  ;;  %v5731_v56 = vrot.slane %v5729_v40, 4  ;;  %v11710_v46 = vld [vmem:[#allocation3 + $0x30] sm:$0xff]  ;;  %v11670_v12 = vld [vmem:[#allocation3 + $0x24] sm:$0xff] }
 0x2f5   : > { %v5734_v34 = vrot.slane %v5732_v29, 5  ;;  %v5740_v53 = vrot.slane %v5738_v37, 5  ;;  %v5744_v41 = vrot.slane %v5742_v36, 4  ;;  %v5748_v35 = vshll.u32 %v14317_v39, 16 }
 0x2f6   : > { %v5177_v8 = vrot.slane %v5175_v45, 7  ;;  %v4819_v18 = vadd.f32 %v14076_v48, %v4783_v31  ;;  %v4964_v44 = vsel %vm13572_vm3, 0, %v4963_v57  ;;  %v6439_v16 = vrot.slane %v14141_v51, 5  ;;  %v4911_v31 = vld [vmem:[#allocation3 + $0x9c] sm:$0x1] }
 0x2f7   : > { %6659 = vmatmul.bf16.gmra.mxu3 %v14223_v33  ;;  %v3683_v19 = vpop.f32.mrf.mxu2  ;;  %v5735_v43 = vor.u32 %v5734_v34, %v5731_v56  ;;  %v5745_v9 = vor.u32 %v5744_v41, %v5740_v53  ;;  %4965 = vst [vmem:[#allocation3 + $0x98] sm:$0x1] %v4964_v44  ;;  %v4912_v37 = vsel %vm13546_vm7, 0, %v4911_v31  ;;  %v6442_v36 = vrot.slane %v14144_v50, 5  ;;  %v5406_v56 = vld [vmem:[#allocation3 + $0x84] sm:$0xf] }
 0x2f8   : > { %v5180_v17 = vor.u32 %v5178_v7, %v5177_v8  ;;  %v5182_v0 = vrot.slane %v5177_v8, 4  ;;  %v4851_v61 = vmax.f32 %v4819_v18, 0.0  ;;  %v3732_v15 = vadd.f32 %v3683_v19, %v3445_v6  ;;  %v4738_v25 = vpop.f32.mrf.mxu0  ;;  %4913 = vst [vmem:[#allocation3 + $0x9c] sm:$0x1] %v4912_v37  ;;  %v16568_v41 = vld [vmem:[#allocation15_spill] sm:$0xff] }
 0x2f9   : > { %v5736_v63 = vrot.slane %v5735_v43, 4  ;;  %v5746_v4 = vrot.slane %v5745_v9, 4  ;;  %v5750_v6 = vrot.slane %v5748_v35, 5  ;;  %v6441_v20 = vrot.slane %v6439_v16, 4 }
 0x2fa   : > { %v5181_v33 = vsel %vm12121_vm8, %v5173_v52, %v5180_v17  ;;  %v5404_v1 = vsel %vm13546_vm7, %v5182_v0, %v5403_v3  ;;  %v5001_v2 = vpack.c.bf16 %v4851_v61, %v4851_v61  ;;  %v4386_v62 = vadd.f32 %v14259_v13, %v3732_v15  ;;  %v14351_v61 = vld [vmem:[#allocation3 + $0x54] sm:$0xe] }
 0x2fb   : > { %5402 = vst [vmem:[#allocation3 + $0x7c] sm:$0xf] %v5181_v33  ;;  %v6440_v40 = vsel %vm12655_vm2, %v11104_v59, %v6439_v16  ;;  %6973 = vmatmul.bf16.gmra.mxu0 %v11710_v46  ;;  %v5741_v13 = vsel %vm12199_vm13, %v5736_v63, %v5740_v53  ;;  %v5751_v29 = vsel %vm12199_vm13, %v5746_v4, %v5750_v6  ;;  %v14346_v59 = vpop.f32.mrf.mxu3  ;;  %v16569_v16 = vld [vmem:[#allocation16_spill] sm:$0xff]  ;;  %v16570_v33 = vld [vmem:[#allocation31_spill] sm:$0xff] }
 0x2fc   : > { %5405 = vst [vmem:[#allocation3 + $0x80] sm:$0x1] %v5404_v1  ;;  %v5184_v51 = vshrl.u32 %v5001_v2, 16  ;;  %v4784_v45 = vadd.f32 %v4735_v58, %v4386_v62  ;;  %6281 = vmatmul.bf16.gmra.mxu2 %v11670_v12  ;;  %v5187_v8 = vshll.u32 %v5001_v2, 16  ;;  %v5932_v18 = vunpack.c.l.b16 %v5751_v29  ;;  %v5468_v2 = vld [vmem:[#allocation3 + $0x78] sm:$0xf] }
 0x2fd   : > { %v14336_v52 = vpop.f32.mrf.mxu1  ;;  %v5931_v3 = vunpack.c.l.b16 %v5741_v13  ;;  %v6443_v19 = vsel %vm12655_vm2, %v6441_v20, %v6442_v36  ;;  %v6536_v50 = vunpack.c.l.b16 %v6440_v40  ;;  %v3447_v1 = vadd.f32 %v16570_v33, %v16569_v16  ;;  %v11733_v20 = vld [vmem:[%s16476_s3 + $0x110] sm:$0xff]  ;;  %v11671_v33 = vld [vmem:[#allocation3 + $0x30] sm:$0xff] }
 0x2fe   : > { %v5186_v58 = vrot.slane %v5184_v51, 7  ;;  %v4820_v7 = vadd.f32 %v14076_v48, %v4784_v45  ;;  %v6537_v0 = vunpack.c.l.b16 %v6443_v19  ;;  %v5753_v6 = vshrl.u32 %v5468_v2, 16  ;;  %7637 = vmatpush.bf16.msrb.mxu1 %v11733_v20  ;;  %v4914_v20 = vld [vmem:[#allocation3 + $0xa8] sm:$0x1] }
 0x2ff   : > { %v3686_v57 = vpop.f32.mrf.mxu2  ;;  %v5954_v17 = vpack.c.b16 %v5932_v18, %v5931_v3  ;;  %v5756_v31 = vshll.u32 %v5468_v2, 16 }
 0x300   : > { %v5189_v34 = vor.u32 %v5187_v8, %v5186_v58  ;;  %v4852_v53 = vmax.f32 %v4820_v7, 0.0  ;;  %v3733_v35 = vadd.f32 %v3686_v57, %v16568_v41  ;;  %v4740_v9 = vpop.f32.mrf.mxu0  ;;  %v14360_v62 = vpack.c.b16 %v6537_v0, %v6536_v50  ;;  %v4966_v8 = vld [vmem:[#allocation3 + $0xa4] sm:$0x1]  ;;  %v5410_v7 = vld [vmem:[#allocation3 + $0x8c] sm:$0x1] }
 0x301   : > { %v5190_v51 = vrot.slane %v5186_v58, 4  ;;  %v5755_v36 = vrot.slane %v5753_v6, 4  ;;  %v5758_v58 = vrot.slane %v5756_v31, 5  ;;  %v4967_v50 = vsel %vm13572_vm3, 0, %v4966_v8  ;;  %v5413_v8 = vld [vmem:[#allocation3 + $0x90] sm:$0xf] }
 0x302   : > { %v5407_v15 = vsel %vm13698_vm11, %v5189_v34, %v5406_v56  ;;  %v5002_v43 = vpack.c.bf16 %v4852_v53, %v4852_v53  ;;  %v4387_v44 = vadd.f32 %v14287_v42, %v3733_v35  ;;  %v14358_v46 = vld [vmem:[#allocation3 + $0x7c] sm:$0xf]  ;;  %v11105_v42 = vrot.slane %v14351_v61, 9  ;;  %4968 = vst [vmem:[#allocation3 + $0xa4] sm:$0x1] %v4967_v50 }
 0x303   : > { %5408 = vst [vmem:[#allocation3 + $0x84] sm:$0xf] %v5407_v15  ;;  %v14362_v4 = vld [vmem:[#allocation3 + $0x80] sm:$0x1]  ;;  %v5762_v40 = vshll.u32 %v14358_v46, 16  ;;  %v5766_v13 = vshrl.u32 %v14358_v46, 16  ;;  %v14375_v35 = vpop.f32.mrf.mxu3 }
 0x304   : > { %v5192_v12 = vshrl.u32 %v5002_v43, 16  ;;  %v4785_v63 = vadd.f32 %v4738_v25, %v4387_v44  ;;  %6078 = vmatmul.bf16.gmra.mxu1 %v5954_v17  ;;  %v5195_v25 = vshll.u32 %v5002_v43, 16  ;;  %v5772_v3 = vshll.u32 %v14362_v4, 16  ;;  %v11711_v44 = vld [vmem:[#allocation3 + $0x3c] sm:$0xff] }
 0x305   : > { %v14368_v45 = vpop.f32.mrf.mxu1  ;;  %v5764_v56 = vrot.slane %v5762_v40, 5  ;;  %v5768_v57 = vrot.slane %v5766_v13, 4  ;;  %v5759_v17 = vor.u32 %v5758_v58, %v5755_v36  ;;  %v6446_v0 = vrot.slane %v14204_v5, 5 }
 0x306   : > { %v5194_v29 = vrot.slane %v5192_v12, 7  ;;  %v4821_v37 = vadd.f32 %v14076_v48, %v4785_v63  ;;  %v5774_v12 = vrot.slane %v5772_v3, 5  ;;  %v4915_v13 = vsel %vm13546_vm7, 0, %v4914_v20 }
 0x307   : > { %6664 = vmatmul.bf16.gmra.mxu3 %v14276_v11  ;;  %v3688_v18 = vpop.f32.mrf.mxu2  ;;  %v5769_v48 = vor.u32 %v5768_v57, %v5764_v56  ;;  %v6448_v63 = vrot.slane %v6446_v0, 4  ;;  %4916 = vst [vmem:[#allocation3 + $0xa8] sm:$0x1] %v4915_v13 }
 0x308   : > { %v5197_v19 = vor.u32 %v5195_v25, %v5194_v29  ;;  %v5199_v34 = vrot.slane %v5194_v29, 4  ;;  %v4853_v53 = vmax.f32 %v4821_v37, 0.0  ;;  %v3734_v41 = vadd.f32 %v3688_v18, %v3447_v1  ;;  %v4743_v43 = vpop.f32.mrf.mxu0 }
 0x309   : > { %v5760_v1 = vrot.slane %v5759_v17, 4  ;;  %v5770_v2 = vrot.slane %v5769_v48, 4  ;;  %v6449_v29 = vrot.slane %v14208_v47, 5  ;;  %v16571_v47 = vld [vmem:[#allocation32_spill] sm:$0xff] }
 0x30a   : > { %v5198_v11 = vsel %vm12121_vm8, %v5190_v51, %v5197_v19  ;;  %v5411_v61 = vsel %vm13546_vm7, %v5199_v34, %v5410_v7  ;;  %v5003_v15 = vpack.c.bf16 %v4853_v53, %v4853_v53  ;;  %v4388_v16 = vadd.f32 %v14315_v22, %v3734_v41  ;;  %v14405_v41 = vld [vmem:[#allocation3 + $0x60] sm:$0xe] }
 0x30b   : > { %5409 = vst [vmem:[#allocation3 + $0x88] sm:$0xf] %v5198_v11  ;;  %v6447_v51 = vsel %vm12655_vm2, %v11105_v42, %v6446_v0  ;;  %6978 = vmatmul.bf16.gmra.mxu0 %v11711_v44  ;;  %v5765_v22 = vsel %vm12199_vm13, %v5760_v1, %v5764_v56  ;;  %v5775_v40 = vsel %vm12199_vm13, %v5770_v2, %v5774_v12  ;;  %v14399_v42 = vld [vmem:[%s16475_s2] ss:$0 sm:$0xff]  ;;  %v14410_v11 = vpop.f32.mrf.mxu3 }
 0x30c   : > { %5412 = vst [vmem:[#allocation3 + $0x8c] sm:$0x1] %v5411_v61  ;;  %v5201_v5 = vshrl.u32 %v5003_v15, 16  ;;  %v4786_v6 = vadd.f32 %v4740_v9, %v4388_v16  ;;  %6286 = vmatmul.bf16.gmra.mxu2 %v11671_v33  ;;  %v5204_v25 = vshll.u32 %v5003_v15, 16  ;;  %v5934_v36 = vunpack.c.l.b16 %v5775_v40  ;;  %v16572_v61 = vld [vmem:[#allocation18_spill] sm:$0xff]  ;;  %v16573_v15 = vld [vmem:[#allocation17_spill] sm:$0xff] }
 0x30d   : > { %v14387_v31 = vpop.f32.mrf.mxu1  ;;  %v5933_v18 = vunpack.c.l.b16 %v5765_v22  ;;  %v6450_v58 = vsel %vm12655_vm2, %v6448_v63, %v6449_v29  ;;  %v6538_v34 = vunpack.c.l.b16 %v6447_v51  ;;  %v3449_v44 = vadd.f32 %v16573_v15, %v16572_v61  ;;  %v5470_v16 = vld [vmem:[#allocation3 + $0x84] sm:$0xf]  ;;  %v11712_v61 = vld [vmem:[#allocation3 + $0x48] sm:$0xff] }
 0x30e   : > { %v5203_v9 = vrot.slane %v5201_v5, 7  ;;  %v4822_v37 = vadd.f32 %v14399_v42, %v4786_v6  ;;  %v6539_v53 = vunpack.c.l.b16 %v6450_v58  ;;  %v5777_v5 = vshrl.u32 %v5470_v16, 16 }
 0x30f   : > { %v3691_v7 = vpop.f32.mrf.mxu2  ;;  %v5955_v19 = vpack.c.b16 %v5934_v36, %v5933_v18  ;;  %v11106_v6 = vrot.slane %v14405_v41, 9  ;;  %v5780_v51 = vshll.u32 %v5470_v16, 16  ;;  %v5417_v36 = vld [vmem:[#allocation3 + $0x98] sm:$0x1]  ;;  %v6453_v41 = vrot.slane %v14265_v14, 5  ;;  %v11672_v16 = vld [vmem:[#allocation3 + $0x3c] sm:$0xff] }
 0x310   : > { %v5206_v56 = vor.u32 %v5204_v25, %v5203_v9  ;;  %v4854_v57 = vmax.f32 %v4822_v37, 0.0  ;;  %v3735_v3 = vadd.f32 %v3691_v7, %v16571_v47  ;;  %v4745_v50 = vpop.f32.mrf.mxu0  ;;  %v14416_v1 = vpack.c.b16 %v6539_v53, %v6538_v34 }
 0x311   : > { %v5207_v20 = vrot.slane %v5203_v9, 4  ;;  %v5779_v37 = vrot.slane %v5777_v5, 4  ;;  %v5782_v7 = vrot.slane %v5780_v51, 5  ;;  %v6455_v5 = vrot.slane %v6453_v41, 4 }
 0x312   : > { %v5414_v17 = vsel %vm13698_vm11, %v5206_v56, %v5413_v8  ;;  %v5004_v48 = vpack.c.bf16 %v4854_v57, %v4854_v57  ;;  %v4389_v0 = vadd.f32 %v14346_v59, %v3735_v3  ;;  %v14414_v33 = vld [vmem:[#allocation3 + $0x88] sm:$0xf] }
 0x313   : > { %5415 = vst [vmem:[#allocation3 + $0x90] sm:$0xf] %v5414_v17  ;;  %v14418_v63 = vld [vmem:[#allocation3 + $0x8c] sm:$0x1]  ;;  %v5786_v22 = vshll.u32 %v14414_v33, 16  ;;  %v5790_v40 = vshrl.u32 %v14414_v33, 16 }
 0x314   : > { %v5209_v2 = vshrl.u32 %v5004_v48, 16  ;;  %v4787_v12 = vadd.f32 %v4743_v43, %v4389_v0  ;;  %6083 = vmatmul.bf16.gmra.mxu1 %v5955_v19  ;;  %v5212_v29 = vshll.u32 %v5004_v48, 16  ;;  %v4969_v43 = vld [vmem:[#allocation3 + $0xb0] sm:$0x1]  ;;  %v5796_v58 = vshll.u32 %v14418_v63, 16 }
 0x315   : > { %v14421_v59 = vpop.f32.mrf.mxu1  ;;  %v5788_v9 = vrot.slane %v5786_v22, 5  ;;  %v5792_v18 = vrot.slane %v5790_v40, 4  ;;  %v5783_v19 = vor.u32 %v5782_v7, %v5779_v37  ;;  %v4970_v53 = vsel %vm13572_vm3, 0, %v4969_v43  ;;  %v14436_v22 = vpop.f32.mrf.mxu3 }
 0x316   : > { %v5211_v13 = vrot.slane %v5209_v2, 7  ;;  %v4823_v25 = vadd.f32 %v14399_v42, %v4787_v12  ;;  %4971 = vst [vmem:[#allocation3 + $0xb0] sm:$0x1] %v4970_v53  ;;  %v5798_v12 = vrot.slane %v5796_v58, 5  ;;  %v6454_v40 = vsel %vm12655_vm2, %v11106_v6, %v6453_v41  ;;  %v5420_v6 = vld [vmem:[#allocation3 + $0x9c] sm:$0xf] }
 0x317   : > { %6669 = vmatmul.bf16.gmra.mxu3 %v14313_v30  ;;  %v3693_v8 = vpop.f32.mrf.mxu2  ;;  %v5793_v34 = vor.u32 %v5792_v18, %v5788_v9 }
 0x318   : > { %v5214_v56 = vor.u32 %v5212_v29, %v5211_v13  ;;  %v5216_v57 = vrot.slane %v5211_v13, 4  ;;  %v4855_v47 = vmax.f32 %v4823_v25, 0.0  ;;  %v3736_v3 = vadd.f32 %v3693_v8, %v3449_v44  ;;  %v4748_v0 = vpop.f32.mrf.mxu0 }
 0x319   : > { %v5784_v44 = vrot.slane %v5783_v19, 4  ;;  %v5794_v2 = vrot.slane %v5793_v34, 4  ;;  %v6540_v19 = vunpack.c.l.b16 %v6454_v40 }
 0x31a   : > { %v5215_v30 = vsel %vm12121_vm8, %v5207_v20, %v5214_v56  ;;  %v5418_v17 = vsel %vm13546_vm7, %v5216_v57, %v5417_v36  ;;  %v5005_v48 = vpack.c.bf16 %v4855_v47, %v4855_v47  ;;  %v4390_v15 = vadd.f32 %v14375_v35, %v3736_v3  ;;  %v4917_v20 = vld [vmem:[#allocation3 + $0xb4] sm:$0x1] }
 0x31b   : > { %5416 = vst [vmem:[#allocation3 + $0x94] sm:$0xf] %v5215_v30  ;;  %6983 = vmatmul.bf16.gmra.mxu0 %v11712_v61  ;;  %v5789_v35 = vsel %vm12199_vm13, %v5784_v44, %v5788_v9  ;;  %v5799_v29 = vsel %vm12199_vm13, %v5794_v2, %v5798_v12  ;;  %v4918_v25 = vsel %vm13546_vm7, 0, %v4917_v20  ;;  %v16574_v57 = vld [vmem:[#allocation33_spill] sm:$0xff]  ;;  %v16576_v61 = vld [vmem:[#allocation19_spill] sm:$0xff] }
 0x31c   : > { %5419 = vst [vmem:[#allocation3 + $0x98] sm:$0x1] %v5418_v17  ;;  %v5218_v14 = vshrl.u32 %v5005_v48, 16  ;;  %v4788_v51 = vadd.f32 %v4745_v50, %v4390_v15  ;;  %6291 = vmatmul.bf16.gmra.mxu2 %v11672_v16  ;;  %v6456_v50 = vrot.slane %v14268_v60, 5  ;;  %v5221_v43 = vshll.u32 %v5005_v48, 16  ;;  %v16575_v48 = vld [vmem:[#allocation20_spill] sm:$0xff] }
 0x31d   : > { %v14440_v13 = vpop.f32.mrf.mxu1  ;;  %v5936_v8 = vunpack.c.l.b16 %v5799_v29  ;;  %4919 = vst [vmem:[#allocation3 + $0xb4] sm:$0x1] %v4918_v25  ;;  %v5935_v18 = vunpack.c.l.b16 %v5789_v35  ;;  %v14453_v60 = vld [vmem:[#allocation3 + $0x6c] sm:$0xe]  ;;  %v3451_v15 = vadd.f32 %v16576_v61, %v16575_v48  ;;  %v5472_v16 = vld [vmem:[#allocation3 + $0x90] sm:$0xf] }
 0x31e   : > { %v5220_v37 = vrot.slane %v5218_v14, 7  ;;  %v4824_v36 = vadd.f32 %v14399_v42, %v4788_v51  ;;  %v6457_v9 = vsel %vm12655_vm2, %v6455_v5, %v6456_v50  ;;  %v5801_v51 = vshrl.u32 %v5472_v16, 16  ;;  %v11732_v20 = vld [vmem:[%s16476_s3 + $0x108] sm:$0xff] }
 0x31f   : > { %v3696_v7 = vpop.f32.mrf.mxu2  ;;  %v5956_v3 = vpack.c.b16 %v5936_v8, %v5935_v18  ;;  %v6541_v34 = vunpack.c.l.b16 %v6457_v9  ;;  %v5804_v29 = vshll.u32 %v5472_v16, 16  ;;  %7638 = vmatpush.bf16.msrb.mxu1 %v11732_v20  ;;  %v5424_v18 = vld [vmem:[#allocation3 + $0xa4] sm:$0x1] }
 0x320   : > { %v5223_v58 = vor.u32 %v5221_v43, %v5220_v37  ;;  %v4856_v56 = vmax.f32 %v4824_v36, 0.0  ;;  %v3737_v47 = vadd.f32 %v3696_v7, %v16574_v57  ;;  %v4750_v30 = vpop.f32.mrf.mxu0  ;;  %v5224_v40 = vrot.slane %v5220_v37, 4  ;;  %v14475_v8 = vpop.f32.mrf.mxu3  ;;  %v4972_v7 = vld [vmem:[#allocation3 + $0xbc] sm:$0x1] }
 0x321   : > { %v14462_v2 = vpack.c.b16 %v6541_v34, %v6540_v19  ;;  %v5806_v9 = vrot.slane %v5804_v29, 5 }
 0x322   : > { %v5421_v53 = vsel %vm13698_vm11, %v5223_v58, %v5420_v6  ;;  %v5006_v41 = vpack.c.bf16 %v4856_v56, %v4856_v56  ;;  %v4391_v17 = vadd.f32 %v14410_v11, %v3737_v47  ;;  %v14460_v44 = vld [vmem:[#allocation3 + $0x94] sm:$0xf]  ;;  %v11107_v11 = vrot.slane %v14453_v60, 9 }
 0x323   : > { %5422 = vst [vmem:[#allocation3 + $0x9c] sm:$0xf] %v5421_v53  ;;  %v14464_v14 = vld [vmem:[#allocation3 + $0x98] sm:$0x1]  ;;  %v5810_v25 = vshll.u32 %v14460_v44, 16  ;;  %v5814_v50 = vshrl.u32 %v14460_v44, 16 }
 0x324   : > { %v5226_v12 = vshrl.u32 %v5006_v41, 16  ;;  %v4789_v5 = vadd.f32 %v4748_v0, %v4391_v17  ;;  %6088 = vmatmul.bf16.gmra.mxu1 %v5956_v3  ;;  %v5229_v0 = vshll.u32 %v5006_v41, 16  ;;  %v5803_v6 = vrot.slane %v5801_v51, 4  ;;  %v11673_v51 = vld [vmem:[#allocation3 + $0x48] sm:$0xff] }
 0x325   : > { %v14470_v35 = vpop.f32.mrf.mxu1  ;;  %v5812_v58 = vrot.slane %v5810_v25, 5  ;;  %v5816_v56 = vrot.slane %v5814_v50, 4  ;;  %v5820_v57 = vshll.u32 %v14464_v14, 16  ;;  %v4973_v41 = vsel %vm13572_vm3, 0, %v4972_v7 }
 0x326   : > { %v5228_v43 = vrot.slane %v5226_v12, 7  ;;  %v4825_v36 = vadd.f32 %v14399_v42, %v4789_v5  ;;  %v5807_v60 = vor.u32 %v5806_v9, %v5803_v6  ;;  %v6460_v17 = vrot.slane %v14311_v49, 5  ;;  %v11713_v12 = vld [vmem:[#allocation3 + $0x54] sm:$0xff]  ;;  %4974 = vst [vmem:[#allocation3 + $0xbc] sm:$0x1] %v4973_v41 }
 0x327   : > { %6674 = vmatmul.bf16.gmra.mxu3 %v14360_v62  ;;  %v3698_v37 = vpop.f32.mrf.mxu2  ;;  %v5817_v53 = vor.u32 %v5816_v56, %v5812_v58  ;;  %v5822_v29 = vrot.slane %v5820_v57, 5  ;;  %v6463_v6 = vrot.slane %v14317_v39, 5  ;;  %v5427_v9 = vld [vmem:[#allocation3 + $0xa8] sm:$0xf] }
 0x328   : > { %v5231_v47 = vor.u32 %v5229_v0, %v5228_v43  ;;  %v5233_v3 = vrot.slane %v5228_v43, 4  ;;  %v4857_v19 = vmax.f32 %v4825_v36, 0.0  ;;  %v3738_v34 = vadd.f32 %v3698_v37, %v3451_v15  ;;  %v4753_v16 = vpop.f32.mrf.mxu0 }
 0x329   : > { %v5808_v15 = vrot.slane %v5807_v60, 4  ;;  %v5818_v20 = vrot.slane %v5817_v53, 4  ;;  %v6462_v25 = vrot.slane %v6460_v17, 4  ;;  %v6461_v43 = vsel %vm12655_vm2, %v11107_v11, %v6460_v17 }
 0x32a   : > { %v5232_v62 = vsel %vm12121_vm8, %v5224_v40, %v5231_v47  ;;  %v5425_v48 = vsel %vm13546_vm7, %v5233_v3, %v5424_v18  ;;  %v5007_v61 = vpack.c.bf16 %v4857_v19, %v4857_v19  ;;  %v4392_v5 = vadd.f32 %v14436_v22, %v3738_v34  ;;  %v4920_v40 = vld [vmem:[#allocation3 + $0xc0] sm:$0x1]  ;;  %v4357_v19 = vpop.f32.mrf.mxu3  ;;  %v16577_v34 = vld [vmem:[#allocation21_spill] sm:$0xff] }
 0x32b   : > { %5423 = vst [vmem:[#allocation3 + $0xa0] sm:$0xf] %v5232_v62  ;;  %6988 = vmatmul.bf16.gmra.mxu0 %v11713_v12  ;;  %v5813_v0 = vsel %vm12199_vm13, %v5808_v15, %v5812_v58  ;;  %v5823_v22 = vsel %vm12199_vm13, %v5818_v20, %v5822_v29  ;;  %v4921_v36 = vsel %vm13546_vm7, 0, %v4920_v40  ;;  %v6464_v58 = vsel %vm12655_vm2, %v6462_v25, %v6463_v6  ;;  %v5474_v12 = vld [vmem:[#allocation3 + $0x9c] sm:$0xf]  ;;  %v16578_v15 = vld [vmem:[#allocation35_spill] sm:$0xff] }
 0x32c   : > { %5426 = vst [vmem:[#allocation3 + $0xa4] sm:$0x1] %v5425_v48  ;;  %v5235_v49 = vshrl.u32 %v5007_v61, 16  ;;  %v4790_v50 = vadd.f32 %v4750_v30, %v4392_v5  ;;  %6296 = vmatmul.bf16.gmra.mxu2 %v11673_v51  ;;  %v5238_v18 = vshll.u32 %v5007_v61, 16  ;;  %v5938_v37 = vunpack.c.l.b16 %v5823_v22  ;;  %v16579_v20 = vld [vmem:[#allocation34_spill] sm:$0xff] }
 0x32d   : > { %4922 = vst [vmem:[#allocation3 + $0xc0] sm:$0x1] %v4921_v36  ;;  %v14497_v11 = vpop.f32.mrf.mxu1  ;;  %v5937_v57 = vunpack.c.l.b16 %v5813_v0  ;;  %v6542_v53 = vunpack.c.l.b16 %v6461_v43  ;;  %v6543_v41 = vunpack.c.l.b16 %v6464_v58  ;;  %v3453_v29 = vadd.f32 %v16579_v20, %v16578_v15 }
 0x32e   : > { %v5237_v7 = vrot.slane %v5235_v49, 7  ;;  %v4826_v30 = vadd.f32 %v14399_v42, %v4790_v50  ;;  %v5825_v40 = vshrl.u32 %v5474_v12, 16  ;;  %v5828_v0 = vshll.u32 %v5474_v12, 16 }
 0x32f   : > { %v3701_v56 = vpop.f32.mrf.mxu2  ;;  %v5957_v39 = vpack.c.b16 %v5938_v37, %v5937_v57  ;;  %v14507_v51 = vpack.c.b16 %v6543_v41, %v6542_v53  ;;  %v4975_v37 = vld [vmem:[#allocation3 + $0xc8] sm:$0x1] }
 0x330   : > { %v5240_v47 = vor.u32 %v5238_v18, %v5237_v7  ;;  %v4858_v3 = vmax.f32 %v4826_v30, 0.0  ;;  %v3739_v60 = vadd.f32 %v3701_v56, %v16577_v34  ;;  %v4755_v48 = vpop.f32.mrf.mxu0  ;;  %v5241_v43 = vrot.slane %v5237_v7, 4 }
 0x331   : > { %v5827_v30 = vrot.slane %v5825_v40, 4  ;;  %v5830_v56 = vrot.slane %v5828_v0, 5  ;;  %v11674_v40 = vld [vmem:[#allocation3 + $0x54] sm:$0xff] }
 0x332   : > { %v5428_v17 = vsel %vm13698_vm11, %v5240_v47, %v5427_v9  ;;  %v5008_v62 = vpack.c.bf16 %v4858_v3, %v4858_v3  ;;  %v4393_v61 = vadd.f32 %v14475_v8, %v3739_v60  ;;  %v14505_v5 = vld [vmem:[#allocation3 + $0xa0] sm:$0xf]  ;;  %v5431_v9 = vld [vmem:[#allocation3 + $0xb0] sm:$0x1] }
 0x333   : > { %5429 = vst [vmem:[#allocation3 + $0xa8] sm:$0xf] %v5428_v17  ;;  %v14511_v50 = vld [vmem:[#allocation3 + $0xa4] sm:$0x1]  ;;  %v5834_v22 = vshll.u32 %v14505_v5, 16  ;;  %v5838_v8 = vshrl.u32 %v14505_v5, 16  ;;  %v5831_v41 = vor.u32 %v5830_v56, %v5827_v30 }
 0x334   : > { %v5243_v25 = vshrl.u32 %v5008_v62, 16  ;;  %v4791_v49 = vadd.f32 %v4753_v16, %v4393_v61  ;;  %6093 = vmatmul.bf16.gmra.mxu1 %v5957_v39  ;;  %v5246_v6 = vshll.u32 %v5008_v62, 16  ;;  %v5844_v7 = vshll.u32 %v14511_v50, 16  ;;  %v6357_v39 = vld [vmem:[#allocation3 + $0x78] sm:$0xe] }
 0x335   : > { %v5836_v57 = vrot.slane %v5834_v22, 5  ;;  %v5840_v58 = vrot.slane %v5838_v8, 4  ;;  %v14518_v53 = vpop.f32.mrf.mxu1  ;;  %v4976_v62 = vsel %vm13572_vm3, 0, %v4975_v37  ;;  %v5832_v0 = vrot.slane %v5831_v41, 4 }
 0x336   : > { %v5245_v36 = vrot.slane %v5243_v25, 7  ;;  %v4827_v18 = vadd.f32 %v14399_v42, %v4791_v49  ;;  %4977 = vst [vmem:[#allocation3 + $0xc8] sm:$0x1] %v4976_v62  ;;  %v5846_v8 = vrot.slane %v5844_v7, 5 }
 0x337   : > { %6679 = vmatmul.bf16.gmra.mxu3 %v14416_v1  ;;  %v3703_v16 = vpop.f32.mrf.mxu2  ;;  %v5841_v17 = vor.u32 %v5840_v58, %v5836_v57  ;;  %v6467_v1 = vrot.slane %v14358_v46, 5  ;;  %v5837_v30 = vsel %vm12199_vm13, %v5832_v0, %v5836_v57  ;;  %v6470_v57 = vrot.slane %v14362_v4, 5 }
 0x338   : > { %v5248_v47 = vor.u32 %v5246_v6, %v5245_v36  ;;  %v5250_v3 = vrot.slane %v5245_v36, 4  ;;  %v4859_v34 = vmax.f32 %v4827_v18, 0.0  ;;  %v3740_v60 = vadd.f32 %v3703_v16, %v3453_v29  ;;  %v4758_v20 = vpop.f32.mrf.mxu0  ;;  %v11714_v29 = vld [vmem:[#allocation3 + $0x60] sm:$0xff]  ;;  %v11731_v16 = vld [vmem:[%s16476_s3 + $0x100] sm:$0xff] }
 0x339   : > { %v5842_v22 = vrot.slane %v5841_v17, 4  ;;  %v11108_v36 = vrot.slane %v6357_v39, 9  ;;  %v6469_v18 = vrot.slane %v6467_v1, 4  ;;  %7639 = vmatpush.bf16.msrb.mxu1 %v11731_v16 }
 0x33a   : > { %v5249_v61 = vsel %vm12121_vm8, %v5241_v43, %v5248_v47  ;;  %v5432_v12 = vsel %vm13546_vm7, %v5250_v3, %v5431_v9  ;;  %v5009_v15 = vpack.c.bf16 %v4859_v34, %v4859_v34  ;;  %v4360_v25 = vpop.f32.mrf.mxu3  ;;  %v4394_v49 = vadd.f32 %v4357_v19, %v3740_v60  ;;  %v5476_v43 = vld [vmem:[#allocation3 + $0xa8] sm:$0xf]  ;;  %v5434_v47 = vld [vmem:[#allocation3 + $0xb4] sm:$0xf] }
 0x33b   : > { %5430 = vst [vmem:[#allocation3 + $0xac] sm:$0xf] %v5249_v61  ;;  %6993 = vmatmul.bf16.gmra.mxu0 %v11714_v29  ;;  %v5847_v19 = vsel %vm12199_vm13, %v5842_v22, %v5846_v8  ;;  %v5849_v37 = vshrl.u32 %v5476_v43, 16  ;;  %v5852_v9 = vshll.u32 %v5476_v43, 16  ;;  %v5939_v34 = vunpack.c.l.b16 %v5837_v30 }
 0x33c   : > { %5433 = vst [vmem:[#allocation3 + $0xb0] sm:$0x1] %v5432_v12  ;;  %v5252_v46 = vshrl.u32 %v5009_v15, 16  ;;  %v4792_v6 = vadd.f32 %v4755_v48, %v4394_v49  ;;  %6301 = vmatmul.bf16.gmra.mxu2 %v11674_v40  ;;  %v5255_v58 = vshll.u32 %v5009_v15, 16  ;;  %v5940_v7 = vunpack.c.l.b16 %v5847_v19 }
 0x33d   : > { %v6468_v17 = vsel %vm12655_vm2, %v11108_v36, %v6467_v1  ;;  %v5851_v61 = vrot.slane %v5849_v37, 4  ;;  %v5854_v12 = vrot.slane %v5852_v9, 5  ;;  %v6471_v15 = vsel %vm12655_vm2, %v6469_v18, %v6470_v57 }
 0x33e   : > { %v5254_v56 = vrot.slane %v5252_v46, 7  ;;  %v4828_v48 = vadd.f32 %v14399_v42, %v4792_v6  ;;  %v5958_v62 = vpack.c.b16 %v5940_v7, %v5939_v34  ;;  %v6545_v8 = vunpack.c.l.b16 %v6471_v15 }
 0x33f   : > { %v3706_v3 = vpop.f32.mrf.mxu2  ;;  %v6544_v36 = vunpack.c.l.b16 %v6468_v17  ;;  %v3455_v30 = vadd.f32 %v14263_v38, %v13620_v26 }
 0x340   : > { %v5257_v60 = vor.u32 %v5255_v58, %v5254_v56  ;;  %v4860_v39 = vmax.f32 %v4828_v48, 0.0  ;;  %v3741_v41 = vadd.f32 %v3706_v3, %v13602_v24  ;;  %v4760_v40 = vpop.f32.mrf.mxu0  ;;  %v5258_v7 = vrot.slane %v5254_v56, 4 }
 0x341   : > { %v14545_v24 = vpop.f32.mrf.mxu1  ;;  %v14553_v37 = vpack.c.b16 %v6545_v8, %v6544_v36 }
 0x342   : > { %v5435_v29 = vsel %vm13698_vm11, %v5257_v60, %v5434_v47  ;;  %v5010_v49 = vpack.c.bf16 %v4860_v39, %v4860_v39  ;;  %v4362_v0 = vpop.f32.mrf.mxu3  ;;  %v4395_v4 = vadd.f32 %v4360_v25, %v3741_v41  ;;  %v14543_v22 = vld [vmem:[#allocation3 + $0xac] sm:$0xf]  ;;  %v5855_v25 = vor.u32 %v5854_v12, %v5851_v61  ;;  %v5438_v47 = vld [vmem:[#allocation3 + $0xbc] sm:$0x1]  ;;  %v11675_v12 = vld [vmem:[#allocation3 + $0x60] sm:$0xff] }
 0x343   : > { %5436 = vst [vmem:[#allocation3 + $0xb4] sm:$0xf] %v5435_v29  ;;  %v5858_v1 = vshll.u32 %v14543_v22, 16  ;;  %v14548_v43 = vld [vmem:[#allocation3 + $0xb0] sm:$0x1]  ;;  %v5862_v18 = vshrl.u32 %v14543_v22, 16 }
 0x344   : > { %v5260_v46 = vshrl.u32 %v5010_v49, 16  ;;  %v4793_v6 = vadd.f32 %v4758_v20, %v4395_v4  ;;  %6098 = vmatmul.bf16.gmra.mxu1 %v5958_v62  ;;  %v5263_v16 = vshll.u32 %v5010_v49, 16  ;;  %v5868_v3 = vshll.u32 %v14548_v43, 16  ;;  %v11746_v29 = vld [vmem:[%s16476_s3 + $0x178] sm:$0xff]  ;;  %v11715_v4 = vld [vmem:[#allocation3 + $0x6c] sm:$0xff] }
 0x345   : > { %v5860_v19 = vrot.slane %v5858_v1, 5  ;;  %v5864_v48 = vrot.slane %v5862_v18, 4  ;;  %v5856_v60 = vrot.slane %v5855_v25, 4  ;;  %8058 = vmatpush.bf16.msra.mxu2 %v11746_v29  ;;  %v11770_v25 = vld [vmem:[%s16476_s3 + $0x1b8] sm:$0xff] }
 0x346   : > { %v5262_v9 = vrot.slane %v5260_v46, 7  ;;  %v4829_v58 = vadd.f32 %v14399_v42, %v4793_v6  ;;  %v5870_v1 = vrot.slane %v5868_v3, 5  ;;  %8373 = vmatpush.bf16.msra.mxu3 %v11770_v25 }
 0x347   : > { %6684 = vmatmul.bf16.gmra.mxu3 %v14462_v2  ;;  %v3708_v20 = vpop.f32.mrf.mxu2  ;;  %v5865_v39 = vor.u32 %v5864_v48, %v5860_v19  ;;  %v5861_v6 = vsel %vm12199_vm13, %v5856_v60, %v5860_v19  ;;  %v5441_v48 = vld [vmem:[#allocation3 + $0xc0] sm:$0xf] }
 0x348   : > { %v5265_v34 = vor.u32 %v5263_v16, %v5262_v9  ;;  %v5267_v57 = vrot.slane %v5262_v9, 4  ;;  %v4861_v26 = vmax.f32 %v4829_v58, 0.0  ;;  %v3742_v38 = vadd.f32 %v3708_v20, %v3455_v30  ;;  %v14562_v56 = vpop.f32.mrf.mxu0 }
 0x349   : > { %16580 = vst [vmem:[#allocation23_spill] sm:$0xff] %v14562_v56  ;;  %v14567_v49 = vpop.f32.mrf.mxu1  ;;  %v5866_v8 = vrot.slane %v5865_v39, 4 }
 0x34a   : > { %v5266_v41 = vsel %vm12121_vm8, %v5258_v7, %v5265_v34  ;;  %v5439_v17 = vsel %vm13546_vm7, %v5267_v57, %v5438_v47  ;;  %v5011_v62 = vpack.c.bf16 %v4861_v26, %v4861_v26  ;;  %v6645_v61 = vpop.f32.mrf.mxu3  ;;  %v4396_v2 = vadd.f32 %v4362_v0, %v3742_v38  ;;  %v5478_v15 = vld [vmem:[#allocation3 + $0xb4] sm:$0xf] }
 0x34b   : > { %5437 = vst [vmem:[#allocation3 + $0xb8] sm:$0xf] %v5266_v41  ;;  %6998 = vmatmul.bf16.gmra.mxu0 %v11715_v4  ;;  %v5871_v0 = vsel %vm12199_vm13, %v5866_v8, %v5870_v1  ;;  %v5873_v18 = vshrl.u32 %v5478_v15, 16  ;;  %v5876_v30 = vshll.u32 %v5478_v15, 16  ;;  %v5941_v47 = vunpack.c.l.b16 %v5861_v6  ;;  %v11778_v15 = vld [vmem:[%s16476_s3 + $0x1f8] sm:$0xff] }
 0x34c   : > { %5440 = vst [vmem:[#allocation3 + $0xbc] sm:$0x1] %v5439_v17  ;;  %v5269_v36 = vshrl.u32 %v5011_v62, 16  ;;  %v4794_v46 = vadd.f32 %v4760_v40, %v4396_v2  ;;  %6306 = vmatmul.bf16.gmra.mxu2 %v11675_v12  ;;  %v5272_v16 = vshll.u32 %v5011_v62, 16  ;;  %v5942_v40 = vunpack.c.l.b16 %v5871_v0  ;;  %v11786_v8 = vld [vmem:[%s16476_s3 + $0x238] sm:$0xff]  ;;  %9055 = vmatpush.bf16.msra.mxu0 %v11778_v15 }
 0x34d   : > { %v5875_v57 = vrot.slane %v5873_v18, 4  ;;  %v5878_v17 = vrot.slane %v5876_v30, 5  ;;  %v5445_v6 = vld [vmem:[#allocation3 + $0xc8] sm:$0x1]  ;;  %9481 = vmatpush.bf16.msra.mxu1 %v11786_v8 }
 0x34e   : > { %v5271_v9 = vrot.slane %v5269_v36, 7  ;;  %v4830_v58 = vadd.f32 %v14399_v42, %v4794_v46  ;;  %v5959_v34 = vpack.c.b16 %v5942_v40, %v5941_v47  ;;  %v14601_v40 = vld [vmem:[#allocation3 + $0x10] sm:$0xf] }
 0x34f   : > { %v6267_v7 = vpop.f32.mrf.mxu2  ;;  %v5879_v46 = vor.u32 %v5878_v17, %v5875_v57  ;;  %v7071_v57 = vld [vmem:[#allocation3 + $0xc] sm:$0xf]  ;;  %v7129_v28 = vshll.u32 %v14601_v40, 16  ;;  %v7133_v17 = vshrl.u32 %v14601_v40, 16 }
 0x350   : > { %v5274_v19 = vor.u32 %v5272_v16, %v5271_v9  ;;  %v4862_v20 = vmax.f32 %v4830_v58, 0.0  ;;  %v6268_v3 = vadd.f32 %v6267_v7, %v14289_v55  ;;  %v14580_v60 = vpop.f32.mrf.mxu0  ;;  %v5275_v30 = vrot.slane %v5271_v9, 4  ;;  %v11676_v9 = vld [vmem:[#allocation3 + $0x6c] sm:$0xff] }
 0x351   : > { %16581 = vst [vmem:[#allocation24_spill] sm:$0xff] %v14580_v60  ;;  %v14586_v62 = vpop.f32.mrf.mxu1  ;;  %v7135_v8 = vrot.slane %v7133_v17, 4 }
 0x352   : > { %v5442_v26 = vsel %vm13698_vm11, %v5274_v19, %v5441_v48  ;;  %v5012_v38 = vpack.c.bf16 %v4862_v20, %v4862_v20  ;;  %v6647_v39 = vpop.f32.mrf.mxu3  ;;  %v14582_v41 = vadd.f32 %v6645_v61, %v6268_v3  ;;  %v14584_v42 = vld [vmem:[#allocation3 + $0xb8] sm:$0xf] }
 0x353   : > { %5443 = vst [vmem:[#allocation3 + $0xc0] sm:$0xf] %v5442_v26  ;;  %v14588_v2 = vld [vmem:[#allocation3 + $0xbc] sm:$0x1]  ;;  %v5882_v55 = vshll.u32 %v14584_v42, 16  ;;  %v5886_v12 = vshrl.u32 %v14584_v42, 16 }
 0x354   : > { %v5277_v32 = vshrl.u32 %v5012_v38, 16  ;;  %6103 = vmatmul.bf16.gmra.mxu1 %v5959_v34  ;;  %v5892_v4 = vshll.u32 %v14588_v2, 16  ;;  %v5280_v36 = vshll.u32 %v5012_v38, 16  ;;  %v5880_v34 = vrot.slane %v5879_v46, 4  ;;  %v11716_v26 = vld [vmem:[#allocation3 + $0x78] sm:$0xff] }
 0x355   : > { %v5884_v61 = vrot.slane %v5882_v55, 5  ;;  %v5888_v29 = vrot.slane %v5886_v12, 4  ;;  %v7120_v12 = vshrl.u32 %v7071_v57, 16 }
 0x356   : > { %v5279_v1 = vrot.slane %v5277_v32, 7  ;;  %v5894_v7 = vrot.slane %v5892_v4, 5  ;;  %v7131_v4 = vrot.slane %v7129_v28, 5 }
 0x357   : > { %6689 = vmatmul.bf16.gmra.mxu3 %v14507_v51  ;;  %v6269_v0 = vpop.f32.mrf.mxu2  ;;  %v5889_v18 = vor.u32 %v5888_v29, %v5884_v61  ;;  %v7123_v29 = vshll.u32 %v7071_v57, 16  ;;  %v6484_v57 = vrot.slane %v14464_v14, 5 }
 0x358   : > { %v5282_v25 = vor.u32 %v5280_v36, %v5279_v1  ;;  %v5284_v16 = vrot.slane %v5279_v1, 4  ;;  %v6270_v58 = vadd.f32 %v6269_v0, %v14319_v54  ;;  %v14607_v20 = vpop.f32.mrf.mxu0 }
 0x359   : > { %v5890_v48 = vrot.slane %v5889_v18, 4  ;;  %16582 = vst [vmem:[#allocation25_spill] sm:$0xff] %v14607_v20  ;;  %v14611_v54 = vpop.f32.mrf.mxu1  ;;  %v14624_v18 = vld [vmem:[#allocation3 + $0x14] sm:$0x1] }
 0x35a   : > { %v5283_v47 = vsel %vm12121_vm8, %v5275_v30, %v5282_v25  ;;  %v5446_v19 = vsel %vm13546_vm7, %v5284_v16, %v5445_v6  ;;  %v6650_v51 = vpop.f32.mrf.mxu3  ;;  %v14609_v3 = vadd.f32 %v6647_v39, %v6270_v58  ;;  %v5885_v39 = vsel %vm12199_vm13, %v5880_v34, %v5884_v61 }
 0x35b   : > { %5444 = vst [vmem:[#allocation3 + $0xc4] sm:$0xf] %v5283_v47  ;;  %v5895_v38 = vsel %vm12199_vm13, %v5890_v48, %v5894_v7  ;;  %7003 = vmatmul.bf16.gmra.mxu0 %v11716_v26  ;;  %v5943_v15 = vunpack.c.l.b16 %v5885_v39  ;;  %v7122_v61 = vrot.slane %v7120_v12, 4  ;;  %v7125_v25 = vrot.slane %v7123_v29, 5  ;;  %v6359_v48 = vld [vmem:[#allocation3 + $0x90] sm:$0xe] }
 0x35c   : > { %16583 = vst [vmem:[#allocation27_spill] sm:$0xff] %v14609_v3  ;;  %6311 = vmatmul.bf16.gmra.mxu2 %v11676_v9  ;;  %v5944_v55 = vunpack.c.l.b16 %v5895_v38  ;;  %v7136_v16 = vor.u32 %v7135_v8, %v7131_v4  ;;  %v7139_v58 = vshll.u32 %v14624_v18, 16  ;;  %v6481_v7 = vrot.slane %v14460_v44, 5  ;;  %v14634_v38 = vld [vmem:[#allocation3 + $0x1c] sm:$0xf]  ;;  %v11717_v29 = vld [vmem:[#allocation3 + $0x84] sm:$0xff] }
 0x35d   : > { %5447 = vst [vmem:[#allocation3 + $0xc8] sm:$0x1] %v5446_v19  ;;  %v11110_v47 = vrot.slane %v6359_v48, 9  ;;  %vm10348_vm8 = vcmask 1044484  }
 0x35e   : > { %v5960_v36 = vpack.c.b16 %v5944_v55, %v5943_v15  ;;  %v7137_v9 = vrot.slane %v7136_v16, 4  ;;  %v6483_v34 = vrot.slane %v6481_v7, 4  ;;  %v7141_v17 = vrot.slane %v7139_v58, 5  ;;  %v11677_v55 = vld [vmem:[#allocation3 + $0x78] sm:$0xff] }
 0x35f   : > { %v6272_v32 = vpop.f32.mrf.mxu2  ;;  %v6482_v28 = vsel %vm12655_vm2, %v11110_v47, %v6481_v7  ;;  %v7074_v16 = vld [vmem:[#allocation3 + $0x18] sm:$0xf] }
 0x360   : > { %v6273_v1 = vadd.f32 %v6272_v32, %v14336_v52  ;;  %v14620_v46 = vpop.f32.mrf.mxu0  ;;  %v6474_v52 = vrot.slane %v14414_v33, 5  ;;  %v6485_v33 = vsel %vm12655_vm2, %v6483_v34, %v6484_v57  ;;  %v6548_v32 = vunpack.c.l.b16 %v6482_v28  ;;  %v11769_v7 = vld [vmem:[%s16476_s3 + $0x1b0] sm:$0xff] }
 0x361   : > { %16584 = vst [vmem:[#allocation29_spill] sm:$0xff] %v14620_v46  ;;  %v14626_v30 = vpop.f32.mrf.mxu1  ;;  %v6549_v14 = vunpack.c.l.b16 %v6485_v33  ;;  %v7144_v34 = vshrl.u32 %v7074_v16, 16  ;;  %8374 = vmatpush.bf16.msra.mxu3 %v11769_v7  ;;  %v11785_v7 = vld [vmem:[%s16476_s3 + $0x230] sm:$0xff] }
 0x362   : > { %v6652_v6 = vpop.f32.mrf.mxu3  ;;  %v14622_v0 = vadd.f32 %v6650_v51, %v6273_v1  ;;  %v7126_v51 = vor.u32 %v7125_v25, %v7122_v61  ;;  %v6476_v12 = vrot.slane %v6474_v52, 4  ;;  %v7142_v1 = vsel %vm12199_vm13, %v7137_v9, %v7141_v17  ;;  %9482 = vmatpush.bf16.msra.mxu1 %v11785_v7 }
 0x363   : > { %v7153_v61 = vshll.u32 %v14634_v38, 16  ;;  %v6477_v25 = vrot.slane %v14418_v63, 5  ;;  %v14654_v58 = vpack.c.b16 %v6549_v14, %v6548_v32  ;;  %v7521_v47 = vunpack.c.l.b16 %v7142_v1 }
 0x364   : > { %16585 = vst [vmem:[#allocation26_spill] sm:$0xff] %v14622_v0  ;;  %6108 = vmatmul.bf16.gmra.mxu1 %v5960_v36  ;;  %v7127_v8 = vrot.slane %v7126_v51, 4  ;;  %v6358_v36 = vld [vmem:[#allocation3 + $0x84] sm:$0xe]  ;;  %v7147_v63 = vshll.u32 %v7074_v16, 16 }
 0x365   : > { %v6478_v51 = vsel %vm12655_vm2, %v6476_v12, %v6477_v25  ;;  %v14663_v57 = vrot.slane %v7153_v61, 5  ;;  %v7077_v25 = vld [vmem:[#allocation3 + $0x24] sm:$0xf] }
 0x366   : > { %v7132_v48 = vsel %vm12199_vm13, %v7127_v8, %v7131_v4  ;;  %v6547_v33 = vunpack.c.l.b16 %v6478_v51  ;;  %v7149_v61 = vrot.slane %v7147_v63, 5 }
 0x367   : > { %6694 = vmatmul.bf16.gmra.mxu3 %v14553_v37  ;;  %v6274_v19 = vpop.f32.mrf.mxu2  ;;  %v7520_v4 = vunpack.c.l.b16 %v7132_v48 }
 0x368   : > { %v6275_v26 = vadd.f32 %v6274_v19, %v14368_v45  ;;  %v14640_v44 = vpop.f32.mrf.mxu0  ;;  %v11745_v45 = vld [vmem:[%s16476_s3 + $0x170] sm:$0xff]  ;;  %v11109_v19 = vrot.slane %v6358_v36, 9  ;;  %v7146_v36 = vrot.slane %v7144_v34, 4 }
 0x369   : > { %16586 = vst [vmem:[#allocation11_spill] sm:$0xff] %v14640_v44  ;;  %v14647_v15 = vpop.f32.mrf.mxu1  ;;  %8059 = vmatpush.bf16.msra.mxu2 %v11745_v45  ;;  %v7552_v45 = vpack.c.b16 %v7521_v47, %v7520_v4  ;;  %v6360_v47 = vld [vmem:[#allocation3 + $0x9c] sm:$0xe] }
 0x36a   : > { %v6655_v37 = vpop.f32.mrf.mxu3  ;;  %v14642_v39 = vadd.f32 %v6652_v6, %v6275_v26  ;;  %v7157_v6 = vshrl.u32 %v14634_v38, 16  ;;  %v6475_v17 = vsel %vm12655_vm2, %v11109_v19, %v6474_v52  ;;  %v11777_v52 = vld [vmem:[%s16476_s3 + $0x1f0] sm:$0xff]  ;;  %v6488_v19 = vrot.slane %v14505_v5, 5 }
 0x36b   : > { %7008 = vmatmul.bf16.gmra.mxu0 %v11717_v29  ;;  %v7078_v29 = vld [vmem:[#allocation3 + $0x28] sm:$0xf]  ;;  %v6546_v1 = vunpack.c.l.b16 %v6475_v17  ;;  %v11111_v51 = vrot.slane %v6360_v47, 9  ;;  %v7150_v34 = vor.u32 %v7149_v61, %v7146_v36 }
 0x36c   : > { %16587 = vst [vmem:[#allocation30_spill] sm:$0xff] %v14642_v39  ;;  %6316 = vmatmul.bf16.gmra.mxu2 %v11677_v55  ;;  %v7159_v26 = vrot.slane %v7157_v6, 4  ;;  %v14668_v55 = vld [vmem:[#allocation3 + $0x20] sm:$0x1]  ;;  %9056 = vmatpush.bf16.msra.mxu0 %v11777_v52  ;;  %v7181_v48 = vshrl.u32 %v7078_v29, 16 }
 0x36d   : > { %v7163_v6 = vshll.u32 %v14668_v55, 16  ;;  %v6567_v16 = vpack.c.b16 %v6547_v33, %v6546_v1  ;;  %v7168_v33 = vshrl.u32 %v7077_v25, 16  ;;  %v7171_v1 = vshll.u32 %v7077_v25, 16 }
 0x36e   : > { %v7183_v5 = vrot.slane %v7181_v48, 4  ;;  %v7079_v48 = vld [vmem:[#allocation3 + $0x2c] sm:$0x1] }
 0x36f   : > { %v6277_v9 = vpop.f32.mrf.mxu2  ;;  %v7165_v17 = vrot.slane %v7163_v6, 5  ;;  %v7755_v6 = vld [vmem:[#allocation3 + $0x24] sm:$0xe]  ;;  %v7187_v21 = vshll.u32 %v7079_v48, 16 }
 0x370   : > { %v6278_v28 = vadd.f32 %v6277_v9, %v14387_v31  ;;  %v14670_v32 = vpop.f32.mrf.mxu0  ;;  %v7160_v31 = vor.u32 %v7159_v26, %v14663_v57  ;;  %v6490_v26 = vrot.slane %v6488_v19, 4 }
 0x371   : > { %16588 = vst [vmem:[#allocation28_spill] sm:$0xff] %v14670_v32  ;;  %v14674_v8 = vpop.f32.mrf.mxu1 }
 0x372   : > { %v6657_v14 = vpop.f32.mrf.mxu3  ;;  %v14672_v12 = vadd.f32 %v6655_v37, %v6278_v28  ;;  %v7177_v37 = vshll.u32 %v7078_v29, 16  ;;  %v7161_v63 = vrot.slane %v7160_v31, 4  ;;  %v6491_v28 = vrot.slane %v14511_v50, 5  ;;  %v11678_v50 = vld [vmem:[#allocation3 + $0x84] sm:$0xff] }
 0x374   : > { %16589 = vst [vmem:[#allocation13_spill] sm:$0xff] %v14672_v12  ;;  %7640 = vmatmul.bf16.vlgmr.msrb.gmra.mxu1 %v7552_v45  ;;  %v6489_v45 = vsel %vm12655_vm2, %v11111_v51, %v6488_v19  ;;  %v14689_v52 = vrot.slane %v7177_v37, 5  ;;  %v7166_v25 = vsel %vm12199_vm13, %v7161_v63, %v7165_v17  ;;  %v7151_v37 = vrot.slane %v7150_v34, 4 }
 0x375   : > { %v6550_v7 = vunpack.c.l.b16 %v6489_v45  ;;  %v7833_v51 = vrot.slane %v7078_v29, 5  ;;  %v7836_v17 = vrot.slane %v7079_v48, 5  ;;  %v7189_v48 = vrot.slane %v7187_v21, 5 }
 0x376   : > { %v7156_v45 = vsel %vm12199_vm13, %v7151_v37, %v14663_v57 }
 0x377   : > { %6699 = vmatmul.bf16.gmra.mxu3 %v6567_v16  ;;  %v6279_v9 = vpop.f32.mrf.mxu2  ;;  %v6492_v16 = vsel %vm12655_vm2, %v6490_v26, %v6491_v28  ;;  %v7170_v26 = vrot.slane %v7168_v33, 4  ;;  %v7184_v28 = vor.u32 %v7183_v5, %v14689_v52  ;;  %v7835_v63 = vrot.slane %v7833_v51, 4 }
 0x378   : > { %v6280_v4 = vadd.f32 %v6279_v9, %v14421_v59  ;;  %v14693_v36 = vpop.f32.mrf.mxu0  ;;  %v6551_v59 = vunpack.c.l.b16 %v6492_v16  ;;  %v11718_v9 = vld [vmem:[#allocation3 + $0x90] sm:$0xff]  ;;  %v7523_v16 = vunpack.c.l.b16 %v7166_v25  ;;  %v7522_v33 = vunpack.c.l.b16 %v7156_v45 }
 0x379   : > { %16590 = vst [vmem:[#allocation14_spill] sm:$0xff] %v14693_v36  ;;  %v14697_v47 = vpop.f32.mrf.mxu1  ;;  %v7837_v5 = vsel %vm12655_vm2, %v7835_v63, %v7836_v17  ;;  %v11719_v36 = vld [vmem:[#allocation3 + $0x9c] sm:$0xff] }
 0x37a   : > { %v6660_v61 = vpop.f32.mrf.mxu3  ;;  %v14695_v31 = vadd.f32 %v6657_v14, %v6280_v4  ;;  %v14701_v19 = vpack.c.b16 %v6551_v59, %v6550_v7  ;;  %v7173_v14 = vrot.slane %v7171_v1, 5  ;;  %v11324_v4 = vrot.slane %v7755_v6, 9 }
 0x37b   : > { %7013 = vmatmul.bf16.gmra.mxu0 %v11718_v9  ;;  %v7185_v7 = vrot.slane %v7184_v28, 4  ;;  %v7951_v25 = vunpack.c.l.b16 %v7837_v5  ;;  %v14722_v28 = vld [vmem:[#allocation3 + $0x1c] sm:$0xf] }
 0x37c   : > { %16591 = vst [vmem:[#allocation12_spill] sm:$0xff] %v14695_v31  ;;  %6321 = vmatmul.bf16.gmra.mxu2 %v11678_v50  ;;  %v7834_v34 = vsel %vm12655_vm2, %v11324_v4, %v7833_v51  ;;  %v7080_v50 = vld [vmem:[#allocation3 + $0x30] sm:$0xf]  ;;  %v7174_v1 = vor.u32 %v7173_v14, %v7170_v26  ;;  %v7553_v51 = vpack.c.b16 %v7523_v16, %v7522_v33  ;;  %v7081_v14 = vld [vmem:[#allocation3 + $0x34] sm:$0xf] }
 0x37d   : > { %v7950_v9 = vunpack.c.l.b16 %v7834_v34  ;;  %v7192_v4 = vshrl.u32 %v7080_v50, 16  ;;  %v7190_v26 = vsel %vm12199_vm13, %v7185_v7, %v7189_v48  ;;  %v7195_v45 = vshll.u32 %v7080_v50, 16  ;;  %v7756_v34 = vld [vmem:[#allocation3 + $0x30] sm:$0xe]  ;;  %v14730_v16 = vld [vmem:[#allocation3 + $0x38] sm:$0x1] }
 0x37e   : > { %v14735_v33 = vunpack.c.l.b16 %v7190_v26  ;;  %v9176_v50 = vld [vmem:[#allocation3 + $0x18] sm:$0xe]  ;;  %v9242_v7 = vrot.slane %v14722_v28, 5  ;;  %v7201_v5 = vshll.u32 %v7081_v14, 16 }
 0x37f   : > { %v6282_v23 = vpop.f32.mrf.mxu2  ;;  %v14732_v17 = vrot.slane %v7192_v4, 4  ;;  %v14747_v26 = vrot.slane %v7195_v45, 5 }
 0x380   : > { %v6283_v29 = vadd.f32 %v6282_v23, %v14440_v13  ;;  %v14712_v59 = vpop.f32.mrf.mxu0  ;;  %v14718_v23 = vpack.c.b16 %v7951_v25, %v7950_v9  ;;  %v7175_v13 = vrot.slane %v7174_v1, 4  ;;  %v7840_v1 = vrot.slane %v7081_v14, 5 }
 0x381   : > { %16592 = vst [vmem:[#allocation15_spill] sm:$0xff] %v14712_v59  ;;  %v14716_v37 = vpop.f32.mrf.mxu1  ;;  %v7205_v9 = vshrl.u32 %v7081_v14, 16  ;;  %v11325_v25 = vrot.slane %v7756_v34, 9  ;;  %v11744_v14 = vld [vmem:[%s16476_s3 + $0x168] sm:$0xff]  ;;  %v9177_v59 = vld [vmem:[#allocation3 + $0x24] sm:$0xe] }
 0x382   : > { %v6662_v57 = vpop.f32.mrf.mxu3  ;;  %v14714_v6 = vadd.f32 %v6660_v61, %v6283_v29  ;;  %v14724_v61 = vld [vmem:[#allocation3 + $0x28] sm:$0xf]  ;;  %v7180_v21 = vsel %vm12199_vm13, %v7175_v13, %v14689_v52  ;;  %v11679_v13 = vld [vmem:[#allocation3 + $0x90] sm:$0xff]  ;;  %v9244_v32 = vrot.slane %v9242_v7, 4  ;;  %8060 = vmatpush.bf16.msra.mxu2 %v11744_v14 }
 0x383   : > { %v7207_v46 = vrot.slane %v7205_v9, 4 }
 0x384   : > { %16593 = vst [vmem:[#allocation16_spill] sm:$0xff] %v14714_v6  ;;  %7645 = vmatmul.bf16.gmra.mxu1 %v7553_v51  ;;  %v9249_v51 = vrot.slane %v14724_v61, 5  ;;  %v14762_v6 = vld [vmem:[#allocation3 + $0x34] sm:$0xf] }
 0x387   : > { %6704 = vmatmul.bf16.gmra.mxu3 %v14654_v58  ;;  %v6284_v63 = vpop.f32.mrf.mxu2  ;;  %v14738_v58 = vld [vmem:[#allocation3 + $0x20] sm:$0x1] }
 0x388   : > { %v6285_v29 = vadd.f32 %v6284_v63, %v14470_v35  ;;  %v14741_v52 = vpop.f32.mrf.mxu0  ;;  %v14745_v35 = vunpack.c.l.b16 %v7180_v21  ;;  %v7211_v63 = vshll.u32 %v14730_v16, 16  ;;  %v11546_v21 = vrot.slane %v9176_v50, 9 }
 0x389   : > { %16594 = vst [vmem:[#allocation31_spill] sm:$0xff] %v14741_v52  ;;  %v14753_v34 = vpop.f32.mrf.mxu1  ;;  %v7841_v52 = vsel %vm12655_vm2, %v11325_v25, %v7840_v1  ;;  %v9245_v31 = vrot.slane %v14738_v58, 5  ;;  %v9251_v25 = vrot.slane %v9249_v51, 4 }
 0x38a   : > { %v6665_v48 = vpop.f32.mrf.mxu3  ;;  %v14743_v4 = vadd.f32 %v6662_v57, %v6285_v29  ;;  %v7842_v57 = vrot.slane %v7840_v1, 4  ;;  %v7843_v29 = vrot.slane %v14730_v16, 5  ;;  %v7554_v45 = vpack.c.b16 %v14735_v33, %v14745_v35  ;;  %v11768_v1 = vld [vmem:[%s16476_s3 + $0x1a8] sm:$0xff]  ;;  %v7083_v35 = vld [vmem:[#allocation3 + $0x3c] sm:$0xf] }
 0x38b   : > { %7018 = vmatmul.bf16.gmra.mxu0 %v11719_v36  ;;  %v9243_v50 = vsel %vm12655_vm2, %v11546_v21, %v9242_v7  ;;  %v11547_v33 = vrot.slane %v9177_v59, 9  ;;  %v7952_v44 = vunpack.c.l.b16 %v7841_v52  ;;  %v9246_v36 = vsel %vm12655_vm2, %v9244_v32, %v9245_v31  ;;  %8375 = vmatpush.bf16.msra.mxu3 %v11768_v1 }
 0x38c   : > { %16595 = vst [vmem:[#allocation32_spill] sm:$0xff] %v14743_v4  ;;  %6326 = vmatmul.bf16.gmra.mxu2 %v11679_v13  ;;  %v14760_v4 = vld [vmem:[#allocation3 + $0x2c] sm:$0x1]  ;;  %v7844_v16 = vsel %vm12655_vm2, %v7842_v57, %v7843_v29  ;;  %v14772_v13 = vrot.slane %v7201_v5, 5  ;;  %v9256_v7 = vrot.slane %v14762_v6, 5  ;;  %v9369_v21 = vunpack.c.l.b16 %v9243_v50 }
 0x38d   : > { %v7953_v12 = vunpack.c.l.b16 %v7844_v16  ;;  %v9250_v39 = vsel %vm12655_vm2, %v11547_v33, %v9249_v51  ;;  %v9252_v57 = vrot.slane %v14760_v4, 5  ;;  %v14781_v5 = vld [vmem:[#allocation3 + $0x40] sm:$0xf]  ;;  %v14783_v29 = vld [vmem:[#allocation3 + $0x38] sm:$0x1]  ;;  %v9370_v32 = vunpack.c.l.b16 %v9246_v36 }
 0x38e   : > { %v7198_v31 = vor.u32 %v14747_v26, %v14732_v17  ;;  %v7216_v9 = vshrl.u32 %v7083_v35, 16  ;;  %v7219_v1 = vshll.u32 %v7083_v35, 16  ;;  %v9371_v20 = vunpack.c.l.b16 %v9250_v39  ;;  %v11767_v26 = vld [vmem:[%s16476_s3 + $0x1a0] sm:$0xff] }
 0x38f   : > { %v6287_v14 = vpop.f32.mrf.mxu2  ;;  %v14785_v52 = vpack.c.b16 %v7953_v12, %v7952_v44  ;;  %v9253_v51 = vsel %vm12655_vm2, %v9251_v25, %v9252_v57  ;;  %v9178_v12 = vld [vmem:[#allocation3 + $0x30] sm:$0xe]  ;;  %v7208_v17 = vor.u32 %v7207_v46, %v14772_v13  ;;  %v7225_v25 = vshll.u32 %v14781_v5, 16  ;;  %8376 = vmatpush.bf16.msra.mxu3 %v11767_v26 }
 0x390   : > { %v6288_v59 = vadd.f32 %v6287_v14, %v14497_v11  ;;  %v14793_v11 = vld [vmem:[#allocation3 + $0x44] sm:$0x1]  ;;  %v14795_v14 = vpack.c.b16 %v9370_v32, %v9369_v21  ;;  %v9372_v44 = vunpack.c.l.b16 %v9253_v51  ;;  %v14797_v50 = vpop.f32.mrf.mxu0  ;;  %v9258_v35 = vrot.slane %v9256_v7, 4  ;;  %v11784_v51 = vld [vmem:[%s16476_s3 + $0x228] sm:$0xff] }
 0x391   : > { %16596 = vst [vmem:[#allocation18_spill] sm:$0xff] %v14785_v52  ;;  %v14799_v36 = vpop.f32.mrf.mxu1  ;;  %v9259_v39 = vrot.slane %v14783_v29, 5  ;;  %v14810_v57 = vrot.slane %v7211_v63, 5  ;;  %v7229_v32 = vshrl.u32 %v14781_v5, 16  ;;  %v7209_v46 = vrot.slane %v7208_v17, 4  ;;  %9483 = vmatpush.bf16.msra.mxu1 %v11784_v51  ;;  %v11680_v52 = vld [vmem:[#allocation3 + $0x9c] sm:$0xff] }
 0x392   : > { %v6667_v16 = vpop.f32.mrf.mxu3  ;;  %v14791_v33 = vadd.f32 %v6665_v48, %v6288_v59  ;;  %16598 = vst [vmem:[#allocation33_spill] sm:$0xff] %v14795_v14  ;;  %v11776_v48 = vld [vmem:[%s16476_s3 + $0x1e8] sm:$0xff]  ;;  %v14812_v59 = vld [vmem:[#allocation3 + $0x48] sm:$0xf]  ;;  %v14814_v21 = vpack.c.b16 %v9372_v44, %v9371_v20  ;;  %v7757_v14 = vld [vmem:[#allocation3 + $0x3c] sm:$0xe] }
 0x393   : > { %16599 = vst [vmem:[#allocation20_spill] sm:$0xff] %v14797_v50  ;;  %v11548_v50 = vrot.slane %v9178_v12, 9  ;;  %v9260_v63 = vsel %vm12655_vm2, %v9258_v35, %v9259_v39  ;;  %9057 = vmatpush.bf16.msra.mxu0 %v11776_v48  ;;  %v14825_v20 = vrot.slane %v7216_v9, 4  ;;  %v11766_v12 = vld [vmem:[%s16476_s3 + $0x198] sm:$0xff]  ;;  %v11326_v48 = vrot.slane %v7757_v14, 9 }
 0x394   : > { %16597 = vst [vmem:[#allocation17_spill] sm:$0xff] %v14791_v33  ;;  %7650 = vmatmul.bf16.gmra.mxu1 %v7554_v45  ;;  %v14823_v33 = vrot.slane %v7198_v31, 4  ;;  %v14827_v45 = vrot.slane %v7219_v1, 5  ;;  %v7847_v35 = vrot.slane %v14781_v5, 5  ;;  %v16601_v17 = vrot.slane %v14543_v22, 5  ;;  %8377 = vmatpush.bf16.msra.mxu3 %v11766_v12 }
 0x395   : > { %16600 = vst [vmem:[#allocation19_spill] sm:$0xff] %v14814_v21  ;;  %v14831_v21 = vrot.slane %v7225_v25, 5  ;;  %v9257_v9 = vsel %vm12655_vm2, %v11548_v50, %v9256_v7  ;;  %v14843_v39 = vrot.slane %v7229_v32, 4  ;;  %v14845_v51 = vld [vmem:[#allocation3 + $0x40] sm:$0xf]  ;;  %v7243_v5 = vshll.u32 %v14812_v59, 16 }
 0x396   : > { %v6497_v25 = vrot.slane %v16601_v17, 4  ;;  %v9179_v44 = vld [vmem:[#allocation3 + $0x3c] sm:$0xe]  ;;  %v6361_v7 = vld [vmem:[#allocation3 + $0xa8] sm:$0xe]  ;;  %v7848_v14 = vsel %vm12655_vm2, %v11326_v48, %v7847_v35  ;;  %v9373_v50 = vunpack.c.l.b16 %v9257_v9  ;;  %v7850_v17 = vrot.slane %v14793_v11, 5 }
 0x397   : > { %6709 = vmatmul.bf16.gmra.mxu3 %v14701_v19  ;;  %v6289_v26 = vpop.f32.mrf.mxu2  ;;  %v9374_v19 = vunpack.c.l.b16 %v9260_v63  ;;  %v11720_v63 = vld [vmem:[#allocation3 + $0xa8] sm:$0xff]  ;;  %v14862_v12 = vld [vmem:[#allocation3 + $0x44] sm:$0x1]  ;;  %v7214_v9 = vsel %vm12199_vm13, %v7209_v46, %v14810_v57  ;;  %v11549_v60 = vrot.slane %v9179_v44, 9 }
 0x398   : > { %v6290_v1 = vadd.f32 %v6289_v26, %v14518_v53  ;;  %v11775_v53 = vld [vmem:[%s16476_s3 + $0x1e0] sm:$0xff]  ;;  %v6498_v26 = vrot.slane %v14548_v43, 5  ;;  %v11112_v43 = vrot.slane %v6361_v7, 9  ;;  %v11774_v57 = vld [vmem:[%s16476_s3 + $0x1d8] sm:$0xff] }
 0x399   : > { %v14855_v32 = vpop.f32.mrf.mxu1  ;;  %9058 = vmatpush.bf16.msra.mxu0 %v11775_v53  ;;  %v14868_v48 = vld [vmem:[#allocation3 + $0x4c] sm:$0xf] }
 0x39a   : > { %v6670_v0 = vpop.f32.mrf.mxu3  ;;  %v14847_v31 = vadd.f32 %v6667_v16, %v6290_v1  ;;  %16603 = vst [vmem:[#allocation35_spill] sm:$0xff] %v14855_v32  ;;  %v7204_v16 = vsel %vm12199_vm13, %v14823_v33, %v14772_v13  ;;  %v7849_v1 = vrot.slane %v7847_v35, 4  ;;  %v9263_v13 = vrot.slane %v14845_v51, 5  ;;  %v14873_v33 = vpop.f32.mrf.mxu0  ;;  %v11743_v46 = vld [vmem:[%s16476_s3 + $0x160] sm:$0xff] }
 0x39b   : > { %16605 = vst [vmem:[#allocation37_spill] sm:$0xff] %v14873_v33  ;;  %7023 = vmatmul.bf16.gmra.mxu0 %v11720_v63  ;;  %v6499_v35 = vsel %vm12655_vm2, %v6497_v25, %v6498_v26  ;;  %v7527_v26 = vunpack.c.l.b16 %v7214_v9  ;;  %8061 = vmatpush.bf16.msra.mxu2 %v11743_v46  ;;  %v11764_v33 = vld [vmem:[%s16476_s3 + $0x188] sm:$0xff] }
 0x39c   : > { %16602 = vst [vmem:[#allocation21_spill] sm:$0xff] %v14847_v31  ;;  %6331 = vmatmul.bf16.gmra.mxu2 %v11680_v52  ;;  %v14870_v31 = vpack.c.b16 %v9374_v19, %v9373_v50  ;;  %v11765_v52 = vld [vmem:[%s16476_s3 + $0x190] sm:$0xff]  ;;  %v7851_v44 = vsel %vm12655_vm2, %v7849_v1, %v7850_v17  ;;  %v7954_v19 = vunpack.c.l.b16 %v7848_v14  ;;  %v9264_v25 = vsel %vm12655_vm2, %v11549_v60, %v9263_v13 }
 0x39d   : > { %v7955_v7 = vunpack.c.l.b16 %v7851_v44  ;;  %v9265_v53 = vrot.slane %v9263_v13, 4  ;;  %v9266_v50 = vrot.slane %v14862_v12, 5  ;;  %8378 = vmatpush.bf16.msra.mxu3 %v11765_v52  ;;  %v7249_v14 = vshll.u32 %v14868_v48, 16  ;;  %9059 = vmatpush.bf16.msra.mxu0 %v11774_v57 }
 0x39e   : > { %16604 = vst [vmem:[#allocation34_spill] sm:$0xff] %v14870_v31  ;;  %v7232_v31 = vor.u32 %v14843_v39, %v14831_v21  ;;  %v7253_v1 = vshrl.u32 %v14868_v48, 16  ;;  %v16606_v17 = vrot.slane %v14543_v22, 5  ;;  %v7526_v52 = vunpack.c.l.b16 %v7204_v16  ;;  %v11773_v22 = vld [vmem:[%s16476_s3 + $0x1d0] sm:$0xff] }
 0x39f   : > { %v6292_v63 = vpop.f32.mrf.mxu2  ;;  %v14903_v13 = vpack.c.b16 %v7955_v7, %v7954_v19  ;;  %v9267_v39 = vsel %vm12655_vm2, %v9265_v53, %v9266_v50  ;;  %v6553_v46 = vunpack.c.l.b16 %v6499_v35  ;;  %v9375_v44 = vunpack.c.l.b16 %v9264_v25 }
 0x3a0   : > { %v6293_v60 = vadd.f32 %v6292_v63, %v14545_v24  ;;  %v6496_v9 = vsel %vm12655_vm2, %v11112_v43, %v16606_v17  ;;  %v9376_v3 = vunpack.c.l.b16 %v9267_v39  ;;  %v7222_v24 = vor.u32 %v14827_v45, %v14825_v20  ;;  %v11763_v20 = vld [vmem:[%s16476_s3 + $0x180] sm:$0xff]  ;;  %v8494_v63 = vld [vmem:[#allocation3 + $0x18] sm:$0xf]  ;;  %v14941_v39 = vld [vmem:[#allocation3 + $0x50] sm:$0x1] }
 0x3a1   : > { %v16608_v43 = vshrl.u32 %v14812_v59, 16  ;;  %v7245_v19 = vrot.slane %v7243_v5, 5  ;;  %v14916_v7 = vpop.f32.mrf.mxu1  ;;  %v7555_v16 = vpack.c.b16 %v7527_v26, %v7526_v52  ;;  %v6552_v35 = vunpack.c.l.b16 %v6496_v9  ;;  %8379 = vmatpush.bf16.msra.mxu3 %v11764_v33  ;;  %9060 = vmatpush.bf16.msra.mxu0 %v11773_v22  ;;  %v11772_v59 = vld [vmem:[%s16476_s3 + $0x1c8] sm:$0xff] }
 0x3a2   : > { %v6672_v32 = vpop.f32.mrf.mxu3  ;;  %v14907_v56 = vadd.f32 %v6670_v0, %v6293_v60  ;;  %v7233_v25 = vrot.slane %v7232_v31, 4  ;;  %v11742_v0 = vld [vmem:[%s16476_s3 + $0x158] sm:$0xff]  ;;  %v14921_v53 = vpack.c.b16 %v9376_v3, %v9375_v44  ;;  %v14929_v45 = vrot.slane %v7249_v14, 5  ;;  %v11741_v3 = vld [vmem:[%s16476_s3 + $0x150] sm:$0xff]  ;;  %v14937_v17 = vpop.f32.mrf.mxu0 }
 0x3a3   : > { %v7242_v57 = vrot.slane %v16608_v43, 4  ;;  %v7255_v5 = vrot.slane %v7253_v1, 4  ;;  %v6570_v31 = vpack.c.b16 %v6553_v46, %v6552_v35  ;;  %v16610_v33 = vshll.u32 %v14793_v11, 16  ;;  %8062 = vmatpush.bf16.msra.mxu2 %v11742_v0  ;;  %16611 = vst [vmem:[#allocation40_spill] sm:$0xff] %v14937_v17 }
 0x3a4   : > { %16607 = vst [vmem:[#allocation38_spill] sm:$0xff] %v14907_v56  ;;  %7655 = vmatmul.bf16.gmra.mxu1 %v7555_v16  ;;  %v6502_v26 = vrot.slane %v14584_v42, 5  ;;  %v7223_v9 = vrot.slane %v7222_v24, 4  ;;  %v8543_v46 = vshrl.u32 %v8494_v63, 16  ;;  %v8546_v44 = vshll.u32 %v8494_v63, 16  ;;  %v11681_v16 = vld [vmem:[#allocation3 + $0xa8] sm:$0xff] }
 0x3a5   : > { %16609 = vst [vmem:[#allocation39_spill] sm:$0xff] %v14921_v53  ;;  %v7237_v50 = vrot.slane %v16610_v33, 5  ;;  %v7246_v60 = vor.u32 %v7245_v19, %v7242_v57  ;;  %8380 = vmatpush.bf16.msra.mxu3 %v11763_v20  ;;  %9061 = vmatpush.bf16.msra.mxu0 %v11772_v59  ;;  %v7256_v52 = vor.u32 %v7255_v5, %v14929_v45  ;;  %v14945_v42 = vld [vmem:[#allocation3 + $0x4c] sm:$0xf]  ;;  %v8552_v24 = vshll.u32 %v14722_v28, 16  ;;  %v11721_v19 = vld [vmem:[#allocation3 + $0xb4] sm:$0xff] }
 0x3a6   : > { %v7228_v22 = vsel %vm12199_vm13, %v7223_v9, %v14831_v21  ;;  %v8556_v43 = vshrl.u32 %v14722_v28, 16  ;;  %v6504_v35 = vrot.slane %v6502_v26, 4  ;;  %v7259_v0 = vshll.u32 %v14941_v39, 16  ;;  %v11771_v20 = vld [vmem:[%s16476_s3 + $0x1c0] sm:$0xff]  ;;  %v6362_v5 = vld [vmem:[#allocation3 + $0xb4] sm:$0xe] }
 0x3a7   : > { %6714 = vmatmul.bf16.gmra.mxu3 %v6570_v31  ;;  %v6294_v14 = vpop.f32.mrf.mxu2  ;;  %v7238_v1 = vsel %vm12199_vm13, %v7233_v25, %v7237_v50  ;;  %8063 = vmatpush.bf16.msra.mxu2 %v11741_v3  ;;  %v14954_v25 = vrot.slane %v7246_v60, 4  ;;  %v11740_v28 = vld [vmem:[%s16476_s3 + $0x148] sm:$0xff]  ;;  %v9270_v31 = vrot.slane %v14945_v42, 5  ;;  %v6505_v33 = vrot.slane %v14588_v2, 5 }
 0x3a8   : > { %v6295_v11 = vadd.f32 %v6294_v14, %v14567_v49  ;;  %v7529_v59 = vunpack.c.l.b16 %v7238_v1  ;;  %v7257_v50 = vrot.slane %v7256_v52, 4  ;;  %v8545_v3 = vrot.slane %v8543_v46, 4  ;;  %v11739_v1 = vld [vmem:[%s16476_s3 + $0x140] sm:$0xff]  ;;  %v14973_v53 = vld [vmem:[#allocation3 + $0x50] sm:$0x1] }
 0x3a9   : > { %v14960_v21 = vpop.f32.mrf.mxu1  ;;  %9062 = vmatpush.bf16.msra.mxu0 %v11771_v20  ;;  %v8548_v63 = vrot.slane %v8546_v44, 5  ;;  %v7528_v60 = vunpack.c.l.b16 %v7228_v22  ;;  %v14967_v14 = vrot.slane %v8552_v24, 5  ;;  %v8558_v9 = vrot.slane %v8556_v43, 4  ;;  %v7753_v20 = vld [vmem:[#allocation3 + $0xc] sm:$0xe] }
 0x3aa   : > { %v6675_v57 = vpop.f32.mrf.mxu3  ;;  %v14952_v49 = vadd.f32 %v6672_v32, %v6295_v11  ;;  %v9180_v32 = vld [vmem:[#allocation3 + $0x48] sm:$0xe]  ;;  %v7819_v11 = vrot.slane %v14601_v40, 5  ;;  %v6506_v2 = vsel %vm12655_vm2, %v6504_v35, %v6505_v33  ;;  %v9272_v46 = vrot.slane %v9270_v31, 4 }
 0x3ab   : > { %7028 = vmatmul.bf16.gmra.mxu0 %v11721_v19  ;;  %8064 = vmatpush.bf16.msra.mxu2 %v11740_v28  ;;  %v11550_v52 = vrot.slane %v9180_v32, 9  ;;  %v7556_v22 = vpack.c.b16 %v7529_v59, %v7528_v60  ;;  %v7252_v24 = vsel %vm12199_vm13, %v14954_v25, %v14929_v45  ;;  %v7261_v43 = vrot.slane %v7259_v0, 5  ;;  %v14988_v59 = vpop.f32.mrf.mxu0  ;;  %v8497_v0 = vld [vmem:[#allocation3 + $0x24] sm:$0xf] }
 0x3ac   : > { %16612 = vst [vmem:[#allocation41_spill] sm:$0xff] %v14952_v49  ;;  %6336 = vmatmul.bf16.gmra.mxu2 %v11681_v16  ;;  %v11113_v16 = vrot.slane %v6362_v5, 9  ;;  %v8562_v19 = vshll.u32 %v14738_v58, 16  ;;  %v9273_v28 = vrot.slane %v14973_v53, 5  ;;  %v6555_v32 = vunpack.c.l.b16 %v6506_v2 }
 0x3ad   : > { %v9271_v35 = vsel %vm12655_vm2, %v11550_v52, %v9270_v31  ;;  %16613 = vst [vmem:[#allocation42_spill] sm:$0xff] %v14988_v59  ;;  %v7262_v45 = vsel %vm12199_vm13, %v7257_v50, %v7261_v43  ;;  %v8549_v25 = vor.u32 %v8548_v63, %v8545_v3  ;;  %v8559_v58 = vor.u32 %v8558_v9, %v14967_v14  ;;  %v7090_v9 = vld [vmem:[#allocation3 + $0x58] sm:$0xf] }
 0x3ae   : > { %v6503_v5 = vsel %vm12655_vm2, %v11113_v16, %v6502_v26  ;;  %v11322_v26 = vrot.slane %v7753_v20, 9  ;;  %v7821_v60 = vrot.slane %v7819_v11, 4  ;;  %v9274_v31 = vsel %vm12655_vm2, %v9272_v46, %v9273_v28  ;;  %v11783_v46 = vld [vmem:[%s16476_s3 + $0x220] sm:$0xff] }
 0x3af   : > { %v6297_v44 = vpop.f32.mrf.mxu2  ;;  %8065 = vmatpush.bf16.msra.mxu2 %v11739_v1  ;;  %v6554_v52 = vunpack.c.l.b16 %v6503_v5  ;;  %v7822_v2 = vrot.slane %v14624_v18, 5  ;;  %v9378_v50 = vunpack.c.l.b16 %v9274_v31  ;;  %v15000_v3 = vunpack.c.l.b16 %v7262_v45  ;;  %9484 = vmatpush.bf16.msra.mxu1 %v11783_v46  ;;  %v15019_v31 = vld [vmem:[#allocation3 + $0x5c] sm:$0x1] }
 0x3b0   : > { %v6298_v40 = vadd.f32 %v6297_v44, %v14586_v62  ;;  %v9377_v44 = vunpack.c.l.b16 %v9271_v35  ;;  %v7820_v63 = vsel %vm12655_vm2, %v11322_v26, %v7819_v11  ;;  %v8570_v1 = vshll.u32 %v8497_v0, 16 }
 0x3b1   : > { %v14997_v16 = vpop.f32.mrf.mxu1  ;;  %v6571_v43 = vpack.c.b16 %v6555_v32, %v6554_v52  ;;  %v8560_v20 = vrot.slane %v8559_v58, 4  ;;  %v8550_v5 = vrot.slane %v8549_v25, 4  ;;  %v7823_v35 = vsel %vm12655_vm2, %v7821_v60, %v7822_v2  ;;  %v7759_v58 = vld [vmem:[#allocation3 + $0x54] sm:$0xe] }
 0x3b2   : > { %v6677_v62 = vpop.f32.mrf.mxu3  ;;  %v14993_v33 = vadd.f32 %v6675_v57, %v6298_v40  ;;  %v8567_v57 = vshrl.u32 %v8497_v0, 16  ;;  %v8576_v40 = vshll.u32 %v14724_v61, 16  ;;  %v15008_v18 = vpack.c.b16 %v9378_v50, %v9377_v44  ;;  %v15027_v44 = vld [vmem:[#allocation3 + $0x18] sm:$0xe] }
 0x3b3   : > { %v8580_v11 = vshrl.u32 %v14724_v61, 16  ;;  %v15013_v45 = vunpack.c.l.b16 %v7252_v24  ;;  %v7946_v32 = vunpack.c.l.b16 %v7820_v63  ;;  %v7861_v0 = vrot.slane %v7090_v9, 5  ;;  %v11682_v63 = vld [vmem:[#allocation3 + $0xb4] sm:$0xff] }
 0x3b4   : > { %16614 = vst [vmem:[#allocation43_spill] sm:$0xff] %v14993_v33  ;;  %7660 = vmatmul.bf16.gmra.mxu1 %v7556_v22  ;;  %v8564_v22 = vrot.slane %v8562_v19, 5  ;;  %v8555_v25 = vsel %vm12199_vm13, %v8550_v5, %v14967_v14  ;;  %v8569_v60 = vrot.slane %v8567_v57, 4  ;;  %v8572_v52 = vrot.slane %v8570_v1, 5  ;;  %v15031_v57 = vpop.f32.mrf.mxu0  ;;  %v11722_v5 = vld [vmem:[#allocation3 + $0xc0] sm:$0xff] }
 0x3b5   : > { %16615 = vst [vmem:[#allocation44_spill] sm:$0xff] %v15008_v18  ;;  %v7947_v19 = vunpack.c.l.b16 %v7823_v35  ;;  %v15025_v2 = vrot.slane %v8576_v40, 5  ;;  %v8582_v14 = vrot.slane %v8580_v11, 4  ;;  %v7863_v46 = vrot.slane %v7861_v0, 4 }
 0x3b6   : > { %v8565_v24 = vsel %vm12199_vm13, %v8560_v20, %v8564_v22  ;;  %16617 = vst [vmem:[#allocation46_spill] sm:$0xff] %v15031_v57  ;;  %v7089_v20 = vld [vmem:[#allocation3 + $0x54] sm:$0xf]  ;;  %v7273_v35 = vshll.u32 %v7090_v9, 16  ;;  %v7277_v40 = vshrl.u32 %v7090_v9, 16  ;;  %v7864_v22 = vrot.slane %v15019_v31, 5 }
 0x3b7   : > { %6719 = vmatmul.bf16.gmra.mxu3 %v6571_v43  ;;  %v6299_v28 = vpop.f32.mrf.mxu2  ;;  %v11328_v43 = vrot.slane %v7759_v58, 9  ;;  %v8573_v61 = vor.u32 %v8572_v52, %v8569_v60  ;;  %v7826_v11 = vrot.slane %v14634_v38, 5  ;;  %v15040_v58 = vld [vmem:[#allocation3 + $0x58] sm:$0xf]  ;;  %v15044_v18 = vunpack.c.l.b16 %v8565_v24 }
 0x3b8   : > { %v6300_v26 = vadd.f32 %v6299_v28, %v14611_v54  ;;  %v15035_v28 = vunpack.c.l.b16 %v8555_v25  ;;  %v15046_v25 = vpack.c.b16 %v7947_v19, %v7946_v32  ;;  %v8586_v9 = vshll.u32 %v14760_v4, 16 }
 0x3b9   : > { %v15033_v1 = vpop.f32.mrf.mxu1  ;;  %v7264_v60 = vshrl.u32 %v7089_v20, 16  ;;  %v7267_v52 = vshll.u32 %v7089_v20, 16  ;;  %v7279_v59 = vrot.slane %v7277_v40, 4  ;;  %v9277_v24 = vrot.slane %v15040_v58, 5  ;;  %v8500_v20 = vld [vmem:[#allocation3 + $0x30] sm:$0xf] }
 0x3ba   : > { %v6680_v54 = vpop.f32.mrf.mxu3  ;;  %v15029_v50 = vadd.f32 %v6677_v62, %v6300_v26  ;;  %v11323_v62 = vrot.slane %v15027_v44, 9  ;;  %v7862_v26 = vsel %vm12655_vm2, %v11328_v43, %v7861_v0  ;;  %v8583_v44 = vor.u32 %v8582_v14, %v15025_v2 }
 0x3bb   : > { %7033 = vmatmul.bf16.gmra.mxu0 %v11722_v5  ;;  %v7958_v0 = vunpack.c.l.b16 %v7862_v26  ;;  %v8574_v19 = vrot.slane %v8573_v61, 4  ;;  %v7828_v43 = vrot.slane %v7826_v11, 4  ;;  %v8600_v4 = vshll.u32 %v14762_v6, 16  ;;  %v15057_v5 = vld [vmem:[#allocation3 + $0x5c] sm:$0x1] }
 0x3bc   : > { %16616 = vst [vmem:[#allocation45_spill] sm:$0xff] %v15029_v50  ;;  %6341 = vmatmul.bf16.gmra.mxu2 %v11682_v63  ;;  %v7865_v63 = vsel %vm12655_vm2, %v7863_v46, %v7864_v22  ;;  %v15052_v50 = vrot.slane %v7273_v35, 5  ;;  %v15059_v46 = vrot.slane %v8586_v9, 5  ;;  %v7829_v14 = vrot.slane %v14668_v55, 5 }
 0x3bd   : > { %v7959_v38 = vunpack.c.l.b16 %v7865_v63  ;;  %v8604_v35 = vshrl.u32 %v14762_v6, 16  ;;  %v7266_v63 = vrot.slane %v7264_v60, 4  ;;  %v15070_v61 = vrot.slane %v8583_v44, 4  ;;  %v15080_v60 = vld [vmem:[#allocation3 + $0x64] sm:$0xf]  ;;  %v15084_v44 = vpop.f32.mrf.mxu0 }
 0x3be   : > { %v7269_v33 = vrot.slane %v7267_v52, 5  ;;  %v7280_v55 = vor.u32 %v7279_v59, %v15052_v50  ;;  %v9279_v17 = vrot.slane %v9277_v24, 4  ;;  %v9280_v6 = vrot.slane %v15057_v5, 5  ;;  %16620 = vst [vmem:[#allocation49_spill] sm:$0xff] %v15084_v44  ;;  %v11747_v59 = vld [vmem:[#allocation3 + $0x18] sm:$0xff] }
 0x3bf   : > { %v6302_v57 = vpop.f32.mrf.mxu2  ;;  %v15063_v22 = vpack.c.b16 %v7959_v38, %v7958_v0  ;;  %v8591_v38 = vshrl.u32 %v8500_v20, 16  ;;  %v8594_v0 = vshll.u32 %v8500_v20, 16  ;;  %v16621_v52 = vpack.c.b16 %v15000_v3, %v15013_v45  ;;  %v8503_v45 = vld [vmem:[#allocation3 + $0x3c] sm:$0xf] }
 0x3c0   : > { %v6303_v32 = vadd.f32 %v6302_v57, %v14626_v30  ;;  %v8579_v30 = vsel %vm12199_vm13, %v8574_v19, %v15025_v2  ;;  %v9181_v57 = vld [vmem:[#allocation3 + $0x54] sm:$0xe]  ;;  %v15082_v2 = vrot.slane %v8600_v4, 5  ;;  %v8606_v19 = vrot.slane %v8604_v35, 4 }
 0x3c1   : > { %16618 = vst [vmem:[#allocation47_spill] sm:$0xff] %v15063_v22  ;;  %v15072_v9 = vpop.f32.mrf.mxu1  ;;  %v15098_v20 = vunpack.c.l.b16 %v8579_v30  ;;  %v15102_v3 = vsel %vm12655_vm2, %v11323_v62, %v7826_v11  ;;  %v7270_v35 = vor.u32 %v7269_v33, %v7266_v63  ;;  %v8593_v4 = vrot.slane %v8591_v38, 4 }
 0x3c2   : > { %v6682_v40 = vpop.f32.mrf.mxu3  ;;  %v15065_v26 = vadd.f32 %v6680_v54, %v6303_v32  ;;  %v15078_v54 = vsel %vm12655_vm2, %v7828_v43, %v7829_v14  ;;  %v7283_v32 = vshll.u32 %v15019_v31, 16  ;;  %v9281_v43 = vsel %vm12655_vm2, %v9279_v17, %v9280_v6  ;;  %v7760_v17 = vld [vmem:[#allocation3 + $0x60] sm:$0xe] }
 0x3c3   : > { %v8975_v14 = vpack.c.b16 %v15044_v18, %v15035_v28  ;;  %v7868_v6 = vrot.slane %v15080_v60, 5  ;;  %v9380_v62 = vunpack.c.l.b16 %v9281_v43  ;;  %v8596_v44 = vrot.slane %v8594_v0, 5  ;;  %v7092_v0 = vld [vmem:[#allocation3 + $0x60] sm:$0xf] }
 0x3c4   : > { %16619 = vst [vmem:[#allocation48_spill] sm:$0xff] %v15065_v26  ;;  %7665 = vmatmul.bf16.gmra.mxu1 %v16621_v52  ;;  %v11551_v26 = vrot.slane %v9181_v57, 9  ;;  %v7281_v57 = vrot.slane %v7280_v55, 4  ;;  %v15109_v52 = vld [vmem:[#allocation3 + $0x68] sm:$0x1]  ;;  %v7285_v11 = vrot.slane %v7283_v32, 5 }
 0x3c5   : > { %v8615_v33 = vshrl.u32 %v8503_v45, 16  ;;  %v11329_v49 = vrot.slane %v7760_v17, 9  ;;  %v7870_v56 = vrot.slane %v7868_v6, 4  ;;  %v7871_v38 = vrot.slane %v15109_v52, 5  ;;  %v15134_v30 = vpop.f32.mrf.mxu0 }
 0x3c6   : > { %v9278_v18 = vsel %vm12655_vm2, %v11551_v26, %v9277_v24  ;;  %v7286_v26 = vsel %vm12199_vm13, %v7281_v57, %v7285_v11  ;;  %v7297_v32 = vshll.u32 %v15080_v60, 16  ;;  %16624 = vst [vmem:[#allocation52_spill] sm:$0xff] %v15134_v30 }
 0x3c7   : > { %8381 = vmatmul.bf16.vlgmr.msra.gmra.mxu3 %v11747_v59  ;;  %v6304_v31 = vpop.f32.mrf.mxu2  ;;  %v8607_v59 = vor.u32 %v8606_v19, %v15082_v2  ;;  %v9379_v22 = vunpack.c.l.b16 %v9278_v18  ;;  %v15122_v19 = vld [vmem:[#allocation3 + $0x64] sm:$0xf]  ;;  %v7869_v43 = vsel %vm12655_vm2, %v11329_v49, %v7868_v6  ;;  %v7291_v6 = vshll.u32 %v7092_v0, 16 }
 0x3c8   : > { %v6305_v28 = vadd.f32 %v6304_v31, %v14647_v15  ;;  %v7271_v15 = vrot.slane %v7270_v35, 4  ;;  %v8618_v31 = vshll.u32 %v8503_v45, 16  ;;  %v8597_v35 = vor.u32 %v8596_v44, %v8593_v4 }
 0x3c9   : > { %v15114_v24 = vpop.f32.mrf.mxu1  ;;  %v15126_v17 = vpack.c.b16 %v9380_v62, %v9379_v22  ;;  %v8608_v57 = vrot.slane %v8607_v59, 4  ;;  %v8610_v45 = vshll.u32 %v14783_v29, 16  ;;  %v7288_v22 = vshrl.u32 %v7092_v0, 16 }
 0x3ca   : > { %v6685_v63 = vpop.f32.mrf.mxu3  ;;  %v15112_v55 = vadd.f32 %v6682_v40, %v6305_v28  ;;  %v7301_v40 = vshrl.u32 %v15080_v60, 16  ;;  %v7276_v18 = vsel %vm12199_vm13, %v7271_v15, %v15052_v50  ;;  %v7533_v60 = vunpack.c.l.b16 %v7286_v26  ;;  %v15142_v15 = vld [vmem:[#allocation3 + $0x68] sm:$0x1] }
 0x3cb   : > { %16623 = vst [vmem:[#allocation51_spill] sm:$0xff] %v15126_v17  ;;  %9063 = vmatmul.bf16.vlgmr.msra.gmra.mxu0 %v8975_v14  ;;  %v8617_v28 = vrot.slane %v8615_v33, 4  ;;  %v7960_v14 = vunpack.c.l.b16 %v7869_v43  ;;  %v9284_v44 = vrot.slane %v15122_v19, 5  ;;  %v15138_v4 = vrot.slane %v7297_v32, 5 }
 0x3cc   : > { %16622 = vst [vmem:[#allocation50_spill] sm:$0xff] %v15112_v55  ;;  %8066 = vmatmul.bf16.vlgmr.msra.gmra.mxu2 %v15046_v25  ;;  %v7872_v25 = vsel %vm12655_vm2, %v7870_v56, %v7871_v38  ;;  %v7303_v56 = vrot.slane %v7301_v40, 4  ;;  %v8620_v62 = vrot.slane %v8618_v31, 5  ;;  %v7532_v59 = vunpack.c.l.b16 %v7276_v18 }
 0x3cd   : > { %v7961_v11 = vunpack.c.l.b16 %v7872_v25  ;;  %v8624_v50 = vshll.u32 %v14845_v51, 16  ;;  %v8628_v33 = vshrl.u32 %v14845_v51, 16  ;;  %v8598_v40 = vrot.slane %v8597_v35, 4 }
 0x3ce   : > { %v8612_v31 = vrot.slane %v8610_v45, 5  ;;  %v7558_v25 = vpack.c.b16 %v7533_v60, %v7532_v59  ;;  %v7290_v18 = vrot.slane %v7288_v22, 4  ;;  %v7293_v51 = vrot.slane %v7291_v6, 5  ;;  %v11782_v45 = vld [vmem:[%s16476_s3 + $0x218] sm:$0xff]  ;;  %v7096_v22 = vld [vmem:[#allocation3 + $0x70] sm:$0xf] }
 0x3cf   : > { %v6307_v49 = vpop.f32.mrf.mxu2  ;;  %v15144_v26 = vpack.c.b16 %v7961_v11, %v7960_v14  ;;  %v9286_v11 = vrot.slane %v9284_v44, 4  ;;  %v7304_v14 = vor.u32 %v7303_v56, %v15138_v4  ;;  %v9287_v17 = vrot.slane %v15142_v15, 5  ;;  %9485 = vmatpush.bf16.msra.mxu1 %v11782_v45 }
 0x3d0   : > { %v6308_v29 = vadd.f32 %v6307_v49, %v14674_v8  ;;  %v16626_v8 = vsel %vm12199_vm13, %v15070_v61, %v15059_v46  ;;  %v8506_v49 = vld [vmem:[#allocation3 + $0x48] sm:$0xf]  ;;  %v8603_v61 = vsel %vm12199_vm13, %v8598_v40, %v15082_v2  ;;  %v8613_v35 = vsel %vm12199_vm13, %v8608_v57, %v8612_v31 }
 0x3d1   : > { %v8946_v32 = vunpack.c.l.b16 %v16626_v8  ;;  %v15153_v43 = vpop.f32.mrf.mxu1  ;;  %v11748_v46 = vld [vmem:[#allocation3 + $0x24] sm:$0xff]  ;;  %v15168_v60 = vrot.slane %v8624_v50, 5  ;;  %v8639_v6 = vshrl.u32 %v8506_v49, 16  ;;  %v8642_v56 = vshll.u32 %v8506_v49, 16  ;;  %v15183_v49 = vpop.f32.mrf.mxu0 }
 0x3d2   : > { %v6687_v38 = vpop.f32.mrf.mxu3  ;;  %v15146_v0 = vadd.f32 %v6685_v63, %v6308_v29  ;;  %v7948_v63 = vunpack.c.l.b16 %v15102_v3  ;;  %v8621_v29 = vor.u32 %v8620_v62, %v8617_v28  ;;  %v8630_v3 = vrot.slane %v8628_v33, 4  ;;  %16628 = vst [vmem:[#allocation54_spill] sm:$0xff] %v15183_v49 }
 0x3d3   : > { %v7307_v28 = vshll.u32 %v15109_v52, 16  ;;  %v15173_v62 = vsel %vm12655_vm2, %v9286_v11, %v9287_v17  ;;  %v8976_v2 = vpack.c.b16 %v8946_v32, %v15098_v20  ;;  %v16627_v59 = vunpack.c.l.b16 %v15078_v54  ;;  %v15187_v11 = vld [vmem:[#allocation3 + $0x74] sm:$0x1] }
 0x3d4   : > { %16625 = vst [vmem:[#allocation53_spill] sm:$0xff] %v15146_v0  ;;  %7670 = vmatmul.bf16.gmra.mxu1 %v7558_v25  ;;  %v7294_v40 = vor.u32 %v7293_v51, %v7290_v18  ;;  %v7305_v33 = vrot.slane %v7304_v14, 4  ;;  %v15179_v52 = vunpack.c.l.b16 %v8603_v61  ;;  %v15181_v31 = vrot.slane %v8621_v29, 4  ;;  %v7761_v25 = vld [vmem:[#allocation3 + $0x6c] sm:$0xe] }
 0x3d5   : > { %v7979_v8 = vpack.c.b16 %v16627_v59, %v7948_v63  ;;  %v15185_v17 = vunpack.c.l.b16 %v8613_v35  ;;  %v8631_v20 = vor.u32 %v8630_v3, %v15168_v60  ;;  %v8634_v54 = vshll.u32 %v14862_v12, 16  ;;  %v9182_v18 = vld [vmem:[#allocation3 + $0x60] sm:$0xe]  ;;  %v7095_v35 = vld [vmem:[#allocation3 + $0x6c] sm:$0xf] }
 0x3d6   : > { %v7875_v32 = vrot.slane %v7096_v22, 5  ;;  %v7309_v63 = vrot.slane %v7307_v28, 5  ;;  %v15193_v14 = vrot.slane %v8639_v6, 4  ;;  %v15195_v29 = vrot.slane %v8642_v56, 5  ;;  %v15222_v0 = vld [vmem:[#allocation3 + $0x74] sm:$0x1] }
 0x3d7   : > { %8386 = vmatmul.bf16.gmra.mxu3 %v11748_v46  ;;  %v6309_v57 = vpop.f32.mrf.mxu2  ;;  %v7295_v61 = vrot.slane %v7294_v40, 4  ;;  %v7321_v45 = vshll.u32 %v7096_v22, 16  ;;  %v11330_v59 = vrot.slane %v7761_v25, 9  ;;  %v8648_v6 = vshll.u32 %v14945_v42, 16  ;;  %v15207_v40 = vld [vmem:[#allocation3 + $0x70] sm:$0xf] }
 0x3d8   : > { %v6310_v50 = vadd.f32 %v6309_v57, %v14697_v47  ;;  %v7325_v57 = vshrl.u32 %v7096_v22, 16  ;;  %v7310_v12 = vsel %vm12199_vm13, %v7305_v33, %v7309_v63  ;;  %v7877_v3 = vrot.slane %v7875_v32, 4 }
 0x3d9   : > { %v15197_v46 = vpop.f32.mrf.mxu1  ;;  %v7300_v28 = vsel %vm12199_vm13, %v7295_v61, %v15138_v4  ;;  %v8652_v56 = vshrl.u32 %v14945_v42, 16  ;;  %v7876_v22 = vsel %vm12655_vm2, %v11330_v59, %v7875_v32  ;;  %v7315_v33 = vshll.u32 %v7095_v35, 16 }
 0x3da   : > { %v6690_v51 = vpop.f32.mrf.mxu3  ;;  %v15191_v47 = vadd.f32 %v6687_v38, %v6310_v50  ;;  %v7878_v38 = vrot.slane %v15187_v11, 5  ;;  %v11552_v50 = vrot.slane %v9182_v18, 9  ;;  %v7535_v18 = vunpack.c.l.b16 %v7310_v12 }
 0x3db   : > { %9068 = vmatmul.bf16.gmra.mxu0 %v8976_v2  ;;  %v15217_v63 = vrot.slane %v7321_v45, 5  ;;  %v7327_v42 = vrot.slane %v7325_v57, 4  ;;  %v9382_v61 = vunpack.c.l.b16 %v15173_v62  ;;  %v7962_v32 = vunpack.c.l.b16 %v7876_v22  ;;  %v15228_v62 = vpop.f32.mrf.mxu0 }
 0x3dc   : > { %16629 = vst [vmem:[#allocation55_spill] sm:$0xff] %v15191_v47  ;;  %8071 = vmatmul.bf16.gmra.mxu2 %v7979_v8  ;;  %v7312_v8 = vshrl.u32 %v7095_v35, 16  ;;  %v7879_v25 = vsel %vm12655_vm2, %v7877_v3, %v7878_v38  ;;  %v9285_v2 = vsel %vm12655_vm2, %v11552_v50, %v9284_v44  ;;  %v16482_v35 = vrot.slane %v15207_v40, 5 }
 0x3dd   : > { %v7963_v59 = vunpack.c.l.b16 %v7879_v25  ;;  %v7534_v49 = vunpack.c.l.b16 %v7300_v28  ;;  %v8632_v3 = vrot.slane %v8631_v20, 4  ;;  %v8636_v38 = vrot.slane %v8634_v54, 5  ;;  %16631 = vst [vmem:[#allocation57_spill] sm:$0xff] %v15228_v62 }
 0x3de   : > { %v9381_v30 = vunpack.c.l.b16 %v9285_v2  ;;  %v7314_v45 = vrot.slane %v7312_v8, 4  ;;  %v7317_v12 = vrot.slane %v7315_v33, 5  ;;  %v7328_v25 = vor.u32 %v7327_v42, %v15217_v63  ;;  %v11749_v2 = vld [vmem:[#allocation3 + $0x30] sm:$0xff] }
 0x3df   : > { %v6312_v4 = vpop.f32.mrf.mxu2  ;;  %v15226_v57 = vpack.c.b16 %v7963_v59, %v7962_v32  ;;  %v7559_v22 = vpack.c.b16 %v7535_v18, %v7534_v49  ;;  %v8645_v20 = vor.u32 %v15195_v29, %v15193_v14  ;;  %v15237_v28 = vrot.slane %v8648_v6, 5  ;;  %v7099_v14 = vld [vmem:[#allocation3 + $0x7c] sm:$0xf]  ;;  %v8509_v29 = vld [vmem:[#allocation3 + $0x54] sm:$0xf] }
 0x3e0   : > { %v6313_v47 = vadd.f32 %v6312_v4, %v14716_v37  ;;  %v15235_v54 = vpack.c.b16 %v9382_v61, %v9381_v30  ;;  %v9293_v8 = vrot.slane %v16482_v35, 4  ;;  %v9294_v33 = vrot.slane %v15222_v0, 5  ;;  %v15291_v35 = vld [vmem:[#allocation3 + $0x7c] sm:$0xf] }
 0x3e1   : > { %v15230_v37 = vpop.f32.mrf.mxu1  ;;  %v8977_v49 = vpack.c.b16 %v15185_v17, %v15179_v52  ;;  %v7331_v4 = vshll.u32 %v15187_v11, 16  ;;  %v8627_v30 = vsel %vm12199_vm13, %v15181_v31, %v15168_v60  ;;  %v7318_v6 = vor.u32 %v7317_v12, %v7314_v45 }
 0x3e2   : > { %v6692_v44 = vpop.f32.mrf.mxu3  ;;  %v15224_v50 = vadd.f32 %v6690_v51, %v6313_v47  ;;  %16632 = vst [vmem:[#allocation58_spill] sm:$0xff] %v15235_v54  ;;  %v8654_v51 = vrot.slane %v8652_v56, 4  ;;  %v15239_v47 = vld [vmem:[#allocation3 + $0x48] sm:$0xe]  ;;  %v8637_v56 = vsel %vm12199_vm13, %v8632_v3, %v8636_v38  ;;  %v8658_v18 = vshll.u32 %v14973_v53, 16 }
 0x3e3   : > { %v15256_v42 = vsel %vm12655_vm2, %v9293_v8, %v9294_v33  ;;  %v7329_v17 = vrot.slane %v7328_v25, 4  ;;  %v15258_v11 = vrot.slane %v8645_v20, 4  ;;  %v8663_v59 = vshrl.u32 %v8509_v29, 16  ;;  %v7762_v3 = vld [vmem:[#allocation3 + $0x78] sm:$0xe] }
 0x3e4   : > { %16630 = vst [vmem:[#allocation56_spill] sm:$0xff] %v15224_v50  ;;  %7675 = vmatmul.bf16.gmra.mxu1 %v7559_v22  ;;  %v8655_v32 = vor.u32 %v8654_v51, %v15237_v28  ;;  %v7882_v53 = vrot.slane %v7099_v14, 5  ;;  %v7333_v38 = vrot.slane %v7331_v4, 5  ;;  %v15264_v45 = vunpack.c.l.b16 %v8627_v30  ;;  %v15268_v22 = vld [vmem:[#allocation3 + $0x80] sm:$0x1] }
 0x3e5   : > { %v15266_v12 = vunpack.c.l.b16 %v8637_v56  ;;  %v8666_v25 = vshll.u32 %v8509_v29, 16  ;;  %v9183_v20 = vld [vmem:[#allocation3 + $0x6c] sm:$0xe]  ;;  %v15276_v51 = vrot.slane %v8658_v18, 5  ;;  %v7098_v56 = vld [vmem:[#allocation3 + $0x78] sm:$0xf] }
 0x3e6   : > { %v7334_v30 = vsel %vm12199_vm13, %v7329_v17, %v7333_v38  ;;  %v7349_v29 = vshrl.u32 %v7099_v14, 16  ;;  %v11331_v61 = vrot.slane %v7762_v3, 9  ;;  %v11553_v60 = vrot.slane %v9183_v20, 9  ;;  %v15308_v50 = vld [vmem:[#allocation3 + $0x80] sm:$0x1] }
 0x3e7   : > { %8391 = vmatmul.bf16.gmra.mxu3 %v11749_v2  ;;  %v6314_v52 = vpop.f32.mrf.mxu2  ;;  %v7319_v2 = vrot.slane %v7318_v6, 4  ;;  %v7884_v6 = vrot.slane %v7882_v53, 4  ;;  %v8665_v17 = vrot.slane %v8663_v59, 4  ;;  %v8668_v38 = vrot.slane %v8666_v25, 5 }
 0x3e8   : > { %v6315_v31 = vadd.f32 %v6314_v52, %v14753_v34  ;;  %v7345_v52 = vshll.u32 %v7099_v14, 16  ;;  %v15286_v34 = vpop.f32.mrf.mxu0  ;;  %v7537_v14 = vunpack.c.l.b16 %v7334_v30  ;;  %v16635_v20 = vrot.slane %v15207_v40, 5 }
 0x3e9   : > { %v15278_v4 = vpop.f32.mrf.mxu1  ;;  %16634 = vst [vmem:[#allocation60_spill] sm:$0xff] %v15286_v34  ;;  %v7324_v18 = vsel %vm12199_vm13, %v7319_v2, %v15217_v63  ;;  %v7351_v59 = vrot.slane %v7349_v29, 4  ;;  %v9384_v25 = vunpack.c.l.b16 %v15256_v42  ;;  %v8669_v42 = vor.u32 %v8668_v38, %v8665_v17  ;;  %v11781_v38 = vld [vmem:[%s16476_s3 + $0x210] sm:$0xff] }
 0x3ea   : > { %v6695_v8 = vpop.f32.mrf.mxu3  ;;  %v15270_v33 = vadd.f32 %v6692_v44, %v6315_v31  ;;  %v15283_v44 = vrot.slane %v8655_v32, 4  ;;  %v7885_v31 = vrot.slane %v15268_v22, 5  ;;  %v7336_v32 = vshrl.u32 %v7098_v56, 16  ;;  %9486 = vmatpush.bf16.msra.mxu1 %v11781_v38 }
 0x3eb   : > { %9073 = vmatmul.bf16.gmra.mxu0 %v8977_v49  ;;  %v9292_v49 = vsel %vm12655_vm2, %v11553_v60, %v16635_v20  ;;  %v15301_v63 = vrot.slane %v7345_v52, 5  ;;  %v7536_v34 = vunpack.c.l.b16 %v7324_v18  ;;  %v16636_v52 = vld [vmem:[#allocation23_spill] sm:$0xff]  ;;  %v8978_v17 = vpack.c.b16 %v15266_v12, %v15264_v45 }
 0x3ec   : > { %16633 = vst [vmem:[#allocation59_spill] sm:$0xff] %v15270_v33  ;;  %8076 = vmatmul.bf16.gmra.mxu2 %v14718_v23  ;;  %v7883_v23 = vsel %vm12655_vm2, %v11331_v61, %v7882_v53  ;;  %v7886_v3 = vsel %vm12655_vm2, %v7884_v6, %v7885_v31  ;;  %v7339_v33 = vshll.u32 %v7098_v56, 16  ;;  %v8672_v6 = vshll.u32 %v15040_v58, 16 }
 0x3ed   : > { %v7964_v61 = vunpack.c.l.b16 %v7883_v23  ;;  %v7965_v53 = vunpack.c.l.b16 %v7886_v3  ;;  %v8676_v31 = vshrl.u32 %v15040_v58, 16  ;;  %v9383_v60 = vunpack.c.l.b16 %v9292_v49 }
 0x3ee   : > { %v7039_v29 = vadd.f32 %v16636_v52, %v14582_v41  ;;  %v7560_v23 = vpack.c.b16 %v7537_v14, %v7536_v34  ;;  %v7338_v3 = vrot.slane %v7336_v32, 4  ;;  %v7341_v18 = vrot.slane %v7339_v33, 5  ;;  %v7102_v34 = vld [vmem:[#allocation3 + $0x88] sm:$0xf] }
 0x3ef   : > { %v6317_v54 = vpop.f32.mrf.mxu2  ;;  %v15316_v30 = vpack.c.b16 %v9384_v25, %v9383_v60  ;;  %v7352_v58 = vor.u32 %v7351_v59, %v15301_v63  ;;  %v16640_v49 = vrot.slane %v15291_v35, 5  ;;  %v9301_v41 = vrot.slane %v15308_v50, 5 }
 0x3f0   : > { %v6318_v2 = vadd.f32 %v6317_v54, %v14799_v36  ;;  %v15314_v36 = vpack.c.b16 %v7965_v53, %v7964_v61  ;;  %v8661_v33 = vsel %vm12199_vm13, %v15283_v44, %v15276_v51  ;;  %v15333_v14 = vrot.slane %v8672_v6, 5  ;;  %v8512_v51 = vld [vmem:[#allocation3 + $0x60] sm:$0xf]  ;;  %v15349_v61 = vpop.f32.mrf.mxu0 }
 0x3f1   : > { %v7641_v54 = vpop.f32.mrf.mxu1  ;;  %16639 = vst [vmem:[#allocation62_spill] sm:$0xff] %v15316_v30  ;;  %v9300_v55 = vrot.slane %v16640_v49, 4  ;;  %v8678_v32 = vrot.slane %v8676_v31, 4  ;;  %v7355_v59 = vshll.u32 %v15268_v22, 16  ;;  %v16641_v25 = vrot.slane %v14868_v48, 5 }
 0x3f2   : > { %v6697_v56 = vpop.f32.mrf.mxu3  ;;  %v15312_v20 = vadd.f32 %v6695_v8, %v6318_v2  ;;  %16638 = vst [vmem:[#allocation61_spill] sm:$0xff] %v15314_v36  ;;  %v15318_v62 = vadd.f32 %v7641_v54, %v7039_v29  ;;  %v11750_v8 = vld [vmem:[#allocation3 + $0x3c] sm:$0xff]  ;;  %v16642_v2 = vrot.slane %v15239_v47, 9  ;;  %v7342_v22 = vor.u32 %v7341_v18, %v7338_v3  ;;  %v7763_v3 = vld [vmem:[#allocation3 + $0x84] sm:$0xe] }
 0x3f3   : > { %v15347_v44 = vsel %vm12655_vm2, %v9300_v55, %v9301_v41  ;;  %16643 = vst [vmem:[#allocation63_spill] sm:$0xff] %v15349_v61  ;;  %v16644_v47 = vsel %vm12199_vm13, %v15258_v11, %v15237_v28  ;;  %v15358_v31 = vrot.slane %v8669_v42, 4  ;;  %v16645_v60 = vmov %v16641_v25  ;;  %v16646_v55 = vld [vmem:[#allocation35_spill] sm:$0xff]  ;;  %v9184_v49 = vld [vmem:[#allocation3 + $0x78] sm:$0xe] }
 0x3f4   : > { %16637 = vst [vmem:[#allocation23_spill] sm:$0xff] %v15312_v20  ;;  %7680 = vmatmul.bf16.gmra.mxu1 %v7560_v23  ;;  %v15342_v45 = vsel %vm12655_vm2, %v16642_v2, %v16641_v25  ;;  %v15356_v6 = vunpack.c.l.b16 %v16644_v47  ;;  %v15362_v52 = vrot.slane %v16645_v60, 4  ;;  %v7353_v54 = vrot.slane %v7352_v58, 4  ;;  %v16647_v41 = vld [vmem:[#allocation27_spill] sm:$0xff]  ;;  %v15369_v11 = vld [vmem:[#allocation3 + $0x8c] sm:$0x1] }
 0x3f5   : > { %v15365_v23 = vunpack.c.l.b16 %v8661_v33  ;;  %v7889_v18 = vrot.slane %v7102_v34, 5  ;;  %v8679_v42 = vor.u32 %v8678_v32, %v15333_v14  ;;  %v8682_v38 = vshll.u32 %v15057_v5, 16  ;;  %v7101_v58 = vld [vmem:[#allocation3 + $0x84] sm:$0xf]  ;;  %v16652_v36 = vld [vmem:[#allocation26_spill] sm:$0xff] }
 0x3f6   : > { %v8687_v48 = vshrl.u32 %v8512_v51, 16  ;;  %v7369_v33 = vshll.u32 %v7102_v34, 16  ;;  %v7373_v47 = vshrl.u32 %v7102_v34, 16  ;;  %v8690_v12 = vshll.u32 %v8512_v51, 16 }
 0x3f7   : > { %8396 = vmatmul.bf16.gmra.mxu3 %v11750_v8  ;;  %v6319_v53 = vpop.f32.mrf.mxu2  ;;  %v16648_v8 = vld [vmem:[#allocation24_spill] sm:$0xff]  ;;  %v11332_v30 = vrot.slane %v7763_v3, 9  ;;  %v11554_v20 = vrot.slane %v9184_v49, 9  ;;  %v7891_v32 = vrot.slane %v7889_v18, 4 }
 0x3f8   : > { %v6320_v29 = vadd.f32 %v6319_v53, %v16646_v55  ;;  %v7040_v28 = vadd.f32 %v16648_v8, %v16647_v41  ;;  %v7357_v53 = vrot.slane %v7355_v59, 5  ;;  %v7343_v55 = vrot.slane %v7342_v22, 4  ;;  %v16650_v8 = vld [vmem:[#allocation18_spill] sm:$0xff] }
 0x3f9   : > { %v7643_v60 = vpop.f32.mrf.mxu1  ;;  %v7360_v59 = vshrl.u32 %v7101_v58, 16  ;;  %v7363_v22 = vshll.u32 %v7101_v58, 16  ;;  %v7890_v51 = vsel %vm12655_vm2, %v11332_v30, %v7889_v18  ;;  %v7375_v3 = vrot.slane %v7373_v47, 4  ;;  %v15396_v47 = vpop.f32.mrf.mxu0 }
 0x3fa   : > { %v6700_v25 = vpop.f32.mrf.mxu3  ;;  %v15373_v2 = vadd.f32 %v6697_v56, %v6320_v29  ;;  %v15375_v41 = vadd.f32 %v7643_v60, %v7040_v28  ;;  %v7358_v5 = vsel %vm12199_vm13, %v7353_v54, %v7357_v53  ;;  %v7892_v56 = vrot.slane %v15369_v11, 5 }
 0x3fb   : > { %9078 = vmatmul.bf16.gmra.mxu0 %v8978_v17  ;;  %v7348_v34 = vsel %vm12199_vm13, %v7343_v55, %v15301_v63  ;;  %v15386_v29 = vrot.slane %v7369_v33, 5  ;;  %v16651_v54 = vrot.slane %v15291_v35, 5  ;;  %v7539_v53 = vunpack.c.l.b16 %v7358_v5 }
 0x3fc   : > { %16649 = vst [vmem:[#allocation35_spill] sm:$0xff] %v15373_v2  ;;  %8081 = vmatmul.bf16.gmra.mxu2 %v16650_v8  ;;  %v7893_v49 = vsel %vm12655_vm2, %v7891_v32, %v7892_v56  ;;  %v8689_v60 = vrot.slane %v8687_v48, 4  ;;  %v8692_v63 = vrot.slane %v8690_v12, 5  ;;  %v9386_v58 = vunpack.c.l.b16 %v15347_v44  ;;  %v15403_v44 = vld [vmem:[#allocation3 + $0x88] sm:$0xf] }
 0x3fd   : > { %v9299_v17 = vsel %vm12655_vm2, %v11554_v20, %v16651_v54  ;;  %v8680_v30 = vrot.slane %v8679_v42, 4  ;;  %v7966_v18 = vunpack.c.l.b16 %v7890_v51  ;;  %v7967_v33 = vunpack.c.l.b16 %v7893_v49  ;;  %v16653_v20 = vld [vmem:[#allocation25_spill] sm:$0xff] }
 0x3fe   : > { %v7538_v8 = vunpack.c.l.b16 %v7348_v34  ;;  %v7362_v32 = vrot.slane %v7360_v59, 4  ;;  %v7365_v56 = vrot.slane %v7363_v22, 5  ;;  %v9385_v2 = vunpack.c.l.b16 %v9299_v17 }
 0x3ff   : > { %v6322_v28 = vpop.f32.mrf.mxu2  ;;  %v7041_v54 = vadd.f32 %v16653_v20, %v16652_v36  ;;  %v7376_v12 = vor.u32 %v7375_v3, %v15386_v29  ;;  %v8684_v51 = vrot.slane %v8682_v38, 5  ;;  %v8693_v49 = vor.u32 %v8692_v63, %v8689_v60  ;;  %v11751_v38 = vld [vmem:[#allocation3 + $0x48] sm:$0xff] }
 0x400   : > { %v6323_v55 = vadd.f32 %v6322_v28, %v14916_v7  ;;  %v15405_v7 = vpack.c.b16 %v7967_v33, %v7966_v18  ;;  %v7561_v48 = vpack.c.b16 %v7539_v53, %v7538_v8  ;;  %v15407_v34 = vpack.c.b16 %v9386_v58, %v9385_v2  ;;  %v7764_v58 = vld [vmem:[#allocation3 + $0x90] sm:$0xe]  ;;  %v7105_v8 = vld [vmem:[#allocation3 + $0x94] sm:$0xf] }
 0x401   : > { %v7646_v42 = vpop.f32.mrf.mxu1  ;;  %v7379_v22 = vshll.u32 %v15369_v11, 16  ;;  %v8675_v36 = vsel %vm12199_vm13, %v15358_v31, %v15333_v14  ;;  %v7366_v2 = vor.u32 %v7365_v56, %v7362_v32  ;;  %v8685_v17 = vsel %vm12199_vm13, %v8680_v30, %v8684_v51  ;;  %v15439_v56 = vld [vmem:[#allocation3 + $0x8c] sm:$0x1] }
 0x402   : > { %v6702_v61 = vpop.f32.mrf.mxu3  ;;  %v15400_v5 = vadd.f32 %v6700_v25, %v6323_v55  ;;  %16654 = vst [vmem:[#allocation27_spill] sm:$0xff] %v15407_v34  ;;  %v15409_v59 = vadd.f32 %v7646_v42, %v7041_v54  ;;  %v16655_v25 = vrot.slane %v14941_v39, 5  ;;  %v8696_v11 = vshll.u32 %v15122_v19, 16  ;;  %v9185_v55 = vld [vmem:[#allocation3 + $0x84] sm:$0xe]  ;;  %v16659_v34 = vld [vmem:[#allocation13_spill] sm:$0xff] }
 0x403   : > { %v9305_v28 = vrot.slane %v15403_v44, 5  ;;  %v7377_v53 = vrot.slane %v7376_v12, 4  ;;  %v8979_v39 = vpack.c.b16 %v15365_v23, %v15356_v6  ;;  %v15433_v63 = vrot.slane %v8693_v49, 4  ;;  %v16656_v6 = vld [vmem:[#allocation30_spill] sm:$0xff]  ;;  %v16657_v23 = vld [vmem:[#allocation29_spill] sm:$0xff] }
 0x404   : > { %v15421_v3 = vsel %vm12655_vm2, %v15362_v52, %v16655_v25  ;;  %7685 = vmatmul.bf16.gmra.mxu1 %v7561_v48  ;;  %v15430_v52 = vunpack.c.l.b16 %v8675_v36  ;;  %v7381_v18 = vrot.slane %v7379_v22, 5  ;;  %v15436_v33 = vunpack.c.l.b16 %v8685_v17  ;;  %v15449_v49 = vld [vmem:[#allocation3 + $0x98] sm:$0x1] }
 0x405   : > { %v8700_v32 = vshrl.u32 %v15122_v19, 16  ;;  %v7042_v20 = vadd.f32 %v16657_v23, %v16656_v6  ;;  %v7367_v54 = vrot.slane %v7366_v2, 4  ;;  %v15443_v12 = vrot.slane %v8696_v11, 5  ;;  %v15451_v19 = vpop.f32.mrf.mxu0 }
 0x406   : > { %v9307_v42 = vrot.slane %v9305_v28, 4  ;;  %v11333_v22 = vrot.slane %v7764_v58, 9  ;;  %v11555_v36 = vrot.slane %v9185_v55, 9  ;;  %v7393_v17 = vshll.u32 %v7105_v8, 16  ;;  %v15462_v55 = vld [vmem:[#allocation3 + $0x94] sm:$0xf] }
 0x407   : > { %8401 = vmatmul.bf16.gmra.mxu3 %v11751_v38  ;;  %v6324_v31 = vpop.f32.mrf.mxu2  ;;  %v7104_v38 = vld [vmem:[#allocation3 + $0x90] sm:$0xf]  ;;  %v7896_v2 = vrot.slane %v7105_v8, 5  ;;  %v9308_v11 = vrot.slane %v15439_v56, 5  ;;  %v9312_v14 = vrot.slane %v15462_v55, 5 }
 0x408   : > { %v6325_v30 = vadd.f32 %v6324_v31, %v14960_v21  ;;  %v7382_v21 = vsel %vm12199_vm13, %v7377_v53, %v7381_v18  ;;  %v7397_v31 = vshrl.u32 %v7105_v8, 16  ;;  %v8702_v53 = vrot.slane %v8700_v32, 4 }
 0x409   : > { %v7648_v25 = vpop.f32.mrf.mxu1  ;;  %v9306_v58 = vsel %vm12655_vm2, %v11555_v36, %v9305_v28  ;;  %v7898_v18 = vrot.slane %v7896_v2, 4  ;;  %v7899_v8 = vrot.slane %v15449_v49, 5  ;;  %v7541_v23 = vunpack.c.l.b16 %v7382_v21 }
 0x40a   : > { %v6705_v48 = vpop.f32.mrf.mxu3  ;;  %v15445_v51 = vadd.f32 %v6702_v61, %v6325_v30  ;;  %v15454_v6 = vadd.f32 %v7648_v25, %v7042_v20  ;;  %v7372_v61 = vsel %vm12199_vm13, %v7367_v54, %v15386_v29  ;;  %v7897_v30 = vsel %vm12655_vm2, %v11333_v22, %v7896_v2 }
 0x40b   : > { %9083 = vmatmul.bf16.gmra.mxu0 %v8979_v39  ;;  %v7384_v20 = vshrl.u32 %v7104_v38, 16  ;;  %v7387_v25 = vshll.u32 %v7104_v38, 16  ;;  %v15469_v54 = vrot.slane %v7393_v17, 5  ;;  %v7399_v28 = vrot.slane %v7397_v31, 4 }
 0x40c   : > { %16658 = vst [vmem:[#allocation24_spill] sm:$0xff] %v15445_v51  ;;  %8086 = vmatmul.bf16.gmra.mxu2 %v14903_v13  ;;  %v9309_v13 = vsel %vm12655_vm2, %v9307_v42, %v9308_v11  ;;  %v7900_v39 = vsel %vm12655_vm2, %v7898_v18, %v7899_v8  ;;  %v9387_v36 = vunpack.c.l.b16 %v9306_v58  ;;  %v7968_v2 = vunpack.c.l.b16 %v7897_v30  ;;  %v16660_v42 = vld [vmem:[#allocation11_spill] sm:$0xff] }
 0x40d   : > { %v9388_v29 = vunpack.c.l.b16 %v9309_v13  ;;  %v7969_v60 = vunpack.c.l.b16 %v7900_v39  ;;  %v7043_v21 = vadd.f32 %v16660_v42, %v16659_v34  ;;  %v7540_v11 = vunpack.c.l.b16 %v7372_v61  ;;  %v8515_v13 = vld [vmem:[#allocation3 + $0x6c] sm:$0xf]  ;;  %v15490_v61 = vld [vmem:[#allocation3 + $0x98] sm:$0x1] }
 0x40e   : > { %v8706_v38 = vshll.u32 %v15142_v15, 16  ;;  %v7386_v18 = vrot.slane %v7384_v20, 4  ;;  %v7389_v58 = vrot.slane %v7387_v25, 5  ;;  %v7400_v39 = vor.u32 %v7399_v28, %v15469_v54 }
 0x40f   : > { %v6327_v32 = vpop.f32.mrf.mxu2  ;;  %v15478_v17 = vpack.c.b16 %v9388_v29, %v9387_v36  ;;  %v15482_v8 = vpack.c.b16 %v7969_v60, %v7968_v2  ;;  %v8699_v15 = vsel %vm12199_vm13, %v15433_v63, %v15443_v12  ;;  %v8703_v34 = vor.u32 %v8702_v53, %v15443_v12  ;;  %v15494_v29 = vpop.f32.mrf.mxu0  ;;  %v11780_v12 = vld [vmem:[%s16476_s3 + $0x208] sm:$0xff] }
 0x410   : > { %v6328_v22 = vadd.f32 %v6327_v32, %v14997_v16  ;;  %v9186_v16 = vld [vmem:[#allocation3 + $0x90] sm:$0xe]  ;;  %v7562_v32 = vpack.c.b16 %v7541_v23, %v7540_v11  ;;  %v8711_v20 = vshrl.u32 %v8515_v13, 16  ;;  %v8714_v25 = vshll.u32 %v8515_v13, 16  ;;  %v11752_v23 = vld [vmem:[#allocation3 + $0x54] sm:$0xff]  ;;  %9487 = vmatpush.bf16.msra.mxu1 %v11780_v12 }
 0x411   : > { %16661 = vst [vmem:[#allocation18_spill] sm:$0xff] %v15478_v17  ;;  %v7651_v30 = vpop.f32.mrf.mxu1  ;;  %v9314_v60 = vrot.slane %v9312_v14, 4  ;;  %v16663_v28 = vunpack.c.l.b16 %v15342_v45  ;;  %v16664_v36 = vunpack.c.l.b16 %v15421_v3  ;;  %v7403_v63 = vshll.u32 %v15449_v49, 16 }
 0x412   : > { %v6707_v31 = vpop.f32.mrf.mxu3  ;;  %v15480_v51 = vadd.f32 %v6705_v48, %v6328_v22  ;;  %v15492_v48 = vadd.f32 %v7651_v30, %v7043_v21  ;;  %v11556_v53 = vrot.slane %v9186_v16, 9  ;;  %v8980_v2 = vpack.c.b16 %v15436_v33, %v15430_v52  ;;  %v7108_v16 = vld [vmem:[#allocation3 + $0xa0] sm:$0xf] }
 0x413   : > { %v7983_v22 = vpack.c.b16 %v16664_v36, %v16663_v28  ;;  %v7390_v42 = vor.u32 %v7389_v58, %v7386_v18  ;;  %v8708_v21 = vrot.slane %v8706_v38, 5  ;;  %v9315_v11 = vrot.slane %v15490_v61, 5 }
 0x414   : > { %16662 = vst [vmem:[#allocation26_spill] sm:$0xff] %v15480_v51  ;;  %7690 = vmatmul.bf16.gmra.mxu1 %v7562_v32  ;;  %v7401_v45 = vrot.slane %v7400_v39, 4  ;;  %v8704_v30 = vrot.slane %v8703_v34, 4  ;;  %v15507_v3 = vunpack.c.l.b16 %v8699_v15  ;;  %v9313_v49 = vsel %vm12655_vm2, %v11556_v53, %v9312_v14  ;;  %v16665_v15 = vld [vmem:[#allocation12_spill] sm:$0xff] }
 0x415   : > { %v8713_v28 = vrot.slane %v8711_v20, 4  ;;  %v8716_v36 = vrot.slane %v8714_v25, 5  ;;  %v9316_v52 = vsel %vm12655_vm2, %v9314_v60, %v9315_v11  ;;  %v7405_v33 = vrot.slane %v7403_v63, 5  ;;  %v16666_v34 = vld [vmem:[#allocation28_spill] sm:$0xff]  ;;  %v7107_v63 = vld [vmem:[#allocation3 + $0x9c] sm:$0xf] }
 0x416   : > { %v8720_v38 = vshll.u32 %v15207_v40, 16  ;;  %v8724_v18 = vshrl.u32 %v15207_v40, 16  ;;  %v9390_v58 = vunpack.c.l.b16 %v9316_v52  ;;  %v7391_v14 = vrot.slane %v7390_v42, 4  ;;  %v15524_v11 = vld [vmem:[#allocation3 + $0xa4] sm:$0x1] }
 0x417   : > { %8406 = vmatmul.bf16.gmra.mxu3 %v11752_v23  ;;  %v6329_v13 = vpop.f32.mrf.mxu2  ;;  %v7044_v23 = vadd.f32 %v16666_v34, %v16665_v15  ;;  %v9389_v53 = vunpack.c.l.b16 %v9313_v49  ;;  %v7406_v25 = vsel %vm12199_vm13, %v7401_v45, %v7405_v33  ;;  %v8709_v60 = vsel %vm12199_vm13, %v8704_v30, %v8708_v21 }
 0x418   : > { %v6330_v32 = vadd.f32 %v6329_v13, %v15033_v1  ;;  %v7765_v1 = vld [vmem:[#allocation3 + $0x9c] sm:$0xe]  ;;  %v7417_v40 = vshll.u32 %v7108_v16, 16  ;;  %v7421_v13 = vshrl.u32 %v7108_v16, 16  ;;  %v7396_v45 = vsel %vm12199_vm13, %v7391_v14, %v15469_v54 }
 0x419   : > { %v7653_v20 = vpop.f32.mrf.mxu1  ;;  %v15528_v42 = vpack.c.b16 %v9390_v58, %v9389_v53  ;;  %v15533_v49 = vrot.slane %v8720_v38, 5  ;;  %v8726_v21 = vrot.slane %v8724_v18, 4  ;;  %v11334_v30 = vrot.slane %v7765_v1, 9  ;;  %v16670_v1 = vld [vmem:[#allocation16_spill] sm:$0xff]  ;;  %v16671_v53 = vld [vmem:[#allocation14_spill] sm:$0xff] }
 0x41a   : > { %v6710_v39 = vpop.f32.mrf.mxu3  ;;  %v15518_v12 = vadd.f32 %v6707_v31, %v6330_v32  ;;  %v15526_v52 = vadd.f32 %v7653_v20, %v7044_v23  ;;  %v8717_v31 = vor.u32 %v8716_v36, %v8713_v28  ;;  %v7903_v32 = vrot.slane %v7108_v16, 5  ;;  %v15536_v20 = vpop.f32.mrf.mxu0  ;;  %v15540_v36 = vld [vmem:[#allocation3 + $0xa0] sm:$0xf] }
 0x41b   : > { %16668 = vst [vmem:[#allocation30_spill] sm:$0xff] %v15528_v42  ;;  %9088 = vmatmul.bf16.gmra.mxu0 %v8980_v2  ;;  %v7543_v33 = vunpack.c.l.b16 %v7406_v25  ;;  %v7408_v15 = vshrl.u32 %v7107_v63, 16  ;;  %v7906_v23 = vrot.slane %v15524_v11, 5  ;;  %v7411_v16 = vshll.u32 %v7107_v63, 16  ;;  %v8518_v42 = vld [vmem:[#allocation3 + $0x78] sm:$0xf] }
 0x41c   : > { %16667 = vst [vmem:[#allocation25_spill] sm:$0xff] %v15518_v12  ;;  %8091 = vmatmul.bf16.gmra.mxu2 %v7983_v22  ;;  %v7905_v34 = vrot.slane %v7903_v32, 4  ;;  %v15538_v28 = vrot.slane %v7417_v40, 5  ;;  %v7423_v2 = vrot.slane %v7421_v13, 4  ;;  %v7904_v54 = vsel %vm12655_vm2, %v11334_v30, %v7903_v32 }
 0x41d   : > { %16669 = vst [vmem:[#allocation29_spill] sm:$0xff] %v15536_v20  ;;  %v15545_v18 = vunpack.c.l.b16 %v8709_v60  ;;  %v8718_v58 = vrot.slane %v8717_v31, 4  ;;  %v7045_v25 = vadd.f32 %v16671_v53, %v16670_v1  ;;  %v7542_v63 = vunpack.c.l.b16 %v7396_v45  ;;  %v15559_v53 = vld [vmem:[#allocation3 + $0xa4] sm:$0x1] }
 0x41e   : > { %v7907_v14 = vsel %vm12655_vm2, %v7905_v34, %v7906_v23  ;;  %v8727_v40 = vor.u32 %v8726_v21, %v15533_v49  ;;  %v8730_v13 = vshll.u32 %v15222_v0, 16  ;;  %v7970_v32 = vunpack.c.l.b16 %v7904_v54  ;;  %v11753_v54 = vld [vmem:[#allocation3 + $0x60] sm:$0xff] }
 0x41f   : > { %v6332_v22 = vpop.f32.mrf.mxu2  ;;  %v9319_v60 = vrot.slane %v15540_v36, 5  ;;  %v7563_v30 = vpack.c.b16 %v7543_v33, %v7542_v63  ;;  %v7413_v34 = vrot.slane %v7411_v16, 5  ;;  %v7424_v23 = vor.u32 %v7423_v2, %v15538_v28 }
 0x420   : > { %v6333_v38 = vadd.f32 %v6332_v22, %v15072_v9  ;;  %v7971_v9 = vunpack.c.l.b16 %v7907_v14  ;;  %v7410_v22 = vrot.slane %v7408_v15, 4  ;;  %v8735_v45 = vshrl.u32 %v8518_v42, 16 }
 0x421   : > { %v7656_v31 = vpop.f32.mrf.mxu1  ;;  %v8738_v21 = vshll.u32 %v8518_v42, 16  ;;  %v7427_v33 = vshll.u32 %v15524_v11, 16  ;;  %v8723_v15 = vsel %vm12199_vm13, %v8718_v58, %v15533_v49  ;;  %v8728_v16 = vrot.slane %v8727_v40, 4 }
 0x422   : > { %v6712_v17 = vpop.f32.mrf.mxu3  ;;  %v15553_v12 = vadd.f32 %v6710_v39, %v6333_v38  ;;  %v15557_v1 = vadd.f32 %v7656_v31, %v7045_v25  ;;  %v15561_v0 = vpack.c.b16 %v7971_v9, %v7970_v32  ;;  %v9187_v39 = vld [vmem:[#allocation3 + $0x9c] sm:$0xe]  ;;  %v8981_v38 = vpack.c.b16 %v15545_v18, %v15507_v3 }
 0x423   : > { %v8732_v2 = vrot.slane %v8730_v13, 5  ;;  %v9321_v14 = vrot.slane %v9319_v60, 4  ;;  %v7414_v25 = vor.u32 %v7413_v34, %v7410_v22  ;;  %v7425_v63 = vrot.slane %v7424_v23, 4  ;;  %v16674_v34 = vld [vmem:[#allocation32_spill] sm:$0xff]  ;;  %v16675_v23 = vld [vmem:[#allocation15_spill] sm:$0xff] }
 0x424   : > { %16672 = vst [vmem:[#allocation13_spill] sm:$0xff] %v15553_v12  ;;  %7695 = vmatmul.bf16.gmra.mxu1 %v7563_v30  ;;  %v11557_v32 = vrot.slane %v9187_v39, 9  ;;  %v9322_v9 = vrot.slane %v15559_v53, 5  ;;  %v7111_v30 = vld [vmem:[#allocation3 + $0xac] sm:$0xf]  ;;  %v8737_v3 = vrot.slane %v8735_v45, 4  ;;  %v15572_v12 = vpop.f32.mrf.mxu0 }
 0x425   : > { %v8740_v18 = vrot.slane %v8738_v21, 5  ;;  %v8744_v11 = vshll.u32 %v15291_v35, 16  ;;  %16673 = vst [vmem:[#allocation11_spill] sm:$0xff] %v15572_v12  ;;  %v7429_v49 = vrot.slane %v7427_v33, 5  ;;  %v8748_v58 = vshrl.u32 %v15291_v35, 16 }
 0x426   : > { %v9320_v40 = vsel %vm12655_vm2, %v11557_v32, %v9319_v60  ;;  %v9323_v13 = vsel %vm12655_vm2, %v9321_v14, %v9322_v9  ;;  %v8733_v45 = vsel %vm12199_vm13, %v8728_v16, %v8732_v2  ;;  %v15585_v21 = vunpack.c.l.b16 %v8723_v15 }
 0x427   : > { %8411 = vmatmul.bf16.gmra.mxu3 %v11753_v54  ;;  %v6334_v42 = vpop.f32.mrf.mxu2  ;;  %v7766_v54 = vld [vmem:[#allocation3 + $0xa8] sm:$0xe]  ;;  %v7415_v35 = vrot.slane %v7414_v25, 4  ;;  %v7430_v60 = vsel %vm12199_vm13, %v7425_v63, %v7429_v49  ;;  %v7441_v14 = vshll.u32 %v7111_v30, 16  ;;  %v7445_v32 = vshrl.u32 %v7111_v30, 16 }
 0x428   : > { %v6335_v31 = vadd.f32 %v6334_v42, %v15114_v24  ;;  %v7046_v24 = vadd.f32 %v16675_v23, %v16674_v34  ;;  %v15589_v42 = vld [vmem:[#allocation3 + $0xb0] sm:$0x1]  ;;  %v16677_v34 = vld [vmem:[#allocation47_spill] sm:$0xff]  ;;  %v9391_v23 = vunpack.c.l.b16 %v9320_v40  ;;  %v9392_v16 = vunpack.c.l.b16 %v9323_v13 }
 0x429   : > { %v7658_v33 = vpop.f32.mrf.mxu1  ;;  %v8741_v15 = vor.u32 %v8740_v18, %v8737_v3  ;;  %v15594_v2 = vrot.slane %v8744_v11, 5  ;;  %v8750_v25 = vrot.slane %v8748_v58, 4  ;;  %v7420_v63 = vsel %vm12199_vm13, %v7415_v35, %v15538_v28 }
 0x42a   : > { %v6715_v22 = vpop.f32.mrf.mxu3  ;;  %v15581_v39 = vadd.f32 %v6712_v17, %v6335_v31  ;;  %v15591_v9 = vadd.f32 %v7658_v33, %v7046_v24  ;;  %v7110_v17 = vld [vmem:[#allocation3 + $0xa8] sm:$0xf]  ;;  %v7910_v31 = vrot.slane %v7111_v30, 5  ;;  %v7913_v24 = vrot.slane %v15589_v42, 5 }
 0x42b   : > { %9093 = vmatmul.bf16.gmra.mxu0 %v8981_v38  ;;  %v15600_v33 = vpack.c.b16 %v9392_v16, %v9391_v23  ;;  %v7545_v12 = vunpack.c.l.b16 %v7430_v60  ;;  %v7432_v30 = vshrl.u32 %v7110_v17, 16  ;;  %v7435_v40 = vshll.u32 %v7110_v17, 16  ;;  %v15614_v60 = vld [vmem:[#allocation3 + $0xac] sm:$0xf]  ;;  %v16679_v23 = vld [vmem:[#allocation17_spill] sm:$0xff] }
 0x42c   : > { %16676 = vst [vmem:[#allocation12_spill] sm:$0xff] %v15581_v39  ;;  %8096 = vmatmul.bf16.gmra.mxu2 %v16677_v34  ;;  %v11335_v39 = vrot.slane %v7766_v54, 9  ;;  %v7912_v49 = vrot.slane %v7910_v31, 4  ;;  %v15605_v18 = vrot.slane %v7441_v14, 5  ;;  %v7447_v11 = vrot.slane %v7445_v32, 4 }
 0x42d   : > { %16678 = vst [vmem:[#allocation28_spill] sm:$0xff] %v15600_v33  ;;  %v7544_v58 = vunpack.c.l.b16 %v7420_v63  ;;  %v15609_v13 = vunpack.c.l.b16 %v8733_v45  ;;  %v15611_v54 = vrot.slane %v8741_v15, 4  ;;  %v8751_v35 = vor.u32 %v8750_v25, %v15594_v2  ;;  %v15620_v14 = vld [vmem:[#allocation3 + $0x84] sm:$0xf] }
 0x42e   : > { %v7911_v38 = vsel %vm12655_vm2, %v11335_v39, %v7910_v31  ;;  %v7914_v28 = vsel %vm12655_vm2, %v7912_v49, %v7913_v24  ;;  %v16680_v39 = vld [vmem:[#allocation31_spill] sm:$0xff]  ;;  %v15622_v49 = vpop.f32.mrf.mxu0  ;;  %v7434_v15 = vrot.slane %v7432_v30, 4  ;;  %v7437_v24 = vrot.slane %v7435_v40, 5 }
 0x42f   : > { %v6337_v34 = vpop.f32.mrf.mxu2  ;;  %v7047_v31 = vadd.f32 %v16680_v39, %v16679_v23  ;;  %v7972_v32 = vunpack.c.l.b16 %v7911_v38  ;;  %v7973_v16 = vunpack.c.l.b16 %v7914_v28  ;;  %16682 = vst [vmem:[#allocation14_spill] sm:$0xff] %v15622_v49  ;;  %v7564_v63 = vpack.c.b16 %v7545_v12, %v7544_v58  ;;  %v11779_v12 = vld [vmem:[%s16476_s3 + $0x200] sm:$0xff]  ;;  %v7114_v28 = vld [vmem:[#allocation3 + $0xb8] sm:$0xf]  ;;  %v15663_v49 = vld [vmem:[#allocation3 + $0xbc] sm:$0x1] }
 0x430   : > { %v6338_v3 = vadd.f32 %v6337_v34, %v15153_v43  ;;  %v8754_v25 = vshll.u32 %v15308_v50, 16  ;;  %v7448_v33 = vor.u32 %v7447_v11, %v15605_v18  ;;  %v15631_v38 = vrot.slane %v8751_v35, 4  ;;  %9488 = vmatpush.bf16.msra.mxu1 %v11779_v12  ;;  %v16685_v12 = vld [vmem:[#allocation20_spill] sm:$0xff] }
 0x431   : > { %v7661_v45 = vpop.f32.mrf.mxu1  ;;  %v15628_v51 = vpack.c.b16 %v7973_v16, %v7972_v32  ;;  %v8759_v30 = vshrl.u32 %v15620_v14, 16  ;;  %v8982_v50 = vpack.c.b16 %v15609_v13, %v15585_v21  ;;  %v7451_v40 = vshll.u32 %v15589_v42, 16  ;;  %v15648_v32 = vld [vmem:[#allocation3 + $0xb0] sm:$0x1]  ;;  %v9188_v16 = vld [vmem:[#allocation3 + $0xa8] sm:$0xe] }
 0x432   : > { %v6717_v17 = vpop.f32.mrf.mxu3  ;;  %v15618_v43 = vadd.f32 %v6715_v22, %v6338_v3  ;;  %v15625_v34 = vadd.f32 %v7661_v45, %v7047_v31  ;;  %v9326_v22 = vrot.slane %v15614_v60, 5  ;;  %v11754_v3 = vld [vmem:[#allocation3 + $0x6c] sm:$0xff]  ;;  %v7438_v35 = vor.u32 %v7437_v24, %v7434_v15 }
 0x433   : > { %v15644_v23 = vrot.slane %v8754_v25, 5  ;;  %v8768_v39 = vshll.u32 %v15403_v44, 16  ;;  %v8772_v31 = vshrl.u32 %v15403_v44, 16  ;;  %v7449_v42 = vrot.slane %v7448_v33, 4  ;;  %v16684_v44 = vld [vmem:[#allocation21_spill] sm:$0xff]  ;;  %v16738_v27 = vld [vmem:[#allocation12_spill] sm:$0xff] }
 0x434   : > { %16681 = vst [vmem:[#allocation16_spill] sm:$0xff] %v15618_v43  ;;  %7700 = vmatmul.bf16.gmra.mxu1 %v7564_v63  ;;  %v8762_v13 = vshll.u32 %v15620_v14, 16  ;;  %v9328_v45 = vrot.slane %v9326_v22, 4  ;;  %v7465_v15 = vshll.u32 %v7114_v28, 16  ;;  %v7469_v24 = vshrl.u32 %v7114_v28, 16 }
 0x435   : > { %16683 = vst [vmem:[#allocation32_spill] sm:$0xff] %v15625_v34  ;;  %v8757_v63 = vsel %vm12199_vm13, %v15631_v38, %v15644_v23  ;;  %v15656_v25 = vrot.slane %v8759_v30, 4  ;;  %v7048_v11 = vadd.f32 %v16685_v12, %v16684_v44  ;;  %v7767_v33 = vld [vmem:[#allocation3 + $0xb4] sm:$0xe]  ;;  %v9329_v14 = vrot.slane %v15648_v32, 5 }
 0x436   : > { %v7439_v43 = vrot.slane %v7438_v35, 4  ;;  %v15665_v20 = vrot.slane %v8768_v39, 5  ;;  %v8774_v38 = vrot.slane %v8772_v31, 4  ;;  %v11558_v23 = vrot.slane %v9188_v16, 9  ;;  %v15674_v12 = vpop.f32.mrf.mxu0 }
 0x437   : > { %8416 = vmatmul.bf16.gmra.mxu3 %v11754_v3  ;;  %v6339_v58 = vpop.f32.mrf.mxu2  ;;  %v9330_v44 = vsel %vm12655_vm2, %v9328_v45, %v9329_v14  ;;  %16688 = vst [vmem:[#allocation17_spill] sm:$0xff] %v15674_v12  ;;  %v15676_v35 = vrot.slane %v7465_v15, 5  ;;  %v7471_v39 = vrot.slane %v7469_v24, 4  ;;  %v11336_v31 = vrot.slane %v7767_v33, 9 }
 0x438   : > { %v6340_v21 = vadd.f32 %v6339_v58, %v15197_v46  ;;  %v7453_v46 = vrot.slane %v7451_v40, 5  ;;  %v7917_v40 = vrot.slane %v7114_v28, 5  ;;  %v7920_v28 = vrot.slane %v15663_v49, 5 }
 0x439   : > { %v7663_v58 = vpop.f32.mrf.mxu1  ;;  %v9394_v16 = vunpack.c.l.b16 %v9330_v44  ;;  %v8764_v24 = vrot.slane %v8762_v13, 5  ;;  %v7472_v44 = vor.u32 %v7471_v39, %v15676_v35  ;;  %v8960_v39 = vunpack.c.l.b16 %v8757_v63 }
 0x43a   : > { %v6720_v3 = vpop.f32.mrf.mxu3  ;;  %v15660_v34 = vadd.f32 %v6717_v17, %v6340_v21  ;;  %v15667_v30 = vadd.f32 %v7663_v58, %v7048_v11  ;;  %v7454_v17 = vsel %vm12199_vm13, %v7449_v42, %v7453_v46  ;;  %v7113_v21 = vld [vmem:[#allocation3 + $0xb4] sm:$0xf]  ;;  %v9327_v11 = vsel %vm12655_vm2, %v11558_v23, %v9326_v22  ;;  %v16689_v23 = vld [vmem:[#allocation38_spill] sm:$0xff] }
 0x43b   : > { %9098 = vmatmul.bf16.gmra.mxu0 %v8982_v50  ;;  %v7919_v42 = vrot.slane %v7917_v40, 4  ;;  %v7547_v45 = vunpack.c.l.b16 %v7454_v17  ;;  %v7456_v14 = vshrl.u32 %v7113_v21, 16  ;;  %v7459_v58 = vshll.u32 %v7113_v21, 16 }
 0x43c   : > { %16686 = vst [vmem:[#allocation15_spill] sm:$0xff] %v15660_v34  ;;  %8101 = vmatmul.bf16.gmra.mxu2 %v15144_v26  ;;  %v7444_v26 = vsel %vm12199_vm13, %v7439_v43, %v15605_v18  ;;  %v7918_v50 = vsel %vm12655_vm2, %v11336_v31, %v7917_v40  ;;  %v9393_v33 = vunpack.c.l.b16 %v9327_v11  ;;  %v16690_v18 = vld [vmem:[#allocation37_spill] sm:$0xff]  ;;  %v8775_v17 = vor.u32 %v8774_v38, %v15665_v20 }
 0x43d   : > { %16687 = vst [vmem:[#allocation47_spill] sm:$0xff] %v15667_v30  ;;  %v7921_v22 = vsel %vm12655_vm2, %v7919_v42, %v7920_v28  ;;  %v7049_v43 = vadd.f32 %v16690_v18, %v16689_v23  ;;  %v7546_v30 = vunpack.c.l.b16 %v7444_v26  ;;  %v7974_v12 = vunpack.c.l.b16 %v7918_v50  ;;  %v15698_v28 = vld [vmem:[#allocation3 + $0xb8] sm:$0xf]  ;;  %v7117_v18 = vld [vmem:[#allocation3 + $0xc4] sm:$0xf] }
 0x43e   : > { %v7975_v40 = vunpack.c.l.b16 %v7921_v22  ;;  %v15695_v31 = vpack.c.b16 %v9394_v16, %v9393_v33  ;;  %v7461_v42 = vrot.slane %v7459_v58, 5  ;;  %v8778_v11 = vshll.u32 %v15439_v56, 16  ;;  %v15714_v63 = vpop.f32.mrf.mxu0 }
 0x43f   : > { %v6342_v46 = vpop.f32.mrf.mxu2  ;;  %v7565_v13 = vpack.c.b16 %v7547_v45, %v7546_v30  ;;  %v7475_v38 = vshll.u32 %v15663_v49, 16  ;;  %v8765_v16 = vor.u32 %v8764_v24, %v15656_v25  ;;  %v15706_v50 = vrot.slane %v8775_v17, 4  ;;  %v9189_v25 = vld [vmem:[#allocation3 + $0xb4] sm:$0xe] }
 0x440   : > { %v6343_v15 = vadd.f32 %v6342_v46, %v15230_v37  ;;  %16692 = vst [vmem:[#allocation21_spill] sm:$0xff] %v15695_v31  ;;  %v7458_v46 = vrot.slane %v7456_v14, 4  ;;  %v15703_v23 = vpack.c.b16 %v7975_v40, %v7974_v12  ;;  %v16694_v56 = vsel %vm12199_vm13, %v15611_v54, %v15594_v2  ;;  %v7768_v2 = vld [vmem:[#allocation3 + $0xc0] sm:$0xe] }
 0x441   : > { %v7666_v37 = vpop.f32.mrf.mxu1  ;;  %v8959_v30 = vunpack.c.l.b16 %v16694_v56  ;;  %v7473_v45 = vrot.slane %v7472_v44, 4  ;;  %v9333_v14 = vrot.slane %v15698_v28, 5  ;;  %v15716_v58 = vrot.slane %v8778_v11, 5  ;;  %v16696_v44 = vld [vmem:[#allocation40_spill] sm:$0xff]  ;;  %v7116_v11 = vld [vmem:[#allocation3 + $0xc0] sm:$0xf] }
 0x442   : > { %v6722_v34 = vpop.f32.mrf.mxu3  ;;  %v15693_v21 = vadd.f32 %v6720_v3, %v6343_v15  ;;  %v15700_v26 = vadd.f32 %v7666_v37, %v7049_v43  ;;  %v11755_v3 = vld [vmem:[#allocation3 + $0x78] sm:$0xff]  ;;  %v7462_v12 = vor.u32 %v7461_v42, %v7458_v46  ;;  %v7477_v33 = vrot.slane %v7475_v38, 5  ;;  %v16695_v43 = vld [vmem:[#allocation41_spill] sm:$0xff]  ;;  %v15735_v56 = vld [vmem:[#allocation3 + $0xc8] sm:$0x1] }
 0x443   : > { %v15718_v15 = vld [vmem:[#allocation3 + $0xbc] sm:$0x1]  ;;  %v8983_v24 = vpack.c.b16 %v8960_v39, %v8959_v30  ;;  %v9335_v54 = vrot.slane %v9333_v14, 4  ;;  %v7050_v17 = vadd.f32 %v16696_v44, %v16695_v43  ;;  %v15723_v40 = vrot.slane %v8765_v16, 4 }
 0x444   : > { %16691 = vst [vmem:[#allocation31_spill] sm:$0xff] %v15693_v21  ;;  %7705 = vmatmul.bf16.gmra.mxu1 %v7565_v13  ;;  %v11559_v39 = vrot.slane %v9189_v25, 9  ;;  %v9336_v38 = vrot.slane %v15718_v15, 5  ;;  %v7463_v16 = vrot.slane %v7462_v12, 4  ;;  %v7489_v30 = vshll.u32 %v7117_v18, 16  ;;  %v16699_v12 = vld [vmem:[#allocation43_spill] sm:$0xff] }
 0x445   : > { %16693 = vst [vmem:[#allocation20_spill] sm:$0xff] %v15700_v26  ;;  %v11337_v43 = vrot.slane %v7768_v2, 9 }
 0x446   : > { %v9337_v25 = vsel %vm12655_vm2, %v9335_v54, %v9336_v38  ;;  %v7468_v2 = vsel %vm12199_vm13, %v7463_v16, %v15676_v35  ;;  %v7483_v54 = vshll.u32 %v7116_v11, 16  ;;  %v15756_v38 = vld [vmem:[#allocation3 + $0xc8] sm:$0x1] }
 0x447   : > { %8421 = vmatmul.bf16.gmra.mxu3 %v11755_v3  ;;  %v6344_v49 = vpop.f32.mrf.mxu2  ;;  %v7548_v26 = vunpack.c.l.b16 %v7468_v2 }
 0x448   : > { %v6345_v22 = vadd.f32 %v6344_v49, %v15278_v4  ;;  %v7478_v4 = vsel %vm12199_vm13, %v7473_v45, %v7477_v33  ;;  %v7493_v49 = vshrl.u32 %v7117_v18, 16  ;;  %v9334_v45 = vsel %vm12655_vm2, %v11559_v39, %v9333_v14  ;;  %v16700_v33 = vld [vmem:[#allocation42_spill] sm:$0xff] }
 0x449   : > { %v7668_v3 = vpop.f32.mrf.mxu1  ;;  %v7051_v13 = vadd.f32 %v16700_v33, %v16699_v12  ;;  %v7927_v14 = vrot.slane %v15735_v56, 5  ;;  %v9396_v39 = vunpack.c.l.b16 %v9337_v25  ;;  %v9395_v12 = vunpack.c.l.b16 %v9334_v45 }
 0x44a   : > { %v8382_v46 = vpop.f32.mrf.mxu3  ;;  %v15730_v42 = vadd.f32 %v6722_v34, %v6345_v22  ;;  %v15737_v44 = vadd.f32 %v7668_v3, %v7050_v17  ;;  %v15740_v34 = vld [vmem:[#allocation3 + $0xc4] sm:$0xf]  ;;  %v7924_v22 = vrot.slane %v7117_v18, 5  ;;  %v7549_v17 = vunpack.c.l.b16 %v7478_v4 }
 0x44b   : > { %9103 = vmatmul.bf16.gmra.mxu0 %v8983_v24  ;;  %v7480_v3 = vshrl.u32 %v7116_v11, 16  ;;  %v15754_v24 = vrot.slane %v7489_v30, 5  ;;  %v9340_v33 = vrot.slane %v15740_v34, 5  ;;  %v7495_v4 = vrot.slane %v7493_v49, 4 }
 0x44c   : > { %16697 = vst [vmem:[#allocation38_spill] sm:$0xff] %v15730_v42  ;;  %8106 = vmatmul.bf16.gmra.mxu2 %v15226_v57  ;;  %v9190_v57 = vld [vmem:[#allocation3 + $0xc0] sm:$0xe]  ;;  %v7925_v18 = vsel %vm12655_vm2, %v11337_v43, %v7924_v22  ;;  %v7926_v37 = vrot.slane %v7924_v22, 4  ;;  %v15762_v22 = vpop.f32.mrf.mxu0  ;;  %v15764_v11 = vpack.c.b16 %v9396_v39, %v9395_v12  ;;  %v7485_v39 = vrot.slane %v7483_v54, 5 }
 0x44d   : > { %16698 = vst [vmem:[#allocation37_spill] sm:$0xff] %v15737_v44  ;;  %v11560_v43 = vrot.slane %v9190_v57, 9  ;;  %v7976_v25 = vunpack.c.l.b16 %v7925_v18  ;;  %v9342_v21 = vrot.slane %v9340_v33, 4  ;;  %v8524_v57 = vld [vmem:[#allocation3 + $0x90] sm:$0xf] }
 0x44e   : > { %v7928_v16 = vsel %vm12655_vm2, %v7926_v37, %v7927_v14  ;;  %v7482_v37 = vrot.slane %v7480_v3, 4  ;;  %v8796_v14 = vshrl.u32 %v15462_v55, 16  ;;  %v8786_v54 = vshll.u32 %v8524_v57, 16 }
 0x44f   : > { %v8067_v44 = vpop.f32.mrf.mxu2  ;;  %v7977_v31 = vunpack.c.l.b16 %v7928_v16  ;;  %v9341_v45 = vsel %vm12655_vm2, %v11560_v43, %v9340_v33  ;;  %v11756_v33 = vld [vmem:[#allocation3 + $0x84] sm:$0xff] }
 0x450   : > { %v8147_v35 = vadd.f32 %v8067_v44, %v15318_v62  ;;  %v9343_v62 = vrot.slane %v15756_v38, 5  ;;  %v7566_v44 = vpack.c.b16 %v7549_v17, %v7548_v26  ;;  %v8771_v26 = vsel %vm12199_vm13, %v15723_v40, %v15665_v20 }
 0x451   : > { %v7671_v49 = vpop.f32.mrf.mxu1  ;;  %v15772_v2 = vpack.c.b16 %v7977_v31, %v7976_v25  ;;  %v7499_v31 = vshll.u32 %v15735_v56, 16  ;;  %v8783_v17 = vshrl.u32 %v8524_v57, 16  ;;  %v7486_v20 = vor.u32 %v7485_v39, %v7482_v37 }
 0x452   : > { %v8384_v30 = vpop.f32.mrf.mxu3  ;;  %v15766_v42 = vadd.f32 %v8382_v46, %v8147_v35  ;;  %v15774_v18 = vadd.f32 %v7671_v49, %v7051_v13  ;;  %v7496_v46 = vor.u32 %v7495_v4, %v15754_v24  ;;  %v9344_v12 = vsel %vm12655_vm2, %v9342_v21, %v9343_v62 }
 0x453   : > { %v9397_v35 = vunpack.c.l.b16 %v9341_v45  ;;  %v9398_v16 = vunpack.c.l.b16 %v9344_v12  ;;  %v16701_v13 = vsel %vm12199_vm13, %v15706_v50, %v15716_v58  ;;  %v16702_v4 = vshll.u32 %v15462_v55, 16  ;;  %v16704_v12 = vld [vmem:[#allocation46_spill] sm:$0xff] }
 0x454   : > { %7710 = vmatmul.bf16.gmra.mxu1 %v7566_v44  ;;  %v8962_v3 = vunpack.c.l.b16 %v16701_v13  ;;  %v7497_v40 = vrot.slane %v7496_v46, 4  ;;  %v8798_v56 = vrot.slane %v8796_v14, 4  ;;  %v8961_v62 = vunpack.c.l.b16 %v8771_v26  ;;  %v16703_v44 = vld [vmem:[#allocation45_spill] sm:$0xff]  ;;  %v15798_v58 = vpop.f32.mrf.mxu0 }
 0x455   : > { %v8794_v43 = vrot.slane %v16702_v4, 5  ;;  %v15791_v25 = vpack.c.b16 %v9398_v16, %v9397_v35  ;;  %v7501_v50 = vrot.slane %v7499_v31, 5  ;;  %v8785_v13 = vrot.slane %v8783_v17, 4 }
 0x456   : > { %v8984_v55 = vpack.c.b16 %v8962_v3, %v8961_v62  ;;  %v8788_v35 = vrot.slane %v8786_v54, 5  ;;  %v7487_v37 = vrot.slane %v7486_v20, 4  ;;  %v8802_v46 = vshll.u32 %v15490_v61, 16  ;;  %v16707_v20 = vld [vmem:[#allocation49_spill] sm:$0xff] }
 0x457   : > { %8426 = vmatmul.bf16.gmra.mxu3 %v11756_v33  ;;  %v8069_v21 = vpop.f32.mrf.mxu2  ;;  %v7052_v33 = vadd.f32 %v16704_v12, %v16703_v44  ;;  %v7502_v14 = vsel %vm12199_vm13, %v7497_v40, %v7501_v50  ;;  %v8799_v39 = vor.u32 %v8798_v56, %v8794_v43  ;;  %v8527_v50 = vld [vmem:[#allocation3 + $0x9c] sm:$0xf] }
 0x458   : > { %v8148_v45 = vadd.f32 %v8069_v21, %v15375_v41  ;;  %v16705_v41 = vld [vmem:[#allocation61_spill] sm:$0xff]  ;;  %v7551_v31 = vunpack.c.l.b16 %v7502_v14  ;;  %v8789_v17 = vor.u32 %v8788_v35, %v8785_v13  ;;  %v8804_v56 = vrot.slane %v8802_v46, 5 }
 0x459   : > { %v7673_v57 = vpop.f32.mrf.mxu1  ;;  %v8800_v21 = vrot.slane %v8799_v39, 4  ;;  %v11757_v13 = vld [vmem:[#allocation3 + $0x90] sm:$0xff]  ;;  %v8810_v14 = vshll.u32 %v8527_v50, 16 }
 0x45a   : > { %v8387_v49 = vpop.f32.mrf.mxu3  ;;  %v15796_v10 = vadd.f32 %v8384_v30, %v8148_v45  ;;  %v15800_v16 = vadd.f32 %v7673_v57, %v7052_v33  ;;  %v7492_v30 = vsel %vm12199_vm13, %v7487_v37, %v15754_v24  ;;  %v16706_v45 = vld [vmem:[#allocation48_spill] sm:$0xff]  ;;  %v8790_v33 = vrot.slane %v8789_v17, 4 }
 0x45b   : > { %9108 = vmatmul.bf16.gmra.mxu0 %v8984_v55  ;;  %v7550_v54 = vunpack.c.l.b16 %v7492_v30  ;;  %v7053_v62 = vadd.f32 %v16707_v20, %v16706_v45  ;;  %v8805_v61 = vsel %vm12199_vm13, %v8800_v21, %v8804_v56  ;;  %v8820_v57 = vshrl.u32 %v15540_v36, 16  ;;  %v16709_v17 = vld [vmem:[#allocation52_spill] sm:$0xff] }
 0x45c   : > { %8111 = vmatmul.bf16.gmra.mxu2 %v16705_v41  ;;  %v15820_v55 = vpop.f32.mrf.mxu0  ;;  %v8964_v35 = vunpack.c.l.b16 %v8805_v61  ;;  %v8807_v37 = vshrl.u32 %v8527_v50, 16  ;;  %v16710_v50 = vld [vmem:[#allocation53_spill] sm:$0xff] }
 0x45d   : > { %v7567_v12 = vpack.c.b16 %v7551_v31, %v7550_v54  ;;  %v8822_v46 = vrot.slane %v8820_v57, 4  ;;  %v16708_v31 = vld [vmem:[#allocation50_spill] sm:$0xff] }
 0x45e   : > { %v8809_v20 = vrot.slane %v8807_v37, 4  ;;  %v8530_v37 = vld [vmem:[#allocation3 + $0xa8] sm:$0xf] }
 0x45f   : > { %v8072_v26 = vpop.f32.mrf.mxu2 }
 0x460   : > { %v8149_v3 = vadd.f32 %v8072_v26, %v15409_v59  ;;  %v8816_v59 = vshll.u32 %v15540_v36, 16  ;;  %v7054_v36 = vadd.f32 %v16709_v17, %v16708_v31 }
 0x461   : > { %v7676_v44 = vpop.f32.mrf.mxu1 }
 0x462   : > { %v8389_v4 = vpop.f32.mrf.mxu3  ;;  %v15812_v40 = vadd.f32 %v8387_v49, %v8149_v3  ;;  %v15814_v24 = vadd.f32 %v7676_v44, %v7053_v62  ;;  %v8795_v49 = vsel %vm12199_vm13, %v8790_v33, %v8794_v43  ;;  %v8818_v30 = vrot.slane %v8816_v59, 5  ;;  %v16711_v59 = vld [vmem:[#allocation54_spill] sm:$0xff] }
 0x463   : > { %v8963_v26 = vunpack.c.l.b16 %v8795_v49  ;;  %v8812_v43 = vrot.slane %v8810_v14, 5  ;;  %v7055_v57 = vadd.f32 %v16711_v59, %v16710_v50  ;;  %v8840_v14 = vshll.u32 %v15614_v60, 16 }
 0x464   : > { %7715 = vmatmul.bf16.gmra.mxu1 %v7567_v12  ;;  %v8823_v56 = vor.u32 %v8822_v46, %v8818_v30  ;;  %v15833_v44 = vpop.f32.mrf.mxu0  ;;  %v16712_v46 = vld [vmem:[#allocation33_spill] sm:$0xff] }
 0x465   : > { %v8985_v45 = vpack.c.b16 %v8964_v35, %v8963_v26  ;;  %v8813_v33 = vor.u32 %v8812_v43, %v8809_v20  ;;  %v11758_v26 = vld [vmem:[#allocation3 + $0x9c] sm:$0xff]  ;;  %v8842_v20 = vrot.slane %v8840_v14, 5 }
 0x466   : > { %v8824_v61 = vrot.slane %v8823_v56, 4 }
 0x467   : > { %8431 = vmatmul.bf16.gmra.mxu3 %v11757_v13  ;;  %v8074_v41 = vpop.f32.mrf.mxu2 }
 0x468   : > { %v8150_v39 = vadd.f32 %v8074_v41, %v15454_v6  ;;  %v8826_v6 = vshll.u32 %v15559_v53, 16  ;;  %v8814_v41 = vrot.slane %v8813_v33, 4 }
 0x469   : > { %v7678_v54 = vpop.f32.mrf.mxu1 }
 0x46a   : > { %v15827_v3 = vadd.f32 %v8389_v4, %v8150_v39  ;;  %v8392_v21 = vpop.f32.mrf.mxu3  ;;  %v15829_v62 = vadd.f32 %v7678_v54, %v7054_v36  ;;  %v8828_v49 = vrot.slane %v8826_v6, 5  ;;  %v8844_v39 = vshrl.u32 %v15614_v60, 16  ;;  %v16713_v60 = vld [vmem:[#allocation55_spill] sm:$0xff] }
 0x46b   : > { %9113 = vmatmul.bf16.gmra.mxu0 %v8985_v45  ;;  %v8819_v31 = vsel %vm12199_vm13, %v8814_v41, %v8818_v30  ;;  %v8834_v54 = vshll.u32 %v8530_v37, 16 }
 0x46c   : > { %8116 = vmatmul.bf16.gmra.mxu2 %v15405_v7  ;;  %v8829_v53 = vsel %vm12199_vm13, %v8824_v61, %v8828_v49  ;;  %v8846_v43 = vrot.slane %v8844_v39, 4  ;;  %v15850_v56 = vpop.f32.mrf.mxu0  ;;  %v8965_v6 = vunpack.c.l.b16 %v8819_v31  ;;  %v16715_v39 = vld [vmem:[#allocation56_spill] sm:$0xff] }
 0x46d   : > { %v8966_v17 = vunpack.c.l.b16 %v8829_v53  ;;  %v8836_v59 = vrot.slane %v8834_v54, 5  ;;  %v8533_v54 = vld [vmem:[#allocation3 + $0xb4] sm:$0xf] }
 0x46e   : > { %v8847_v49 = vor.u32 %v8846_v43, %v8842_v20  ;;  %v16717_v43 = vld [vmem:[#allocation19_spill] sm:$0xff] }
 0x46f   : > { %v8077_v12 = vpop.f32.mrf.mxu2  ;;  %v8986_v50 = vpack.c.b16 %v8966_v17, %v8965_v6  ;;  %v11759_v6 = vld [vmem:[#allocation3 + $0xa8] sm:$0xff] }
 0x470   : > { %v8151_v4 = vadd.f32 %v8077_v12, %v15492_v48  ;;  %v16714_v12 = vld [vmem:[#allocation57_spill] sm:$0xff]  ;;  %v8848_v14 = vrot.slane %v8847_v49, 4 }
 0x471   : > { %v7681_v35 = vpop.f32.mrf.mxu1  ;;  %v7056_v33 = vadd.f32 %v16714_v12, %v16713_v60 }
 0x472   : > { %v15838_v13 = vadd.f32 %v8392_v21, %v8151_v4  ;;  %v15840_v7 = vadd.f32 %v7681_v35, %v7055_v57  ;;  %v8394_v48 = vpop.f32.mrf.mxu3  ;;  %v8831_v21 = vshrl.u32 %v8530_v37, 16 }
 0x474   : > { %9489 = vmatmul.bf16.vlgmr.msra.gmra.mxu1 %v16712_v46  ;;  %v8833_v30 = vrot.slane %v8831_v21, 4  ;;  %v15865_v17 = vpop.f32.mrf.mxu0 }
 0x476   : > { %v8837_v53 = vor.u32 %v8836_v59, %v8833_v30 }
 0x477   : > { %8436 = vmatmul.bf16.gmra.mxu3 %v11758_v26  ;;  %v8079_v36 = vpop.f32.mrf.mxu2 }
 0x478   : > { %v8152_v45 = vadd.f32 %v8079_v36, %v15526_v52  ;;  %v8850_v52 = vshll.u32 %v15648_v32, 16 }
 0x479   : > { %v7683_v61 = vpop.f32.mrf.mxu1 }
 0x47a   : > { %v15854_v4 = vadd.f32 %v8394_v48, %v8152_v45  ;;  %v15856_v57 = vadd.f32 %v7683_v61, %v7056_v33  ;;  %v8397_v35 = vpop.f32.mrf.mxu3  ;;  %v16716_v48 = vld [vmem:[#allocation60_spill] sm:$0xff]  ;;  %v8852_v31 = vrot.slane %v8850_v52, 5  ;;  %v8864_v45 = vshll.u32 %v15698_v28, 16 }
 0x47b   : > { %9118 = vmatmul.bf16.gmra.mxu0 %v8986_v50  ;;  %v7057_v46 = vadd.f32 %v16716_v48, %v16715_v39  ;;  %v8855_v61 = vshrl.u32 %v8533_v54, 16  ;;  %v8858_v50 = vshll.u32 %v8533_v54, 16  ;;  %v16720_v54 = vld [vmem:[#allocation23_spill] sm:$0xff] }
 0x47c   : > { %8121 = vmatmul.bf16.gmra.mxu2 %v15482_v8  ;;  %v8838_v8 = vrot.slane %v8837_v53, 4  ;;  %v8853_v32 = vsel %vm12199_vm13, %v8848_v14, %v8852_v31  ;;  %v8866_v59 = vrot.slane %v8864_v45, 5  ;;  %v16719_v53 = vld [vmem:[#allocation63_spill] sm:$0xff]  ;;  %v7059_v45 = vadd.f32 %v15396_v47, %v16720_v54 }
 0x47d   : > { %v8968_v12 = vunpack.c.l.b16 %v8853_v32  ;;  %v8857_v48 = vrot.slane %v8855_v61, 4  ;;  %v16721_v61 = vld [vmem:[#allocation34_spill] sm:$0xff] }
 0x47e   : > { %v8843_v60 = vsel %vm12199_vm13, %v8838_v8, %v8842_v20  ;;  %v8860_v20 = vrot.slane %v8858_v50, 5  ;;  %v8536_v50 = vld [vmem:[#allocation3 + $0xc0] sm:$0xf] }
 0x47f   : > { %v8082_v41 = vpop.f32.mrf.mxu2 }
 0x480   : > { %v8153_v37 = vadd.f32 %v8082_v41, %v15557_v1  ;;  %v8868_v1 = vshrl.u32 %v15698_v28, 16  ;;  %v16718_v41 = vld [vmem:[#allocation59_spill] sm:$0xff]  ;;  %v8861_v8 = vor.u32 %v8860_v20, %v8857_v48 }
 0x481   : > { %v7686_v36 = vpop.f32.mrf.mxu1  ;;  %v7058_v28 = vadd.f32 %v16719_v53, %v16718_v41 }
 0x482   : > { %v15863_v26 = vadd.f32 %v8397_v35, %v8153_v37  ;;  %v15867_v21 = vadd.f32 %v7686_v36, %v7057_v46  ;;  %v8870_v49 = vrot.slane %v8868_v1, 4  ;;  %v8399_v52 = vpop.f32.mrf.mxu3  ;;  %v8967_v35 = vunpack.c.l.b16 %v8843_v60  ;;  %v15884_v36 = vpop.f32.mrf.mxu0 }
 0x484   : > { %9494 = vmatmul.bf16.gmra.mxu1 %v16717_v43  ;;  %v8987_v39 = vpack.c.b16 %v8968_v12, %v8967_v35  ;;  %v8871_v31 = vor.u32 %v8870_v49, %v8866_v59  ;;  %v8882_v35 = vshll.u32 %v8536_v50, 16 }
 0x486   : > { %v8872_v32 = vrot.slane %v8871_v31, 4 }
 0x487   : > { %8441 = vmatmul.bf16.gmra.mxu3 %v11759_v6  ;;  %v8084_v33 = vpop.f32.mrf.mxu2  ;;  %v8862_v6 = vrot.slane %v8861_v8, 4  ;;  %v8898_v8 = vshll.u32 %v15756_v38, 16 }
 0x488   : > { %v8154_v30 = vadd.f32 %v8084_v33, %v15591_v9  ;;  %v8874_v9 = vshll.u32 %v15718_v15, 16  ;;  %v8892_v33 = vshrl.u32 %v15740_v34, 16  ;;  %v11760_v15 = vld [vmem:[#allocation3 + $0xb4] sm:$0xff] }
 0x489   : > { %v7688_v14 = vpop.f32.mrf.mxu1 }
 0x48a   : > { %v15879_v37 = vadd.f32 %v8399_v52, %v8154_v30  ;;  %v15881_v46 = vadd.f32 %v7688_v14, %v7058_v28  ;;  %v8876_v1 = vrot.slane %v8874_v9, 5  ;;  %v8867_v30 = vsel %vm12199_vm13, %v8862_v6, %v8866_v59  ;;  %v15898_v47 = vpop.f32.mrf.mxu0  ;;  %v16722_v14 = vld [vmem:[#allocation35_spill] sm:$0xff] }
 0x48b   : > { %9123 = vmatmul.bf16.gmra.mxu0 %v8987_v39  ;;  %v8879_v52 = vshrl.u32 %v8536_v50, 16  ;;  %v8894_v53 = vrot.slane %v8892_v33, 4  ;;  %v8969_v28 = vunpack.c.l.b16 %v8867_v30  ;;  %v7060_v39 = vadd.f32 %v15451_v19, %v16722_v14  ;;  %v16723_v33 = vld [vmem:[#allocation39_spill] sm:$0xff]  ;;  %v16725_v30 = vld [vmem:[#allocation24_spill] sm:$0xff] }
 0x48c   : > { %8126 = vmatmul.bf16.gmra.mxu2 %v15561_v0  ;;  %v8877_v12 = vsel %vm12199_vm13, %v8872_v32, %v8876_v1  ;;  %v8888_v0 = vshll.u32 %v15740_v34, 16  ;;  %v8884_v59 = vrot.slane %v8882_v35, 5  ;;  %v7061_v1 = vadd.f32 %v15494_v29, %v15400_v5 }
 0x48d   : > { %v8970_v49 = vunpack.c.l.b16 %v8877_v12  ;;  %v8881_v31 = vrot.slane %v8879_v52, 4  ;;  %v8900_v19 = vrot.slane %v8898_v8, 5 }
 0x48e   : > { %v8890_v41 = vrot.slane %v8888_v0, 5  ;;  %v4923_v0 = vld [vmem:[#allocation3 + $0xcc] sm:$0x1] }
 0x48f   : > { %v8988_v48 = vpack.c.b16 %v8970_v49, %v8969_v28  ;;  %v8885_v32 = vor.u32 %v8884_v59, %v8881_v31  ;;  %v16726_v49 = vld [vmem:[#allocation29_spill] sm:$0xff] }
 0x490   : > { %v8895_v9 = vor.u32 %v8894_v53, %v8890_v41  ;;  %v7062_v52 = vadd.f32 %v16726_v49, %v16725_v30 }
 0x491   : > { %v7691_v43 = vpop.f32.mrf.mxu1  ;;  %v8886_v12 = vrot.slane %v8885_v32, 4 }
 0x492   : > { %v15889_v60 = vadd.f32 %v7691_v43, %v7059_v45  ;;  %v8896_v54 = vrot.slane %v8895_v9, 4  ;;  %v15906_v45 = vpop.f32.mrf.mxu0 }
 0x493   : > { %v8891_v50 = vsel %vm12199_vm13, %v8886_v12, %v8890_v41  ;;  %v16729_v12 = vld [vmem:[#allocation11_spill] sm:$0xff]  ;;  %v16731_v41 = vld [vmem:[#allocation25_spill] sm:$0xff] }
 0x494   : > { %9499 = vmatmul.bf16.gmra.mxu1 %v16721_v61  ;;  %v11761_v61 = vld [vmem:[#allocation3 + $0xc0] sm:$0xff]  ;;  %v8971_v29 = vunpack.c.l.b16 %v8891_v50 }
 0x497   : > { %8446 = vmatmul.bf16.gmra.mxu3 %v11760_v15  ;;  %v4924_v15 = vsel %vm13546_vm7, 0, %v4923_v0 }
 0x498   : > { %4925 = vst [vmem:[#allocation3 + $0xcc] sm:$0x1] %v4924_v15 }
 0x499   : > { %v7693_v34 = vpop.f32.mrf.mxu1 }
 0x49a   : > { %v15902_v20 = vadd.f32 %v7693_v34, %v7060_v39  ;;  %v15921_v35 = vpop.f32.mrf.mxu0  ;;  %v4978_v39 = vld [vmem:[#allocation3 + $0xd4] sm:$0x1]  ;;  %v15926_v34 = vld [vmem:[#allocation3 + $0xd0] sm:$0xf] }
 0x49b   : > { %9128 = vmatmul.bf16.gmra.mxu0 %v8988_v48  ;;  %v4979_v48 = vsel %vm13572_vm3, 0, %v4978_v39  ;;  %v8912_v59 = vshll.u32 %v15926_v34, 16  ;;  %v8916_v9 = vshrl.u32 %v15926_v34, 16 }
 0x49c   : > { %8131 = vmatmul.bf16.gmra.mxu2 %v15628_v51  ;;  %v8901_v51 = vsel %vm12199_vm13, %v8896_v54, %v8900_v19  ;;  %4980 = vst [vmem:[#allocation3 + $0xd4] sm:$0x1] %v4979_v48  ;;  %v16732_v48 = vld [vmem:[#allocation14_spill] sm:$0xff] }
 0x49d   : > { %v8972_v5 = vunpack.c.l.b16 %v8901_v51  ;;  %v8914_v54 = vrot.slane %v8912_v59, 5 }
 0x49f   : > { %v8989_v28 = vpack.c.b16 %v8972_v5, %v8971_v29  ;;  %v8539_v31 = vld [vmem:[#allocation3 + $0xcc] sm:$0xf] }
 0x4a0   : > { %v8903_v8 = vshrl.u32 %v8539_v31, 16  ;;  %v8906_v32 = vshll.u32 %v8539_v31, 16  ;;  %v11762_v38 = vld [vmem:[#allocation3 + $0xcc] sm:$0xff]  ;;  %v7064_v31 = vadd.f32 %v16732_v48, %v16731_v41  ;;  %v16745_v48 = vld [vmem:[#allocation31_spill] sm:$0xff] }
 0x4a1   : > { %v7696_v43 = vpop.f32.mrf.mxu1  ;;  %v16730_v29 = vld [vmem:[#allocation44_spill] sm:$0xff] }
 0x4a2   : > { %v15910_v6 = vadd.f32 %v7696_v43, %v7061_v1  ;;  %v8918_v1 = vrot.slane %v8916_v9, 4  ;;  %v8905_v19 = vrot.slane %v8903_v8, 4  ;;  %v8908_v43 = vrot.slane %v8906_v32, 5  ;;  %v15936_v5 = vpop.f32.mrf.mxu0 }
 0x4a3   : > { %v15939_v30 = vld [vmem:[#allocation3 + $0xd4] sm:$0x1] }
 0x4a4   : > { %9504 = vmatmul.bf16.gmra.mxu1 %v16723_v33  ;;  %v8909_v0 = vor.u32 %v8908_v43, %v8905_v19  ;;  %v8919_v33 = vor.u32 %v8918_v1, %v8914_v54  ;;  %v16734_v19 = vld [vmem:[#allocation13_spill] sm:$0xff] }
 0x4a5   : > { %v16735_v43 = vld [vmem:[#allocation17_spill] sm:$0xff] }
 0x4a6   : > { %v8910_v50 = vrot.slane %v8909_v0, 4  ;;  %v16737_v0 = vld [vmem:[#allocation51_spill] sm:$0xff] }
 0x4a7   : > { %8451 = vmatmul.bf16.gmra.mxu3 %v11761_v61 }
 0x4a8   : > { %v8915_v49 = vsel %vm12199_vm13, %v8910_v50, %v8914_v54 }
 0x4a9   : > { %v7698_v53 = vpop.f32.mrf.mxu1  ;;  %v8973_v39 = vunpack.c.l.b16 %v8915_v49 }
 0x4aa   : > { %v15923_v14 = vadd.f32 %v7698_v53, %v7062_v52  ;;  %v8920_v52 = vrot.slane %v8919_v33, 4  ;;  %v8922_v53 = vshll.u32 %v15939_v30, 16  ;;  %v15951_v54 = vpop.f32.mrf.mxu0  ;;  %v7066_v33 = vadd.f32 %v15714_v63, %v16738_v27  ;;  %v15993_v27 = vpop.f32.mrf.mxu2 }
 0x4ab   : > { %9133 = vmatmul.bf16.gmra.mxu0 %v8989_v28  ;;  %v7069_v63 = vadd.f32 %v15820_v55, %v16745_v48  ;;  %v15988_v55 = vld [vmem:[%s16477_s4] ss:$0 sm:$0xff] }
 0x4ac   : > { %8136 = vmatmul.bf16.gmra.mxu2 %v15703_v23  ;;  %v16728_v23 = vld [vmem:[#allocation26_spill] sm:$0xff]  ;;  %v8924_v28 = vrot.slane %v8922_v53, 5  ;;  %v16743_v53 = vld [vmem:[#allocation15_spill] sm:$0xff] }
 0x4ad   : > { %v7063_v51 = vadd.f32 %v16729_v12, %v16728_v23  ;;  %v7065_v23 = vadd.f32 %v16735_v43, %v16734_v19 }
 0x4ae   : > { %v8925_v59 = vsel %vm12199_vm13, %v8920_v52, %v8924_v28  ;;  %v16742_v52 = vld [vmem:[#allocation58_spill] sm:$0xff]  ;;  %v7068_v28 = vadd.f32 %v15798_v58, %v16743_v53  ;;  %v9144_v58 = vadd.f32 %v15850_v56, %v15766_v42  ;;  %v9145_v42 = vadd.f32 %v15865_v17, %v15796_v10 }
 0x4af   : > { %v8974_v8 = vunpack.c.l.b16 %v8925_v59  ;;  %vm10354_vm13 = vcmask 1047559  }
 0x4b1   : > { %v7701_v61 = vpop.f32.mrf.mxu1  ;;  %v8990_v1 = vpack.c.b16 %v8974_v8, %v8973_v39 }
 0x4b2   : > { %v15934_v15 = vadd.f32 %v7701_v61, %v7063_v51  ;;  %v16006_v53 = vpop.f32.mrf.mxu2  ;;  %v16010_v10 = vpop.f32.mrf.mxu0 }
 0x4b4   : > { %9509 = vmatmul.bf16.gmra.mxu1 %v16730_v29 }
 0x4b7   : > { %8456 = vmatmul.bf16.gmra.mxu3 %v11762_v38 }
 0x4b9   : > { %v7703_v9 = vpop.f32.mrf.mxu1 }
 0x4ba   : > { %v15948_v32 = vadd.f32 %v7703_v9, %v7064_v31  ;;  %v16747_v9 = vld [vmem:[#allocation62_spill] sm:$0xff] }
 0x4bb   : > { %9138 = vmatmul.bf16.gmra.mxu0 %v8990_v1 }
 0x4bc   : > { %16733 = vst [vmem:[#allocation41_spill] sm:$0xff] %v15948_v32  ;;  %8141 = vmatmul.bf16.gmra.mxu2 %v15772_v2  ;;  %v16740_v2 = vld [vmem:[#allocation16_spill] sm:$0xff] }
 0x4bd   : > { %v7067_v50 = vadd.f32 %v15762_v22, %v16740_v2  ;;  %v16748_v22 = vld [vmem:[#allocation38_spill] sm:$0xff] }
 0x4be   : > { %v7070_v8 = vadd.f32 %v15833_v44, %v16748_v22 }
 0x4c1   : > { %v7706_v12 = vpop.f32.mrf.mxu1 }
 0x4c2   : > { %v15955_v51 = vadd.f32 %v7706_v12, %v7065_v23  ;;  %v16750_v12 = vld [vmem:[#allocation27_spill] sm:$0xff] }
 0x4c4   : > { %16736 = vst [vmem:[#allocation40_spill] sm:$0xff] %v15955_v51  ;;  %9514 = vmatmul.bf16.gmra.mxu1 %v16737_v0 }
 0x4c9   : > { %v7708_v61 = vpop.f32.mrf.mxu1 }
 0x4ca   : > { %v15960_v38 = vadd.f32 %v7708_v61, %v7066_v33 }
 0x4cc   : > { %16739 = vst [vmem:[#allocation43_spill] sm:$0xff] %v15960_v38 }
 0x4d1   : > { %v7711_v29 = vpop.f32.mrf.mxu1 }
 0x4d2   : > { %v15964_v49 = vadd.f32 %v7711_v29, %v7067_v50  ;;  %v16001_v50 = vpop.f32.mrf.mxu3  ;;  %v9146_v29 = vadd.f32 %v15884_v36, %v15812_v40 }
 0x4d4   : > { %16741 = vst [vmem:[#allocation42_spill] sm:$0xff] %v15964_v49  ;;  %9519 = vmatmul.bf16.gmra.mxu1 %v16742_v52 }
 0x4d9   : > { %v7713_v39 = vpop.f32.mrf.mxu1 }
 0x4da   : > { %v15969_v41 = vadd.f32 %v7713_v39, %v7068_v28  ;;  %v16751_v39 = vld [vmem:[#allocation18_spill] sm:$0xff]  ;;  %v16015_v22 = vpop.f32.mrf.mxu3 }
 0x4dc   : > { %16744 = vst [vmem:[#allocation45_spill] sm:$0xff] %v15969_v41 }
 0x4e1   : > { %v7716_v31 = vpop.f32.mrf.mxu1 }
 0x4e2   : > { %v15973_v59 = vadd.f32 %v7716_v31, %v7069_v63  ;;  %v9147_v31 = vadd.f32 %v15898_v47, %v15827_v3 }
 0x4e4   : > { %16746 = vst [vmem:[#allocation46_spill] sm:$0xff] %v15973_v59  ;;  %9524 = vmatmul.bf16.gmra.mxu1 %v16747_v9  ;;  %v16030_v59 = vpop.f32.mrf.mxu3 }
 0x4e9   : > { %v7718_v1 = vpop.f32.mrf.mxu1 }
 0x4ea   : > { %v15978_v19 = vadd.f32 %v7718_v1, %v7070_v8 }
 0x4ec   : > { %16749 = vst [vmem:[#allocation61_spill] sm:$0xff] %v15978_v19  ;;  %v16752_v19 = vld [vmem:[#allocation30_spill] sm:$0xff] }
 0x4f1   : > { %v9490_v43 = vpop.f32.mrf.mxu1 }
 0x4f2   : > { %v9570_v23 = vadd.f32 %v9490_v43, %v9144_v58 }
 0x4f4   : > { %9529 = vmatmul.bf16.gmra.mxu1 %v16750_v12  ;;  %v9606_v44 = vadd.f32 %v15988_v55, %v9570_v23  ;;  %v16018_v23 = vpop.f32.mrf.mxu2 }
 0x4f6   : > { %v9638_v0 = vmax.f32 %v9606_v44, 0.0 }
 0x4f8   : > { %9670 = vst [vmem:[%s15995_s17] sm:$0xff] %v9638_v0 }
 0x4f9   : > { %v9492_v56 = vpop.f32.mrf.mxu1 }
 0x4fa   : > { %v9571_v33 = vadd.f32 %v9492_v56, %v9145_v42 }
 0x4fc   : > { %v9607_v61 = vadd.f32 %v15988_v55, %v9571_v33 }
 0x4fe   : > { %v9639_v2 = vmax.f32 %v9607_v61, 0.0  ;;  %v16024_v61 = vpop.f32.mrf.mxu0 }
 0x500   : > { %9671 = vst [vmem:[%s15995_s17 + $0x8] sm:$0xff] %v9639_v2 }
 0x501   : > { %v9495_v52 = vpop.f32.mrf.mxu1 }
 0x502   : > { %v9572_v28 = vadd.f32 %v9495_v52, %v9146_v29 }
 0x504   : > { %9534 = vmatmul.bf16.gmra.mxu1 %v16751_v39  ;;  %v9608_v48 = vadd.f32 %v15988_v55, %v9572_v28 }
 0x506   : > { %v9640_v17 = vmax.f32 %v9608_v48, 0.0 }
 0x508   : > { %9672 = vst [vmem:[%s15995_s17 + $0x10] sm:$0xff] %v9640_v17  ;;  %v9702_v63 = vmax.f32 %v9638_v0, %v9640_v17  ;;  %v9148_v17 = vadd.f32 %v15906_v45, %v15838_v13 }
 0x509   : > { %v9497_v9 = vpop.f32.mrf.mxu1 }
 0x50a   : > { %v9734_v40 = vrot.slane %v9702_v63, 2  ;;  %v9735_v36 = vrot.slane %v9702_v63, 4  ;;  %v9736_v8 = vrot.slane %v9702_v63, 6  ;;  %v9830_v1 = vsel %vm1420_vm0, %v9702_v63, -inf }
 0x50b   : > { %v9831_v58 = vrot.slane %v9830_v1, 4  ;;  %v9573_v43 = vadd.f32 %v9497_v9, %v9147_v31 }
 0x50c   : > { %v9837_v12 = vsel %vm1420_vm0, %v9734_v40, -inf  ;;  %v9844_v44 = vsel %vm1420_vm0, %v9735_v36, -inf  ;;  %v9851_v0 = vsel %vm1420_vm0, %v9736_v8, -inf }
 0x50d   : > { %v9832_v42 = vmax.f32 %v9830_v1, %v9831_v58  ;;  %v9838_v3 = vrot.slane %v9837_v12, 4  ;;  %v9845_v47 = vrot.slane %v9844_v44, 4  ;;  %v9852_v56 = vrot.slane %v9851_v0, 4 }
 0x50e   : > { %v9609_v33 = vadd.f32 %v15988_v55, %v9573_v43 }
 0x50f   : > { %v9833_v29 = vrot.slane %v9832_v42, 2  ;;  %v9839_v52 = vmax.f32 %v9837_v12, %v9838_v3  ;;  %v9846_v28 = vmax.f32 %v9844_v44, %v9845_v47  ;;  %v9853_v39 = vmax.f32 %v9851_v0, %v9852_v56  ;;  %v16033_v56 = vpop.f32.mrf.mxu2 }
 0x510   : > { %v9641_v48 = vmax.f32 %v9609_v33, 0.0 }
 0x511   : > { %v9834_v63 = vmax.f32 %v9832_v42, %v9833_v29  ;;  %v9840_v31 = vrot.slane %v9839_v52, 2  ;;  %v9847_v9 = vrot.slane %v9846_v28, 2  ;;  %v9854_v40 = vrot.slane %v9853_v39, 2  ;;  %v9500_v36 = vpop.f32.mrf.mxu1 }
 0x512   : > { %9673 = vst [vmem:[%s15995_s17 + $0x18] sm:$0xff] %v9641_v48  ;;  %v9703_v8 = vmax.f32 %v9639_v2, %v9641_v48  ;;  %v9574_v43 = vadd.f32 %v9500_v36, %v9148_v17  ;;  %v16039_v36 = vpop.f32.mrf.mxu0 }
 0x513   : > { %v9841_v1 = vmax.f32 %v9839_v52, %v9840_v31  ;;  %v9848_v58 = vmax.f32 %v9846_v28, %v9847_v9  ;;  %v9835_v13 = vrot.slane %v9834_v63, 1  ;;  %v9855_v47 = vmax.f32 %v9853_v39, %v9854_v40 }
 0x514   : > { %9539 = vmatmul.bf16.gmra.mxu1 %v16752_v19  ;;  %v9737_v12 = vrot.slane %v9703_v8, 2  ;;  %v9738_v44 = vrot.slane %v9703_v8, 4  ;;  %v9739_v0 = vrot.slane %v9703_v8, 6  ;;  %v9858_v3 = vsel %vm1420_vm0, %v9703_v8, -inf }
 0x515   : > { %v9842_v45 = vrot.slane %v9841_v1, 1  ;;  %v9849_v42 = vrot.slane %v9848_v58, 1  ;;  %v9859_v33 = vrot.slane %v9858_v3, 4  ;;  %v9610_v9 = vadd.f32 %v15988_v55, %v9574_v43 }
 0x516   : > { %v9865_v2 = vsel %vm1420_vm0, %v9737_v12, -inf  ;;  %v9872_v29 = vsel %vm1420_vm0, %v9738_v44, -inf  ;;  %v9879_v19 = vsel %vm1420_vm0, %v9739_v0, -inf  ;;  %v9836_v39 = vmax.f32 %v9834_v63, %v9835_v13 }
 0x517   : > { %v9843_v52 = vmax.f32 %v9841_v1, %v9842_v45  ;;  %v9866_v28 = vrot.slane %v9865_v2, 4  ;;  %v9860_v48 = vmax.f32 %v9858_v3, %v9859_v33  ;;  %v9873_v17 = vrot.slane %v9872_v29, 4 }
 0x518   : > { %v9880_v31 = vrot.slane %v9879_v19, 4  ;;  %v9856_v40 = vrot.slane %v9855_v47, 1  ;;  %v9149_v12 = vadd.f32 %v15921_v35, %v15854_v4  ;;  %v9850_v0 = vmax.f32 %v9848_v58, %v9849_v42  ;;  %v16048_v35 = vpop.f32.mrf.mxu3 }
 0x519   : > { %v9867_v8 = vmax.f32 %v9865_v2, %v9866_v28  ;;  %v9502_v44 = vpop.f32.mrf.mxu1  ;;  %v9861_v1 = vrot.slane %v9860_v48, 2  ;;  %v9874_v45 = vmax.f32 %v9872_v29, %v9873_v17  ;;  %v10343_v3 = vsel %vm10342_vm4, %v9843_v52, %v9836_v39  ;;  %v16052_v28 = vpop.f32.mrf.mxu2 }
 0x51a   : > { %v9881_v41 = vmax.f32 %v9879_v19, %v9880_v31  ;;  %v9642_v49 = vmax.f32 %v9610_v9, 0.0  ;;  %v9575_v38 = vadd.f32 %v9502_v44, %v9149_v12  ;;  %v10345_v58 = vsel %vm10344_vm5, %v9850_v0, %v10343_v3 }
 0x51b   : > { %v9868_v33 = vrot.slane %v9867_v8, 2  ;;  %v9862_v43 = vmax.f32 %v9860_v48, %v9861_v1  ;;  %v9875_v51 = vrot.slane %v9874_v45, 2  ;;  %v9857_v29 = vmax.f32 %v9855_v47, %v9856_v40  ;;  %v16062_v40 = vpop.f32.mrf.mxu0 }
 0x51c   : > { %v9882_v32 = vrot.slane %v9881_v41, 2  ;;  %9674 = vst [vmem:[%s15995_s17 + $0x20] sm:$0xff] %v9642_v49  ;;  %v16046_v4 = vadd.f32 %v15988_v55, %v9575_v38  ;;  %v9150_v31 = vadd.f32 %v15936_v5, %v15863_v26  ;;  %v16753_v26 = vld [vmem:[#allocation28_spill] sm:$0xff] }
 0x51d   : > { %v9869_v63 = vmax.f32 %v9867_v8, %v9868_v33  ;;  %v9863_v13 = vrot.slane %v9862_v43, 1  ;;  %v9876_v42 = vmax.f32 %v9874_v45, %v9875_v51  ;;  %v10347_v9 = vsel %vm10346_vm6, %v9857_v29, %v10345_v58  ;;  %v16754_v45 = vld [vmem:[#allocation32_spill] sm:$0xff] }
 0x51e   : > { %v9883_v2 = vmax.f32 %v9881_v41, %v9882_v32  ;;  %v9643_v52 = vmax.f32 %v16046_v4, 0.0  ;;  %v8155_v3 = vadd.f32 %v15993_v27, %v16754_v45 }
 0x51f   : > { %v9870_v19 = vrot.slane %v9869_v63, 1  ;;  %v9864_v48 = vmax.f32 %v9862_v43, %v9863_v13  ;;  %v9877_v17 = vrot.slane %v9876_v42, 1 }
 0x520   : > { %v9884_v38 = vrot.slane %v9883_v2, 1  ;;  %9675 = vst [vmem:[%s15995_s17 + $0x28] sm:$0xff] %v9643_v52  ;;  %v16074_v33 = vpop.f32.mrf.mxu3 }
 0x521   : > { %v9871_v39 = vmax.f32 %v9869_v63, %v9870_v19  ;;  %v9505_v32 = vpop.f32.mrf.mxu1  ;;  %v9878_v51 = vmax.f32 %v9876_v42, %v9877_v17  ;;  %v10349_v41 = vsel %vm10348_vm8, %v9864_v48, %v10347_v9  ;;  %v9151_v63 = vadd.f32 %v15951_v54, %v15879_v37  ;;  %v16079_v13 = vpop.f32.mrf.mxu2 }
 0x522   : > { %v9576_v47 = vadd.f32 %v9505_v32, %v9150_v31  ;;  %v9885_v8 = vmax.f32 %v9883_v2, %v9884_v38  ;;  %v8470_v38 = vadd.f32 %v16001_v50, %v8155_v3 }
 0x523   : > { %v10351_v12 = vsel %vm10350_vm10, %v9871_v39, %v10349_v41  ;;  %v16086_v9 = vpop.f32.mrf.mxu0 }
 0x524   : > { %9544 = vmatmul.bf16.gmra.mxu1 %v16753_v26  ;;  %v10353_v5 = vsel %vm10352_vm12, %v9878_v51, %v10351_v12  ;;  %v9612_v44 = vadd.f32 %v15988_v55, %v9576_v47  ;;  %v16755_v51 = vld [vmem:[#allocation47_spill] sm:$0xff] }
 0x525   : > { %v10355_v0 = vsel %vm10354_vm13, %v9885_v8, %v10353_v5  ;;  %v8156_v41 = vadd.f32 %v16006_v53, %v16755_v51 }
 0x526   : > { %10413 = vst [vmem:[%s16069_s29] sm:$0xff] %v10355_v0  ;;  %v9644_v1 = vmax.f32 %v9612_v44, 0.0  ;;  %v9152_v44 = vadd.f32 %v16010_v10, %v8470_v38 }
 0x528   : > { %9676 = vst [vmem:[%s15995_s17 + $0x30] sm:$0xff] %v9644_v1  ;;  %v9704_v43 = vmax.f32 %v9642_v49, %v9644_v1 }
 0x529   : > { %v9507_v58 = vpop.f32.mrf.mxu1 }
 0x52a   : > { %v9740_v42 = vrot.slane %v9704_v43, 2  ;;  %v9741_v2 = vrot.slane %v9704_v43, 4  ;;  %v9742_v29 = vrot.slane %v9704_v43, 6  ;;  %v9886_v19 = vsel %vm1420_vm0, %v9704_v43, -inf }
 0x52b   : > { %v9887_v48 = vrot.slane %v9886_v19, 4  ;;  %v9577_v17 = vadd.f32 %v9507_v58, %v9151_v63  ;;  %v16092_v63 = vpop.f32.mrf.mxu3  ;;  %v8471_v58 = vadd.f32 %v16015_v22, %v8156_v41  ;;  %v16107_v41 = vpop.f32.mrf.mxu0 }
 0x52c   : > { %v9893_v27 = vsel %vm1420_vm0, %v9740_v42, -inf  ;;  %v9900_v31 = vsel %vm1420_vm0, %v9741_v2, -inf  ;;  %v9907_v49 = vsel %vm1420_vm0, %v9742_v29, -inf }
 0x52d   : > { %v9888_v37 = vmax.f32 %v9886_v19, %v9887_v48  ;;  %v9894_v54 = vrot.slane %v9893_v27, 4  ;;  %v9901_v39 = vrot.slane %v9900_v31, 4  ;;  %v9908_v32 = vrot.slane %v9907_v49, 4  ;;  %v16756_v19 = vld [vmem:[#allocation21_spill] sm:$0xff]  ;;  %v16099_v48 = vpop.f32.mrf.mxu2 }
 0x52e   : > { %v9613_v47 = vadd.f32 %v15988_v55, %v9577_v17 }
 0x52f   : > { %v9889_v8 = vrot.slane %v9888_v37, 2  ;;  %v9895_v50 = vmax.f32 %v9893_v27, %v9894_v54  ;;  %v9902_v12 = vmax.f32 %v9900_v31, %v9901_v39  ;;  %v9909_v26 = vmax.f32 %v9907_v49, %v9908_v32  ;;  %v16757_v32 = vld [vmem:[#allocation20_spill] sm:$0xff] }
 0x530   : > { %v9645_v5 = vmax.f32 %v9613_v47, 0.0  ;;  %v8157_v51 = vadd.f32 %v16018_v23, %v16757_v32 }
 0x531   : > { %v9890_v0 = vmax.f32 %v9888_v37, %v9889_v8  ;;  %v9896_v1 = vrot.slane %v9895_v50, 2  ;;  %v9903_v45 = vrot.slane %v9902_v12, 2  ;;  %v9910_v3 = vrot.slane %v9909_v26, 2  ;;  %v9510_v43 = vpop.f32.mrf.mxu1 }
 0x532   : > { %9677 = vst [vmem:[%s15995_s17 + $0x38] sm:$0xff] %v9645_v5  ;;  %v9705_v53 = vmax.f32 %v9643_v52, %v9645_v5  ;;  %v9578_v29 = vadd.f32 %v9510_v43, %v9152_v44 }
 0x533   : > { %v9897_v42 = vmax.f32 %v9895_v50, %v9896_v1  ;;  %v9904_v2 = vmax.f32 %v9902_v12, %v9903_v45  ;;  %v9891_v31 = vrot.slane %v9890_v0, 1  ;;  %v9911_v54 = vmax.f32 %v9909_v26, %v9910_v3 }
 0x534   : > { %9549 = vmatmul.bf16.gmra.mxu1 %v16756_v19  ;;  %v9743_v10 = vrot.slane %v9705_v53, 2  ;;  %v9744_v17 = vrot.slane %v9705_v53, 4  ;;  %v9745_v38 = vrot.slane %v9705_v53, 6  ;;  %v9914_v27 = vsel %vm1420_vm0, %v9705_v53, -inf }
 0x535   : > { %v9898_v49 = vrot.slane %v9897_v42, 1  ;;  %v9905_v37 = vrot.slane %v9904_v2, 1  ;;  %v9915_v4 = vrot.slane %v9914_v27, 4  ;;  %v9614_v44 = vadd.f32 %v15988_v55, %v9578_v29 }
 0x536   : > { %v9921_v52 = vsel %vm1420_vm0, %v9743_v10, -inf  ;;  %v9928_v22 = vsel %vm1420_vm0, %v9744_v17, -inf  ;;  %v9935_v39 = vsel %vm1420_vm0, %v9745_v38, -inf  ;;  %v9892_v26 = vmax.f32 %v9890_v0, %v9891_v31 }
 0x537   : > { %v9899_v47 = vmax.f32 %v9897_v42, %v9898_v49  ;;  %v9922_v8 = vrot.slane %v9921_v52, 4  ;;  %v9916_v50 = vmax.f32 %v9914_v27, %v9915_v4  ;;  %v9929_v12 = vrot.slane %v9928_v22, 4  ;;  %v16113_v4 = vpop.f32.mrf.mxu3 }
 0x538   : > { %v9936_v5 = vrot.slane %v9935_v39, 4  ;;  %v9912_v1 = vrot.slane %v9911_v54, 1  ;;  %v9153_v3 = vadd.f32 %v16024_v61, %v8471_v58  ;;  %v9906_v53 = vmax.f32 %v9904_v2, %v9905_v37  ;;  %v16119_v58 = vpop.f32.mrf.mxu2 }
 0x539   : > { %v9923_v45 = vmax.f32 %v9921_v52, %v9922_v8  ;;  %v9512_v43 = vpop.f32.mrf.mxu1  ;;  %v9917_v19 = vrot.slane %v9916_v50, 2  ;;  %v9930_v10 = vmax.f32 %v9928_v22, %v9929_v12  ;;  %v10356_v17 = vsel %vm10342_vm4, %v9899_v47, %v9892_v26  ;;  %v16126_v26 = vpop.f32.mrf.mxu0 }
 0x53a   : > { %v9937_v23 = vmax.f32 %v9935_v39, %v9936_v5  ;;  %v9646_v38 = vmax.f32 %v9614_v44, 0.0  ;;  %v9579_v27 = vadd.f32 %v9512_v43, %v9153_v3  ;;  %v8472_v49 = vadd.f32 %v16030_v59, %v8157_v51  ;;  %v16758_v5 = vld [vmem:[#allocation37_spill] sm:$0xff] }
 0x53b   : > { %v9924_v42 = vrot.slane %v9923_v45, 2  ;;  %v9918_v0 = vmax.f32 %v9916_v50, %v9917_v19  ;;  %v9931_v29 = vrot.slane %v9930_v10, 2  ;;  %v10357_v2 = vsel %vm10344_vm5, %v9906_v53, %v10356_v17 }
 0x53c   : > { %v9938_v31 = vrot.slane %v9937_v23, 2  ;;  %9678 = vst [vmem:[%s15995_s17 + $0x40] sm:$0xff] %v9646_v38  ;;  %v16117_v61 = vadd.f32 %v15988_v55, %v9579_v27  ;;  %v9913_v32 = vmax.f32 %v9911_v54, %v9912_v1  ;;  %v9154_v12 = vadd.f32 %v16039_v36, %v8472_v49 }
 0x53d   : > { %v9925_v52 = vmax.f32 %v9923_v45, %v9924_v42  ;;  %v9919_v37 = vrot.slane %v9918_v0, 1  ;;  %v9932_v22 = vmax.f32 %v9930_v10, %v9931_v29  ;;  %v8158_v44 = vadd.f32 %v16033_v56, %v16758_v5 }
 0x53e   : > { %v9939_v39 = vmax.f32 %v9937_v23, %v9938_v31  ;;  %v9647_v51 = vmax.f32 %v16117_v61, 0.0  ;;  %v10358_v45 = vsel %vm10346_vm6, %v9913_v32, %v10357_v2  ;;  %v8159_v49 = vadd.f32 %v16052_v28, %v15774_v18 }
 0x53f   : > { %v9926_v59 = vrot.slane %v9925_v52, 1  ;;  %v9920_v47 = vmax.f32 %v9918_v0, %v9919_v37  ;;  %v9933_v8 = vrot.slane %v9932_v22, 1  ;;  %v8473_v23 = vadd.f32 %v16048_v35, %v8158_v44  ;;  %v16139_v42 = vpop.f32.mrf.mxu3 }
 0x540   : > { %v9940_v50 = vrot.slane %v9939_v39, 1  ;;  %9679 = vst [vmem:[%s15995_s17 + $0x48] sm:$0xff] %v9647_v51  ;;  %v16144_v0 = vpop.f32.mrf.mxu2 }
 0x541   : > { %v9927_v3 = vmax.f32 %v9925_v52, %v9926_v59  ;;  %v9515_v54 = vpop.f32.mrf.mxu1  ;;  %v9934_v1 = vmax.f32 %v9932_v22, %v9933_v8  ;;  %v10359_v43 = vsel %vm10348_vm8, %v9920_v47, %v10358_v45  ;;  %v16149_v22 = vpop.f32.mrf.mxu0  ;;  %v8474_v59 = vadd.f32 %v16074_v33, %v8159_v49 }
 0x542   : > { %v9580_v53 = vadd.f32 %v9515_v54, %v9154_v12  ;;  %v9941_v19 = vmax.f32 %v9939_v39, %v9940_v50  ;;  %v8160_v12 = vadd.f32 %v16079_v13, %v15800_v16  ;;  %v8161_v16 = vadd.f32 %v16099_v48, %v15814_v24 }
 0x543   : > { %v10360_v36 = vsel %vm10350_vm10, %v9927_v3, %v10359_v43  ;;  %v9156_v43 = vadd.f32 %v16086_v9, %v8474_v59  ;;  %v8162_v59 = vadd.f32 %v16119_v58, %v15829_v62 }
 0x544   : > { %9554 = vmatmul.bf16.gmra.mxu1 %v15764_v11  ;;  %v10361_v56 = vsel %vm10352_vm12, %v9934_v1, %v10360_v36  ;;  %v9616_v10 = vadd.f32 %v15988_v55, %v9580_v53  ;;  %v9155_v11 = vadd.f32 %v16062_v40, %v8473_v23  ;;  %v8475_v23 = vadd.f32 %v16092_v63, %v8160_v12 }
 0x545   : > { %v10362_v17 = vsel %vm10354_vm13, %v9941_v19, %v10361_v56 }
 0x546   : > { %10414 = vst [vmem:[%s16069_s29 + $0x8] sm:$0xff] %v10362_v17  ;;  %v9648_v27 = vmax.f32 %v9616_v10, 0.0 }
 0x547   : > { %v16158_v54 = vpop.f32.mrf.mxu3 }
 0x548   : > { %9680 = vst [vmem:[%s15995_s17 + $0x50] sm:$0xff] %v9648_v27  ;;  %v9706_v29 = vmax.f32 %v9646_v38, %v9648_v27  ;;  %v16164_v13 = vpop.f32.mrf.mxu2 }
 0x549   : > { %v9517_v31 = vpop.f32.mrf.mxu1 }
 0x54a   : > { %v9746_v52 = vrot.slane %v9706_v29, 2  ;;  %v9747_v2 = vrot.slane %v9706_v29, 4  ;;  %v9748_v37 = vrot.slane %v9706_v29, 6  ;;  %v9942_v35 = vsel %vm1420_vm0, %v9706_v29, -inf }
 0x54b   : > { %v9943_v39 = vrot.slane %v9942_v35, 4  ;;  %v9581_v32 = vadd.f32 %v9517_v31, %v9155_v11 }
 0x54c   : > { %v9949_v18 = vsel %vm1420_vm0, %v9746_v52, -inf  ;;  %v9956_v28 = vsel %vm1420_vm0, %v9747_v2, -inf  ;;  %v9963_v38 = vsel %vm1420_vm0, %v9748_v37, -inf  ;;  %v16171_v2 = vpop.f32.mrf.mxu0 }
 0x54d   : > { %v9944_v47 = vmax.f32 %v9942_v35, %v9943_v39  ;;  %v9950_v40 = vrot.slane %v9949_v18, 4  ;;  %v9957_v8 = vrot.slane %v9956_v28, 4  ;;  %v9964_v50 = vrot.slane %v9963_v38, 4 }
 0x54e   : > { %v9617_v5 = vadd.f32 %v15988_v55, %v9581_v32 }
 0x54f   : > { %v9945_v44 = vrot.slane %v9944_v47, 2  ;;  %v9951_v45 = vmax.f32 %v9949_v18, %v9950_v40  ;;  %v9958_v3 = vmax.f32 %v9956_v28, %v9957_v8  ;;  %v9965_v33 = vmax.f32 %v9963_v38, %v9964_v50 }
 0x550   : > { %v9649_v1 = vmax.f32 %v9617_v5, 0.0 }
 0x551   : > { %v9946_v53 = vmax.f32 %v9944_v47, %v9945_v44  ;;  %v9952_v19 = vrot.slane %v9951_v45, 2  ;;  %v9959_v36 = vrot.slane %v9958_v3, 2  ;;  %v9966_v56 = vrot.slane %v9965_v33, 2  ;;  %v9520_v10 = vpop.f32.mrf.mxu1 }
 0x552   : > { %9681 = vst [vmem:[%s15995_s17 + $0x58] sm:$0xff] %v9649_v1  ;;  %v9707_v17 = vmax.f32 %v9647_v51, %v9649_v1  ;;  %v9582_v9 = vadd.f32 %v9520_v10, %v9156_v43  ;;  %v9157_v44 = vadd.f32 %v16107_v41, %v8475_v23 }
 0x553   : > { %v9953_v27 = vmax.f32 %v9951_v45, %v9952_v19  ;;  %v9960_v49 = vmax.f32 %v9958_v3, %v9959_v36  ;;  %v9967_v29 = vmax.f32 %v9965_v33, %v9966_v56  ;;  %v9947_v24 = vrot.slane %v9946_v53, 1  ;;  %v16183_v3 = vpop.f32.mrf.mxu3  ;;  %v9191_v56 = vld [vmem:[#allocation3 + $0xcc] sm:$0xe] }
 0x554   : > { %9559 = vmatmul.bf16.gmra.mxu1 %v15791_v25  ;;  %v9749_v11 = vrot.slane %v9707_v17, 2  ;;  %v9750_v31 = vrot.slane %v9707_v17, 4  ;;  %v9751_v52 = vrot.slane %v9707_v17, 6  ;;  %v9970_v63 = vsel %vm1420_vm0, %v9707_v17, -inf }
 0x555   : > { %v9954_v48 = vrot.slane %v9953_v27, 1  ;;  %v9961_v37 = vrot.slane %v9960_v49, 1  ;;  %v9968_v35 = vrot.slane %v9967_v29, 1  ;;  %v9971_v39 = vrot.slane %v9970_v63, 4 }
 0x556   : > { %v9977_v61 = vsel %vm1420_vm0, %v9749_v11, -inf  ;;  %v9984_v51 = vsel %vm1420_vm0, %v9750_v31, -inf  ;;  %v9991_v32 = vsel %vm1420_vm0, %v9751_v52, -inf  ;;  %v8476_v25 = vadd.f32 %v16113_v4, %v8161_v16 }
 0x557   : > { %v9955_v18 = vmax.f32 %v9953_v27, %v9954_v48  ;;  %v9978_v28 = vrot.slane %v9977_v61, 4  ;;  %v9972_v38 = vmax.f32 %v9970_v63, %v9971_v39  ;;  %v9985_v47 = vrot.slane %v9984_v51, 4  ;;  %v16196_v63 = vpop.f32.mrf.mxu0 }
 0x558   : > { %v9992_v40 = vrot.slane %v9991_v32, 4  ;;  %v16180_v8 = vadd.f32 %v15988_v55, %v9582_v9  ;;  %v9948_v50 = vmax.f32 %v9946_v53, %v9947_v24  ;;  %v9962_v12 = vmax.f32 %v9960_v49, %v9961_v37  ;;  %v16187_v53 = vpop.f32.mrf.mxu2 }
 0x559   : > { %v9979_v5 = vmax.f32 %v9977_v61, %v9978_v28  ;;  %v9522_v45 = vpop.f32.mrf.mxu1  ;;  %v9969_v4 = vmax.f32 %v9967_v29, %v9968_v35  ;;  %v9973_v33 = vrot.slane %v9972_v38, 2  ;;  %v9986_v62 = vmax.f32 %v9984_v51, %v9985_v47 }
 0x55a   : > { %v9993_v58 = vmax.f32 %v9991_v32, %v9992_v40  ;;  %v10363_v1 = vsel %vm10342_vm4, %v9955_v18, %v9948_v50  ;;  %v9650_v19 = vmax.f32 %v16180_v8, 0.0  ;;  %v9583_v36 = vadd.f32 %v9522_v45, %v9157_v44 }
 0x55b   : > { %v9980_v43 = vrot.slane %v9979_v5, 2  ;;  %v9974_v10 = vmax.f32 %v9972_v38, %v9973_v33  ;;  %v9987_v16 = vrot.slane %v9986_v62, 2  ;;  %v11561_v23 = vrot.slane %v9191_v56, 9 }
 0x55c   : > { %v9994_v41 = vrot.slane %v9993_v58, 2  ;;  %9682 = vst [vmem:[%s15995_s17 + $0x60] sm:$0xff] %v9650_v19  ;;  %v16191_v27 = vadd.f32 %v15988_v55, %v9583_v36  ;;  %v9347_v49 = vrot.slane %v15926_v34, 5  ;;  %v9350_v29 = vrot.slane %v15939_v30, 5 }
 0x55d   : > { %v9981_v17 = vmax.f32 %v9979_v5, %v9980_v43  ;;  %v10364_v9 = vsel %vm10344_vm5, %v9962_v12, %v10363_v1  ;;  %v9975_v11 = vrot.slane %v9974_v10, 1  ;;  %v9988_v31 = vmax.f32 %v9986_v62, %v9987_v16  ;;  %v16210_v5 = vpop.f32.mrf.mxu3 }
 0x55e   : > { %v9995_v52 = vmax.f32 %v9993_v58, %v9994_v41  ;;  %v9651_v48 = vmax.f32 %v16191_v27, 0.0  ;;  %v9348_v35 = vsel %vm12655_vm2, %v11561_v23, %v9347_v49  ;;  %v9349_v39 = vrot.slane %v9347_v49, 4 }
 0x55f   : > { %v9982_v24 = vrot.slane %v9981_v17, 1  ;;  %v9976_v61 = vmax.f32 %v9974_v10, %v9975_v11  ;;  %v9989_v51 = vrot.slane %v9988_v31, 1  ;;  %v9158_v30 = vadd.f32 %v16126_v26, %v8476_v25  ;;  %v16222_v56 = vpop.f32.mrf.mxu0 }
 0x560   : > { %v9996_v34 = vrot.slane %v9995_v52, 1  ;;  %v10365_v32 = vsel %vm10346_vm6, %v9969_v4, %v10364_v9  ;;  %9683 = vst [vmem:[%s15995_s17 + $0x68] sm:$0xff] %v9651_v48  ;;  %v9351_v38 = vsel %vm12655_vm2, %v9349_v39, %v9350_v29  ;;  %v9399_v47 = vunpack.c.l.b16 %v9348_v35  ;;  %v16216_v58 = vpop.f32.mrf.mxu2 }
 0x561   : > { %v9983_v18 = vmax.f32 %v9981_v17, %v9982_v24  ;;  %v9525_v28 = vpop.f32.mrf.mxu1  ;;  %v9990_v40 = vmax.f32 %v9988_v31, %v9989_v51  ;;  %v10366_v8 = vsel %vm10348_vm8, %v9976_v61, %v10365_v32  ;;  %v9400_v25 = vunpack.c.l.b16 %v9351_v38 }
 0x562   : > { %v9584_v50 = vadd.f32 %v9525_v28, %v9158_v30  ;;  %v9997_v12 = vmax.f32 %v9995_v52, %v9996_v34  ;;  %v8477_v4 = vadd.f32 %v16139_v42, %v8162_v59  ;;  %v8163_v43 = vadd.f32 %v16144_v0, %v15840_v7 }
 0x563   : > { %v10367_v26 = vsel %vm10350_vm10, %v9983_v18, %v10366_v8  ;;  %v9416_v62 = vpack.c.b16 %v9400_v25, %v9399_v47  ;;  %v8164_v52 = vadd.f32 %v16164_v13, %v15856_v57 }
 0x564   : > { %v10368_v44 = vsel %vm10352_vm12, %v9990_v40, %v10367_v26  ;;  %v9620_v45 = vadd.f32 %v15988_v55, %v9584_v50  ;;  %v9159_v10 = vadd.f32 %v16149_v22, %v8477_v4  ;;  %v8478_v29 = vadd.f32 %v16158_v54, %v8163_v43 }
 0x565   : > { %v10369_v33 = vsel %vm10354_vm13, %v9997_v12, %v10368_v44  ;;  %9564 = vmatmul.bf16.gmra.mxu1 %v9416_v62  ;;  %v16232_v24 = vpop.f32.mrf.mxu3  ;;  %v8479_v13 = vadd.f32 %v16183_v3, %v8164_v52  ;;  %v8165_v43 = vadd.f32 %v16187_v53, %v15867_v21 }
 0x566   : > { %10415 = vst [vmem:[%s16069_s29 + $0x10] sm:$0xff] %v10369_v33  ;;  %v9652_v1 = vmax.f32 %v9620_v45, 0.0  ;;  %v9160_v30 = vadd.f32 %v16171_v2, %v8478_v29 }
 0x567   : > { %v16242_v40 = vpop.f32.mrf.mxu0 }
 0x568   : > { %9684 = vst [vmem:[%s15995_s17 + $0x70] sm:$0xff] %v9652_v1  ;;  %v9708_v36 = vmax.f32 %v9650_v19, %v9652_v1  ;;  %v16235_v51 = vpop.f32.mrf.mxu2 }
 0x569   : > { %v9527_v16 = vpop.f32.mrf.mxu1 }
 0x56a   : > { %v9752_v41 = vrot.slane %v9708_v36, 2  ;;  %v9753_v42 = vrot.slane %v9708_v36, 4  ;;  %v9754_v59 = vrot.slane %v9708_v36, 6  ;;  %v9998_v23 = vsel %vm1420_vm0, %v9708_v36, -inf }
 0x56b   : > { %v9999_v17 = vrot.slane %v9998_v23, 4  ;;  %v9585_v49 = vadd.f32 %v9527_v16, %v9159_v10 }
 0x56c   : > { %v10005_v9 = vsel %vm1420_vm0, %v9752_v41, -inf  ;;  %v10012_v7 = vsel %vm1420_vm0, %v9753_v42, -inf  ;;  %v10019_v0 = vsel %vm1420_vm0, %v9754_v59, -inf }
 0x56d   : > { %v10000_v19 = vmax.f32 %v9998_v23, %v9999_v17  ;;  %v10006_v11 = vrot.slane %v10005_v9, 4  ;;  %v10013_v31 = vrot.slane %v10012_v7, 4  ;;  %v10020_v22 = vrot.slane %v10019_v0, 4  ;;  %v16250_v16 = vpop.f32.mrf.mxu3 }
 0x56e   : > { %v9621_v37 = vadd.f32 %v15988_v55, %v9585_v49 }
 0x56f   : > { %v10001_v35 = vrot.slane %v10000_v19, 2  ;;  %v10007_v54 = vmax.f32 %v10005_v9, %v10006_v11  ;;  %v10014_v39 = vmax.f32 %v10012_v7, %v10013_v31  ;;  %v10021_v61 = vmax.f32 %v10019_v0, %v10020_v22 }
 0x570   : > { %v9653_v34 = vmax.f32 %v9621_v37, 0.0  ;;  %v9161_v9 = vadd.f32 %v16196_v63, %v8479_v13  ;;  %v16254_v0 = vpop.f32.mrf.mxu2 }
 0x571   : > { %v10002_v32 = vmax.f32 %v10000_v19, %v10001_v35  ;;  %v10008_v18 = vrot.slane %v10007_v54, 2  ;;  %v10015_v28 = vrot.slane %v10014_v39, 2  ;;  %v10022_v38 = vrot.slane %v10021_v61, 2  ;;  %v9530_v47 = vpop.f32.mrf.mxu1 }
 0x572   : > { %9685 = vst [vmem:[%s15995_s17 + $0x78] sm:$0xff] %v9653_v34  ;;  %v9709_v57 = vmax.f32 %v9651_v48, %v9653_v34  ;;  %v9586_v12 = vadd.f32 %v9530_v47, %v9160_v30  ;;  %v8480_v35 = vadd.f32 %v16210_v5, %v8165_v43  ;;  %v16258_v34 = vpop.f32.mrf.mxu0 }
 0x573   : > { %v10009_v8 = vmax.f32 %v10007_v54, %v10008_v18  ;;  %v10016_v50 = vmax.f32 %v10014_v39, %v10015_v28  ;;  %v10003_v45 = vrot.slane %v10002_v32, 1  ;;  %v10023_v62 = vmax.f32 %v10021_v61, %v10022_v38 }
 0x574   : > { %v9755_v26 = vrot.slane %v9709_v57, 2  ;;  %v9756_v25 = vrot.slane %v9709_v57, 4  ;;  %v9757_v44 = vrot.slane %v9709_v57, 6  ;;  %v10026_v2 = vsel %vm1420_vm0, %v9709_v57, -inf }
 0x575   : > { %v10010_v4 = vrot.slane %v10009_v8, 1  ;;  %v10017_v33 = vrot.slane %v10016_v50, 1  ;;  %v10027_v1 = vrot.slane %v10026_v2, 4  ;;  %v9622_v23 = vadd.f32 %v15988_v55, %v9586_v12 }
 0x576   : > { %v10033_v27 = vsel %vm1420_vm0, %v9755_v26, -inf  ;;  %v10040_v48 = vsel %vm1420_vm0, %v9756_v25, -inf  ;;  %v10047_v3 = vsel %vm1420_vm0, %v9757_v44, -inf  ;;  %v10004_v17 = vmax.f32 %v10002_v32, %v10003_v45  ;;  %v8434_v45 = vpop.f32.mrf.mxu3 }
 0x577   : > { %v10011_v36 = vmax.f32 %v10009_v8, %v10010_v4  ;;  %v10034_v10 = vrot.slane %v10033_v27, 4  ;;  %v10028_v41 = vmax.f32 %v10026_v2, %v10027_v1  ;;  %v10041_v42 = vrot.slane %v10040_v48, 4 }
 0x578   : > { %v10048_v59 = vrot.slane %v10047_v3, 4  ;;  %v10024_v49 = vrot.slane %v10023_v62, 1  ;;  %v10018_v19 = vmax.f32 %v10016_v50, %v10017_v33  ;;  %v9654_v52 = vmax.f32 %v9622_v23, 0.0 }
 0x579   : > { %v10035_v29 = vmax.f32 %v10033_v27, %v10034_v10  ;;  %v9532_v7 = vpop.f32.mrf.mxu1  ;;  %v10029_v21 = vrot.slane %v10028_v41, 2  ;;  %v10042_v53 = vmax.f32 %v10040_v48, %v10041_v42  ;;  %v10370_v31 = vsel %vm10342_vm4, %v10011_v36, %v10004_v17  ;;  %v16273_v48 = vpop.f32.mrf.mxu2 }
 0x57a   : > { %v10049_v11 = vmax.f32 %v10047_v3, %v10048_v59  ;;  %v9587_v37 = vadd.f32 %v9532_v7, %v9161_v9  ;;  %9686 = vst [vmem:[%s15995_s17 + $0x80] sm:$0xff] %v9654_v52  ;;  %v10371_v32 = vsel %vm10344_vm5, %v10018_v19, %v10370_v31  ;;  %v10025_v47 = vmax.f32 %v10023_v62, %v10024_v49  ;;  %v16280_v36 = vpop.f32.mrf.mxu0 }
 0x57b   : > { %v10036_v22 = vrot.slane %v10035_v29, 2  ;;  %v10030_v54 = vmax.f32 %v10028_v41, %v10029_v21  ;;  %v10043_v39 = vrot.slane %v10042_v53, 2  ;;  %v9162_v12 = vadd.f32 %v16222_v56, %v8480_v35 }
 0x57c   : > { %v10050_v61 = vrot.slane %v10049_v11, 2  ;;  %v16262_v30 = vadd.f32 %v15988_v55, %v9587_v37  ;;  %v8166_v26 = vadd.f32 %v16216_v58, %v15881_v46  ;;  %v10372_v25 = vsel %vm10346_vm6, %v10025_v47, %v10371_v32 }
 0x57d   : > { %v10037_v63 = vmax.f32 %v10035_v29, %v10036_v22  ;;  %v10031_v18 = vrot.slane %v10030_v54, 1  ;;  %v10044_v28 = vmax.f32 %v10042_v53, %v10043_v39  ;;  %v8167_v10 = vadd.f32 %v16235_v51, %v15889_v60 }
 0x57e   : > { %v10051_v38 = vmax.f32 %v10049_v11, %v10050_v61  ;;  %v9655_v5 = vmax.f32 %v16262_v30, 0.0  ;;  %v8481_v58 = vadd.f32 %v16232_v24, %v8166_v26  ;;  %v16288_v7 = vpop.f32.mrf.mxu3  ;;  %v8168_v31 = vadd.f32 %v16254_v0, %v15902_v20 }
 0x57f   : > { %v10038_v57 = vrot.slane %v10037_v63, 1  ;;  %v10032_v13 = vmax.f32 %v10030_v54, %v10031_v18  ;;  %v10045_v8 = vrot.slane %v10044_v28, 1  ;;  %v8482_v9 = vadd.f32 %v16250_v16, %v8167_v10  ;;  %v16300_v16 = vld [vmem:[%s16477_s4] ss:$0 sm:$0xff] }
 0x580   : > { %v10052_v50 = vrot.slane %v10051_v38, 1  ;;  %9687 = vst [vmem:[%s15995_s17 + $0x88] sm:$0xff] %v9655_v5  ;;  %v9163_v42 = vadd.f32 %v16242_v40, %v8481_v58  ;;  %v8483_v47 = vadd.f32 %v8434_v45, %v8168_v31  ;;  %v8169_v45 = vadd.f32 %v16273_v48, %v15910_v6 }
 0x581   : > { %v10039_v44 = vmax.f32 %v10037_v63, %v10038_v57  ;;  %v9535_v2 = vpop.f32.mrf.mxu1  ;;  %v10046_v4 = vmax.f32 %v10044_v28, %v10045_v8  ;;  %v10373_v33 = vsel %vm10348_vm8, %v10032_v13, %v10372_v25  ;;  %v16295_v22 = vpop.f32.mrf.mxu2  ;;  %v9164_v63 = vadd.f32 %v16258_v34, %v8482_v9 }
 0x582   : > { %v9588_v62 = vadd.f32 %v9535_v2, %v9162_v12  ;;  %v10053_v1 = vmax.f32 %v10051_v38, %v10052_v50  ;;  %v16304_v30 = vpop.f32.mrf.mxu0 }
 0x583   : > { %v10374_v27 = vsel %vm10350_vm10, %v10039_v44, %v10373_v33 }
 0x584   : > { %v10375_v56 = vsel %vm10352_vm12, %v10046_v4, %v10374_v27  ;;  %v9624_v46 = vadd.f32 %v15988_v55, %v9588_v62 }
 0x585   : > { %v10376_v3 = vsel %vm10354_vm13, %v10053_v1, %v10375_v56 }
 0x586   : > { %10416 = vst [vmem:[%s16069_s29 + $0x18] sm:$0xff] %v10376_v3  ;;  %v9656_v43 = vmax.f32 %v9624_v46, 0.0  ;;  %v8439_v33 = vpop.f32.mrf.mxu3 }
 0x588   : > { %9688 = vst [vmem:[%s15995_s17 + $0x90] sm:$0xff] %v9656_v43  ;;  %v9710_v41 = vmax.f32 %v9654_v52, %v9656_v43 }
 0x589   : > { %v9537_v59 = vpop.f32.mrf.mxu1  ;;  %v8127_v58 = vpop.f32.mrf.mxu2 }
 0x58a   : > { %v9758_v23 = vrot.slane %v9710_v41, 2  ;;  %v9759_v17 = vrot.slane %v9710_v41, 4  ;;  %v9760_v49 = vrot.slane %v9710_v41, 6  ;;  %v10054_v55 = vsel %vm1420_vm0, %v9710_v41, -inf  ;;  %v9121_v6 = vpop.f32.mrf.mxu0 }
 0x58b   : > { %v10055_v24 = vrot.slane %v10054_v55, 4  ;;  %v9589_v29 = vadd.f32 %v9537_v59, %v9163_v42 }
 0x58c   : > { %v10061_v19 = vsel %vm1420_vm0, %v9758_v23, -inf  ;;  %v10068_v60 = vsel %vm1420_vm0, %v9759_v17, -inf  ;;  %v10075_v51 = vsel %vm1420_vm0, %v9760_v49, -inf  ;;  %v9165_v17 = vadd.f32 %v16280_v36, %v8483_v47 }
 0x58d   : > { %v10056_v21 = vmax.f32 %v10054_v55, %v10055_v24  ;;  %v10062_v40 = vrot.slane %v10061_v19, 4  ;;  %v10069_v53 = vrot.slane %v10068_v60, 4  ;;  %v10076_v11 = vrot.slane %v10075_v51, 4 }
 0x58e   : > { %v9625_v52 = vadd.f32 %v16300_v16, %v9589_v29 }
 0x58f   : > { %v10057_v37 = vrot.slane %v10056_v21, 2  ;;  %v10063_v35 = vmax.f32 %v10061_v19, %v10062_v40  ;;  %v10070_v54 = vmax.f32 %v10068_v60, %v10069_v53  ;;  %v10077_v39 = vmax.f32 %v10075_v51, %v10076_v11 }
 0x590   : > { %v9657_v61 = vmax.f32 %v9625_v52, 0.0 }
 0x591   : > { %v10058_v20 = vmax.f32 %v10056_v21, %v10057_v37  ;;  %v10064_v0 = vrot.slane %v10063_v35, 2  ;;  %v10071_v32 = vrot.slane %v10070_v54, 2  ;;  %v10078_v18 = vrot.slane %v10077_v39, 2  ;;  %v9540_v28 = vpop.f32.mrf.mxu1 }
 0x592   : > { %9689 = vst [vmem:[%s15995_s17 + $0x98] sm:$0xff] %v9657_v61  ;;  %v9711_v38 = vmax.f32 %v9655_v5, %v9657_v61  ;;  %v9590_v8 = vadd.f32 %v9540_v28, %v9164_v63  ;;  %v8484_v21 = vadd.f32 %v16288_v7, %v8169_v45  ;;  %v8170_v28 = vadd.f32 %v16295_v22, %v15923_v14  ;;  %v9124_v14 = vpop.f32.mrf.mxu0 }
 0x593   : > { %v10065_v57 = vmax.f32 %v10063_v35, %v10064_v0  ;;  %v10072_v13 = vmax.f32 %v10070_v54, %v10071_v32  ;;  %v10059_v44 = vrot.slane %v10058_v20, 1  ;;  %v10079_v4 = vmax.f32 %v10077_v39, %v10078_v18 }
 0x594   : > { %v9761_v50 = vrot.slane %v9711_v38, 2  ;;  %v9762_v12 = vrot.slane %v9711_v38, 4  ;;  %v9763_v26 = vrot.slane %v9711_v38, 6  ;;  %v10082_v25 = vsel %vm1420_vm0, %v9711_v38, -inf }
 0x595   : > { %v10066_v34 = vrot.slane %v10065_v57, 1  ;;  %v10073_v2 = vrot.slane %v10072_v13, 1  ;;  %v10083_v62 = vrot.slane %v10082_v25, 4  ;;  %v9626_v41 = vadd.f32 %v16300_v16, %v9590_v8 }
 0x596   : > { %v10089_v1 = vsel %vm1420_vm0, %v9761_v50, -inf  ;;  %v10096_v27 = vsel %vm1420_vm0, %v9762_v12, -inf  ;;  %v10103_v5 = vsel %vm1420_vm0, %v9763_v26, -inf  ;;  %v10060_v42 = vmax.f32 %v10058_v20, %v10059_v44  ;;  %v8442_v20 = vpop.f32.mrf.mxu3 }
 0x597   : > { %v10067_v56 = vmax.f32 %v10065_v57, %v10066_v34  ;;  %v10090_v46 = vrot.slane %v10089_v1, 4  ;;  %v10084_v3 = vmax.f32 %v10082_v25, %v10083_v62  ;;  %v10097_v43 = vrot.slane %v10096_v27, 4 }
 0x598   : > { %v10104_v10 = vrot.slane %v10103_v5, 4  ;;  %v10080_v59 = vrot.slane %v10079_v4, 1  ;;  %v10074_v55 = vmax.f32 %v10072_v13, %v10073_v2  ;;  %v9658_v60 = vmax.f32 %v9626_v41, 0.0  ;;  %v8129_v13 = vpop.f32.mrf.mxu2 }
 0x599   : > { %v10091_v23 = vmax.f32 %v10089_v1, %v10090_v46  ;;  %v9542_v49 = vpop.f32.mrf.mxu1  ;;  %v10085_v24 = vrot.slane %v10084_v3, 2  ;;  %v10098_v29 = vmax.f32 %v10096_v27, %v10097_v43  ;;  %v10377_v48 = vsel %vm10342_vm4, %v10067_v56, %v10060_v42 }
 0x59a   : > { %v10105_v9 = vmax.f32 %v10103_v5, %v10104_v10  ;;  %v9591_v51 = vadd.f32 %v9542_v49, %v9165_v17  ;;  %9690 = vst [vmem:[%s15995_s17 + $0xa0] sm:$0xff] %v9658_v60  ;;  %v10378_v52 = vsel %vm10344_vm5, %v10074_v55, %v10377_v48  ;;  %v10081_v39 = vmax.f32 %v10079_v4, %v10080_v59  ;;  %v16760_v55 = vld [vmem:[#allocation41_spill] sm:$0xff] }
 0x59b   : > { %v10092_v19 = vrot.slane %v10091_v23, 2  ;;  %v10086_v40 = vmax.f32 %v10084_v3, %v10085_v24  ;;  %v10099_v53 = vrot.slane %v10098_v29, 2  ;;  %v9166_v18 = vadd.f32 %v16304_v30, %v8484_v21 }
 0x59c   : > { %v10106_v11 = vrot.slane %v10105_v9, 2  ;;  %v16319_v36 = vadd.f32 %v16300_v16, %v9591_v51  ;;  %v10379_v38 = vsel %vm10346_vm6, %v10081_v39, %v10378_v52  ;;  %v8485_v22 = vadd.f32 %v8439_v33, %v8170_v28 }
 0x59d   : > { %v10093_v31 = vmax.f32 %v10091_v23, %v10092_v19  ;;  %v10087_v37 = vrot.slane %v10086_v40, 1  ;;  %v10100_v35 = vmax.f32 %v10098_v29, %v10099_v53  ;;  %v8171_v4 = vadd.f32 %v8127_v58, %v15934_v15 }
 0x59e   : > { %v10107_v54 = vmax.f32 %v10105_v9, %v10106_v11  ;;  %v9659_v63 = vmax.f32 %v16319_v36, 0.0  ;;  %v9167_v1 = vadd.f32 %v9121_v6, %v8485_v22  ;;  %v8444_v5 = vpop.f32.mrf.mxu3  ;;  %v8172_v24 = vadd.f32 %v8129_v13, %v16760_v55  ;;  %v9126_v9 = vpop.f32.mrf.mxu0 }
 0x59f   : > { %v10094_v61 = vrot.slane %v10093_v31, 1  ;;  %v10088_v7 = vmax.f32 %v10086_v40, %v10087_v37  ;;  %v10101_v0 = vrot.slane %v10100_v35, 1  ;;  %v8486_v41 = vadd.f32 %v8442_v20, %v8171_v4 }
 0x5a0   : > { %v10108_v32 = vrot.slane %v10107_v54, 1  ;;  %9691 = vst [vmem:[%s15995_s17 + $0xa8] sm:$0xff] %v9659_v63  ;;  %v8132_v33 = vpop.f32.mrf.mxu2  ;;  %v8487_v37 = vadd.f32 %v8444_v5, %v8172_v24 }
 0x5a1   : > { %v10095_v47 = vmax.f32 %v10093_v31, %v10094_v61  ;;  %v9545_v57 = vpop.f32.mrf.mxu1  ;;  %v10102_v8 = vmax.f32 %v10100_v35, %v10101_v0  ;;  %v10380_v50 = vsel %vm10348_vm8, %v10088_v7, %v10379_v38  ;;  %v9168_v21 = vadd.f32 %v9124_v14, %v8486_v41 }
 0x5a2   : > { %v9592_v12 = vadd.f32 %v9545_v57, %v9166_v18  ;;  %v10109_v26 = vmax.f32 %v10107_v54, %v10108_v32 }
 0x5a3   : > { %v10381_v25 = vsel %vm10350_vm10, %v10095_v47, %v10380_v50 }
 0x5a4   : > { %v10382_v30 = vsel %vm10352_vm12, %v10102_v8, %v10381_v25  ;;  %v9628_v44 = vadd.f32 %v16300_v16, %v9592_v12  ;;  %v16761_v12 = vld [vmem:[#allocation40_spill] sm:$0xff] }
 0x5a5   : > { %v10383_v34 = vsel %vm10354_vm13, %v10109_v26, %v10382_v30  ;;  %v8173_v26 = vadd.f32 %v8132_v33, %v16761_v12 }
 0x5a6   : > { %10417 = vst [vmem:[%s16069_s29 + $0x20] sm:$0xff] %v10383_v34  ;;  %v9660_v2 = vmax.f32 %v9628_v44, 0.0  ;;  %v8447_v61 = vpop.f32.mrf.mxu3 }
 0x5a8   : > { %9692 = vst [vmem:[%s15995_s17 + $0xb0] sm:$0xff] %v9660_v2  ;;  %v9712_v62 = vmax.f32 %v9658_v60, %v9660_v2  ;;  %v8134_v57 = vpop.f32.mrf.mxu2  ;;  %v9129_v2 = vpop.f32.mrf.mxu0 }
 0x5a9   : > { %v9547_v27 = vpop.f32.mrf.mxu1 }
 0x5aa   : > { %v9764_v45 = vrot.slane %v9712_v62, 2  ;;  %v9765_v56 = vrot.slane %v9712_v62, 4  ;;  %v9766_v46 = vrot.slane %v9712_v62, 6  ;;  %v10110_v3 = vsel %vm1420_vm0, %v9712_v62, -inf }
 0x5ab   : > { %v10111_v43 = vrot.slane %v10110_v3, 4  ;;  %v9593_v10 = vadd.f32 %v9547_v27, %v9167_v1  ;;  %v9169_v27 = vadd.f32 %v9126_v9, %v8487_v37 }
 0x5ac   : > { %v10117_v42 = vsel %vm1420_vm0, %v9764_v45, -inf  ;;  %v10124_v59 = vsel %vm1420_vm0, %v9765_v56, -inf  ;;  %v10131_v15 = vsel %vm1420_vm0, %v9766_v46, -inf }
 0x5ad   : > { %v10112_v58 = vmax.f32 %v10110_v3, %v10111_v43  ;;  %v10118_v23 = vrot.slane %v10117_v42, 4  ;;  %v10125_v17 = vrot.slane %v10124_v59, 4  ;;  %v10132_v49 = vrot.slane %v10131_v15, 4 }
 0x5ae   : > { %v9629_v29 = vadd.f32 %v16300_v16, %v9593_v10 }
 0x5af   : > { %v10113_v6 = vrot.slane %v10112_v58, 2  ;;  %v10119_v48 = vmax.f32 %v10117_v42, %v10118_v23  ;;  %v10126_v19 = vmax.f32 %v10124_v59, %v10125_v17  ;;  %v10133_v60 = vmax.f32 %v10131_v15, %v10132_v49  ;;  %v8449_v49 = vpop.f32.mrf.mxu3 }
 0x5b0   : > { %v9661_v51 = vmax.f32 %v9629_v29, 0.0  ;;  %v8488_v42 = vadd.f32 %v8447_v61, %v8173_v26  ;;  %v9131_v61 = vpop.f32.mrf.mxu0 }
 0x5b1   : > { %v10114_v40 = vmax.f32 %v10112_v58, %v10113_v6  ;;  %v10120_v53 = vrot.slane %v10119_v48, 2  ;;  %v10127_v11 = vrot.slane %v10126_v19, 2  ;;  %v10134_v31 = vrot.slane %v10133_v60, 2  ;;  %v9550_v36 = vpop.f32.mrf.mxu1 }
 0x5b2   : > { %9693 = vst [vmem:[%s15995_s17 + $0xb8] sm:$0xff] %v9661_v51  ;;  %v9713_v52 = vmax.f32 %v9659_v63, %v9661_v51  ;;  %v9594_v39 = vadd.f32 %v9550_v36, %v9168_v21 }
 0x5b3   : > { %v10121_v35 = vmax.f32 %v10119_v48, %v10120_v53  ;;  %v10128_v54 = vmax.f32 %v10126_v19, %v10127_v11  ;;  %v10115_v18 = vrot.slane %v10114_v40, 1  ;;  %v10135_v47 = vmax.f32 %v10133_v60, %v10134_v31  ;;  %v8137_v60 = vpop.f32.mrf.mxu2  ;;  %v16762_v11 = vld [vmem:[#allocation43_spill] sm:$0xff] }
 0x5b4   : > { %v9767_v20 = vrot.slane %v9713_v52, 2  ;;  %v9768_v7 = vrot.slane %v9713_v52, 4  ;;  %v9769_v0 = vrot.slane %v9713_v52, 6  ;;  %v10138_v32 = vsel %vm1420_vm0, %v9713_v52, -inf }
 0x5b5   : > { %v10122_v28 = vrot.slane %v10121_v35, 1  ;;  %v10129_v38 = vrot.slane %v10128_v54, 1  ;;  %v10139_v13 = vrot.slane %v10138_v32, 4  ;;  %v9630_v34 = vadd.f32 %v16300_v16, %v9594_v39 }
 0x5b6   : > { %v10145_v8 = vsel %vm1420_vm0, %v9767_v20, -inf  ;;  %v10152_v63 = vsel %vm1420_vm0, %v9768_v7, -inf  ;;  %v10159_v50 = vsel %vm1420_vm0, %v9769_v0, -inf  ;;  %v10116_v4 = vmax.f32 %v10114_v40, %v10115_v18 }
 0x5b7   : > { %v10123_v25 = vmax.f32 %v10121_v35, %v10122_v28  ;;  %v10146_v30 = vrot.slane %v10145_v8, 4  ;;  %v10140_v44 = vmax.f32 %v10138_v32, %v10139_v13  ;;  %v10153_v14 = vrot.slane %v10152_v63, 4 }
 0x5b8   : > { %v10160_v22 = vrot.slane %v10159_v50, 4  ;;  %v10136_v62 = vrot.slane %v10135_v47, 1  ;;  %v10130_v45 = vmax.f32 %v10128_v54, %v10129_v38  ;;  %v9662_v41 = vmax.f32 %v9630_v34, 0.0 }
 0x5b9   : > { %v10147_v1 = vmax.f32 %v10145_v8, %v10146_v30  ;;  %v9552_v5 = vpop.f32.mrf.mxu1  ;;  %v10141_v56 = vrot.slane %v10140_v44, 2  ;;  %v10154_v46 = vmax.f32 %v10152_v63, %v10153_v14  ;;  %v10384_v43 = vsel %vm10342_vm4, %v10123_v25, %v10116_v4 }
 0x5ba   : > { %v10161_v3 = vmax.f32 %v10159_v50, %v10160_v22  ;;  %v9595_v33 = vadd.f32 %v9552_v5, %v9169_v27  ;;  %9694 = vst [vmem:[%s15995_s17 + $0xc0] sm:$0xff] %v9662_v41  ;;  %v10385_v55 = vsel %vm10344_vm5, %v10130_v45, %v10384_v43  ;;  %v10137_v6 = vmax.f32 %v10135_v47, %v10136_v62  ;;  %v8452_v47 = vpop.f32.mrf.mxu3 }
 0x5bb   : > { %v10148_v10 = vrot.slane %v10147_v1, 2  ;;  %v10142_v59 = vmax.f32 %v10140_v44, %v10141_v56  ;;  %v10155_v15 = vrot.slane %v10154_v46, 2  ;;  %v9170_v53 = vadd.f32 %v9129_v2, %v8488_v42  ;;  %v8139_v12 = vpop.f32.mrf.mxu2 }
 0x5bc   : > { %v10162_v58 = vrot.slane %v10161_v3, 2  ;;  %v16352_v17 = vadd.f32 %v16300_v16, %v9595_v33  ;;  %v8174_v31 = vadd.f32 %v8134_v57, %v16762_v11  ;;  %v10386_v36 = vsel %vm10346_vm6, %v10137_v6, %v10385_v55  ;;  %v16763_v57 = vld [vmem:[#allocation42_spill] sm:$0xff] }
 0x5bd   : > { %v10149_v23 = vmax.f32 %v10147_v1, %v10148_v10  ;;  %v10143_v24 = vrot.slane %v10142_v59, 1  ;;  %v10156_v29 = vmax.f32 %v10154_v46, %v10155_v15  ;;  %v8175_v13 = vadd.f32 %v8137_v60, %v16763_v57  ;;  %v9134_v1 = vpop.f32.mrf.mxu0  ;;  %v16764_v46 = vld [vmem:[#allocation45_spill] sm:$0xff] }
 0x5be   : > { %v10163_v9 = vmax.f32 %v10161_v3, %v10162_v58  ;;  %v9663_v19 = vmax.f32 %v16352_v17, 0.0  ;;  %v8489_v18 = vadd.f32 %v8449_v49, %v8174_v31  ;;  %v8176_v3 = vadd.f32 %v8139_v12, %v16764_v46 }
 0x5bf   : > { %v10150_v48 = vrot.slane %v10149_v23, 1  ;;  %v10144_v51 = vmax.f32 %v10142_v59, %v10143_v24  ;;  %v10157_v21 = vrot.slane %v10156_v29, 1  ;;  %v8490_v34 = vadd.f32 %v8452_v47, %v8175_v13 }
 0x5c0   : > { %v10164_v40 = vrot.slane %v10163_v9, 1  ;;  %9695 = vst [vmem:[%s15995_s17 + $0xc8] sm:$0xff] %v9663_v19  ;;  %v9171_v63 = vadd.f32 %v9131_v61, %v8489_v18 }
 0x5c1   : > { %v10151_v52 = vmax.f32 %v10149_v23, %v10150_v48  ;;  %v9555_v37 = vpop.f32.mrf.mxu1  ;;  %v10158_v35 = vmax.f32 %v10156_v29, %v10157_v21  ;;  %v10387_v54 = vsel %vm10348_vm8, %v10144_v51, %v10386_v36  ;;  %v9172_v15 = vadd.f32 %v9134_v1, %v8490_v34 }
 0x5c2   : > { %v9596_v39 = vadd.f32 %v9555_v37, %v9170_v53  ;;  %v10165_v20 = vmax.f32 %v10163_v9, %v10164_v40  ;;  %v8454_v24 = vpop.f32.mrf.mxu3 }
 0x5c3   : > { %v10388_v7 = vsel %vm10350_vm10, %v10151_v52, %v10387_v54  ;;  %v8491_v9 = vadd.f32 %v8454_v24, %v8176_v3  ;;  %v8142_v51 = vpop.f32.mrf.mxu2 }
 0x5c4   : > { %v10389_v0 = vsel %vm10352_vm12, %v10158_v35, %v10388_v7  ;;  %v9632_v32 = vadd.f32 %v16300_v16, %v9596_v39 }
 0x5c5   : > { %v10390_v28 = vsel %vm10354_vm13, %v10165_v20, %v10389_v0  ;;  %v9136_v61 = vpop.f32.mrf.mxu0  ;;  %v16765_v20 = vld [vmem:[#allocation46_spill] sm:$0xff] }
 0x5c6   : > { %10418 = vst [vmem:[%s16069_s29 + $0x28] sm:$0xff] %v10390_v28  ;;  %v9664_v38 = vmax.f32 %v9632_v32, 0.0  ;;  %v8177_v7 = vadd.f32 %v8142_v51, %v16765_v20 }
 0x5c8   : > { %9696 = vst [vmem:[%s15995_s17 + $0xd0] sm:$0xff] %v9664_v38  ;;  %v9714_v8 = vmax.f32 %v9662_v41, %v9664_v38 }
 0x5c9   : > { %v9557_v50 = vpop.f32.mrf.mxu1 }
 0x5ca   : > { %v9770_v26 = vrot.slane %v9714_v8, 2  ;;  %v9771_v25 = vrot.slane %v9714_v8, 4  ;;  %v9772_v30 = vrot.slane %v9714_v8, 6  ;;  %v10166_v44 = vsel %vm1420_vm0, %v9714_v8, -inf }
 0x5cb   : > { %v10167_v14 = vrot.slane %v10166_v44, 4  ;;  %v9597_v22 = vadd.f32 %v9557_v50, %v9171_v63  ;;  %v9173_v63 = vadd.f32 %v9136_v61, %v8491_v9 }
 0x5cc   : > { %v10173_v2 = vsel %vm1420_vm0, %v9770_v26, -inf  ;;  %v10180_v4 = vsel %vm1420_vm0, %v9771_v25, -inf  ;;  %v10187_v62 = vsel %vm1420_vm0, %v9772_v30, -inf }
 0x5cd   : > { %v10168_v27 = vmax.f32 %v10166_v44, %v10167_v14  ;;  %v10174_v5 = vrot.slane %v10173_v2, 4  ;;  %v10181_v45 = vrot.slane %v10180_v4, 4  ;;  %v10188_v56 = vrot.slane %v10187_v62, 4  ;;  %v8457_v44 = vpop.f32.mrf.mxu3 }
 0x5ce   : > { %v9633_v43 = vadd.f32 %v16300_v16, %v9597_v22 }
 0x5cf   : > { %v10169_v10 = vrot.slane %v10168_v27, 2  ;;  %v10175_v41 = vmax.f32 %v10173_v2, %v10174_v5  ;;  %v10182_v33 = vmax.f32 %v10180_v4, %v10181_v45  ;;  %v10189_v42 = vmax.f32 %v10187_v62, %v10188_v56 }
 0x5d0   : > { %v9665_v59 = vmax.f32 %v9633_v43, 0.0  ;;  %v8492_v43 = vadd.f32 %v8457_v44, %v8177_v7 }
 0x5d1   : > { %v10170_v58 = vmax.f32 %v10168_v27, %v10169_v10  ;;  %v10176_v23 = vrot.slane %v10175_v41, 2  ;;  %v10183_v17 = vrot.slane %v10182_v33, 2  ;;  %v10190_v49 = vrot.slane %v10189_v42, 2  ;;  %v9560_v55 = vpop.f32.mrf.mxu1  ;;  %v9139_v10 = vpop.f32.mrf.mxu0 }
 0x5d2   : > { %9697 = vst [vmem:[%s15995_s17 + $0xd8] sm:$0xff] %v9665_v59  ;;  %v9715_v29 = vmax.f32 %v9663_v19, %v9665_v59  ;;  %v9598_v60 = vadd.f32 %v9560_v55, %v9172_v15 }
 0x5d3   : > { %v10177_v6 = vmax.f32 %v10175_v41, %v10176_v23  ;;  %v10184_v48 = vmax.f32 %v10182_v33, %v10183_v17  ;;  %v10171_v31 = vrot.slane %v10170_v58, 1  ;;  %v10191_v37 = vmax.f32 %v10189_v42, %v10190_v49  ;;  %v8144_v23 = vpop.f32.mrf.mxu2 }
 0x5d4   : > { %v9773_v21 = vrot.slane %v9715_v29, 2  ;;  %v9774_v40 = vrot.slane %v9715_v29, 4  ;;  %v9775_v53 = vrot.slane %v9715_v29, 6  ;;  %v10194_v11 = vsel %vm1420_vm0, %v9715_v29, -inf }
 0x5d5   : > { %v10178_v36 = vrot.slane %v10177_v6, 1  ;;  %v10185_v52 = vrot.slane %v10184_v48, 1  ;;  %v10195_v35 = vrot.slane %v10194_v11, 4  ;;  %v9634_v47 = vadd.f32 %v16300_v16, %v9598_v60 }
 0x5d6   : > { %v10201_v54 = vsel %vm1420_vm0, %v9773_v21, -inf  ;;  %v10208_v39 = vsel %vm1420_vm0, %v9774_v40, -inf  ;;  %v10215_v19 = vsel %vm1420_vm0, %v9775_v53, -inf  ;;  %v10172_v57 = vmax.f32 %v10170_v58, %v10171_v31  ;;  %v8459_v40 = vpop.f32.mrf.mxu3 }
 0x5d7   : > { %v10179_v0 = vmax.f32 %v10177_v6, %v10178_v36  ;;  %v10202_v32 = vrot.slane %v10201_v54, 4  ;;  %v10196_v18 = vmax.f32 %v10194_v11, %v10195_v35  ;;  %v10209_v28 = vrot.slane %v10208_v39, 4 }
 0x5d8   : > { %v10216_v38 = vrot.slane %v10215_v19, 4  ;;  %v10192_v13 = vrot.slane %v10191_v37, 1  ;;  %v10186_v12 = vmax.f32 %v10184_v48, %v10185_v52  ;;  %v9666_v34 = vmax.f32 %v9634_v47, 0.0  ;;  %v16766_v48 = vld [vmem:[#allocation61_spill] sm:$0xff] }
 0x5d9   : > { %v10203_v8 = vmax.f32 %v10201_v54, %v10202_v32  ;;  %v9562_v50 = vpop.f32.mrf.mxu1  ;;  %v10197_v26 = vrot.slane %v10196_v18, 2  ;;  %v10210_v25 = vmax.f32 %v10208_v39, %v10209_v28  ;;  %v10391_v14 = vsel %vm10342_vm4, %v10179_v0, %v10172_v57  ;;  %v9141_v52 = vpop.f32.mrf.mxu0 }
 0x5da   : > { %v10217_v30 = vmax.f32 %v10215_v19, %v10216_v38  ;;  %v9599_v2 = vadd.f32 %v9562_v50, %v9173_v63  ;;  %9698 = vst [vmem:[%s15995_s17 + $0xe0] sm:$0xff] %v9666_v34  ;;  %v10392_v45 = vsel %vm10344_vm5, %v10186_v12, %v10391_v14  ;;  %v10193_v41 = vmax.f32 %v10191_v37, %v10192_v13 }
 0x5db   : > { %v10204_v22 = vrot.slane %v10203_v8, 2  ;;  %v10198_v4 = vmax.f32 %v10196_v18, %v10197_v26  ;;  %v10211_v62 = vrot.slane %v10210_v25, 2  ;;  %v9174_v29 = vadd.f32 %v9139_v10, %v8492_v43 }
 0x5dc   : > { %v10218_v1 = vrot.slane %v10217_v30, 2  ;;  %v16383_v5 = vadd.f32 %v16300_v16, %v9599_v2  ;;  %v10393_v17 = vsel %vm10346_vm6, %v10193_v41, %v10392_v45  ;;  %v8178_v60 = vadd.f32 %v8144_v23, %v16766_v48 }
 0x5dd   : > { %v10205_v27 = vmax.f32 %v10203_v8, %v10204_v22  ;;  %v10199_v56 = vrot.slane %v10198_v4, 1  ;;  %v10212_v46 = vmax.f32 %v10210_v25, %v10211_v62 }
 0x5de   : > { %v10219_v3 = vmax.f32 %v10217_v30, %v10218_v1  ;;  %v9667_v42 = vmax.f32 %v16383_v5, 0.0  ;;  %v8493_v36 = vadd.f32 %v8459_v40, %v8178_v60 }
 0x5df   : > { %v10206_v33 = vrot.slane %v10205_v27, 1  ;;  %v10200_v59 = vmax.f32 %v10198_v4, %v10199_v56  ;;  %v10213_v15 = vrot.slane %v10212_v46, 1 }
 0x5e0   : > { %v10220_v58 = vrot.slane %v10219_v3, 1  ;;  %9699 = vst [vmem:[%s15995_s17 + $0xe8] sm:$0xff] %v9667_v42  ;;  %v9175_v54 = vadd.f32 %v9141_v52, %v8493_v36 }
 0x5e1   : > { %v10207_v49 = vmax.f32 %v10205_v27, %v10206_v33  ;;  %v10214_v55 = vmax.f32 %v10212_v46, %v10213_v15  ;;  %v10394_v24 = vsel %vm10348_vm8, %v10200_v59, %v10393_v17 }
 0x5e2   : > { %v10221_v9 = vmax.f32 %v10219_v3, %v10220_v58  ;;  %v9565_v21 = vpop.f32.mrf.mxu1 }
 0x5e3   : > { %v10395_v6 = vsel %vm10350_vm10, %v10207_v49, %v10394_v24  ;;  %v9600_v11 = vadd.f32 %v9565_v21, %v9174_v29 }
 0x5e4   : > { %v10396_v51 = vsel %vm10352_vm12, %v10214_v55, %v10395_v6 }
 0x5e5   : > { %v10397_v53 = vsel %vm10354_vm13, %v10221_v9, %v10396_v51  ;;  %v9636_v31 = vadd.f32 %v16300_v16, %v9600_v11 }
 0x5e6   : > { %10419 = vst [vmem:[%s16069_s29 + $0x30] sm:$0xff] %v10397_v53 }
 0x5e7   : > { %v9668_v37 = vmax.f32 %v9636_v31, 0.0 }
 0x5e9   : > { %9700 = vst [vmem:[%s15995_s17 + $0xf0] sm:$0xff] %v9668_v37  ;;  %v9716_v35 = vmax.f32 %v9666_v34, %v9668_v37 }
 0x5ea   : > { %v9567_v39 = vpop.f32.mrf.mxu1 }
 0x5eb   : > { %v9776_v19 = vrot.slane %v9716_v35, 2  ;;  %v9777_v61 = vrot.slane %v9716_v35, 4  ;;  %v9778_v20 = vrot.slane %v9716_v35, 6  ;;  %v10222_v7 = vsel %vm1420_vm0, %v9716_v35, -inf }
 0x5ec   : > { %v10223_v0 = vrot.slane %v10222_v7, 4  ;;  %v9601_v32 = vadd.f32 %v9567_v39, %v9175_v54 }
 0x5ed   : > { %v10229_v18 = vsel %vm1420_vm0, %v9776_v19, -inf  ;;  %v10236_v28 = vsel %vm1420_vm0, %v9777_v61, -inf  ;;  %v10243_v38 = vsel %vm1420_vm0, %v9778_v20, -inf }
 0x5ee   : > { %v10224_v47 = vmax.f32 %v10222_v7, %v10223_v0  ;;  %v10230_v57 = vrot.slane %v10229_v18, 4  ;;  %v10237_v13 = vrot.slane %v10236_v28, 4  ;;  %v10244_v8 = vrot.slane %v10243_v38, 4 }
 0x5ef   : > { %v9637_v63 = vadd.f32 %v16300_v16, %v9601_v32 }
 0x5f0   : > { %v10225_v50 = vrot.slane %v10224_v47, 2  ;;  %v10231_v12 = vmax.f32 %v10229_v18, %v10230_v57  ;;  %v10238_v26 = vmax.f32 %v10236_v28, %v10237_v13  ;;  %v10245_v25 = vmax.f32 %v10243_v38, %v10244_v8 }
 0x5f1   : > { %v9669_v30 = vmax.f32 %v9637_v63, 0.0 }
 0x5f2   : > { %v10226_v44 = vmax.f32 %v10224_v47, %v10225_v50  ;;  %v10232_v14 = vrot.slane %v10231_v12, 2  ;;  %v10239_v22 = vrot.slane %v10238_v26, 2  ;;  %v10246_v62 = vrot.slane %v10245_v25, 2 }
 0x5f3   : > { %9701 = vst [vmem:[%s15995_s17 + $0xf8] sm:$0xff] %v9669_v30  ;;  %v9717_v34 = vmax.f32 %v9667_v42, %v9669_v30 }
 0x5f4   : > { %v10233_v2 = vmax.f32 %v10231_v12, %v10232_v14  ;;  %v10240_v4 = vmax.f32 %v10238_v26, %v10239_v22 }
 0x5f5   : > { %11902 = shalt.err (!%p11899_p3)
}
 0x5f6   : > { %s11972_s17 = smov 128   ;;  %s11973_s13 = smov 8   ;;  %v9779_v16 = vrot.slane %v9717_v34, 2  ;;  %v9780_v1 = vrot.slane %v9717_v34, 4  ;;  %v9781_v27 = vrot.slane %v9717_v34, 6  ;;  %v10250_v5 = vsel %vm1420_vm0, %v9717_v34, -inf }
 0x5f7   : > { %11791 = dma.vmem_to_hbm [thread:$0]  (%p12047_p5), %s16407_s15, 4096, %s10442_s16, %s10422_s19, %s11972_s17, %s11972_s17, %s11973_s13   ;;  %v10227_v45 = vrot.slane %v10226_v44, 1  ;;  %v10234_v56 = vrot.slane %v10233_v2, 1  ;;  %v10241_v46 = vrot.slane %v10240_v4, 1  ;;  %v10251_v3 = vrot.slane %v10250_v5, 4 }
 0x5f8   : > { %v10257_v43 = vsel %vm1420_vm0, %v9779_v16, -inf  ;;  %v10264_v10 = vsel %vm1420_vm0, %v9780_v1, -inf  ;;  %v10271_v41 = vsel %vm1420_vm0, %v9781_v27, -inf  ;;  %v10247_v42 = vmax.f32 %v10245_v25, %v10246_v62  ;;  %s11788_s14 = sshll.u32 %s12030_s25, 6  ;;  %s10456_s25 = sshll.u32 %s16069_s29, 4  ;;  %s10457_s25 = int_to_ptr.vmem [resolvable:$true] %s10456_s25 }
 0x5f9   : > { %v10235_v33 = vmax.f32 %v10233_v2, %v10234_v56  ;;  %v10258_v59 = vrot.slane %v10257_v43, 4  ;;  %v10252_v15 = vmax.f32 %v10250_v5, %v10251_v3  ;;  %v10265_v58 = vrot.slane %v10264_v10, 4  ;;  %s10455_s19 = scalar_lea.hbm %s16479_s6, %s11788_s14  ;;  %s10427_s26 = scalar_lea.sflag [#allocation7], %s15981_s18 }
 0x5fa   : > { %v10272_v23 = vrot.slane %v10271_v41, 4  ;;  %v10228_v17 = vmax.f32 %v10226_v44, %v10227_v45  ;;  %v10242_v55 = vmax.f32 %v10240_v4, %v10241_v46  ;;  %v10248_v6 = vrot.slane %v10247_v42, 1  ;;  %s10458_s20 = sshll.u32 %s10455_s19, 4  ;;  %s11923_s12 = scalar_lea.hbm %s16479_s6, 128  ;;  %s10459_s20 = int_to_ptr.hbm [resolvable:$true] %s10458_s20 }
 0x5fb   : > { %v10259_v49 = vmax.f32 %v10257_v43, %v10258_v59  ;;  %v10253_v24 = vrot.slane %v10252_v15, 2  ;;  %v10266_v29 = vmax.f32 %v10264_v10, %v10265_v58  ;;  %s11917_s28 = sshra.s32 %s10459_s20, 4  ;;  %s11918_s28 = int_to_ptr.hbm [resolvable:$true] %s11917_s28 }
 0x5fc   : > { %v10273_v9 = vmax.f32 %v10271_v41, %v10272_v23  ;;  %v10398_v48 = vsel %vm10342_vm4, %v10235_v33, %v10228_v17  ;;  %v10249_v37 = vmax.f32 %v10247_v42, %v10248_v6  ;;  %s11919_s9 = scalar_lea.hbm %s11918_s28, 64  ;;  %p11924_p9 = scmp.lt.s32.totalorder %s11918_s28, %s16479_s6 }
 0x5fd   : > { %v10260_v60 = vrot.slane %v10259_v49, 2  ;;  %v10254_v51 = vmax.f32 %v10252_v15, %v10253_v24  ;;  %v10267_v21 = vrot.slane %v10266_v29, 2  ;;  %v10399_v11 = vsel %vm10344_vm5, %v10242_v55, %v10398_v48  ;;  %p11920_p4 = scmp.ne.s32.totalorder %s11918_s28, %s11919_s9  ;;  %p11925_p10 = scmp.lt.s32.totalorder %s11923_s12, %s11919_s9 }
 0x5fe   : > { %v10274_v40 = vrot.slane %v10273_v9, 2  ;;  %v10400_v61 = vsel %vm10346_vm6, %v10249_v37, %v10399_v11 }
 0x5ff   : > { %v10261_v53 = vmax.f32 %v10259_v49, %v10260_v60  ;;  %v10255_v31 = vrot.slane %v10254_v51, 1  ;;  %v10268_v36 = vmax.f32 %v10266_v29, %v10267_v21  ;;  %p11921_p7 = pnand %p11920_p4, %p12047_p5  ;;  %p11926_p11 = por %p11925_p10, %p11924_p9 }
 0x600   : > { %v10275_v52 = vmax.f32 %v10273_v9, %v10274_v40 }
 0x601   : > { %v10262_v35 = vrot.slane %v10261_v53, 1  ;;  %v10256_v54 = vmax.f32 %v10254_v51, %v10255_v31  ;;  %v10269_v39 = vrot.slane %v10268_v36, 1  ;;  %p11922_p8 = pneg %p11921_p7 }
 0x602   : > { %v10276_v19 = vrot.slane %v10275_v52, 1 }
 0x603   : > { %v10263_v20 = vmax.f32 %v10261_v53, %v10262_v35  ;;  %v10270_v7 = vmax.f32 %v10268_v36, %v10269_v39  ;;  %v10401_v0 = vsel %vm10348_vm8, %v10256_v54, %v10400_v61  ;;  %p11927_p12 = pnand %p11926_p11, %p11922_p8 }
 0x604   : > { %v10277_v32 = vmax.f32 %v10275_v52, %v10276_v19 }
 0x605   : > { %v10402_v18 = vsel %vm10350_vm10, %v10263_v20, %v10401_v0 }
 0x606   : > { %v10403_v28 = vsel %vm10352_vm12, %v10270_v7, %v10402_v18 }
 0x607   : > { %v10404_v38 = vsel %vm10354_vm13, %v10277_v32, %v10403_v28 }
 0x608   : > { %10420 = vst [vmem:[%s16069_s29 + $0x38] sm:$0xff] %v10404_v38 }
 0x609   : > { %11930 = shalt.err (!%p11927_p12)
}
 0x60a   : > { %11792 = dma.vmem_to_hbm [thread:$0]  (%p12047_p5), %s10457_s25, 1024, %s10459_s20, %s10427_s26, %s11972_s17, %s11972_s17, %s11973_s13  }
 0x60b PF: > { %p11802_p13 = scmp.ge.s32.totalorder %s11969_s24, 2  ;;  %s10473_s18 = sand.u32 1, %s11957_s21  }
 0x60c   : > { %s10474_s29 = scalar_lea.sflag [#allocation5], %s10473_s18 }
 0x60d   : > { %p11796_p0 = pnand %p11802_p13, %p12051_p6 }
 0x60f   : > { %p11797_p1 = pneg %p11796_p0 }
 0x611   : > { %11948 = dma.done.wait (%p11797_p1), %s10474_s29, 4096  }
 0x612   : > { %11950 = vsyncadd (%p11797_p1), %s10474_s29, 4294963200  ;;  %s10484_s16 = scalar_lea.sflag [#allocation7], %s10473_s18 }
 0x613   : > { %11952 = dma.done.wait (%p11797_p1), %s10484_s16, 1024  }
 0x614   : > { %11954 = vsyncadd (%p11797_p1), %s10484_s16, 4294966272  ;;  %p20_p5 = scmp.ge.s32.totalorder %s12034_s27, 4   ;;  %s16767_s21 = smov %s11961_s22 }
 0x615   : > { %s16768_s22 = smov %s11965_s23  ;;  %s16769_s23 = smov %s12045_s30 }
 0x616   : > { %s16770_s24 = smov %s12034_s27  ;;  %22 = sbr.rel (!%p20_p5) target bundleno = 5 (0x5), region = 114 }
 0x61b   :  { %10490 = vsyncpa [#allocation5], 1 }
 0x61c   :  { %10492 = vsyncpa [#allocation5 + $0x1], 1 }
 0x61d   :  { %10493 = vsyncpa [#allocation7], 1 }
 0x61e   :  { %10495 = vsyncpa [#allocation7 + $0x1], 1 }

</bundles_post_ra>
